<compile_context>
chip_gen: v5e
topology: v5e:2x2
jax: 0.10.0
libtpu: 0.0.40
codegen_flags: <defaults>
</compile_context>

<pallas_src>
import functools

import jax
import jax.numpy as jnp
from jax.experimental import pallas as pl
from jax.experimental.pallas import tpu as pltpu


C0, C1, C2, C3, C4 = 256, 256, 128, 64, 13
BN_EPS = 1e-5
NEG_SLOPE = 0.2


def _leaky_relu(x):
    return jnp.where(x > 0, x, NEG_SLOPE * x)


def _round_up(n, m):
    return ((n + m - 1) // m) * m


def _head_kernel(x_ref, w1_ref, b1_ref, w2_ref, b2_ref, w3_ref, b3_ref, w4_ref, o_ref):
    # x_ref: (C0, tn) tile -- channels on sublanes, points on lanes (native NCW).
    h = x_ref[...]
    if h.dtype != jnp.bfloat16:          # features should already arrive in bf16
        h = h.astype(jnp.bfloat16)

    # conv1 (1x1) with bn0 + bn1 folded in; bf16 bias + leaky-relu epilogue.
    h = jnp.dot(w1_ref[...], h, preferred_element_type=jnp.float32).astype(jnp.bfloat16)
    h = _leaky_relu(h + b1_ref[...])

    # dp1: eval-mode dropout == identity
    # conv2 (1x1) with bn2 folded in
    h = jnp.dot(w2_ref[...], h, preferred_element_type=jnp.float32).astype(jnp.bfloat16)
    h = _leaky_relu(h + b2_ref[...])

    # dp2: eval-mode dropout == identity
    # conv3 (1x1) with bn3 folded in
    h = jnp.dot(w3_ref[...], h, preferred_element_type=jnp.float32).astype(jnp.bfloat16)
    h = _leaky_relu(h + b3_ref[...])

    # conv4 (1x1), bias=False, no activation
    o_ref[...] = jnp.dot(w4_ref[...], h, preferred_element_type=jnp.float32).astype(o_ref.dtype)


def _bn_scale_shift(gamma, beta, mean, var):
    s = gamma / jnp.sqrt(var + BN_EPS)
    return s, beta - mean * s


def _fold_params(params):
    """Fold every inference-mode BatchNorm into the adjacent 1x1 conv.

    All Conv1d layers in the source are bias=False, so there are no conv biases
    to fold. Returns bf16 weight matrices (Cout, Cin) and bf16 bias columns
    (Cout, 1).
    """
    s0, b0 = _bn_scale_shift(*params["bn0"])
    s1, t1 = _bn_scale_shift(*params["bn1"])
    s2, t2 = _bn_scale_shift(*params["bn2"])
    s3, t3 = _bn_scale_shift(*params["bn3"])
    w1 = params["w1"][:, :, 0]   # (C1, C0)
    w2 = params["w2"][:, :, 0]   # (C2, C1)
    w3 = params["w3"][:, :, 0]   # (C3, C2)
    w4 = params["w4"][:, :, 0]   # (C4, C3)

    # y1 = leaky(s1*(W1 @ (s0*x + b0)) + t1) = leaky(W1f @ x + b1f)
    w1f = (s1[:, None] * w1) * s0[None, :]
    b1f = s1 * (w1 @ b0) + t1
    w2f = s2[:, None] * w2
    w3f = s3[:, None] * w3

    bf = lambda w: w.astype(jnp.bfloat16)
    col = lambda b: b.astype(jnp.bfloat16)[:, None]
    return bf(w1f), col(b1f), bf(w2f), col(t2), bf(w3f), col(t3), bf(w4)


@functools.partial(jax.jit, static_argnames=("tn", "out_dtype"))
def semseg_classifier_head(x_bcn, params, *, tn=2048, out_dtype=jnp.float32):
    """x_bcn: (B, 256, N) encoder features (NCW), ideally bf16. Returns (B, 13, N)."""
    B, C, N = x_bcn.shape
    assert C == C0

    # Point tile: multiple of 256 (MXU width), never larger than the rounded-up
    # point count. The ragged edge block (if N % tn != 0) is masked by Pallas,
    # so there is no wrapper-side pad or output slice (no extra HBM passes).
    tn = max(256, min(tn, _round_up(N, 256)))

    w1, b1, w2, b2, w3, b3, w4 = _fold_params(params)

    # Grid-invariant operands: constant block index -> fetched once, not re-DMA'd.
    const2d = lambda r, c: pl.BlockSpec((r, c), lambda b, j: (0, 0))

    out = pl.pallas_call(
        _head_kernel,
        out_shape=jax.ShapeDtypeStruct((B, C4, N), out_dtype),
        grid_spec=pltpu.PrefetchScalarGridSpec(
            num_scalar_prefetch=0,
            grid=(B, pl.cdiv(N, tn)),
            in_specs=[
                pl.BlockSpec((None, C0, tn), lambda b, j: (b, 0, j)),  # x tile
                const2d(C1, C0), const2d(C1, 1),   # conv1 (+bn0/bn1 folded)
                const2d(C2, C1), const2d(C2, 1),   # conv2 (+bn2 folded)
                const2d(C3, C2), const2d(C3, 1),   # conv3 (+bn3 folded)
                const2d(C4, C3),                   # conv4
            ],
            out_specs=pl.BlockSpec((None, C4, tn), lambda b, j: (b, 0, j)),
        ),
        compiler_params=pltpu.CompilerParams(
            dimension_semantics=("parallel", "parallel"),
            vmem_limit_bytes=32 * 1024 * 1024,
        ),
    )(x_bcn, w1, b1, w2, b2, w3, b3, w4)

    return out


def _make_params(key):
    ks = jax.random.split(key, 8)

    def bn(k, c):
        k1, k2, k3 = jax.random.split(k, 3)
        gamma = 1.0 + 0.1 * jax.random.normal(k1, (c,), jnp.float32)
        beta = 0.1 * jax.random.normal(k2, (c,), jnp.float32)
        mean = 0.05 * jax.random.normal(k3, (c,), jnp.float32)
        var = jnp.full((c,), 1.0, jnp.float32)
        return (gamma, beta, mean, var)

    def conv_w(k, cout, cin):
        # kaiming-ish deterministic init; shape matches PyTorch Conv1d weight
        return jax.random.normal(k, (cout, cin, 1), jnp.float32) * (2.0 / cin) ** 0.5

    return {
        "bn0": bn(ks[0], C0),
        "w1": conv_w(ks[1], C1, C0),
        "bn1": bn(ks[2], C1),
        "w2": conv_w(ks[3], C2, C1),
        "bn2": bn(ks[4], C2),
        "w3": conv_w(ks[5], C3, C2),
        "bn3": bn(ks[6], C3),
        "w4": conv_w(ks[7], C4, C3),
    }


def _reference_f32(x_bcn, params):
    """Plain-JAX f32 reference of the head (PyTorch inference semantics)."""
    def bn_apply(x, p):  # x: (B, C, N)
        g, b, m, v = p
        s = g / jnp.sqrt(v + BN_EPS)
        return x * s[None, :, None] + (b - m * s)[None, :, None]

    def conv1x1(x, w):  # w: (Cout, Cin, 1)
        return jnp.einsum("oc,bcn->bon", w[:, :, 0], x)

    h = bn_apply(x_bcn, params["bn0"])
    h = _leaky_relu(bn_apply(conv1x1(h, params["w1"]), params["bn1"]))
    h = _leaky_relu(bn_apply(conv1x1(h, params["w2"]), params["bn2"]))
    h = _leaky_relu(bn_apply(conv1x1(h, params["w3"]), params["bn3"]))
    return conv1x1(h, params["w4"])


def _reference_bf16(x_bcn, params):
    """Plain-JAX mirror of the exact kernel math (BN folding, bf16 operands,
    f32 accumulation, bf16 bias + LeakyReLU epilogue)."""
    w1, b1, w2, b2, w3, b3, w4 = _fold_params(params)
    mm = lambda w, h: jnp.einsum(
        "oc,bcn->bon", w, h.astype(jnp.bfloat16), preferred_element_type=jnp.float32
    )
    h = mm(w1, x_bcn)
    h = _leaky_relu(h.astype(jnp.bfloat16) + b1[None])
    h = mm(w2, h)
    h = _leaky_relu(h.astype(jnp.bfloat16) + b2[None])
    h = mm(w3, h)
    h = _leaky_relu(h.astype(jnp.bfloat16) + b3[None])
    return mm(w4, h)


if __name__ == "__main__":
    key = jax.random.PRNGKey(0)
    k_x, k_p = jax.random.split(key)

    # B point clouds of N points; encoder feature dim is fixed at 256 by the
    # module. N is deliberately NOT a multiple of the tile to exercise the
    # pad-free edge-block masking. Encoder output is consumed in bf16.
    B, N = 2, 1000
    x = jax.random.normal(k_x, (B, C0, N), jnp.float32).astype(jnp.bfloat16)
    params = _make_params(k_p)

    out = semseg_classifier_head(x, params)
    out = jax.block_until_ready(out)
    assert out.shape == (B, C4, N), out.shape
    assert out.dtype == jnp.float32

    # Tight check against a plain-JAX mirror of the exact kernel math.
    ref16 = _reference_bf16(x, params)
    assert jnp.allclose(out, ref16, atol=2e-2, rtol=2e-2), float(
        jnp.max(jnp.abs(out - ref16))
    )

    # Loose check against the full-f32 PyTorch-semantics reference (bf16
    # operands cost ~1% relative error; f32 accumulation bounds it).
    ref32 = _reference_f32(x.astype(jnp.float32), params)
    scale = float(jnp.max(jnp.abs(ref32)))
    err = float(jnp.max(jnp.abs(out - ref32)))
    assert err <= 0.05 * scale + 0.05, (err, scale)

    print("KERNEL_OK")
</pallas_src>

<mosaic_0001>
module attributes {stable_mosaic.version = 11 : i64} {
  func.func @_head_kernel(%arg0: i32, %arg1: i32, %arg2: memref<1x256x1024xbf16, #tpu.memory_space<vmem>>, %arg3: memref<256x256xbf16, #tpu.memory_space<vmem>>, %arg4: memref<256x1xbf16, #tpu.memory_space<vmem>>, %arg5: memref<128x256xbf16, #tpu.memory_space<vmem>>, %arg6: memref<128x1xbf16, #tpu.memory_space<vmem>>, %arg7: memref<64x128xbf16, #tpu.memory_space<vmem>>, %arg8: memref<64x1xbf16, #tpu.memory_space<vmem>>, %arg9: memref<13x64xbf16, #tpu.memory_space<vmem>>, %arg10: memref<1x13x1024xf32, #tpu.memory_space<vmem>>) attributes {dimension_semantics = [#tpu.dimension_semantics<parallel>, #tpu.dimension_semantics<parallel>], iteration_bounds = array<i64: 2, 1>, scalar_prefetch = 0 : i64, scratch_operands = 0 : i64, tpu.core_type = #tpu.core_type<tc>, window_params = [{transform_indices = @transform_0, window_bounds = array<i64: 1, 256, 1024>}, {pipeline_mode = #tpu.pipeline_mode<synchronous>, transform_indices = @transform_1, window_bounds = array<i64: 256, 256>}, {pipeline_mode = #tpu.pipeline_mode<synchronous>, transform_indices = @transform_2, window_bounds = array<i64: 256, 1>}, {pipeline_mode = #tpu.pipeline_mode<synchronous>, transform_indices = @transform_3, window_bounds = array<i64: 128, 256>}, {pipeline_mode = #tpu.pipeline_mode<synchronous>, transform_indices = @transform_4, window_bounds = array<i64: 128, 1>}, {pipeline_mode = #tpu.pipeline_mode<synchronous>, transform_indices = @transform_5, window_bounds = array<i64: 64, 128>}, {pipeline_mode = #tpu.pipeline_mode<synchronous>, transform_indices = @transform_6, window_bounds = array<i64: 64, 1>}, {pipeline_mode = #tpu.pipeline_mode<synchronous>, transform_indices = @transform_7, window_bounds = array<i64: 13, 64>}, {transform_indices = @transform_8, window_bounds = array<i64: 1, 13, 1024>}]} {
    %c0 = arith.constant 0 : index
    %c0_0 = arith.constant 0 : index
    %c0_1 = arith.constant 0 : index
    %0 = vector.load %arg2[%c0, %c0_0, %c0_1] : memref<1x256x1024xbf16, #tpu.memory_space<vmem>>, vector<1x256x1024xbf16>
    %1 = vector.shape_cast %0 : vector<1x256x1024xbf16> to vector<256x1024xbf16>
    %c0_2 = arith.constant 0 : index
    %c0_3 = arith.constant 0 : index
    %2 = vector.load %arg3[%c0_2, %c0_3] : memref<256x256xbf16, #tpu.memory_space<vmem>>, vector<256x256xbf16>
    %cst = arith.constant dense<0.000000e+00> : vector<256x1024xf32>
    %3 = tpu.matmul %2, %1, %cst {dimension_numbers = #tpu.dot_dimension_numbers<[1], [0], [0], [1], [0, 0, 1, 1], [], []>} : vector<256x256xbf16>, vector<256x1024xbf16>, vector<256x1024xf32> -> vector<256x1024xf32>
    %4 = arith.truncf %3 : vector<256x1024xf32> to vector<256x1024xbf16>
    %c0_4 = arith.constant 0 : index
    %c0_5 = arith.constant 0 : index
    %5 = vector.load %arg4[%c0_4, %c0_5] : memref<256x1xbf16, #tpu.memory_space<vmem>>, vector<256x1xbf16>
    %6 = vector.broadcast %5 : vector<256x1xbf16> to vector<256x1024xbf16>
    %7 = arith.addf %4, %6 : vector<256x1024xbf16>
    %cst_6 = arith.constant 0.000000e+00 : bf16
    %8 = vector.broadcast %cst_6 : bf16 to vector<256x1024xbf16>
    %9 = arith.cmpf ogt, %7, %8 : vector<256x1024xbf16>
    %cst_7 = arith.constant 2.001950e-01 : bf16
    %10 = vector.broadcast %cst_7 : bf16 to vector<256x1024xbf16>
    %11 = arith.mulf %10, %7 : vector<256x1024xbf16>
    %12 = arith.select %9, %7, %11 : vector<256x1024xi1>, vector<256x1024xbf16>
    %c0_8 = arith.constant 0 : index
    %c0_9 = arith.constant 0 : index
    %13 = vector.load %arg5[%c0_8, %c0_9] : memref<128x256xbf16, #tpu.memory_space<vmem>>, vector<128x256xbf16>
    %cst_10 = arith.constant dense<0.000000e+00> : vector<128x1024xf32>
    %14 = tpu.matmul %13, %12, %cst_10 {dimension_numbers = #tpu.dot_dimension_numbers<[1], [0], [0], [1], [0, 0, 1, 1], [], []>} : vector<128x256xbf16>, vector<256x1024xbf16>, vector<128x1024xf32> -> vector<128x1024xf32>
    %15 = arith.truncf %14 : vector<128x1024xf32> to vector<128x1024xbf16>
    %c0_11 = arith.constant 0 : index
    %c0_12 = arith.constant 0 : index
    %16 = vector.load %arg6[%c0_11, %c0_12] : memref<128x1xbf16, #tpu.memory_space<vmem>>, vector<128x1xbf16>
    %17 = vector.broadcast %16 : vector<128x1xbf16> to vector<128x1024xbf16>
    %18 = arith.addf %15, %17 : vector<128x1024xbf16>
    %cst_13 = arith.constant 0.000000e+00 : bf16
    %19 = vector.broadcast %cst_13 : bf16 to vector<128x1024xbf16>
    %20 = arith.cmpf ogt, %18, %19 : vector<128x1024xbf16>
    %cst_14 = arith.constant 2.001950e-01 : bf16
    %21 = vector.broadcast %cst_14 : bf16 to vector<128x1024xbf16>
    %22 = arith.mulf %21, %18 : vector<128x1024xbf16>
    %23 = arith.select %20, %18, %22 : vector<128x1024xi1>, vector<128x1024xbf16>
    %c0_15 = arith.constant 0 : index
    %c0_16 = arith.constant 0 : index
    %24 = vector.load %arg7[%c0_15, %c0_16] : memref<64x128xbf16, #tpu.memory_space<vmem>>, vector<64x128xbf16>
    %cst_17 = arith.constant dense<0.000000e+00> : vector<64x1024xf32>
    %25 = tpu.matmul %24, %23, %cst_17 {dimension_numbers = #tpu.dot_dimension_numbers<[1], [0], [0], [1], [0, 0, 1, 1], [], []>} : vector<64x128xbf16>, vector<128x1024xbf16>, vector<64x1024xf32> -> vector<64x1024xf32>
    %26 = arith.truncf %25 : vector<64x1024xf32> to vector<64x1024xbf16>
    %c0_18 = arith.constant 0 : index
    %c0_19 = arith.constant 0 : index
    %27 = vector.load %arg8[%c0_18, %c0_19] : memref<64x1xbf16, #tpu.memory_space<vmem>>, vector<64x1xbf16>
    %28 = vector.broadcast %27 : vector<64x1xbf16> to vector<64x1024xbf16>
    %29 = arith.addf %26, %28 : vector<64x1024xbf16>
    %cst_20 = arith.constant 0.000000e+00 : bf16
    %30 = vector.broadcast %cst_20 : bf16 to vector<64x1024xbf16>
    %31 = arith.cmpf ogt, %29, %30 : vector<64x1024xbf16>
    %cst_21 = arith.constant 2.001950e-01 : bf16
    %32 = vector.broadcast %cst_21 : bf16 to vector<64x1024xbf16>
    %33 = arith.mulf %32, %29 : vector<64x1024xbf16>
    %34 = arith.select %31, %29, %33 : vector<64x1024xi1>, vector<64x1024xbf16>
    %c0_22 = arith.constant 0 : index
    %c0_23 = arith.constant 0 : index
    %35 = vector.load %arg9[%c0_22, %c0_23] : memref<13x64xbf16, #tpu.memory_space<vmem>>, vector<13x64xbf16>
    %cst_24 = arith.constant dense<0.000000e+00> : vector<13x1024xf32>
    %36 = tpu.matmul %35, %34, %cst_24 {dimension_numbers = #tpu.dot_dimension_numbers<[1], [0], [0], [1], [0, 0, 1, 1], [], []>} : vector<13x64xbf16>, vector<64x1024xbf16>, vector<13x1024xf32> -> vector<13x1024xf32>
    %c0_25 = arith.constant 0 : index
    %c0_26 = arith.constant 0 : index
    %c0_27 = arith.constant 0 : index
    %37 = vector.load %arg10[%c0_25, %c0_26, %c0_27] : memref<1x13x1024xf32, #tpu.memory_space<vmem>>, vector<1x13x1024xf32>
    %38 = vector.shape_cast %37 : vector<1x13x1024xf32> to vector<13x1024xf32>
    %39 = vector.shape_cast %36 : vector<13x1024xf32> to vector<1x13x1024xf32>
    tpu.vector_store %arg10[%c0_25, %c0_26, %c0_27], %39 {strides = array<i32>} : memref<1x13x1024xf32, #tpu.memory_space<vmem>>, vector<1x13x1024xf32>,
    return
  }
  func.func @transform_0(%arg0: i32, %arg1: i32) -> (i32, i32, i32) {
    %c0_i32 = arith.constant 0 : i32
    %c0_i32_0 = arith.constant 0 : i32
    return %arg0, %c0_i32, %arg1 : i32, i32, i32
  }
  func.func @transform_1(%arg0: i32, %arg1: i32) -> (i32, i32) {
    %c0_i32 = arith.constant 0 : i32
    %c0_i32_0 = arith.constant 0 : i32
    %c0_i32_1 = arith.constant 0 : i32
    return %c0_i32, %c0_i32_0 : i32, i32
  }
  func.func @transform_2(%arg0: i32, %arg1: i32) -> (i32, i32) {
    %c0_i32 = arith.constant 0 : i32
    %c0_i32_0 = arith.constant 0 : i32
    %c0_i32_1 = arith.constant 0 : i32
    return %c0_i32, %c0_i32_0 : i32, i32
  }
  func.func @transform_3(%arg0: i32, %arg1: i32) -> (i32, i32) {
    %c0_i32 = arith.constant 0 : i32
    %c0_i32_0 = arith.constant 0 : i32
    %c0_i32_1 = arith.constant 0 : i32
    return %c0_i32, %c0_i32_0 : i32, i32
  }
  func.func @transform_4(%arg0: i32, %arg1: i32) -> (i32, i32) {
    %c0_i32 = arith.constant 0 : i32
    %c0_i32_0 = arith.constant 0 : i32
    %c0_i32_1 = arith.constant 0 : i32
    return %c0_i32, %c0_i32_0 : i32, i32
  }
  func.func @transform_5(%arg0: i32, %arg1: i32) -> (i32, i32) {
    %c0_i32 = arith.constant 0 : i32
    %c0_i32_0 = arith.constant 0 : i32
    %c0_i32_1 = arith.constant 0 : i32
    return %c0_i32, %c0_i32_0 : i32, i32
  }
  func.func @transform_6(%arg0: i32, %arg1: i32) -> (i32, i32) {
    %c0_i32 = arith.constant 0 : i32
    %c0_i32_0 = arith.constant 0 : i32
    %c0_i32_1 = arith.constant 0 : i32
    return %c0_i32, %c0_i32_0 : i32, i32
  }
  func.func @transform_7(%arg0: i32, %arg1: i32) -> (i32, i32) {
    %c0_i32 = arith.constant 0 : i32
    %c0_i32_0 = arith.constant 0 : i32
    %c0_i32_1 = arith.constant 0 : i32
    return %c0_i32, %c0_i32_0 : i32, i32
  }
  func.func @transform_8(%arg0: i32, %arg1: i32) -> (i32, i32, i32) {
    %c0_i32 = arith.constant 0 : i32
    %c0_i32_0 = arith.constant 0 : i32
    return %arg0, %c0_i32, %arg1 : i32, i32, i32
  }
}

</mosaic_0001>

<bundles_post_ra>
// kernel: semseg_classifier_head.1
= control target key start
LH: loop header
LB: loop body
LE: loop exit
PB: predicated region body
PF: predicated region fallthrough
CT: control target
= control target key end

     0   :  { %s10226_s27 = smov 0   ;;  %s10228_s28 = smov 0   ;;  %s16037_s0 = inlined_call_operand.vmem [shape: bf16[2,256,1000], index: 0, kind: input, shape index: {}]   ;;  %s16038_s1 = inlined_call_operand.vmem [shape: bf16[256,256], index: 1, kind: input, shape index: {}]   ;;  %s16039_s2 = inlined_call_operand.vmem [shape: bf16[256,1], index: 2, kind: input, shape index: {}]   ;;  %s16040_s3 = inlined_call_operand.vmem [shape: bf16[128,256], index: 3, kind: input, shape index: {}]   ;;  %s16041_s4 = inlined_call_operand.vmem [shape: bf16[128,1], index: 4, kind: input, shape index: {}]   ;;  %s16042_s5 = inlined_call_operand.vmem [shape: bf16[64,128], index: 5, kind: input, shape index: {}]   ;;  %s16043_s6 = inlined_call_operand.vmem [shape: bf16[64,1], index: 6, kind: input, shape index: {}]   ;;  %s16044_s7 = inlined_call_operand.vmem [shape: bf16[13,64], index: 7, kind: input, shape index: {}]   ;;  %s16045_s8 = inlined_call_operand.vmem [shape: f32[2,13,1000], index: 8, kind: output, shape index: {}]  }
   0x1   :  { %s10230_s29 = smov 0  }
   0x2 LB: > { %s30_s30 = sadd.s32 1, %s10173_s28  ;;  %p9200_p0 = scmp.ge.s32.totalorder %s10177_s29, 1  ;;  %s10177_s29 = sphi %s10230_s29, %s18_s29   ;;  %s10173_s28 = sphi %s10228_s28, %s17542_s28   ;;  %s10169_s27 = sphi %s10226_s27, %s17541_s27  }
   0x3   : > { %p32_p1 = scmp.ge.s32.totalorder %s30_s30, 2  ;;  %p283_p2 = scmp.lt.s32.totalorder %s10177_s29, 3 }
   0x5   : > { %s17544_s30 = smov (%p32_p1, %s30_s30), 0  ;;  %p284_p3 = pnand %p9200_p0, %p283_p2 }
   0x7   : > { %287 = sbr.rel (%p284_p3) target bundleno = 2132 (0x854), region = 52 }
   0xc   : > { %v2888_v0 = vld [vmem:[%s16039_s2 + $0x78] sm:$0xf]  ;;  %p326_p4 = scmp.lt.s32.totalorder %s10169_s27, 1  ;;  %v10179_v1 = vmov 0   ;;  %v2870_v3 = vld [vmem:[%s16039_s2 + $0x30] sm:$0xf] }
   0xd   : > { %10149 = vset.pattern.permute.xlu1 %v10179_v1  ;;  %10148 = vset.pattern.permute.xlu0 %v10179_v1  ;;  %v2872_v2 = vld [vmem:[%s16039_s2 + $0x38] sm:$0xf]  ;;  %v2889_v7 = vld [vmem:[%s16039_s2 + $0x7c] sm:$0xf]  ;;  %v2871_v13 = vld [vmem:[%s16039_s2 + $0x34] sm:$0xf] }
   0xe   : > { %3162 = vperm.xlu1 %10149, %v2888_v0   ;;  %s17546_s27 = smov (!%p326_p4, %s10169_s27), 1  ;;  %3018 = vperm.xlu0 %10148, %v2872_v2   ;;  %v2873_v12 = vld [vmem:[%s16039_s2 + $0x3c] sm:$0xf]  ;;  %v2887_v49 = vld [vmem:[%s16039_s2 + $0x74] sm:$0xf] }
   0xf   : > { %10150 = vset.pattern.permute.xlu2 %v10179_v1  ;;  %s9939_s15 = sshll.u32 %s17546_s27, 10  ;;  %v2886_v53 = vld [vmem:[%s16039_s2 + $0x70] sm:$0xf]  ;;  %v2868_v54 = vld [vmem:[%s16039_s2 + $0x28] sm:$0xf]  ;;  %s9940_s23 = sshll.u32 %s17546_s27, 7 }
  0x10   : > { %3000 = vperm.xlu2 %10150, %v2870_v3   ;;  %s10259_s18 = scalar_lea.vmem %s16037_s0, %s9939_s15  ;;  %s16010_s26 = scalar_lea.vmem %s16045_s8, %s9940_s23 }
  0x11   : > { %v9559_v4 = vld [vmem:[%s10259_s18 + $0x1c0] sm:$0xf]  ;;  %v9997_v10 = vld [vmem:[%s10259_s18 + $0x1c4] sm:$0xf] }
  0x12   : > { %v10001_v5 = vld [vmem:[%s10259_s18 + $0x1dc] sm:$0xf0]  ;;  %v9561_v11 = vld [vmem:[%s10259_s18 + $0x1e0] sm:$0xf0] }
  0x13   : > { %v9815_v6 = vld [vmem:[%s10259_s18 + $0x3c0] sm:$0xf]  ;;  %v9560_v8 = vor.u32 %v10001_v5, %v9559_v4  ;;  %v9564_v15 = vor.u32 %v9997_v10, %v9561_v11  ;;  %v10061_v16 = vld [vmem:[%s10259_s18 + $0x3c4] sm:$0xf] }
  0x14   : > { %v10065_v9 = vld [vmem:[%s10259_s18 + $0x3dc] sm:$0xf0]  ;;  %v9817_v17 = vld [vmem:[%s10259_s18 + $0x3e0] sm:$0xf0] }
  0x15   : > { %v9816_v14 = vor.u32 %v10065_v9, %v9815_v6  ;;  %v9527_v18 = vld [vmem:[%s10259_s18 + $0x180] sm:$0xf]  ;;  %1306 = vmatpush.bf16.msra.mxu0 %v9560_v8  ;;  %v9820_v19 = vor.u32 %v10061_v16, %v9817_v17  ;;  %1484 = vmatpush.bf16.msra.mxu2 %v9564_v15  ;;  %v9989_v25 = vld [vmem:[%s10259_s18 + $0x184] sm:$0xf]  ;;  %v2869_v16 = vld [vmem:[%s16039_s2 + $0x2c] sm:$0xf] }
  0x16   : > { %v9993_v20 = vld [vmem:[%s10259_s18 + $0x19c] sm:$0xf0]  ;;  %v9529_v26 = vld [vmem:[%s10259_s18 + $0x1a0] sm:$0xf0]  ;;  %3171 = vperm.xlu1 %10149, %v2889_v7   ;;  %3027 = vperm.xlu0 %10148, %v2873_v12   ;;  %v2884_v12 = vld [vmem:[%s16039_s2 + $0x68] sm:$0xf] }
  0x17   : > { %v9783_v21 = vld [vmem:[%s10259_s18 + $0x380] sm:$0xf]  ;;  %1395 = vmatpush.bf16.msra.mxu1 %v9816_v14  ;;  %v9528_v23 = vor.u32 %v9993_v20, %v9527_v18  ;;  %v10053_v27 = vld [vmem:[%s10259_s18 + $0x384] sm:$0xf]  ;;  %1573 = vmatpush.bf16.msra.mxu3 %v9820_v19  ;;  %v9532_v28 = vor.u32 %v9989_v25, %v9529_v26 }
  0x18   : > { %v10057_v22 = vld [vmem:[%s10259_s18 + $0x39c] sm:$0xf0]  ;;  %v9785_v29 = vld [vmem:[%s10259_s18 + $0x3a0] sm:$0xf0]  ;;  %3009 = vperm.xlu2 %10150, %v2871_v13  }
  0x19   : > { %v9784_v24 = vor.u32 %v10057_v22, %v9783_v21  ;;  %v9495_v30 = vld [vmem:[%s10259_s18 + $0x140] sm:$0xf]  ;;  %v9788_v32 = vor.u32 %v10053_v27, %v9785_v29  ;;  %v9981_v35 = vld [vmem:[%s10259_s18 + $0x144] sm:$0xf]  ;;  %1307 = vmatpush.bf16.msra.mxu0 %v9528_v23  ;;  %1485 = vmatpush.bf16.msra.mxu2 %v9532_v28  ;;  %v2885_v29 = vld [vmem:[%s16039_s2 + $0x6c] sm:$0xf] }
  0x1a   : > { %v9985_v31 = vld [vmem:[%s10259_s18 + $0x15c] sm:$0xf0]  ;;  %v9497_v37 = vld [vmem:[%s10259_s18 + $0x160] sm:$0xf0] }
  0x1b   : > { %v9751_v33 = vld [vmem:[%s10259_s18 + $0x340] sm:$0xf]  ;;  %v9496_v36 = vor.u32 %v9985_v31, %v9495_v30  ;;  %v10045_v38 = vld [vmem:[%s10259_s18 + $0x344] sm:$0xf]  ;;  %1396 = vmatpush.bf16.msra.mxu1 %v9784_v24  ;;  %v9500_v41 = vor.u32 %v9981_v35, %v9497_v37  ;;  %1574 = vmatpush.bf16.msra.mxu3 %v9788_v32 }
  0x1c   : > { %v10049_v34 = vld [vmem:[%s10259_s18 + $0x35c] sm:$0xf0]  ;;  %v9753_v39 = vld [vmem:[%s10259_s18 + $0x360] sm:$0xf0] }
  0x1d   : > { %v9752_v40 = vor.u32 %v10049_v34, %v9751_v33  ;;  %v9463_v42 = vld [vmem:[%s10259_s18 + $0x100] sm:$0xf]  ;;  %v9756_v45 = vor.u32 %v10045_v38, %v9753_v39  ;;  %v9973_v47 = vld [vmem:[%s10259_s18 + $0x104] sm:$0xf]  ;;  %1308 = vmatpush.bf16.msra.mxu0 %v9496_v36  ;;  %1486 = vmatpush.bf16.msra.mxu2 %v9500_v41 }
  0x1e   : > { %v9977_v43 = vld [vmem:[%s10259_s18 + $0x11c] sm:$0xf0]  ;;  %v9465_v48 = vld [vmem:[%s10259_s18 + $0x120] sm:$0xf0]  ;;  %3153 = vperm.xlu1 %10149, %v2887_v49   ;;  %3144 = vperm.xlu0 %10148, %v2886_v53   ;;  %v9209_v49 = vld [vmem:[%s16038_s1 + $0x8] sm:$0xf0] }
  0x1f   : > { %v9719_v44 = vld [vmem:[%s10259_s18 + $0x300] sm:$0xf]  ;;  %v10037_v50 = vld [vmem:[%s10259_s18 + $0x304] sm:$0xf]  ;;  %v9464_v52 = vor.u32 %v9977_v43, %v9463_v42  ;;  %1397 = vmatpush.bf16.msra.mxu1 %v9752_v40  ;;  %v9468_v56 = vor.u32 %v9973_v47, %v9465_v48  ;;  %1575 = vmatpush.bf16.msra.mxu3 %v9756_v45 }
  0x20   : > { %v10041_v46 = vld [vmem:[%s10259_s18 + $0x31c] sm:$0xf0]  ;;  %v9721_v51 = vld [vmem:[%s10259_s18 + $0x320] sm:$0xf0]  ;;  %2982 = vperm.xlu2 %10150, %v2868_v54   ;;  %v2864_v54 = vld [vmem:[%s16039_s2 + $0x18] sm:$0xf] }
  0x21   : > { %v9720_v55 = vor.u32 %v10041_v46, %v9719_v44  ;;  %v9431_v57 = vld [vmem:[%s10259_s18 + $0xc0] sm:$0xf]  ;;  %v9724_v60 = vor.u32 %v10037_v50, %v9721_v51  ;;  %v9965_v62 = vld [vmem:[%s10259_s18 + $0xc4] sm:$0xf]  ;;  %1309 = vmatpush.bf16.msra.mxu0 %v9464_v52  ;;  %1487 = vmatpush.bf16.msra.mxu2 %v9468_v56  ;;  %v10070_v44 = vld [vmem:[%s16038_s1 + $0x4] sm:$0xf0] }
  0x22   : > { %v9969_v58 = vld [vmem:[%s10259_s18 + $0xdc] sm:$0xf0]  ;;  %v9433_v63 = vld [vmem:[%s10259_s18 + $0xe0] sm:$0xf0]  ;;  %v9998_v56 = vld [vmem:[%s10259_s18 + $0x1cc] sm:$0xf] }
  0x23   : > { %v9687_v59 = vld [vmem:[%s10259_s18 + $0x2c0] sm:$0xf]  ;;  %v10029_v0 = vld [vmem:[%s10259_s18 + $0x2c4] sm:$0xf]  ;;  %v9432_v2 = vor.u32 %v9969_v58, %v9431_v57  ;;  %1398 = vmatpush.bf16.msra.mxu1 %v9720_v55  ;;  %v9436_v4 = vor.u32 %v9965_v62, %v9433_v63  ;;  %1576 = vmatpush.bf16.msra.mxu3 %v9724_v60  ;;  %v9569_v57 = vld [vmem:[%s10259_s18 + $0x1e8] sm:$0xf0] }
  0x24   : > { %v10033_v61 = vld [vmem:[%s10259_s18 + $0x2dc] sm:$0xf0]  ;;  %v9689_v1 = vld [vmem:[%s10259_s18 + $0x2e0] sm:$0xf0]  ;;  %v10062_v58 = vld [vmem:[%s10259_s18 + $0x3cc] sm:$0xf] }
  0x25   : > { %v9688_v3 = vor.u32 %v10033_v61, %v9687_v59  ;;  %v9399_v5 = vld [vmem:[%s10259_s18 + $0x80] sm:$0xf]  ;;  %v9692_v8 = vor.u32 %v10029_v0, %v9689_v1  ;;  %v9957_v10 = vld [vmem:[%s10259_s18 + $0x84] sm:$0xf]  ;;  %1310 = vmatpush.bf16.msra.mxu0 %v9432_v2  ;;  %1488 = vmatpush.bf16.msra.mxu2 %v9436_v4  ;;  %v9572_v59 = vor.u32 %v9998_v56, %v9569_v57  ;;  %v9825_v60 = vld [vmem:[%s10259_s18 + $0x3e8] sm:$0xf0] }
  0x26   : > { %v9961_v6 = vld [vmem:[%s10259_s18 + $0x9c] sm:$0xf0]  ;;  %v9401_v11 = vld [vmem:[%s10259_s18 + $0xa0] sm:$0xf0]  ;;  %3126 = vperm.xlu1 %10149, %v2884_v12   ;;  %2991 = vperm.xlu0 %10148, %v2869_v16   ;;  %v2865_v61 = vld [vmem:[%s16039_s2 + $0x1c] sm:$0xf]  ;;  %v9828_v62 = vor.u32 %v10062_v58, %v9825_v60 }
  0x27   : > { %v9655_v7 = vld [vmem:[%s10259_s18 + $0x280] sm:$0xf]  ;;  %v10021_v13 = vld [vmem:[%s10259_s18 + $0x284] sm:$0xf]  ;;  %v9400_v15 = vor.u32 %v9961_v6, %v9399_v5  ;;  %1399 = vmatpush.bf16.msra.mxu1 %v9688_v3  ;;  %v9404_v18 = vor.u32 %v9957_v10, %v9401_v11  ;;  %1577 = vmatpush.bf16.msra.mxu3 %v9692_v8  ;;  %v9567_v63 = vld [vmem:[%s10259_s18 + $0x1c8] sm:$0xf] }
  0x28   : > { %v10025_v9 = vld [vmem:[%s10259_s18 + $0x29c] sm:$0xf0]  ;;  %v9657_v14 = vld [vmem:[%s10259_s18 + $0x2a0] sm:$0xf0]  ;;  %3135 = vperm.xlu2 %10150, %v2885_v29   ;;  %v10002_v0 = vld [vmem:[%s10259_s18 + $0x1e4] sm:$0xf0] }
  0x29   : > { %v9656_v17 = vor.u32 %v10025_v9, %v9655_v7  ;;  %v9367_v19 = vld [vmem:[%s10259_s18 + $0x40] sm:$0xf]  ;;  %v9660_v22 = vor.u32 %v10021_v13, %v9657_v14  ;;  %v9949_v24 = vld [vmem:[%s10259_s18 + $0x44] sm:$0xf]  ;;  %1311 = vmatpush.bf16.msra.mxu0 %v9400_v15  ;;  %1489 = vmatpush.bf16.msra.mxu2 %v9404_v18  ;;  %v9568_v1 = vor.u32 %v10002_v0, %v9567_v63  ;;  %v9823_v2 = vld [vmem:[%s10259_s18 + $0x3c8] sm:$0xf] }
  0x2a   : > { %v9953_v20 = vld [vmem:[%s10259_s18 + $0x5c] sm:$0xf0]  ;;  %v9369_v25 = vld [vmem:[%s10259_s18 + $0x60] sm:$0xf0]  ;;  %v10066_v3 = vld [vmem:[%s10259_s18 + $0x3e4] sm:$0xf0] }
  0x2b   : > { %v9623_v21 = vld [vmem:[%s10259_s18 + $0x240] sm:$0xf]  ;;  %v10013_v26 = vld [vmem:[%s10259_s18 + $0x244] sm:$0xf]  ;;  %v9368_v28 = vor.u32 %v9953_v20, %v9367_v19  ;;  %1400 = vmatpush.bf16.msra.mxu1 %v9656_v17  ;;  %v9372_v31 = vor.u32 %v9949_v24, %v9369_v25  ;;  %1578 = vmatpush.bf16.msra.mxu3 %v9660_v22  ;;  %v9824_v4 = vor.u32 %v10066_v3, %v9823_v2  ;;  %v2881_v5 = vld [vmem:[%s16039_s2 + $0x5c] sm:$0xf] }
  0x2c   : > { %v10017_v23 = vld [vmem:[%s10259_s18 + $0x25c] sm:$0xf0]  ;;  %v9625_v27 = vld [vmem:[%s10259_s18 + $0x260] sm:$0xf0]  ;;  %v9215_v6 = vld [vmem:[%s16038_s1 + $0x10] sm:$0xf] }
  0x2d   : > { %v9624_v30 = vor.u32 %v10017_v23, %v9623_v21  ;;  %v9335_v32 = vld [vmem:[%s10259_s18] sm:$0xf]  ;;  %v9628_v35 = vor.u32 %v10013_v26, %v9625_v27  ;;  %v9941_v37 = vld [vmem:[%s10259_s18 + $0x4] sm:$0xf]  ;;  %1312 = vmatpush.bf16.msra.mxu0 %v9368_v28  ;;  %1490 = vmatpush.bf16.msra.mxu2 %v9372_v31  ;;  %v10072_v7 = vld [vmem:[%s16038_s1 + $0x14] sm:$0xf0] }
  0x2e   : > { %v9945_v33 = vld [vmem:[%s10259_s18 + $0x1c] sm:$0xf0]  ;;  %v9337_v38 = vld [vmem:[%s10259_s18 + $0x20] sm:$0xf0]  ;;  %v2880_v8 = vld [vmem:[%s16039_s2 + $0x58] sm:$0xf]  ;;  %v10416_v11 = vor.u32 %v10072_v7, %v9215_v6 }
  0x2f   : > { %v9591_v34 = vld [vmem:[%s10259_s18 + $0x200] sm:$0xf]  ;;  %v2867_v39 = vld [vmem:[%s16039_s2 + $0x24] sm:$0xf]  ;;  %v9336_v42 = vor.u32 %v9945_v33, %v9335_v32  ;;  %1401 = vmatpush.bf16.msra.mxu1 %v9624_v30  ;;  %v9340_v47 = vor.u32 %v9941_v37, %v9337_v38  ;;  %1579 = vmatpush.bf16.msra.mxu3 %v9628_v35  ;;  %v10071_v9 = vld [vmem:[%s16038_s1 + $0x14] sm:$0xf] }
  0x30   : > { %v10009_v36 = vld [vmem:[%s10259_s18 + $0x21c] sm:$0xf0]  ;;  %v10005_v40 = vld [vmem:[%s10259_s18 + $0x204] sm:$0xf]  ;;  %2973 = vperm.xlu1 %10149, %v2867_v39   ;;  %v9217_v10 = vld [vmem:[%s16038_s1 + $0x18] sm:$0xf0] }
  0x31   : > { %v9593_v41 = vld [vmem:[%s10259_s18 + $0x220] sm:$0xf0]  ;;  %v9207_v43 = vld [vmem:[%s16038_s1] sm:$0xf]  ;;  %v9592_v46 = vor.u32 %v10009_v36, %v9591_v34  ;;  %1313 = vmatpush.bf16.msra.mxu0 %v9336_v42  ;;  %1491 = vmatpush.bf16.msra.mxu2 %v9340_v47  ;;  %v2862_v12 = vld [vmem:[%s16039_s2 + $0x10] sm:$0xf]  ;;  %v10421_v13 = vor.u32 %v10071_v9, %v9217_v10 }
  0x32   : > { %v2866_v45 = vld [vmem:[%s16039_s2 + $0x20] sm:$0xf]  ;;  %v10069_v48 = vld [vmem:[%s16038_s1 + $0x4] sm:$0xf]  ;;  %v9596_v50 = vor.u32 %v10005_v40, %v9593_v41  ;;  %v10370_v51 = vor.u32 %v10070_v44, %v9207_v43  ;;  %v2878_v14 = vld [vmem:[%s16039_s2 + $0x50] sm:$0xf] }
  0x33   : > { %2964 = vperm.xlu0 %10148, %v2866_v45   ;;  %v2882_v52 = vld [vmem:[%s16039_s2 + $0x60] sm:$0xf]  ;;  %v10375_v53 = vor.u32 %v10069_v48, %v9209_v49  ;;  %1402 = vmatpush.bf16.msra.mxu1 %v9592_v46  ;;  %v2883_v55 = vld [vmem:[%s16039_s2 + $0x64] sm:$0xf]  ;;  %v2863_v15 = vld [vmem:[%s16039_s2 + $0x14] sm:$0xf] }
  0x34   : > { %1580 = vmatpush.bf16.msra.mxu3 %v9596_v50  ;;  %3108 = vperm.xlu2 %10150, %v2882_v52   ;;  %v2879_v16 = vld [vmem:[%s16039_s2 + $0x54] sm:$0xf]  ;;  %v2861_v17 = vld [vmem:[%s16039_s2 + $0xc] sm:$0xf]  ;;  %v9223_v18 = vld [vmem:[%s16038_s1 + $0x20] sm:$0xf] }
  0x35   : > { %1314 = vmatmul.bf16.vlgmr.msra.gmra.mxu0 %v10370_v51  ;;  %1492 = vmatmul.bf16.vlgmr.msra.gmra.mxu2 %v10370_v51  ;;  %v10074_v19 = vld [vmem:[%s16038_s1 + $0x24] sm:$0xf0]  ;;  %v10073_v21 = vld [vmem:[%s16038_s1 + $0x24] sm:$0xf]  ;;  %v9225_v22 = vld [vmem:[%s16038_s1 + $0x28] sm:$0xf0] }
  0x36   : > { %1403 = vmatmul.bf16.vlgmr.msra.gmra.mxu1 %v10375_v53  ;;  %1840 = vmatpush.bf16.msrb.mxu2 %v9572_v59  ;;  %v2860_v20 = vld [vmem:[%s16039_s2 + $0x8] sm:$0xf]  ;;  %v10454_v23 = vor.u32 %v10074_v19, %v9223_v18  ;;  %v10459_v25 = vor.u32 %v10073_v21, %v9225_v22  ;;  %v2858_v26 = vld [vmem:[%s16039_s2] sm:$0xf]  ;;  %v9990_v27 = vld [vmem:[%s10259_s18 + $0x18c] sm:$0xf] }
  0x37   : > { %1581 = vmatmul.bf16.vlgmr.msra.gmra.mxu3 %v10375_v53  ;;  %1662 = vmatpush.bf16.msrb.mxu0 %v9568_v1  ;;  %v2876_v24 = vld [vmem:[%s16039_s2 + $0x48] sm:$0xf]  ;;  %v9537_v28 = vld [vmem:[%s10259_s18 + $0x1a8] sm:$0xf0]  ;;  %v2859_v30 = vld [vmem:[%s16039_s2 + $0x4] sm:$0xf] }
  0x38   : > { %2946 = vperm.xlu1 %10149, %v2864_v54   ;;  %1929 = vmatpush.bf16.msrb.mxu3 %v9828_v62  ;;  %16309 = vst [vmem:[#allocation2_spill] sm:$0xff] %v10454_v23  ;;  %v10054_v29 = vld [vmem:[%s10259_s18 + $0x38c] sm:$0xf]  ;;  %v9540_v31 = vor.u32 %v9990_v27, %v9537_v28  ;;  %v9535_v33 = vld [vmem:[%s10259_s18 + $0x188] sm:$0xf] }
  0x39   : > { %1751 = vmatpush.bf16.msrb.mxu1 %v9824_v4  ;;  %16310 = vst [vmem:[#allocation3_spill] sm:$0xff] %v10459_v25  ;;  %v9793_v32 = vld [vmem:[%s10259_s18 + $0x3a8] sm:$0xf0]  ;;  %v9994_v35 = vld [vmem:[%s10259_s18 + $0x1a4] sm:$0xf0] }
  0x3a   : > { %v9796_v34 = vor.u32 %v10054_v29, %v9793_v32  ;;  %v9791_v36 = vld [vmem:[%s10259_s18 + $0x388] sm:$0xf]  ;;  %1841 = vmatpush.bf16.msrb.mxu2 %v9540_v31  ;;  %v9536_v38 = vor.u32 %v9994_v35, %v9535_v33  ;;  %v9231_v40 = vld [vmem:[%s16038_s1 + $0x30] sm:$0xf]  ;;  %v10076_v41 = vld [vmem:[%s16038_s1 + $0x34] sm:$0xf0] }
  0x3b   : > { %3117 = vperm.xlu0 %10148, %v2883_v55   ;;  %v10058_v37 = vld [vmem:[%s10259_s18 + $0x3a4] sm:$0xf0]  ;;  %v10075_v42 = vld [vmem:[%s16038_s1 + $0x34] sm:$0xf]  ;;  %v9233_v43 = vld [vmem:[%s16038_s1 + $0x38] sm:$0xf0]  ;;  %v10491_v44 = vor.u32 %v10076_v41, %v9231_v40 }
  0x3c   : > { %2955 = vperm.xlu2 %10150, %v2865_v61   ;;  %v9792_v39 = vor.u32 %v10058_v37, %v9791_v36  ;;  %1930 = vmatpush.bf16.msrb.mxu3 %v9796_v34  ;;  %v10493_v45 = vor.u32 %v10075_v42, %v9233_v43  ;;  %v9239_v47 = vld [vmem:[%s16038_s1 + $0x40] sm:$0xf]  ;;  %v10078_v48 = vld [vmem:[%s16038_s1 + $0x44] sm:$0xf0]  ;;  %v10077_v49 = vld [vmem:[%s16038_s1 + $0x44] sm:$0xf] }
  0x3d   : > { %1663 = vmatpush.bf16.msrb.mxu0 %v9536_v38  ;;  %16311 = vst [vmem:[#allocation4_spill] sm:$0xff] %v10491_v44  ;;  %v9241_v50 = vld [vmem:[%s16038_s1 + $0x48] sm:$0xf0]  ;;  %v10513_v52 = vor.u32 %v10078_v48, %v9239_v47  ;;  %v9503_v63 = vld [vmem:[%s10259_s18 + $0x148] sm:$0xf] }
  0x3e   : > { %1752 = vmatpush.bf16.msrb.mxu1 %v9792_v39  ;;  %16312 = vst [vmem:[#allocation5_spill] sm:$0xff] %v10493_v45  ;;  %v10515_v54 = vor.u32 %v10077_v49, %v9241_v50  ;;  %v9982_v56 = vld [vmem:[%s10259_s18 + $0x14c] sm:$0xf]  ;;  %v9986_v0 = vld [vmem:[%s10259_s18 + $0x164] sm:$0xf0] }
  0x3f   : > { %16313 = vst [vmem:[#allocation6_spill] sm:$0xff] %v10513_v52  ;;  %v9505_v57 = vld [vmem:[%s10259_s18 + $0x168] sm:$0xf0]  ;;  %v9759_v1 = vld [vmem:[%s10259_s18 + $0x348] sm:$0xf]  ;;  %v9504_v4 = vor.u32 %v9986_v0, %v9503_v63 }
  0x40   : > { %3099 = vperm.xlu1 %10149, %v2881_v5   ;;  %16314 = vst [vmem:[#allocation7_spill] sm:$0xff] %v10515_v54  ;;  %v10046_v58 = vld [vmem:[%s10259_s18 + $0x34c] sm:$0xf]  ;;  %v9508_v59 = vor.u32 %v9982_v56, %v9505_v57  ;;  %v9247_v2 = vld [vmem:[%s16038_s1 + $0x50] sm:$0xf] }
  0x41   : > { %v9761_v60 = vld [vmem:[%s10259_s18 + $0x368] sm:$0xf0]  ;;  %v10080_v3 = vld [vmem:[%s16038_s1 + $0x54] sm:$0xf0]  ;;  %v10050_v5 = vld [vmem:[%s10259_s18 + $0x364] sm:$0xf0]  ;;  %1664 = vmatpush.bf16.msrb.mxu0 %v9504_v4 }
  0x42   : > { %v9764_v61 = vor.u32 %v10046_v58, %v9761_v60  ;;  %1842 = vmatpush.bf16.msrb.mxu2 %v9508_v59  ;;  %v10079_v6 = vld [vmem:[%s16038_s1 + $0x54] sm:$0xf]  ;;  %v9249_v7 = vld [vmem:[%s16038_s1 + $0x58] sm:$0xf0]  ;;  %v10547_v10 = vor.u32 %v10080_v3, %v9247_v2  ;;  %v9255_v18 = vld [vmem:[%s16038_s1 + $0x60] sm:$0xf] }
  0x43   : > { %3090 = vperm.xlu0 %10148, %v2880_v8   ;;  %v9760_v8 = vor.u32 %v10050_v5, %v9759_v1  ;;  %v10082_v19 = vld [vmem:[%s16038_s1 + $0x64] sm:$0xf0]  ;;  %v10081_v21 = vld [vmem:[%s16038_s1 + $0x64] sm:$0xf]  ;;  %v9257_v22 = vld [vmem:[%s16038_s1 + $0x68] sm:$0xf0] }
  0x44   : > { %2928 = vperm.xlu2 %10150, %v2862_v12   ;;  %1931 = vmatpush.bf16.msrb.mxu3 %v9764_v61  ;;  %16316 = vst [vmem:[#allocation9_spill] sm:$0xff] %v10547_v10  ;;  %v10581_v27 = vor.u32 %v10081_v21, %v9257_v22  ;;  %v9473_v31 = vld [vmem:[%s10259_s18 + $0x128] sm:$0xf0]  ;;  %v9263_v38 = vld [vmem:[%s16038_s1 + $0x70] sm:$0xf] }
  0x45   : > { %1319 = vmatmul.bf16.gmra.mxu0 %v10416_v11  ;;  %1497 = vmatmul.bf16.gmra.mxu2 %v10416_v11  ;;  %v10038_v32 = vld [vmem:[%s10259_s18 + $0x30c] sm:$0xf]  ;;  %v10084_v39 = vld [vmem:[%s16038_s1 + $0x74] sm:$0xf0]  ;;  %v10083_v40 = vld [vmem:[%s16038_s1 + $0x74] sm:$0xf] }
  0x46   : > { %1408 = vmatmul.bf16.gmra.mxu1 %v10421_v13  ;;  %16321 = vst [vmem:[#allocation14_spill] sm:$0xff] %v10581_v27  ;;  %v9729_v34 = vld [vmem:[%s10259_s18 + $0x328] sm:$0xf0]  ;;  %v9265_v41 = vld [vmem:[%s16038_s1 + $0x78] sm:$0xf0]  ;;  %v10620_v57 = vor.u32 %v10084_v39, %v9263_v38 }
  0x47   : > { %1586 = vmatmul.bf16.gmra.mxu3 %v10421_v13  ;;  %1753 = vmatpush.bf16.msrb.mxu1 %v9760_v8  ;;  %v9732_v35 = vor.u32 %v10038_v32, %v9729_v34  ;;  %v9471_v42 = vld [vmem:[%s10259_s18 + $0x108] sm:$0xf]  ;;  %v2877_v56 = vld [vmem:[%s16039_s2 + $0x4c] sm:$0xf]  ;;  %v10624_v60 = vor.u32 %v10083_v40, %v9265_v41  ;;  %v2874_v63 = vld [vmem:[%s16039_s2 + $0x40] sm:$0xf] }
  0x48   : > { %3072 = vperm.xlu1 %10149, %v2878_v14   ;;  %v10551_v14 = vor.u32 %v10079_v6, %v9249_v7  ;;  %v9978_v43 = vld [vmem:[%s10259_s18 + $0x124] sm:$0xf0]  ;;  %16323 = vst [vmem:[#allocation16_spill] sm:$0xff] %v10620_v57  ;;  %v9271_v3 = vld [vmem:[%s16038_s1 + $0x80] sm:$0xf] }
  0x49   : > { %1932 = vmatpush.bf16.msrb.mxu3 %v9732_v35  ;;  %v9727_v47 = vld [vmem:[%s10259_s18 + $0x308] sm:$0xf]  ;;  %v9472_v49 = vor.u32 %v9978_v43, %v9471_v42  ;;  %16324 = vst [vmem:[#allocation17_spill] sm:$0xff] %v10624_v60  ;;  %v10085_v5 = vld [vmem:[%s16038_s1 + $0x84] sm:$0xf] }
  0x4a   : > { %16317 = vst [vmem:[#allocation10_spill] sm:$0xff] %v10551_v14  ;;  %v10042_v50 = vld [vmem:[%s10259_s18 + $0x324] sm:$0xf0]  ;;  %v9273_v6 = vld [vmem:[%s16038_s1 + $0x88] sm:$0xf0] }
  0x4b   : > { %2937 = vperm.xlu0 %10148, %v2863_v15   ;;  %v9728_v58 = vor.u32 %v10042_v50, %v9727_v47  ;;  %1665 = vmatpush.bf16.msrb.mxu0 %v9472_v49  ;;  %v10086_v4 = vld [vmem:[%s16038_s1 + $0x84] sm:$0xf0]  ;;  %v2875_v7 = vld [vmem:[%s16039_s2 + $0x44] sm:$0xf]  ;;  %v10660_v21 = vor.u32 %v10085_v5, %v9273_v6  ;;  %v9966_v43 = vld [vmem:[%s10259_s18 + $0xcc] sm:$0xf] }
  0x4c   : > { %3081 = vperm.xlu2 %10150, %v2879_v16   ;;  %v10656_v8 = vor.u32 %v10086_v4, %v9271_v3  ;;  %v9441_v47 = vld [vmem:[%s10259_s18 + $0xe8] sm:$0xf0] }
  0x4d   : > { %1754 = vmatpush.bf16.msrb.mxu1 %v9728_v58  ;;  %16326 = vst [vmem:[#allocation19_spill] sm:$0xff] %v10660_v21  ;;  %v10030_v49 = vld [vmem:[%s10259_s18 + $0x2cc] sm:$0xf]  ;;  %v9444_v58 = vor.u32 %v9966_v43, %v9441_v47 }
  0x4e   : > { %16325 = vst [vmem:[#allocation18_spill] sm:$0xff] %v10656_v8 }
  0x50   : > { %2919 = vperm.xlu1 %10149, %v2861_v17  }
  0x53   : > { %2910 = vperm.xlu0 %10148, %v2860_v20  }
  0x54   : > { %3054 = vperm.xlu2 %10150, %v2876_v24   ;;  %v10577_v24 = vor.u32 %v10082_v19, %v9255_v18 }
  0x55   : > { %1324 = vmatmul.bf16.gmra.mxu0 %v10454_v23  ;;  %1502 = vmatmul.bf16.gmra.mxu2 %v10454_v23 }
  0x56   : > { %1413 = vmatmul.bf16.gmra.mxu1 %v10459_v25  ;;  %16319 = vst [vmem:[#allocation12_spill] sm:$0xff] %v10577_v24 }
  0x57   : > { %1591 = vmatmul.bf16.gmra.mxu3 %v10459_v25 }
  0x58   : > { %2892 = vperm.xlu1 %10149, %v2858_v26  }
  0x5b   : > { %3063 = vperm.xlu0 %10148, %v2877_v56  }
  0x5c   : > { %2901 = vperm.xlu2 %10150, %v2859_v30   ;;  %v9974_v30 = vld [vmem:[%s10259_s18 + $0x10c] sm:$0xf] }
  0x5d   : > { %v9476_v33 = vor.u32 %v9974_v30, %v9473_v31 }
  0x5f   : > { %1843 = vmatpush.bf16.msrb.mxu2 %v9476_v33  ;;  %v10180_v33 = vmov 839922192  }
  0x60   : > { %3045 = vperm.xlu1 %10149, %v2875_v7   ;;  %v2896_v34 = vunpack.c.l.s4 %v10180_v33  ;;  %v9279_v7 = vld [vmem:[%s16038_s1 + $0x90] sm:$0xf] }
  0x62   : > { %v10678_v3 = vunpack.c.0.s8 %v2896_v34 }
  0x63   : > { %3036 = vperm.xlu0 %10148, %v2874_v63   ;;  %v9697_v63 = vld [vmem:[%s10259_s18 + $0x2e8] sm:$0xf0]  ;;  %1844 = vmatpush.bf16.msrb.mxu2 %v9444_v58  ;;  %v9970_v58 = vld [vmem:[%s10259_s18 + $0xe4] sm:$0xf0] }
  0x64   : > { %16327 = vst [vmem:[#allocation20_spill] sm:$0xff] %v10678_v3  ;;  %v9700_v5 = vor.u32 %v10030_v49, %v9697_v63  ;;  %v9439_v49 = vld [vmem:[%s10259_s18 + $0xc8] sm:$0xf] }
  0x65   : > { %1329 = vmatmul.bf16.gmra.mxu0 %v10491_v44  ;;  %1507 = vmatmul.bf16.gmra.mxu2 %v10491_v44  ;;  %v9695_v63 = vld [vmem:[%s10259_s18 + $0x2c8] sm:$0xf] }
  0x66   : > { %1418 = vmatmul.bf16.gmra.mxu1 %v10493_v45  ;;  %1933 = vmatpush.bf16.msrb.mxu3 %v9700_v5 }
  0x67   : > { %1596 = vmatmul.bf16.gmra.mxu3 %v10493_v45 }
  0x6a   : > { %v10499_v46 = vpop.permute.xlu2 %3000 }
  0x72   : > { %v10517_v55 = vpop.permute.xlu2 %3009 }
  0x75   : > { %1334 = vmatmul.bf16.gmra.mxu0 %v10513_v52  ;;  %1512 = vmatmul.bf16.gmra.mxu2 %v10513_v52 }
  0x76   : > { %1423 = vmatmul.bf16.gmra.mxu1 %v10515_v54 }
  0x77   : > { %1601 = vmatmul.bf16.gmra.mxu3 %v10515_v54 }
  0x7a   : > { %v10527_v62 = vpop.permute.xlu2 %2982 }
  0x80   : > { %v10545_v9 = vpop.permute.xlu1 %3162  ;;  %v10549_v12 = vpop.permute.xlu0 %3018 }
  0x81   : > { %16315 = vst [vmem:[#allocation8_spill] sm:$0xff] %v10545_v9 }
  0x82   : > { %v10556_v15 = vpop.permute.xlu2 %3135 }
  0x85   : > { %1339 = vmatmul.bf16.gmra.mxu0 %v10547_v10  ;;  %1517 = vmatmul.bf16.gmra.mxu2 %v10547_v10 }
  0x86   : > { %1428 = vmatmul.bf16.gmra.mxu1 %v10551_v14 }
  0x87   : > { %1606 = vmatmul.bf16.gmra.mxu3 %v10551_v14 }
  0x88   : > { %v10559_v16 = vpop.permute.xlu1 %3171  ;;  %v10561_v17 = vpop.permute.xlu0 %3027 }
  0x89   : > { %16318 = vst [vmem:[#allocation11_spill] sm:$0xff] %v10559_v16  ;;  %v10034_v16 = vld [vmem:[%s10259_s18 + $0x2e4] sm:$0xf0] }
  0x8e   : > { %v10569_v20 = vpop.permute.xlu2 %3108 }
  0x90   : > { %v10579_v26 = vpop.permute.xlu1 %3153  ;;  %v10583_v28 = vpop.permute.xlu0 %3144 }
  0x91   : > { %16320 = vst [vmem:[#allocation13_spill] sm:$0xff] %v10579_v26 }
  0x92   : > { %16322 = vst [vmem:[#allocation15_spill] sm:$0xff] %v10583_v28 }
  0x95   : > { %1344 = vmatmul.bf16.gmra.mxu0 %v10577_v24  ;;  %1522 = vmatmul.bf16.gmra.mxu2 %v10577_v24 }
  0x96   : > { %1433 = vmatmul.bf16.gmra.mxu1 %v10581_v27  ;;  %v10588_v29 = vpop.permute.xlu2 %2955 }
  0x97   : > { %1611 = vmatmul.bf16.gmra.mxu3 %v10581_v27 }
  0x98   : > { %v10595_v36 = vpop.permute.xlu1 %3126  ;;  %v10597_v37 = vpop.permute.xlu0 %2991 }
  0x9e   : > { %v10614_v48 = vpop.permute.xlu2 %2928 }
  0xa2   : > { %v10622_v59 = vpop.permute.xlu1 %2973 }
  0xa5   : > { %v10626_v61 = vpop.permute.xlu0 %2964  ;;  %1349 = vmatmul.bf16.gmra.mxu0 %v10620_v57  ;;  %1527 = vmatmul.bf16.gmra.mxu2 %v10620_v57 }
  0xa6   : > { %1438 = vmatmul.bf16.gmra.mxu1 %v10624_v60  ;;  %v10637_v1 = vpop.permute.xlu2 %3081 }
  0xa7   : > { %1616 = vmatmul.bf16.gmra.mxu3 %v10624_v60 }
  0xaa   : > { %v10635_v0 = vpop.permute.xlu1 %2946 }
  0xad   : > { %v10639_v2 = vpop.permute.xlu0 %3117 }
  0xae   : > { %v10664_v32 = vpop.permute.xlu2 %3054 }
  0xb2   : > { %v10658_v18 = vpop.permute.xlu1 %3099  ;;  %v1315_v19 = vpop.f32.mrf.mxu0 }
  0xb3   : > { %v1404_v22 = vpop.f32.mrf.mxu1 }
  0xb4   : > { %v1405_v31 = vadd.f32 %v1404_v22, %v1315_v19  ;;  %v10088_v19 = vld [vmem:[%s16038_s1 + $0x94] sm:$0xf0]  ;;  %v10087_v22 = vld [vmem:[%s16038_s1 + $0x94] sm:$0xf] }
  0xb5   : > { %v10662_v30 = vpop.permute.xlu0 %3090  ;;  %1354 = vmatmul.bf16.gmra.mxu0 %v10656_v8  ;;  %1532 = vmatmul.bf16.gmra.mxu2 %v10656_v8  ;;  %v9440_v8 = vor.u32 %v9970_v58, %v9439_v49 }
  0xb6   : > { %1443 = vmatmul.bf16.gmra.mxu1 %v10660_v21  ;;  %v2902_v6 = vpop.permute.xlu2 %2901 }
  0xb7   : > { %1621 = vmatmul.bf16.gmra.mxu3 %v10660_v21  ;;  %v2907_v34 = vperm.slane %v2902_v6, %v10678_v3  ;;  %1666 = vmatpush.bf16.msrb.mxu0 %v9440_v8 }
  0xb8   : > { %v1493_v35 = vpop.f32.mrf.mxu2 }
  0xb9   : > { %v10705_v9 = vunpack.c.l.bf16 %v2907_v34 }
  0xba   : > { %v1582_v38 = vpop.f32.mrf.mxu3  ;;  %v10670_v39 = vpop.permute.xlu1 %3072 }
  0xbb   : > { %v1583_v40 = vadd.f32 %v1582_v38, %v1493_v35  ;;  %v1317_v41 = vpop.f32.mrf.mxu0  ;;  %v1406_v42 = vpop.f32.mrf.mxu1  ;;  %v10695_v35 = vor.u32 %v10088_v19, %v9279_v7  ;;  %16330 = vst [vmem:[#allocation23_spill] sm:$0xff] %v10705_v9  ;;  %v9696_v7 = vor.u32 %v10034_v16, %v9695_v63 }
  0xbc   : > { %v1407_v50 = vadd.f32 %v1406_v42, %v1317_v41 }
  0xbd   : > { %v10675_v56 = vpop.permute.xlu0 %2937  ;;  %v10680_v4 = vpack.c.bf16 %v1583_v40, %v1405_v31  ;;  %v9281_v31 = vld [vmem:[%s16038_s1 + $0x98] sm:$0xf0]  ;;  %16328 = vst [vmem:[#allocation21_spill] sm:$0xff] %v10695_v35  ;;  %1755 = vmatpush.bf16.msrb.mxu1 %v9696_v7 }
  0xbe   : > { %v10699_v41 = vor.u32 %v10087_v22, %v9281_v31 }
  0xbf   : > { %v3178_v63 = vunpack.c.l.bf16 %v10680_v4  ;;  %v3179_v8 = vunpack.c.h.bf16 %v10680_v4  ;;  %v10089_v4 = vld [vmem:[%s16038_s1 + $0xa4] sm:$0xf] }
  0xc0   : > { %v1495_v33 = vpop.f32.mrf.mxu2  ;;  %16329 = vst [vmem:[#allocation22_spill] sm:$0xff] %v10699_v41 }
  0xc2   : > { %v1584_v38 = vpop.f32.mrf.mxu3  ;;  %v10697_v40 = vpop.permute.xlu1 %2919 }
  0xc3   : > { %v1585_v42 = vadd.f32 %v1584_v38, %v1495_v33  ;;  %v1320_v43 = vpop.f32.mrf.mxu0  ;;  %v1409_v47 = vpop.f32.mrf.mxu1 }
  0xc4   : > { %v1410_v21 = vadd.f32 %v1409_v47, %v1320_v43 }
  0xc5   : > { %v2734_v5 = vpack.c.bf16 %v1585_v42, %v1407_v50  ;;  %1359 = vmatmul.bf16.gmra.mxu0 %v10695_v35  ;;  %v2911_v6 = vpop.permute.xlu0 %2910  ;;  %1537 = vmatmul.bf16.gmra.mxu2 %v10695_v35 }
  0xc6   : > { %1448 = vmatmul.bf16.gmra.mxu1 %v10699_v41  ;;  %v2916_v31 = vperm.slane %v2911_v6, %v10678_v3 }
  0xc7   : > { %v3186_v19 = vunpack.c.l.bf16 %v2734_v5  ;;  %v3187_v22 = vunpack.c.h.bf16 %v2734_v5  ;;  %1626 = vmatmul.bf16.gmra.mxu3 %v10699_v41 }
  0xc8   : > { %v1498_v33 = vpop.f32.mrf.mxu2  ;;  %v10717_v5 = vunpack.c.l.bf16 %v2916_v31 }
  0xc9   : > { %v3474_v50 = vadd.f32 %v10705_v9, %v3186_v19  ;;  %v3475_v34 = vadd.f32 %v10705_v9, %v3187_v22  ;;  %v9287_v19 = vld [vmem:[%s16038_s1 + $0xa0] sm:$0xf]  ;;  %v10090_v22 = vld [vmem:[%s16038_s1 + $0xa4] sm:$0xf0] }
  0xca   : > { %v1587_v38 = vpop.f32.mrf.mxu3  ;;  %v2893_v42 = vpop.permute.xlu1 %2892  ;;  %16331 = vst [vmem:[#allocation24_spill] sm:$0xff] %v10717_v5 }
  0xcb   : > { %v1588_v16 = vadd.f32 %v1587_v38, %v1498_v33  ;;  %v2898_v43 = vperm.slane %v2893_v42, %v10678_v3  ;;  %v1322_v47 = vpop.f32.mrf.mxu0  ;;  %v1411_v49 = vpop.f32.mrf.mxu1  ;;  %v3726_v58 = vpack.c.bf16 %v3475_v34, %v3474_v50 }
  0xcc   : > { %v1412_v6 = vadd.f32 %v1411_v49, %v1322_v47 }
  0xcd   : > { %v2738_v7 = vpack.c.bf16 %v1588_v16, %v1410_v21  ;;  %v10719_v41 = vunpack.c.l.bf16 %v2898_v43  ;;  %v3858_v33 = vunpack.c.l.bf16 %v3726_v58  ;;  %v3859_v50 = vunpack.c.h.bf16 %v3726_v58  ;;  %v9289_v21 = vld [vmem:[%s16038_s1 + $0xa8] sm:$0xf0] }
  0xce   : > { %v2925_v16 = vperm.slane %v10697_v40, %v10678_v3  ;;  %v10737_v43 = vor.u32 %v10090_v22, %v9287_v19  ;;  %v10741_v26 = vor.u32 %v10089_v4, %v9289_v21  ;;  %v2934_v4 = vperm.slane %v10614_v48, %v10678_v3 }
  0xcf   : > { %16332 = vst [vmem:[#allocation25_spill] sm:$0xff] %v10719_v41  ;;  %v3194_v34 = vunpack.c.l.bf16 %v2738_v7  ;;  %v3195_v38 = vunpack.c.h.bf16 %v2738_v7  ;;  %v3466_v31 = vadd.f32 %v10719_v41, %v3178_v63  ;;  %v3467_v42 = vadd.f32 %v10719_v41, %v3179_v8 }
  0xd0   : > { %16333 = vst [vmem:[#allocation26_spill] sm:$0xff] %v10737_v43  ;;  %v4370_v47 = vmul.f32 0.20019531, %v3858_v33  ;;  %v1500_v49 = vpop.f32.mrf.mxu2  ;;  %v4371_v60 = vmul.f32 0.20019531, %v3859_v50  ;;  %v10745_v19 = vunpack.c.l.bf16 %v2925_v16  ;;  %vm10747_vm0 = vcmp.gt.f32.partialorder %v3858_v33, 0.0 }
  0xd1   : > { %v3482_v7 = vadd.f32 %v10717_v5, %v3194_v34  ;;  %v3483_v9 = vadd.f32 %v10717_v5, %v3195_v38  ;;  %v3722_v35 = vpack.c.bf16 %v3467_v42, %v3466_v31  ;;  %16334 = vst [vmem:[#allocation27_spill] sm:$0xff] %v10741_v26  ;;  %vm10753_vm1 = vcmp.gt.f32.partialorder %v3859_v50, 0.0 }
  0xd2   : > { %v1589_v57 = vpop.f32.mrf.mxu3  ;;  %16335 = vst [vmem:[#allocation28_spill] sm:$0xff] %v10745_v19  ;;  %vm4750_vm4 = vmpackc.low %vm10753_vm1, %vm10747_vm0 }
  0xd3   : > { %v1590_v28 = vadd.f32 %v1589_v57, %v1500_v49  ;;  %v1325_v63 = vpop.f32.mrf.mxu0  ;;  %v1414_v27 = vpop.f32.mrf.mxu1  ;;  %v10743_v8 = vpack.c.bf16 %v3483_v9, %v3482_v7  ;;  %v3850_v41 = vunpack.c.l.bf16 %v3722_v35  ;;  %v3851_v40 = vunpack.c.h.bf16 %v3722_v35  ;;  %v9962_v49 = vld [vmem:[%s10259_s18 + $0xa4] sm:$0xf0] }
  0xd4   : > { %v1415_v22 = vadd.f32 %v1414_v27, %v1325_v63  ;;  %v4622_v9 = vpack.c.bf16 %v4371_v60, %v4370_v47 }
  0xd5   : > { %v2742_v34 = vpack.c.bf16 %v1590_v28, %v1412_v6  ;;  %1364 = vmatmul.bf16.gmra.mxu0 %v10737_v43  ;;  %v3866_v38 = vunpack.c.l.bf16 %v10743_v8  ;;  %1542 = vmatmul.bf16.gmra.mxu2 %v10737_v43  ;;  %v3867_v27 = vunpack.c.h.bf16 %v10743_v8  ;;  %v4362_v33 = vmul.f32 0.20019531, %v3850_v41 }
  0xd6   : > { %1453 = vmatmul.bf16.gmra.mxu1 %v10741_v26  ;;  %vm10763_vm2 = vcmp.gt.f32.partialorder %v3850_v41, 0.0  ;;  %vm10767_vm3 = vcmp.gt.f32.partialorder %v3851_v40, 0.0  ;;  %v4363_v48 = vmul.f32 0.20019531, %v3851_v40  ;;  %v4878_v16 = vsel %vm4750_vm4, %v3726_v58, %v4622_v9 }
  0xd7   : > { %v3202_v28 = vunpack.c.l.bf16 %v2742_v34  ;;  %v3203_v6 = vunpack.c.h.bf16 %v2742_v34  ;;  %1631 = vmatmul.bf16.gmra.mxu3 %v10741_v26  ;;  %vm10777_vm5 = vcmp.gt.f32.partialorder %v3866_v38, 0.0  ;;  %vm10781_vm6 = vcmp.gt.f32.partialorder %v3867_v27, 0.0  ;;  %vm4746_vm7 = vmpackc.low %vm10767_vm3, %vm10763_vm2  ;;  %v10022_v26 = vld [vmem:[%s10259_s18 + $0x28c] sm:$0xf] }
  0xd8   : > { %v1503_v42 = vpop.f32.mrf.mxu2  ;;  %v4378_v24 = vmul.f32 0.20019531, %v3866_v38  ;;  %v4379_v7 = vmul.f32 0.20019531, %v3867_v27  ;;  %v4618_v63 = vpack.c.bf16 %v4363_v48, %v4362_v33  ;;  %v10789_v40 = vunpack.c.l.bf16 %v2934_v4  ;;  %v9665_v33 = vld [vmem:[%s10259_s18 + $0x2a8] sm:$0xf0]  ;;  %vm4754_vm10 = vmpackc.low %vm10781_vm6, %vm10777_vm5 }
  0xd9   : > { %v3490_v21 = vadd.f32 %v10745_v19, %v3202_v28  ;;  %v3491_v31 = vadd.f32 %v10745_v19, %v3203_v6  ;;  %v2943_v34 = vperm.slane %v10675_v56, %v10678_v3  ;;  %v9958_v6 = vld [vmem:[%s10259_s18 + $0x8c] sm:$0xf]  ;;  %v5234_v50 = vunpack.c.l.b16 %v4878_v16  ;;  %v9295_v56 = vld [vmem:[%s16038_s1 + $0xb0] sm:$0xf] }
  0xda   : > { %v1592_v47 = vpop.f32.mrf.mxu3  ;;  %16348 = vst [vmem:[#allocation29_spill] sm:$0xff] %v10789_v40  ;;  %v9409_v19 = vld [vmem:[%s10259_s18 + $0xa8] sm:$0xf0]  ;;  %v4874_v48 = vsel %vm4746_vm7, %v3722_v35, %v4618_v63  ;;  %v9668_v60 = vor.u32 %v10022_v26, %v9665_v33  ;;  %v10091_v26 = vld [vmem:[%s16038_s1 + $0xb4] sm:$0xf] }
  0xdb   : > { %v3734_v58 = vpack.c.bf16 %v3491_v31, %v3490_v21  ;;  %v1593_v57 = vadd.f32 %v1592_v47, %v1503_v42  ;;  %v1327_v9 = vpop.f32.mrf.mxu0  ;;  %v1416_v28 = vpop.f32.mrf.mxu1  ;;  %v9412_v27 = vor.u32 %v9958_v6, %v9409_v19  ;;  %v10092_v21 = vld [vmem:[%s16038_s1 + $0xb4] sm:$0xf0]  ;;  %v4626_v31 = vpack.c.bf16 %v4379_v7, %v4378_v24 }
  0xdc   : > { %v1417_v38 = vadd.f32 %v1416_v28, %v1327_v9  ;;  %v5226_v42 = vunpack.c.l.b16 %v4874_v48  ;;  %v5227_v47 = vunpack.c.h.b16 %v4874_v48  ;;  %v5235_v19 = vunpack.c.h.b16 %v4878_v16  ;;  %1934 = vmatpush.bf16.msrb.mxu3 %v9668_v60 }
  0xdd   : > { %v2746_v43 = vpack.c.bf16 %v1593_v57, %v1415_v22  ;;  %v3874_v5 = vunpack.c.l.bf16 %v3734_v58  ;;  %v3875_v4 = vunpack.c.h.bf16 %v3734_v58  ;;  %1845 = vmatpush.bf16.msrb.mxu2 %v9412_v27  ;;  %v9297_v22 = vld [vmem:[%s16038_s1 + $0xb8] sm:$0xf0]  ;;  %v10823_v33 = vor.u32 %v10092_v21, %v9295_v56 }
  0xde   : > { %v10819_v57 = vpack.c.b16 %v5235_v19, %v5227_v47  ;;  %v10829_v48 = vor.u32 %v10091_v26, %v9297_v22  ;;  %v4882_v60 = vsel %vm4754_vm10, %v10743_v8, %v4626_v31  ;;  %v9663_v47 = vld [vmem:[%s10259_s18 + $0x288] sm:$0xf]  ;;  %v10841_v19 = vunpack.c.l.bf16 %v2943_v34 }
  0xdf   : > { %v3210_v9 = vunpack.c.l.bf16 %v2746_v43  ;;  %v3211_v35 = vunpack.c.h.bf16 %v2746_v43  ;;  %vm10809_vm8 = vcmp.gt.f32.partialorder %v3874_v5, 0.0  ;;  %vm10813_vm9 = vcmp.gt.f32.partialorder %v3875_v4, 0.0  ;;  %16355 = vst [vmem:[#allocation32_spill] sm:$0xff] %v10823_v33  ;;  %v10026_v26 = vld [vmem:[%s10259_s18 + $0x2a4] sm:$0xf0] }
  0xe0   : > { %v4386_v16 = vmul.f32 0.20019531, %v3874_v5  ;;  %v4387_v7 = vmul.f32 0.20019531, %v3875_v4  ;;  %v10817_v43 = vpack.c.b16 %v5234_v50, %v5226_v42  ;;  %16354 = vst [vmem:[#allocation31_spill] sm:$0xff] %v10819_v57  ;;  %v1505_v27 = vpop.f32.mrf.mxu2  ;;  %vm4758_vm11 = vmpackc.low %vm10813_vm9, %vm10809_vm8  ;;  %v9407_v42 = vld [vmem:[%s10259_s18 + $0x88] sm:$0xf]  ;;  %v9664_v24 = vor.u32 %v10026_v26, %v9663_v47 }
  0xe1   : > { %v3498_v28 = vadd.f32 %v10789_v40, %v3210_v9  ;;  %v3499_v6 = vadd.f32 %v10789_v40, %v3211_v35  ;;  %16356 = vst [vmem:[#allocation33_spill] sm:$0xff] %v10829_v48  ;;  %v9408_v35 = vor.u32 %v9962_v49, %v9407_v42  ;;  %v5243_v8 = vunpack.c.h.b16 %v4882_v60 }
  0xe2   : > { %16353 = vst [vmem:[#allocation30_spill] sm:$0xff] %v10817_v43  ;;  %v1594_v5 = vpop.f32.mrf.mxu3  ;;  %v4630_v50 = vpack.c.bf16 %v4387_v7, %v4386_v16  ;;  %v5242_v16 = vunpack.c.l.b16 %v4882_v60  ;;  %1756 = vmatpush.bf16.msrb.mxu1 %v9664_v24 }
  0xe3   : > { %v10836_v4 = vpack.c.bf16 %v3499_v6, %v3498_v28  ;;  %v1595_v56 = vadd.f32 %v1594_v5, %v1505_v27  ;;  %v1330_v21 = vpop.f32.mrf.mxu0  ;;  %v1419_v41 = vpop.f32.mrf.mxu1  ;;  %16357 = vst [vmem:[#allocation34_spill] sm:$0xff] %v10841_v19  ;;  %1667 = vmatpush.bf16.msrb.mxu0 %v9408_v35  ;;  %v2952_v5 = vperm.slane %v10635_v0, %v10678_v3  ;;  %v9303_v0 = vld [vmem:[%s16038_s1 + $0xc0] sm:$0xf] }
  0xe4   : > { %v1420_v9 = vadd.f32 %v1419_v41, %v1330_v21  ;;  %v4886_v22 = vsel %vm4758_vm11, %v3734_v58, %v4630_v50 }
  0xe5   : > { %v2750_v63 = vpack.c.bf16 %v1595_v56, %v1417_v38  ;;  %1369 = vmatmul.bf16.gmra.mxu0 %v10823_v33  ;;  %1547 = vmatmul.bf16.gmra.mxu2 %v10823_v33  ;;  %v3882_v31 = vunpack.c.l.bf16 %v10836_v4  ;;  %v3883_v7 = vunpack.c.h.bf16 %v10836_v4  ;;  %v5250_v34 = vunpack.c.l.b16 %v4886_v22 }
  0xe6   : > { %1458 = vmatmul.bf16.gmra.mxu1 %v10829_v48  ;;  %v5251_v28 = vunpack.c.h.b16 %v4886_v22 }
  0xe7   : > { %v3218_v6 = vunpack.c.l.bf16 %v2750_v63  ;;  %v3219_v27 = vunpack.c.h.bf16 %v2750_v63  ;;  %1636 = vmatmul.bf16.gmra.mxu3 %v10829_v48  ;;  %v10850_v58 = vpack.c.b16 %v5250_v34, %v5242_v16  ;;  %v4394_v41 = vmul.f32 0.20019531, %v3882_v31  ;;  %v10094_v34 = vld [vmem:[%s16038_s1 + $0xc4] sm:$0xf0] }
  0xe8   : > { %v10852_v38 = vpack.c.b16 %v5251_v28, %v5243_v8  ;;  %v1508_v56 = vpop.f32.mrf.mxu2  ;;  %v4395_v42 = vmul.f32 0.20019531, %v3883_v7  ;;  %v10858_v63 = vunpack.c.l.bf16 %v2952_v5  ;;  %vm10866_vm12 = vcmp.gt.f32.partialorder %v3882_v31, 0.0 }
  0xe9   : > { %16358 = vst [vmem:[#allocation35_spill] sm:$0xff] %v10850_v58  ;;  %v3506_v50 = vadd.f32 %v10841_v19, %v3218_v6  ;;  %v3507_v60 = vadd.f32 %v10841_v19, %v3219_v27  ;;  %vm10870_vm13 = vcmp.gt.f32.partialorder %v3883_v7, 0.0 }
  0xea   : > { %16359 = vst [vmem:[#allocation36_spill] sm:$0xff] %v10852_v38  ;;  %v1597_v21 = vpop.f32.mrf.mxu3  ;;  %v4634_v27 = vpack.c.bf16 %v4395_v42, %v4394_v41  ;;  %v2961_v41 = vperm.slane %v10588_v29, %v10678_v3  ;;  %vm4762_vm0 = vmpackc.low %vm10870_vm13, %vm10866_vm12 }
  0xeb   : > { %v3742_v49 = vpack.c.bf16 %v3507_v60, %v3506_v50  ;;  %v1598_v47 = vadd.f32 %v1597_v21, %v1508_v56  ;;  %v1332_v26 = vpop.f32.mrf.mxu0  ;;  %v1421_v35 = vpop.f32.mrf.mxu1  ;;  %16360 = vst [vmem:[#allocation37_spill] sm:$0xff] %v10858_v63  ;;  %v10093_v50 = vld [vmem:[%s16038_s1 + $0xc4] sm:$0xf]  ;;  %v9305_v60 = vld [vmem:[%s16038_s1 + $0xc8] sm:$0xf0] }
  0xec   : > { %v1422_v22 = vadd.f32 %v1421_v35, %v1332_v26  ;;  %v10892_v35 = vor.u32 %v10094_v34, %v9303_v0  ;;  %v10898_v57 = vor.u32 %v10093_v50, %v9305_v60  ;;  %v10907_v28 = vunpack.c.l.bf16 %v2961_v41 }
  0xed   : > { %v2754_v24 = vpack.c.bf16 %v1598_v47, %v1420_v9  ;;  %v3890_v16 = vunpack.c.l.bf16 %v3742_v49  ;;  %v3891_v8 = vunpack.c.h.bf16 %v3742_v49 }
  0xee   : > { %16369 = vst [vmem:[#allocation38_spill] sm:$0xff] %v10892_v35 }
  0xef   : > { %v3226_v9 = vunpack.c.l.bf16 %v2754_v24  ;;  %v3227_v5 = vunpack.c.h.bf16 %v2754_v24  ;;  %vm10880_vm14 = vcmp.gt.f32.partialorder %v3890_v16, 0.0  ;;  %vm10884_vm15 = vcmp.gt.f32.partialorder %v3891_v8, 0.0  ;;  %16370 = vst [vmem:[#allocation39_spill] sm:$0xff] %v10898_v57 }
  0xf0   : > { %v4402_v56 = vmul.f32 0.20019531, %v3890_v16  ;;  %v4403_v21 = vmul.f32 0.20019531, %v3891_v8  ;;  %v1510_v26 = vpop.f32.mrf.mxu2  ;;  %v4890_v8 = vsel %vm4762_vm0, %v10836_v4, %v4634_v27  ;;  %vm4766_vm1 = vmpackc.low %vm10884_vm15, %vm10880_vm14  ;;  %16371 = vst [vmem:[#allocation40_spill] sm:$0xff] %v10907_v28 }
  0xf1   : > { %v3514_v42 = vadd.f32 %v10858_v63, %v3226_v9  ;;  %v3515_v47 = vadd.f32 %v10858_v63, %v3227_v5  ;;  %v5258_v5 = vunpack.c.l.b16 %v4890_v8  ;;  %v5259_v50 = vunpack.c.h.b16 %v4890_v8 }
  0xf2   : > { %v1599_v24 = vpop.f32.mrf.mxu3  ;;  %v4638_v16 = vpack.c.bf16 %v4403_v21, %v4402_v56 }
  0xf3   : > { %v10901_v43 = vpack.c.bf16 %v3515_v47, %v3514_v42  ;;  %v1600_v29 = vadd.f32 %v1599_v24, %v1510_v26  ;;  %v1335_v9 = vpop.f32.mrf.mxu0  ;;  %v1424_v38 = vpop.f32.mrf.mxu1 }
  0xf4   : > { %v1425_v0 = vadd.f32 %v1424_v38, %v1335_v9  ;;  %v4894_v34 = vsel %vm4766_vm1, %v3742_v49, %v4638_v16  ;;  %v2970_v49 = vperm.slane %v10626_v61, %v10678_v3  ;;  %v10014_v61 = vld [vmem:[%s10259_s18 + $0x24c] sm:$0xf] }
  0xf5   : > { %v2758_v6 = vpack.c.bf16 %v1600_v29, %v1422_v22  ;;  %1374 = vmatmul.bf16.gmra.mxu0 %v10892_v35  ;;  %1552 = vmatmul.bf16.gmra.mxu2 %v10892_v35  ;;  %v3898_v4 = vunpack.c.l.bf16 %v10901_v43  ;;  %v3899_v27 = vunpack.c.h.bf16 %v10901_v43  ;;  %v5266_v60 = vunpack.c.l.b16 %v4894_v34 }
  0xf6   : > { %1463 = vmatmul.bf16.gmra.mxu1 %v10898_v57  ;;  %v5267_v31 = vunpack.c.h.b16 %v4894_v34  ;;  %v9950_v34 = vld [vmem:[%s10259_s18 + $0x4c] sm:$0xf] }
  0xf7   : > { %v3234_v7 = vunpack.c.l.bf16 %v2758_v6  ;;  %v3235_v38 = vunpack.c.h.bf16 %v2758_v6  ;;  %1641 = vmatmul.bf16.gmra.mxu3 %v10898_v57  ;;  %v10917_v22 = vpack.c.b16 %v5266_v60, %v5258_v5  ;;  %v4410_v26 = vmul.f32 0.20019531, %v3898_v4  ;;  %v9377_v6 = vld [vmem:[%s10259_s18 + $0x68] sm:$0xf0] }
  0xf8   : > { %v10919_v56 = vpack.c.b16 %v5267_v31, %v5259_v50  ;;  %v1513_v42 = vpop.f32.mrf.mxu2  ;;  %v4411_v24 = vmul.f32 0.20019531, %v3899_v27  ;;  %v10926_v5 = vunpack.c.l.bf16 %v2970_v49  ;;  %v9380_v60 = vor.u32 %v9950_v34, %v9377_v6  ;;  %v9633_v31 = vld [vmem:[%s10259_s18 + $0x268] sm:$0xf0]  ;;  %v9954_v49 = vld [vmem:[%s10259_s18 + $0x64] sm:$0xf0] }
  0xf9   : > { %16372 = vst [vmem:[#allocation41_spill] sm:$0xff] %v10917_v22  ;;  %v3522_v21 = vadd.f32 %v10907_v28, %v3234_v7  ;;  %v3523_v41 = vadd.f32 %v10907_v28, %v3235_v38  ;;  %v9636_v58 = vor.u32 %v10014_v61, %v9633_v31  ;;  %v9311_v22 = vld [vmem:[%s16038_s1 + $0xd0] sm:$0xf]  ;;  %vm10935_vm2 = vcmp.gt.f32.partialorder %v3898_v4, 0.0  ;;  %v9942_v28 = vld [vmem:[%s10259_s18 + $0xc] sm:$0xf] }
  0xfa   : > { %16373 = vst [vmem:[#allocation42_spill] sm:$0xff] %v10919_v56  ;;  %v1602_v47 = vpop.f32.mrf.mxu3  ;;  %1846 = vmatpush.bf16.msrb.mxu2 %v9380_v60  ;;  %vm10939_vm3 = vcmp.gt.f32.partialorder %v3899_v27, 0.0  ;;  %v9345_v57 = vld [vmem:[%s10259_s18 + $0x28] sm:$0xf0] }
  0xfb   : > { %v3750_v16 = vpack.c.bf16 %v3523_v41, %v3522_v21  ;;  %v1603_v8 = vadd.f32 %v1602_v47, %v1513_v42  ;;  %v1337_v29 = vpop.f32.mrf.mxu0  ;;  %v1426_v9 = vpop.f32.mrf.mxu1  ;;  %16374 = vst [vmem:[#allocation43_spill] sm:$0xff] %v10926_v5  ;;  %v10096_v21 = vld [vmem:[%s16038_s1 + $0xd4] sm:$0xf0]  ;;  %1935 = vmatpush.bf16.msrb.mxu3 %v9636_v58  ;;  %vm4770_vm6 = vmpackc.low %vm10939_vm3, %vm10935_vm2  ;;  %v9375_v41 = vld [vmem:[%s10259_s18 + $0x48] sm:$0xf] }
  0xfc   : > { %v1427_v50 = vadd.f32 %v1426_v9, %v1337_v29  ;;  %v9313_v29 = vld [vmem:[%s16038_s1 + $0xd8] sm:$0xf0]  ;;  %v10961_v61 = vor.u32 %v10096_v21, %v9311_v22 }
  0xfd   : > { %v2762_v7 = vpack.c.bf16 %v1603_v8, %v1425_v0  ;;  %v3906_v56 = vunpack.c.l.bf16 %v3750_v16  ;;  %v3907_v38 = vunpack.c.h.bf16 %v3750_v16  ;;  %v4642_v0 = vpack.c.bf16 %v4411_v24, %v4410_v26  ;;  %v10095_v8 = vld [vmem:[%s16038_s1 + $0xd4] sm:$0xf] }
  0xfe   : > { %v2979_v26 = vperm.slane %v10622_v59, %v10678_v3  ;;  %16383 = vst [vmem:[#allocation44_spill] sm:$0xff] %v10961_v61  ;;  %v10967_v59 = vor.u32 %v10095_v8, %v9313_v29  ;;  %v9376_v29 = vor.u32 %v9954_v49, %v9375_v41 }
  0xff   : > { %v3242_v42 = vunpack.c.l.bf16 %v2762_v7  ;;  %v3243_v47 = vunpack.c.h.bf16 %v2762_v7  ;;  %vm10949_vm4 = vcmp.gt.f32.partialorder %v3906_v56, 0.0  ;;  %vm10953_vm5 = vcmp.gt.f32.partialorder %v3907_v38, 0.0 }
 0x100   : > { %v4418_v24 = vmul.f32 0.20019531, %v3906_v56  ;;  %v4419_v9 = vmul.f32 0.20019531, %v3907_v38  ;;  %v1515_v6 = vpop.f32.mrf.mxu2  ;;  %16384 = vst [vmem:[#allocation45_spill] sm:$0xff] %v10967_v59  ;;  %vm4774_vm7 = vmpackc.low %vm10953_vm5, %vm10949_vm4  ;;  %v4898_v31 = vsel %vm4770_vm6, %v10901_v43, %v4642_v0  ;;  %1668 = vmatpush.bf16.msrb.mxu0 %v9376_v29 }
 0x101   : > { %v3530_v34 = vadd.f32 %v10926_v5, %v3242_v42  ;;  %v3531_v58 = vadd.f32 %v10926_v5, %v3243_v47  ;;  %v9631_v42 = vld [vmem:[%s10259_s18 + $0x248] sm:$0xf]  ;;  %v10979_v47 = vunpack.c.l.bf16 %v2979_v26  ;;  %v5274_v5 = vunpack.c.l.b16 %v4898_v31 }
 0x102   : > { %v1604_v60 = vpop.f32.mrf.mxu3  ;;  %v4646_v56 = vpack.c.bf16 %v4419_v9, %v4418_v24  ;;  %v10018_v24 = vld [vmem:[%s10259_s18 + $0x264] sm:$0xf0]  ;;  %v5275_v43 = vunpack.c.h.b16 %v4898_v31 }
 0x103   : > { %v10974_v7 = vpack.c.bf16 %v3531_v58, %v3530_v34  ;;  %v1605_v22 = vadd.f32 %v1604_v60, %v1515_v6  ;;  %v1340_v38 = vpop.f32.mrf.mxu0  ;;  %v1429_v21 = vpop.f32.mrf.mxu1  ;;  %16385 = vst [vmem:[#allocation46_spill] sm:$0xff] %v10979_v47  ;;  %v9632_v27 = vor.u32 %v10018_v24, %v9631_v42 }
 0x104   : > { %v1430_v8 = vadd.f32 %v1429_v21, %v1340_v38  ;;  %v4902_v9 = vsel %vm4774_vm7, %v3750_v16, %v4646_v56  ;;  %v2988_v16 = vperm.slane %v10527_v62, %v10678_v3 }
 0x105   : > { %v2766_v4 = vpack.c.bf16 %v1605_v22, %v1427_v50  ;;  %1379 = vmatmul.bf16.gmra.mxu0 %v10961_v61  ;;  %1557 = vmatmul.bf16.gmra.mxu2 %v10961_v61  ;;  %v3914_v0 = vunpack.c.l.bf16 %v10974_v7  ;;  %v3915_v34 = vunpack.c.h.bf16 %v10974_v7  ;;  %v5282_v26 = vunpack.c.l.b16 %v4902_v9  ;;  %v10010_v61 = vld [vmem:[%s10259_s18 + $0x224] sm:$0xf0] }
 0x106   : > { %1468 = vmatmul.bf16.gmra.mxu1 %v10967_v59  ;;  %v5283_v58 = vunpack.c.h.b16 %v4902_v9 }
 0x107   : > { %v3250_v6 = vunpack.c.l.bf16 %v2766_v4  ;;  %v3251_v60 = vunpack.c.h.bf16 %v2766_v4  ;;  %1646 = vmatmul.bf16.gmra.mxu3 %v10967_v59  ;;  %1757 = vmatpush.bf16.msrb.mxu1 %v9632_v27  ;;  %v10990_v50 = vpack.c.b16 %v5282_v26, %v5274_v5  ;;  %v4426_v41 = vmul.f32 0.20019531, %v3914_v0 }
 0x108   : > { %v10992_v56 = vpack.c.b16 %v5283_v58, %v5275_v43  ;;  %v1518_v38 = vpop.f32.mrf.mxu2  ;;  %v4427_v49 = vmul.f32 0.20019531, %v3915_v34  ;;  %v10996_v4 = vunpack.c.l.bf16 %v2988_v16  ;;  %vm10998_vm8 = vcmp.gt.f32.partialorder %v3914_v0, 0.0 }
 0x109   : > { %16386 = vst [vmem:[#allocation47_spill] sm:$0xff] %v10990_v50  ;;  %v3538_v31 = vadd.f32 %v10979_v47, %v3250_v6  ;;  %v3539_v22 = vadd.f32 %v10979_v47, %v3251_v60  ;;  %vm11002_vm9 = vcmp.gt.f32.partialorder %v3915_v34, 0.0  ;;  %v9319_v6 = vld [vmem:[%s16038_s1 + $0xe0] sm:$0xf]  ;;  %v10098_v60 = vld [vmem:[%s16038_s1 + $0xe4] sm:$0xf0] }
 0x10a   : > { %16387 = vst [vmem:[#allocation48_spill] sm:$0xff] %v10992_v56  ;;  %v1607_v21 = vpop.f32.mrf.mxu3  ;;  %v4650_v0 = vpack.c.bf16 %v4427_v49, %v4426_v41  ;;  %v10097_v34 = vld [vmem:[%s16038_s1 + $0xe4] sm:$0xf]  ;;  %vm4778_vm12 = vmpackc.low %vm11002_vm9, %vm10998_vm8  ;;  %v2997_v49 = vperm.slane %v10597_v37, %v10678_v3  ;;  %v9343_v56 = vld [vmem:[%s10259_s18 + $0x8] sm:$0xf] }
 0x10b   : > { %v3758_v42 = vpack.c.bf16 %v3539_v22, %v3538_v31  ;;  %v1608_v24 = vadd.f32 %v1607_v21, %v1518_v38  ;;  %v1342_v9 = vpop.f32.mrf.mxu0  ;;  %v1431_v29 = vpop.f32.mrf.mxu1  ;;  %16388 = vst [vmem:[#allocation49_spill] sm:$0xff] %v10996_v4  ;;  %v9321_v31 = vld [vmem:[%s16038_s1 + $0xe8] sm:$0xf0]  ;;  %v9946_v50 = vld [vmem:[%s10259_s18 + $0x24] sm:$0xf0] }
 0x10c   : > { %v1432_v62 = vadd.f32 %v1431_v29, %v1342_v9  ;;  %v11039_v47 = vor.u32 %v10097_v34, %v9321_v31  ;;  %v9344_v59 = vor.u32 %v9946_v50, %v9343_v56  ;;  %v9348_v34 = vor.u32 %v9942_v28, %v9345_v57  ;;  %v10006_v31 = vld [vmem:[%s10259_s18 + $0x20c] sm:$0xf] }
 0x10d   : > { %v2770_v27 = vpack.c.bf16 %v1608_v24, %v1430_v8  ;;  %v3922_v43 = vunpack.c.l.bf16 %v3758_v42  ;;  %v3923_v26 = vunpack.c.h.bf16 %v3758_v42  ;;  %v9601_v50 = vld [vmem:[%s10259_s18 + $0x228] sm:$0xf0] }
 0x10e   : > { %1669 = vmatpush.bf16.msrb.mxu0 %v9344_v59  ;;  %v9604_v58 = vor.u32 %v10006_v31, %v9601_v50  ;;  %1847 = vmatpush.bf16.msrb.mxu2 %v9348_v34 }
 0x10f   : > { %v3258_v16 = vunpack.c.l.bf16 %v2770_v27  ;;  %v3259_v8 = vunpack.c.h.bf16 %v2770_v27  ;;  %vm11018_vm10 = vcmp.gt.f32.partialorder %v3922_v43, 0.0  ;;  %vm11022_vm11 = vcmp.gt.f32.partialorder %v3923_v26, 0.0 }
 0x110   : > { %v4434_v21 = vmul.f32 0.20019531, %v3922_v43  ;;  %v4435_v41 = vmul.f32 0.20019531, %v3923_v26  ;;  %v1520_v29 = vpop.f32.mrf.mxu2  ;;  %v11034_v27 = vor.u32 %v10098_v60, %v9319_v6  ;;  %v9599_v43 = vld [vmem:[%s10259_s18 + $0x208] sm:$0xf]  ;;  %v4906_v6 = vsel %vm4778_vm12, %v10974_v7, %v4650_v0  ;;  %vm4782_vm13 = vmpackc.low %vm11022_vm11, %vm11018_vm10  ;;  %1936 = vmatpush.bf16.msrb.mxu3 %v9604_v58 }
 0x111   : > { %v3546_v24 = vadd.f32 %v10996_v4, %v3258_v16  ;;  %v3547_v9 = vadd.f32 %v10996_v4, %v3259_v8  ;;  %v9600_v35 = vor.u32 %v10010_v61, %v9599_v43  ;;  %v5290_v57 = vunpack.c.l.b16 %v4906_v6 }
 0x112   : > { %v1609_v26 = vpop.f32.mrf.mxu3  ;;  %v4654_v37 = vpack.c.bf16 %v4435_v41, %v4434_v21  ;;  %v11058_v21 = vunpack.c.l.bf16 %v2997_v49  ;;  %v5291_v28 = vunpack.c.h.b16 %v4906_v6 }
 0x113   : > { %v11050_v60 = vpack.c.bf16 %v3547_v9, %v3546_v24  ;;  %v1610_v16 = vadd.f32 %v1609_v26, %v1520_v29  ;;  %v1345_v8 = vpop.f32.mrf.mxu0  ;;  %v1434_v4 = vpop.f32.mrf.mxu1  ;;  %1758 = vmatpush.bf16.msrb.mxu1 %v9600_v35 }
 0x114   : > { %v1435_v56 = vadd.f32 %v1434_v4, %v1345_v8  ;;  %v4910_v5 = vsel %vm4782_vm13, %v3758_v42, %v4654_v37 }
 0x115   : > { %v2774_v7 = vpack.c.bf16 %v1610_v16, %v1432_v62  ;;  %1384 = vmatmul.bf16.gmra.mxu0 %v11034_v27  ;;  %v5298_v0 = vunpack.c.l.b16 %v4910_v5  ;;  %1562 = vmatmul.bf16.gmra.mxu2 %v11034_v27  ;;  %v5299_v61 = vunpack.c.h.b16 %v4910_v5  ;;  %v3930_v59 = vunpack.c.l.bf16 %v11050_v60  ;;  %v10100_v5 = vld [vmem:[%s16038_s1 + $0xf4] sm:$0xf0] }
 0x116   : > { %1473 = vmatmul.bf16.gmra.mxu1 %v11039_v47  ;;  %v3931_v42 = vunpack.c.h.bf16 %v11050_v60  ;;  %v3006_v62 = vperm.slane %v10499_v46, %v10678_v3  ;;  %v9327_v46 = vld [vmem:[%s16038_s1 + $0xf0] sm:$0xf] }
 0x117   : > { %v3266_v22 = vunpack.c.l.bf16 %v2774_v7  ;;  %v3267_v38 = vunpack.c.h.bf16 %v2774_v7  ;;  %1651 = vmatmul.bf16.gmra.mxu3 %v11039_v47  ;;  %v11066_v4 = vpack.c.b16 %v5298_v0, %v5290_v57  ;;  %v11068_v35 = vpack.c.b16 %v5299_v61, %v5291_v28  ;;  %v9329_v28 = vld [vmem:[%s16038_s1 + $0xf8] sm:$0xf0] }
 0x118   : > { %v1523_v24 = vpop.f32.mrf.mxu2  ;;  %v4442_v6 = vmul.f32 0.20019531, %v3930_v59  ;;  %v4443_v16 = vmul.f32 0.20019531, %v3931_v42  ;;  %v11074_v34 = vunpack.c.l.bf16 %v3006_v62  ;;  %vm11082_vm14 = vcmp.gt.f32.partialorder %v3930_v59, 0.0 }
 0x119   : > { %16397 = vst [vmem:[#allocation50_spill] sm:$0xff] %v11066_v4  ;;  %v3554_v41 = vadd.f32 %v11058_v21, %v3266_v22  ;;  %v3555_v49 = vadd.f32 %v11058_v21, %v3267_v38  ;;  %vm11092_vm15 = vcmp.gt.f32.partialorder %v3931_v42, 0.0 }
 0x11a   : > { %16398 = vst [vmem:[#allocation51_spill] sm:$0xff] %v11068_v35  ;;  %v1612_v9 = vpop.f32.mrf.mxu3  ;;  %v4658_v22 = vpack.c.bf16 %v4443_v16, %v4442_v6  ;;  %vm4786_vm2 = vmpackc.low %vm11092_vm15, %vm11082_vm14  ;;  %v10063_v35 = vld [vmem:[%s10259_s18 + $0x3d4] sm:$0xf] }
 0x11b   : > { %v3766_v29 = vpack.c.bf16 %v3555_v49, %v3554_v41  ;;  %v1613_v43 = vadd.f32 %v1612_v9, %v1523_v24  ;;  %v1347_v26 = vpop.f32.mrf.mxu0  ;;  %v1436_v37 = vpop.f32.mrf.mxu1  ;;  %v3015_v49 = vperm.slane %v10517_v55, %v10678_v3 }
 0x11c   : > { %v1437_v8 = vadd.f32 %v1436_v37, %v1347_v26 }
 0x11d   : > { %v2778_v31 = vpack.c.bf16 %v1613_v43, %v1435_v56  ;;  %v3938_v50 = vunpack.c.l.bf16 %v3766_v29  ;;  %v3939_v58 = vunpack.c.h.bf16 %v3766_v29  ;;  %v10099_v56 = vld [vmem:[%s16038_s1 + $0xf4] sm:$0xf]  ;;  %v11108_v43 = vor.u32 %v10100_v5, %v9327_v46 }
 0x11e   : > { %v11110_v37 = vor.u32 %v10099_v56, %v9329_v28 }
 0x11f   : > { %v3274_v0 = vunpack.c.l.bf16 %v2778_v31  ;;  %v3275_v57 = vunpack.c.h.bf16 %v2778_v31  ;;  %vm11096_vm0 = vcmp.gt.f32.partialorder %v3938_v50, 0.0  ;;  %vm11100_vm1 = vcmp.gt.f32.partialorder %v3939_v58, 0.0 }
 0x120   : > { %v4450_v62 = vmul.f32 0.20019531, %v3938_v50  ;;  %v4451_v41 = vmul.f32 0.20019531, %v3939_v58  ;;  %v1525_v9 = vpop.f32.mrf.mxu2  ;;  %vm4790_vm3 = vmpackc.low %vm11100_vm1, %vm11096_vm0  ;;  %v4914_v58 = vsel %vm4786_vm2, %v11050_v60, %v4658_v22 }
 0x121   : > { %v3562_v24 = vadd.f32 %v11074_v34, %v3274_v0  ;;  %v3563_v42 = vadd.f32 %v11074_v34, %v3275_v57  ;;  %v11123_v0 = vunpack.c.l.bf16 %v3015_v49  ;;  %v5306_v57 = vunpack.c.l.b16 %v4914_v58 }
 0x122   : > { %v1614_v26 = vpop.f32.mrf.mxu3  ;;  %v4662_v6 = vpack.c.bf16 %v4451_v41, %v4450_v62  ;;  %v5307_v28 = vunpack.c.h.b16 %v4914_v58 }
 0x123   : > { %v11116_v16 = vpack.c.bf16 %v3563_v42, %v3562_v24  ;;  %v1615_v31 = vadd.f32 %v1614_v26, %v1525_v9  ;;  %v1350_v55 = vpop.f32.mrf.mxu0  ;;  %v1439_v50 = vpop.f32.mrf.mxu1 }
 0x124   : > { %v1440_v46 = vadd.f32 %v1439_v50, %v1350_v55  ;;  %v4918_v5 = vsel %vm4790_vm3, %v3766_v29, %v4662_v6  ;;  %v11139_v9 = vpop.permute.xlu0 %3063 }
 0x125   : > { %v2782_v7 = vpack.c.bf16 %v1615_v31, %v1437_v8  ;;  %1389 = vmatmul.bf16.gmra.mxu0 %v11108_v43  ;;  %1567 = vmatmul.bf16.gmra.mxu2 %v11108_v43  ;;  %v5314_v56 = vunpack.c.l.b16 %v4918_v5  ;;  %v5315_v61 = vunpack.c.h.b16 %v4918_v5  ;;  %v3946_v60 = vunpack.c.l.bf16 %v11116_v16 }
 0x126   : > { %1478 = vmatmul.bf16.gmra.mxu1 %v11110_v37  ;;  %v3947_v29 = vunpack.c.h.bf16 %v11116_v16  ;;  %v3024_v8 = vperm.slane %v10549_v12, %v10678_v3 }
 0x127   : > { %v3282_v38 = vunpack.c.l.bf16 %v2782_v7  ;;  %v3283_v59 = vunpack.c.h.bf16 %v2782_v7  ;;  %1656 = vmatmul.bf16.gmra.mxu3 %v11110_v37  ;;  %v11131_v22 = vpack.c.b16 %v5314_v56, %v5306_v57  ;;  %v11137_v24 = vpack.c.b16 %v5315_v61, %v5307_v28 }
 0x128   : > { %v1528_v49 = vpop.f32.mrf.mxu2  ;;  %v4458_v50 = vmul.f32 0.20019531, %v3946_v60  ;;  %v4459_v58 = vmul.f32 0.20019531, %v3947_v29  ;;  %v11141_v7 = vunpack.c.l.bf16 %v3024_v8  ;;  %vm11145_vm4 = vcmp.gt.f32.partialorder %v3946_v60, 0.0 }
 0x129   : > { %16407 = vst [vmem:[#allocation52_spill] sm:$0xff] %v11131_v22  ;;  %v3570_v62 = vadd.f32 %v11123_v0, %v3282_v38  ;;  %v3571_v41 = vadd.f32 %v11123_v0, %v3283_v59  ;;  %v3033_v38 = vperm.slane %v10561_v17, %v10678_v3  ;;  %vm11149_vm5 = vcmp.gt.f32.partialorder %v3947_v29, 0.0 }
 0x12a   : > { %16408 = vst [vmem:[#allocation53_spill] sm:$0xff] %v11137_v24  ;;  %v1617_v42 = vpop.f32.mrf.mxu3  ;;  %vm4794_vm8 = vmpackc.low %vm11149_vm5, %vm11145_vm4 }
 0x12b   : > { %v3774_v26 = vpack.c.bf16 %v3571_v41, %v3570_v62  ;;  %v1618_v6 = vadd.f32 %v1617_v42, %v1528_v49  ;;  %v1352_v31 = vpop.f32.mrf.mxu0  ;;  %v1441_v55 = vpop.f32.mrf.mxu1  ;;  %v4666_v41 = vpack.c.bf16 %v4459_v58, %v4458_v50 }
 0x12c   : > { %v1442_v5 = vadd.f32 %v1441_v55, %v1352_v31  ;;  %v3037_v62 = vpop.permute.xlu0 %3036 }
 0x12d   : > { %v2786_v12 = vpack.c.bf16 %v1618_v6, %v1440_v46  ;;  %v3954_v57 = vunpack.c.l.bf16 %v3774_v26  ;;  %v3955_v56 = vunpack.c.h.bf16 %v3774_v26 }
 0x12f   : > { %v3290_v61 = vunpack.c.l.bf16 %v2786_v12  ;;  %v3291_v59 = vunpack.c.h.bf16 %v2786_v12  ;;  %vm11153_vm6 = vcmp.gt.f32.partialorder %v3954_v57, 0.0  ;;  %vm11157_vm7 = vcmp.gt.f32.partialorder %v3955_v56, 0.0 }
 0x130   : > { %v4466_v17 = vmul.f32 0.20019531, %v3954_v57  ;;  %v4467_v60 = vmul.f32 0.20019531, %v3955_v56  ;;  %v1530_v6 = vpop.f32.mrf.mxu2  ;;  %vm4798_vm9 = vmpackc.low %vm11157_vm7, %vm11153_vm6  ;;  %v4922_v57 = vsel %vm4794_vm8, %v11116_v16, %v4666_v41  ;;  %v11172_v56 = vunpack.c.l.bf16 %v3033_v38 }
 0x131   : > { %v3578_v49 = vadd.f32 %v11141_v7, %v3290_v61  ;;  %v3579_v42 = vadd.f32 %v11141_v7, %v3291_v59  ;;  %v5322_v8 = vunpack.c.l.b16 %v4922_v57  ;;  %v5323_v46 = vunpack.c.h.b16 %v4922_v57 }
 0x132   : > { %v1619_v29 = vpop.f32.mrf.mxu3  ;;  %v4670_v31 = vpack.c.bf16 %v4467_v60, %v4466_v17 }
 0x133   : > { %v3778_v55 = vpack.c.bf16 %v3579_v42, %v3578_v49  ;;  %v1620_v50 = vadd.f32 %v1619_v29, %v1530_v6  ;;  %v1355_v58 = vpop.f32.mrf.mxu0  ;;  %v1444_v12 = vpop.f32.mrf.mxu1 }
 0x134   : > { %v1445_v61 = vadd.f32 %v1444_v12, %v1355_v58  ;;  %v4926_v59 = vsel %vm4798_vm9, %v3774_v26, %v4670_v31  ;;  %v3042_v26 = vperm.slane %v3037_v62, %v10678_v3 }
 0x135   : > { %v3962_v17 = vunpack.c.l.bf16 %v3778_v55  ;;  %v3963_v28 = vunpack.c.h.bf16 %v3778_v55  ;;  %v2790_v60 = vpack.c.bf16 %v1620_v50, %v1442_v5  ;;  %1670 = vmatmul.bf16.vlgmr.msrb.gmra.mxu0 %v10370_v51  ;;  %v5330_v49 = vunpack.c.l.b16 %v4926_v59  ;;  %1848 = vmatmul.bf16.vlgmr.msrb.gmra.mxu2 %v10370_v51 }
 0x136   : > { %1759 = vmatmul.bf16.vlgmr.msrb.gmra.mxu1 %v10375_v53  ;;  %v5331_v42 = vunpack.c.h.b16 %v4926_v59 }
 0x137   : > { %v4474_v6 = vmul.f32 0.20019531, %v3962_v17  ;;  %v4475_v16 = vmul.f32 0.20019531, %v3963_v28  ;;  %v3298_v38 = vunpack.c.l.bf16 %v2790_v60  ;;  %v3299_v41 = vunpack.c.h.bf16 %v2790_v60  ;;  %1937 = vmatmul.bf16.vlgmr.msrb.gmra.mxu3 %v10375_v53 }
 0x138   : > { %v11179_v5 = vpack.c.b16 %v5330_v49, %v5322_v8  ;;  %v11181_v29 = vpack.c.b16 %v5331_v42, %v5323_v46  ;;  %v1533_v58 = vpop.f32.mrf.mxu2  ;;  %vm11185_vm10 = vcmp.gt.f32.partialorder %v3962_v17, 0.0  ;;  %vm11189_vm11 = vcmp.gt.f32.partialorder %v3963_v28, 0.0  ;;  %v9999_v42 = vld [vmem:[%s10259_s18 + $0x1d4] sm:$0xf] }
 0x139   : > { %v3586_v31 = vadd.f32 %v11172_v56, %v3298_v38  ;;  %v3587_v50 = vadd.f32 %v11172_v56, %v3299_v41  ;;  %v4674_v60 = vpack.c.bf16 %v4475_v16, %v4474_v6  ;;  %v9577_v38 = vld [vmem:[%s10259_s18 + $0x1f0] sm:$0xf0]  ;;  %v11196_v41 = vunpack.c.l.bf16 %v3042_v26  ;;  %vm4802_vm12 = vmpackc.low %vm11189_vm11, %vm11185_vm10  ;;  %v3046_v6 = vpop.permute.xlu1 %3045 }
 0x13a   : > { %16417 = vst [vmem:[#allocation54_spill] sm:$0xff] %v11179_v5  ;;  %v1622_v12 = vpop.f32.mrf.mxu3  ;;  %v9580_v24 = vor.u32 %v9999_v42, %v9577_v38  ;;  %v9833_v17 = vld [vmem:[%s10259_s18 + $0x3f0] sm:$0xf0]  ;;  %v9831_v42 = vld [vmem:[%s10259_s18 + $0x3d0] sm:$0xf] }
 0x13b   : > { %16418 = vst [vmem:[#allocation55_spill] sm:$0xff] %v11181_v29  ;;  %v3782_v62 = vpack.c.bf16 %v3587_v50, %v3586_v31  ;;  %v1623_v49 = vadd.f32 %v1622_v12, %v1533_v58  ;;  %v1357_v8 = vpop.f32.mrf.mxu0  ;;  %v1446_v46 = vpop.f32.mrf.mxu1  ;;  %v9836_v28 = vor.u32 %v10063_v35, %v9833_v17  ;;  %v4930_v16 = vsel %vm4802_vm12, %v3778_v55, %v4674_v60 }
 0x13c   : > { %16423 = vst [vmem:[#allocation56_spill] sm:$0xff] %v11196_v41  ;;  %v1447_v4 = vadd.f32 %v1446_v46, %v1357_v8  ;;  %2196 = vmatpush.bf16.msra.mxu2 %v9580_v24  ;;  %v3051_v24 = vperm.slane %v3046_v6, %v10678_v3  ;;  %v9575_v8 = vld [vmem:[%s10259_s18 + $0x1d0] sm:$0xf]  ;;  %v5339_v17 = vunpack.c.h.b16 %v4930_v16 }
 0x13d   : > { %v3970_v22 = vunpack.c.l.bf16 %v3782_v62  ;;  %v3971_v29 = vunpack.c.h.bf16 %v3782_v62  ;;  %v2794_v5 = vpack.c.bf16 %v1623_v49, %v1445_v61  ;;  %2285 = vmatpush.bf16.msra.mxu3 %v9836_v28  ;;  %v10003_v46 = vld [vmem:[%s10259_s18 + $0x1ec] sm:$0xf0] }
 0x13e   : > { %v11222_v12 = vunpack.c.l.bf16 %v3051_v24 }
 0x13f   : > { %v4482_v31 = vmul.f32 0.20019531, %v3970_v22  ;;  %v4483_v50 = vmul.f32 0.20019531, %v3971_v29  ;;  %v3306_v58 = vunpack.c.l.bf16 %v2794_v5  ;;  %v3307_v26 = vunpack.c.h.bf16 %v2794_v5 }
 0x140   : > { %vm11203_vm13 = vcmp.gt.f32.partialorder %v3970_v22, 0.0  ;;  %vm11207_vm14 = vcmp.gt.f32.partialorder %v3971_v29, 0.0  ;;  %v1535_v61 = vpop.f32.mrf.mxu2  ;;  %v5338_v22 = vunpack.c.l.b16 %v4930_v16  ;;  %16428 = vst [vmem:[#allocation57_spill] sm:$0xff] %v11222_v12 }
 0x141   : > { %v4678_v55 = vpack.c.bf16 %v4483_v50, %v4482_v31  ;;  %v3594_v57 = vadd.f32 %v11196_v41, %v3306_v58  ;;  %v3595_v5 = vadd.f32 %v11196_v41, %v3307_v26  ;;  %vm4806_vm15 = vmpackc.low %vm11207_vm14, %vm11203_vm13  ;;  %v9576_v31 = vor.u32 %v10003_v46, %v9575_v8  ;;  %v10067_v50 = vld [vmem:[%s10259_s18 + $0x3ec] sm:$0xf0] }
 0x142   : > { %v1624_v59 = vpop.f32.mrf.mxu3  ;;  %v9832_v35 = vor.u32 %v10067_v50, %v9831_v42 }
 0x143   : > { %v1625_v29 = vadd.f32 %v1624_v59, %v1535_v61  ;;  %v1360_v60 = vpop.f32.mrf.mxu0  ;;  %v1449_v49 = vpop.f32.mrf.mxu1  ;;  %v4934_v38 = vsel %vm4806_vm15, %v3782_v62, %v4678_v55  ;;  %v3786_v28 = vpack.c.bf16 %v3595_v5, %v3594_v57  ;;  %2018 = vmatpush.bf16.msra.mxu0 %v9576_v31 }
 0x144   : > { %v1450_v6 = vadd.f32 %v1449_v49, %v1360_v60  ;;  %v5346_v58 = vunpack.c.l.b16 %v4934_v38  ;;  %v5347_v26 = vunpack.c.h.b16 %v4934_v38  ;;  %2107 = vmatpush.bf16.msra.mxu1 %v9832_v35 }
 0x145   : > { %v2798_v41 = vpack.c.bf16 %v1625_v29, %v1447_v4  ;;  %1675 = vmatmul.bf16.gmra.mxu0 %v10416_v11  ;;  %1853 = vmatmul.bf16.gmra.mxu2 %v10416_v11  ;;  %v3978_v16 = vunpack.c.l.bf16 %v3786_v28  ;;  %v3979_v55 = vunpack.c.h.bf16 %v3786_v28  ;;  %v3060_v4 = vperm.slane %v10664_v32, %v10678_v3 }
 0x146   : > { %1764 = vmatmul.bf16.gmra.mxu1 %v10421_v13  ;;  %v11227_v61 = vpack.c.b16 %v5346_v58, %v5338_v22  ;;  %v11229_v62 = vpack.c.b16 %v5347_v26, %v5339_v17 }
 0x147   : > { %v3314_v57 = vunpack.c.l.bf16 %v2798_v41  ;;  %v3315_v5 = vunpack.c.h.bf16 %v2798_v41  ;;  %1942 = vmatmul.bf16.gmra.mxu3 %v10421_v13  ;;  %v4490_v60 = vmul.f32 0.20019531, %v3978_v16  ;;  %v4491_v49 = vmul.f32 0.20019531, %v3979_v55 }
 0x148   : > { %v1538_v24 = vpop.f32.mrf.mxu2  ;;  %v11236_v17 = vunpack.c.l.bf16 %v3060_v4  ;;  %vm11238_vm0 = vcmp.gt.f32.partialorder %v3978_v16, 0.0  ;;  %vm11242_vm1 = vcmp.gt.f32.partialorder %v3979_v55, 0.0 }
 0x149   : > { %v3602_v59 = vadd.f32 %v11222_v12, %v3314_v57  ;;  %v3603_v29 = vadd.f32 %v11222_v12, %v3315_v5  ;;  %v4682_v35 = vpack.c.bf16 %v4491_v49, %v4490_v60  ;;  %vm4810_vm4 = vmpackc.low %vm11242_vm1, %vm11238_vm0  ;;  %v9681_v12 = vld [vmem:[%s10259_s18 + $0x2b8] sm:$0xf0] }
 0x14a   : > { %v1627_v22 = vpop.f32.mrf.mxu3  ;;  %16429 = vst [vmem:[#allocation58_spill] sm:$0xff] %v11236_v17 }
 0x14b   : > { %v1628_v8 = vadd.f32 %v1627_v22, %v1538_v24  ;;  %v1362_v46 = vpop.f32.mrf.mxu0  ;;  %v1451_v42 = vpop.f32.mrf.mxu1  ;;  %v3790_v38 = vpack.c.bf16 %v3603_v29, %v3602_v59  ;;  %v3069_v59 = vperm.slane %v11139_v9, %v10678_v3 }
 0x14c   : > { %v1452_v41 = vadd.f32 %v1451_v42, %v1362_v46 }
 0x14d   : > { %v2802_v31 = vpack.c.bf16 %v1628_v8, %v1450_v6  ;;  %v3986_v50 = vunpack.c.l.bf16 %v3790_v38  ;;  %v3987_v58 = vunpack.c.h.bf16 %v3790_v38  ;;  %v4938_v8 = vsel %vm4810_vm4, %v3786_v28, %v4682_v35 }
 0x14e   : > { %v5354_v26 = vunpack.c.l.b16 %v4938_v8  ;;  %v5355_v24 = vunpack.c.h.b16 %v4938_v8 }
 0x14f   : > { %v3322_v57 = vunpack.c.l.bf16 %v2802_v31  ;;  %v3323_v5 = vunpack.c.h.bf16 %v2802_v31  ;;  %vm11246_vm2 = vcmp.gt.f32.partialorder %v3986_v50, 0.0  ;;  %vm11250_vm3 = vcmp.gt.f32.partialorder %v3987_v58, 0.0 }
 0x150   : > { %v4498_v6 = vmul.f32 0.20019531, %v3986_v50  ;;  %v4499_v16 = vmul.f32 0.20019531, %v3987_v58  ;;  %v1540_v22 = vpop.f32.mrf.mxu2  ;;  %vm4814_vm5 = vmpackc.low %vm11250_vm3, %vm11246_vm2 }
 0x151   : > { %v3610_v55 = vadd.f32 %v11236_v17, %v3322_v57  ;;  %v3611_v29 = vadd.f32 %v11236_v17, %v3323_v5  ;;  %v11268_v57 = vunpack.c.l.bf16 %v3069_v59  ;;  %v10032_v17 = vld [vmem:[%s10259_s18 + $0x2dc] sm:$0xf] }
 0x152   : > { %v1629_v60 = vpop.f32.mrf.mxu3  ;;  %v4686_v49 = vpack.c.bf16 %v4499_v16, %v4498_v6 }
 0x153   : > { %v11262_v46 = vpack.c.bf16 %v3611_v29, %v3610_v55  ;;  %v1630_v42 = vadd.f32 %v1629_v60, %v1540_v22  ;;  %v1365_v31 = vpop.f32.mrf.mxu0  ;;  %v1454_v50 = vpop.f32.mrf.mxu1  ;;  %16438 = vst [vmem:[#allocation59_spill] sm:$0xff] %v11268_v57 }
 0x154   : > { %v1455_v9 = vadd.f32 %v1454_v50, %v1365_v31  ;;  %v4942_v58 = vsel %vm4814_vm5, %v3790_v38, %v4686_v49 }
 0x155   : > { %v2806_v32 = vpack.c.bf16 %v1630_v42, %v1452_v41  ;;  %1680 = vmatmul.bf16.gmra.mxu0 %v10454_v23  ;;  %v5362_v5 = vunpack.c.l.b16 %v4942_v58  ;;  %1858 = vmatmul.bf16.gmra.mxu2 %v10454_v23  ;;  %v3994_v28 = vunpack.c.l.bf16 %v11262_v46  ;;  %v3995_v35 = vunpack.c.h.bf16 %v11262_v46 }
 0x156   : > { %1769 = vmatmul.bf16.gmra.mxu1 %v10459_v25  ;;  %v5363_v4 = vunpack.c.h.b16 %v4942_v58  ;;  %v3078_v41 = vperm.slane %v10670_v39, %v10678_v3  ;;  %v10055_v39 = vld [vmem:[%s10259_s18 + $0x394] sm:$0xf] }
 0x157   : > { %v3330_v6 = vunpack.c.l.bf16 %v2806_v32  ;;  %v3331_v38 = vunpack.c.h.bf16 %v2806_v32  ;;  %1947 = vmatmul.bf16.gmra.mxu3 %v10459_v25  ;;  %v11278_v16 = vpack.c.b16 %v5362_v5, %v5354_v26  ;;  %v4506_v49 = vmul.f32 0.20019531, %v3994_v28  ;;  %v9991_v32 = vld [vmem:[%s10259_s18 + $0x194] sm:$0xf] }
 0x158   : > { %v11280_v59 = vpack.c.b16 %v5363_v4, %v5355_v24  ;;  %v1543_v22 = vpop.f32.mrf.mxu2  ;;  %v4507_v8 = vmul.f32 0.20019531, %v3995_v35  ;;  %v9545_v25 = vld [vmem:[%s10259_s18 + $0x1b0] sm:$0xf0]  ;;  %v11287_v26 = vunpack.c.l.bf16 %v3078_v41  ;;  %vm11290_vm6 = vcmp.gt.f32.partialorder %v3994_v28, 0.0 }
 0x159   : > { %16439 = vst [vmem:[#allocation60_spill] sm:$0xff] %v11278_v16  ;;  %v3618_v55 = vadd.f32 %v11268_v57, %v3330_v6  ;;  %v3619_v29 = vadd.f32 %v11268_v57, %v3331_v38  ;;  %v9548_v24 = vor.u32 %v9991_v32, %v9545_v25  ;;  %v9801_v4 = vld [vmem:[%s10259_s18 + $0x3b0] sm:$0xf0]  ;;  %vm11294_vm7 = vcmp.gt.f32.partialorder %v3995_v35, 0.0  ;;  %v9995_v57 = vld [vmem:[%s10259_s18 + $0x1ac] sm:$0xf0] }
 0x15a   : > { %16440 = vst [vmem:[#allocation61_spill] sm:$0xff] %v11280_v59  ;;  %v1632_v60 = vpop.f32.mrf.mxu3  ;;  %v9804_v23 = vor.u32 %v10055_v39, %v9801_v4  ;;  %v3087_v28 = vperm.slane %v10637_v1, %v10678_v3  ;;  %vm4818_vm10 = vmpackc.low %vm11294_vm7, %vm11290_vm6  ;;  %v9799_v4 = vld [vmem:[%s10259_s18 + $0x390] sm:$0xf]  ;;  %v16570_v16 = vld [vmem:[#allocation45_spill] sm:$0xff] }
 0x15b   : > { %v3798_v42 = vpack.c.bf16 %v3619_v29, %v3618_v55  ;;  %v1633_v31 = vadd.f32 %v1632_v60, %v1543_v22  ;;  %v1367_v50 = vpop.f32.mrf.mxu0  ;;  %v1456_v58 = vpop.f32.mrf.mxu1  ;;  %16441 = vst [vmem:[#allocation62_spill] sm:$0xff] %v11287_v26  ;;  %2197 = vmatpush.bf16.msra.mxu2 %v9548_v24  ;;  %v4690_v29 = vpack.c.bf16 %v4507_v8, %v4506_v49  ;;  %v9543_v24 = vld [vmem:[%s10259_s18 + $0x190] sm:$0xf] }
 0x15c   : > { %v1457_v5 = vadd.f32 %v1456_v58, %v1367_v50  ;;  %2286 = vmatpush.bf16.msra.mxu3 %v9804_v23  ;;  %v9544_v55 = vor.u32 %v9995_v57, %v9543_v24 }
 0x15d   : > { %v2810_v6 = vpack.c.bf16 %v1633_v31, %v1455_v9  ;;  %v4002_v59 = vunpack.c.l.bf16 %v3798_v42  ;;  %v4003_v38 = vunpack.c.h.bf16 %v3798_v42  ;;  %v4946_v1 = vsel %vm4818_vm10, %v11262_v46, %v4690_v29 }
 0x15e   : > { %v5371_v46 = vunpack.c.h.b16 %v4946_v1  ;;  %2019 = vmatpush.bf16.msra.mxu0 %v9544_v55 }
 0x15f   : > { %v3338_v22 = vunpack.c.l.bf16 %v2810_v6  ;;  %v3339_v41 = vunpack.c.h.bf16 %v2810_v6  ;;  %vm11298_vm8 = vcmp.gt.f32.partialorder %v4002_v59, 0.0  ;;  %vm11302_vm9 = vcmp.gt.f32.partialorder %v4003_v38, 0.0 }
 0x160   : > { %v4514_v35 = vmul.f32 0.20019531, %v4002_v59  ;;  %v4515_v60 = vmul.f32 0.20019531, %v4003_v38  ;;  %v1545_v8 = vpop.f32.mrf.mxu2  ;;  %vm4822_vm11 = vmpackc.low %vm11302_vm9, %vm11298_vm8  ;;  %v11324_v6 = vunpack.c.l.bf16 %v3087_v28 }
 0x161   : > { %v3626_v49 = vadd.f32 %v11287_v26, %v3338_v22  ;;  %v3627_v23 = vadd.f32 %v11287_v26, %v3339_v41  ;;  %v10059_v22 = vld [vmem:[%s10259_s18 + $0x3ac] sm:$0xf0]  ;;  %v9489_v26 = vld [vmem:[%s10259_s18 + $0x138] sm:$0xf0] }
 0x162   : > { %v1634_v31 = vpop.f32.mrf.mxu3  ;;  %v4694_v50 = vpack.c.bf16 %v4515_v60, %v4514_v35  ;;  %16450 = vst [vmem:[#allocation63_spill] sm:$0xff] %v11324_v6  ;;  %v9800_v9 = vor.u32 %v10059_v22, %v9799_v4  ;;  %v5370_v35 = vunpack.c.l.b16 %v4946_v1 }
 0x163   : > { %v11319_v59 = vpack.c.bf16 %v3627_v23, %v3626_v49  ;;  %v1635_v58 = vadd.f32 %v1634_v31, %v1545_v8  ;;  %v1370_v32 = vpop.f32.mrf.mxu0  ;;  %v1459_v39 = vpop.f32.mrf.mxu1  ;;  %v3096_v31 = vperm.slane %v10662_v30, %v10678_v3 }
 0x164   : > { %v1460_v38 = vadd.f32 %v1459_v39, %v1370_v32  ;;  %v4950_v41 = vsel %vm4822_vm11, %v3798_v42, %v4694_v50  ;;  %2108 = vmatpush.bf16.msra.mxu1 %v9800_v9 }
 0x165   : > { %v2814_v25 = vpack.c.bf16 %v1635_v58, %v1457_v5  ;;  %1685 = vmatmul.bf16.gmra.mxu0 %v10491_v44  ;;  %1863 = vmatmul.bf16.gmra.mxu2 %v10491_v44  ;;  %v4010_v29 = vunpack.c.l.bf16 %v11319_v59  ;;  %v4011_v60 = vunpack.c.h.bf16 %v11319_v59  ;;  %v5378_v28 = vunpack.c.l.b16 %v4950_v41  ;;  %v9417_v44 = vld [vmem:[%s10259_s18 + $0xb0] sm:$0xf0] }
 0x166   : > { %1774 = vmatmul.bf16.gmra.mxu1 %v10493_v45  ;;  %v5379_v49 = vunpack.c.h.b16 %v4950_v41 }
 0x167   : > { %v3346_v23 = vunpack.c.l.bf16 %v2814_v25  ;;  %v3347_v8 = vunpack.c.h.bf16 %v2814_v25  ;;  %1952 = vmatmul.bf16.gmra.mxu3 %v10493_v45  ;;  %v11333_v42 = vpack.c.b16 %v5378_v28, %v5370_v35  ;;  %v4522_v39 = vmul.f32 0.20019531, %v4010_v29  ;;  %v16527_v45 = vld [vmem:[#allocation22_spill] sm:$0xff] }
 0x168   : > { %v11335_v5 = vpack.c.b16 %v5379_v49, %v5371_v46  ;;  %v1548_v58 = vpop.f32.mrf.mxu2  ;;  %v4523_v24 = vmul.f32 0.20019531, %v4011_v60  ;;  %v11341_v25 = vunpack.c.l.bf16 %v3096_v31  ;;  %vm11343_vm12 = vcmp.gt.f32.partialorder %v4010_v29, 0.0 }
 0x169   : > { %16451 = vst [vmem:[#allocation64_spill] sm:$0xff] %v11333_v42  ;;  %v3634_v50 = vadd.f32 %v11324_v6, %v3346_v23  ;;  %v3635_v1 = vadd.f32 %v11324_v6, %v3347_v8  ;;  %vm11347_vm13 = vcmp.gt.f32.partialorder %v4011_v60, 0.0  ;;  %v9713_v42 = vld [vmem:[%s10259_s18 + $0x2f8] sm:$0xf0] }
 0x16a   : > { %16452 = vst [vmem:[#allocation65_spill] sm:$0xff] %v11335_v5  ;;  %v1637_v32 = vpop.f32.mrf.mxu3  ;;  %v4698_v49 = vpack.c.bf16 %v4523_v24, %v4522_v39  ;;  %vm4826_vm0 = vmpackc.low %vm11347_vm13, %vm11343_vm12 }
 0x16b   : > { %v3806_v57 = vpack.c.bf16 %v3635_v1, %v3634_v50  ;;  %v1638_v4 = vadd.f32 %v1637_v32, %v1548_v58  ;;  %v1372_v22 = vpop.f32.mrf.mxu0  ;;  %v1461_v55 = vpop.f32.mrf.mxu1  ;;  %16453 = vst [vmem:[#allocation66_spill] sm:$0xff] %v11341_v25  ;;  %v3105_v1 = vperm.slane %v10658_v18, %v10678_v3 }
 0x16c   : > { %v1462_v41 = vadd.f32 %v1461_v55, %v1372_v22 }
 0x16d   : > { %v2818_v9 = vpack.c.bf16 %v1638_v4, %v1460_v38  ;;  %v4018_v35 = vunpack.c.l.bf16 %v3806_v57  ;;  %v4019_v46 = vunpack.c.h.bf16 %v3806_v57  ;;  %v4954_v4 = vsel %vm4826_vm0, %v11319_v59, %v4698_v49 }
 0x16e   : > { %v11374_v30 = vunpack.c.l.bf16 %v3105_v1  ;;  %v5387_v50 = vunpack.c.h.b16 %v4954_v4 }
 0x16f   : > { %v3354_v23 = vunpack.c.l.bf16 %v2818_v9  ;;  %v3355_v8 = vunpack.c.h.bf16 %v2818_v9  ;;  %vm11351_vm14 = vcmp.gt.f32.partialorder %v4018_v35, 0.0  ;;  %vm11355_vm15 = vcmp.gt.f32.partialorder %v4019_v46, 0.0 }
 0x170   : > { %v4530_v38 = vmul.f32 0.20019531, %v4018_v35  ;;  %v4531_v29 = vmul.f32 0.20019531, %v4019_v46  ;;  %v1550_v32 = vpop.f32.mrf.mxu2  ;;  %vm4830_vm1 = vmpackc.low %vm11355_vm15, %vm11351_vm14  ;;  %16462 = vst [vmem:[#allocation67_spill] sm:$0xff] %v11374_v30 }
 0x171   : > { %v3642_v60 = vadd.f32 %v11341_v25, %v3354_v23  ;;  %v3643_v58 = vadd.f32 %v11341_v25, %v3355_v8  ;;  %v5386_v23 = vunpack.c.l.b16 %v4954_v4 }
 0x172   : > { %v1639_v39 = vpop.f32.mrf.mxu3  ;;  %v4702_v24 = vpack.c.bf16 %v4531_v29, %v4530_v38 }
 0x173   : > { %v11368_v22 = vpack.c.bf16 %v3643_v58, %v3642_v60  ;;  %v1640_v55 = vadd.f32 %v1639_v39, %v1550_v32  ;;  %v1375_v9 = vpop.f32.mrf.mxu0  ;;  %v1464_v35 = vpop.f32.mrf.mxu1 }
 0x174   : > { %v1465_v18 = vadd.f32 %v1464_v35, %v1375_v9  ;;  %v4958_v46 = vsel %vm4830_vm1, %v3806_v57, %v4702_v24 }
 0x175   : > { %v2822_v28 = vpack.c.bf16 %v1640_v55, %v1462_v41  ;;  %1690 = vmatmul.bf16.gmra.mxu0 %v10513_v52  ;;  %v5394_v8 = vunpack.c.l.b16 %v4958_v46  ;;  %1868 = vmatmul.bf16.gmra.mxu2 %v10513_v52  ;;  %v4026_v59 = vunpack.c.l.bf16 %v11368_v22  ;;  %v4027_v49 = vunpack.c.h.bf16 %v11368_v22 }
 0x176   : > { %1779 = vmatmul.bf16.gmra.mxu1 %v10515_v54  ;;  %v5395_v31 = vunpack.c.h.b16 %v4958_v46  ;;  %v3114_v41 = vperm.slane %v10569_v20, %v10678_v3  ;;  %v10047_v20 = vld [vmem:[%s10259_s18 + $0x354] sm:$0xf] }
 0x177   : > { %v3362_v38 = vunpack.c.l.bf16 %v2822_v28  ;;  %v3363_v57 = vunpack.c.h.bf16 %v2822_v28  ;;  %1957 = vmatmul.bf16.gmra.mxu3 %v10515_v54  ;;  %v11384_v29 = vpack.c.b16 %v5394_v8, %v5386_v23  ;;  %v4538_v24 = vmul.f32 0.20019531, %v4026_v59  ;;  %v9983_v28 = vld [vmem:[%s10259_s18 + $0x154] sm:$0xf] }
 0x178   : > { %v11386_v1 = vpack.c.b16 %v5395_v31, %v5387_v50  ;;  %v1553_v32 = vpop.f32.mrf.mxu2  ;;  %v4539_v4 = vmul.f32 0.20019531, %v4027_v49  ;;  %v9513_v54 = vld [vmem:[%s10259_s18 + $0x170] sm:$0xf0]  ;;  %v11393_v23 = vunpack.c.l.bf16 %v3114_v41  ;;  %vm11396_vm2 = vcmp.gt.f32.partialorder %v4026_v59, 0.0 }
 0x179   : > { %16463 = vst [vmem:[#allocation68_spill] sm:$0xff] %v11384_v29  ;;  %v3650_v60 = vadd.f32 %v11374_v30, %v3362_v38  ;;  %v3651_v58 = vadd.f32 %v11374_v30, %v3363_v57  ;;  %v9516_v50 = vor.u32 %v9983_v28, %v9513_v54  ;;  %v9769_v31 = vld [vmem:[%s10259_s18 + $0x370] sm:$0xf0]  ;;  %vm11400_vm3 = vcmp.gt.f32.partialorder %v4027_v49, 0.0 }
 0x17a   : > { %16464 = vst [vmem:[#allocation69_spill] sm:$0xff] %v11386_v1  ;;  %v1642_v39 = vpop.f32.mrf.mxu3  ;;  %v9772_v52 = vor.u32 %v10047_v20, %v9769_v31  ;;  %vm4834_vm6 = vmpackc.low %vm11400_vm3, %vm11396_vm2  ;;  %v9511_v20 = vld [vmem:[%s10259_s18 + $0x150] sm:$0xf] }
 0x17b   : > { %v3814_v55 = vpack.c.bf16 %v3651_v58, %v3650_v60  ;;  %v1643_v9 = vadd.f32 %v1642_v39, %v1553_v32  ;;  %v1377_v35 = vpop.f32.mrf.mxu0  ;;  %v1466_v46 = vpop.f32.mrf.mxu1  ;;  %16465 = vst [vmem:[#allocation70_spill] sm:$0xff] %v11393_v23  ;;  %2198 = vmatpush.bf16.msra.mxu2 %v9516_v50  ;;  %v4706_v58 = vpack.c.bf16 %v4539_v4, %v4538_v24  ;;  %v9987_v50 = vld [vmem:[%s10259_s18 + $0x16c] sm:$0xf0] }
 0x17c   : > { %v1467_v8 = vadd.f32 %v1466_v46, %v1377_v35  ;;  %2287 = vmatpush.bf16.msra.mxu3 %v9772_v52  ;;  %v3123_v39 = vperm.slane %v10639_v2, %v10678_v3  ;;  %v9767_v31 = vld [vmem:[%s10259_s18 + $0x350] sm:$0xf] }
 0x17d   : > { %v2826_v38 = vpack.c.bf16 %v1643_v9, %v1465_v18  ;;  %v4034_v25 = vunpack.c.l.bf16 %v3814_v55  ;;  %v4035_v57 = vunpack.c.h.bf16 %v3814_v55  ;;  %v4962_v30 = vsel %vm4834_vm6, %v11368_v22, %v4706_v58  ;;  %v10051_v60 = vld [vmem:[%s10259_s18 + $0x36c] sm:$0xf0] }
 0x17e   : > { %v9768_v18 = vor.u32 %v10051_v60, %v9767_v31 }
 0x17f   : > { %v3370_v32 = vunpack.c.l.bf16 %v2826_v38  ;;  %v3371_v41 = vunpack.c.h.bf16 %v2826_v38  ;;  %vm11404_vm4 = vcmp.gt.f32.partialorder %v4034_v25, 0.0  ;;  %vm11408_vm5 = vcmp.gt.f32.partialorder %v4035_v57, 0.0 }
 0x180   : > { %v4546_v59 = vmul.f32 0.20019531, %v4034_v25  ;;  %v4547_v49 = vmul.f32 0.20019531, %v4035_v57  ;;  %v1555_v4 = vpop.f32.mrf.mxu2  ;;  %vm4838_vm7 = vmpackc.low %vm11408_vm5, %vm11404_vm4  ;;  %v9512_v57 = vor.u32 %v9987_v50, %v9511_v20  ;;  %2109 = vmatpush.bf16.msra.mxu1 %v9768_v18 }
 0x181   : > { %v3658_v24 = vadd.f32 %v11393_v23, %v3370_v32  ;;  %v3659_v52 = vadd.f32 %v11393_v23, %v3371_v41  ;;  %v11431_v41 = vunpack.c.l.bf16 %v3123_v39 }
 0x182   : > { %v1644_v9 = vpop.f32.mrf.mxu3  ;;  %v4710_v35 = vpack.c.bf16 %v4547_v49, %v4546_v59  ;;  %v5402_v59 = vunpack.c.l.b16 %v4962_v30  ;;  %2020 = vmatpush.bf16.msra.mxu0 %v9512_v57 }
 0x183   : > { %v11424_v25 = vpack.c.bf16 %v3659_v52, %v3658_v24  ;;  %v1645_v2 = vadd.f32 %v1644_v9, %v1555_v4  ;;  %v1380_v46 = vpop.f32.mrf.mxu0  ;;  %v1469_v28 = vpop.f32.mrf.mxu1  ;;  %16474 = vst [vmem:[#allocation71_spill] sm:$0xff] %v11431_v41  ;;  %v5403_v24 = vunpack.c.h.b16 %v4962_v30  ;;  %v3132_v9 = vperm.slane %v10595_v36, %v10678_v3 }
 0x184   : > { %v1470_v38 = vadd.f32 %v1469_v28, %v1380_v46  ;;  %v4966_v32 = vsel %vm4838_vm7, %v3814_v55, %v4710_v35 }
 0x185   : > { %v2830_v54 = vpack.c.bf16 %v1645_v2, %v1467_v8  ;;  %1695 = vmatmul.bf16.gmra.mxu0 %v10547_v10  ;;  %1873 = vmatmul.bf16.gmra.mxu2 %v10547_v10  ;;  %v5410_v49 = vunpack.c.l.b16 %v4966_v32  ;;  %v5411_v52 = vunpack.c.h.b16 %v4966_v32  ;;  %v4042_v55 = vunpack.c.l.bf16 %v11424_v25 }
 0x186   : > { %1784 = vmatmul.bf16.gmra.mxu1 %v10551_v14  ;;  %v4043_v8 = vunpack.c.h.bf16 %v11424_v25 }
 0x187   : > { %v3378_v4 = vunpack.c.l.bf16 %v2830_v54  ;;  %v3379_v22 = vunpack.c.h.bf16 %v2830_v54  ;;  %1962 = vmatmul.bf16.gmra.mxu3 %v10551_v14  ;;  %v11439_v58 = vpack.c.b16 %v5410_v49, %v5402_v59  ;;  %v11441_v39 = vpack.c.b16 %v5411_v52, %v5403_v24 }
 0x188   : > { %v1558_v46 = vpop.f32.mrf.mxu2  ;;  %v4554_v57 = vmul.f32 0.20019531, %v4042_v55  ;;  %v4555_v60 = vmul.f32 0.20019531, %v4043_v8  ;;  %v11447_v54 = vunpack.c.l.bf16 %v3132_v9  ;;  %vm11449_vm8 = vcmp.gt.f32.partialorder %v4042_v55, 0.0 }
 0x189   : > { %16475 = vst [vmem:[#allocation72_spill] sm:$0xff] %v11439_v58  ;;  %v3666_v35 = vadd.f32 %v11431_v41, %v3378_v4  ;;  %v3667_v2 = vadd.f32 %v11431_v41, %v3379_v22  ;;  %vm11453_vm9 = vcmp.gt.f32.partialorder %v4043_v8, 0.0 }
 0x18a   : > { %16476 = vst [vmem:[#allocation73_spill] sm:$0xff] %v11441_v39  ;;  %v1647_v28 = vpop.f32.mrf.mxu3  ;;  %v4714_v22 = vpack.c.bf16 %v4555_v60, %v4554_v57  ;;  %vm4842_vm12 = vmpackc.low %vm11453_vm9, %vm11449_vm8  ;;  %v10024_v39 = vld [vmem:[%s10259_s18 + $0x29c] sm:$0xf] }
 0x18b   : > { %v3822_v20 = vpack.c.bf16 %v3667_v2, %v3666_v35  ;;  %v1648_v50 = vadd.f32 %v1647_v28, %v1558_v46  ;;  %v1382_v31 = vpop.f32.mrf.mxu0  ;;  %v1471_v30 = vpop.f32.mrf.mxu1  ;;  %16477 = vst [vmem:[#allocation74_spill] sm:$0xff] %v11447_v54  ;;  %v3141_v2 = vperm.slane %v10556_v15, %v10678_v3 }
 0x18c   : > { %v1472_v32 = vadd.f32 %v1471_v30, %v1382_v31  ;;  %v4970_v15 = vsel %vm4842_vm12, %v11424_v25, %v4714_v22 }
 0x18d   : > { %v2834_v18 = vpack.c.bf16 %v1648_v50, %v1470_v38  ;;  %v4050_v59 = vunpack.c.l.bf16 %v3822_v20  ;;  %v4051_v49 = vunpack.c.h.bf16 %v3822_v20  ;;  %v5418_v35 = vunpack.c.l.b16 %v4970_v15 }
 0x18f   : > { %v3386_v24 = vunpack.c.l.bf16 %v2834_v18  ;;  %v3387_v52 = vunpack.c.h.bf16 %v2834_v18  ;;  %vm11457_vm10 = vcmp.gt.f32.partialorder %v4050_v59, 0.0  ;;  %vm11461_vm11 = vcmp.gt.f32.partialorder %v4051_v49, 0.0 }
 0x190   : > { %v4562_v38 = vmul.f32 0.20019531, %v4050_v59  ;;  %v4563_v55 = vmul.f32 0.20019531, %v4051_v49  ;;  %v1560_v28 = vpop.f32.mrf.mxu2  ;;  %vm4846_vm13 = vmpackc.low %vm11461_vm11, %vm11457_vm10 }
 0x191   : > { %v3674_v46 = vadd.f32 %v11447_v54, %v3386_v24  ;;  %v3675_v8 = vadd.f32 %v11447_v54, %v3387_v52  ;;  %v11480_v24 = vunpack.c.l.bf16 %v3141_v2  ;;  %v16487_v52 = vld [vmem:[#allocation12_spill] sm:$0xff]  ;;  %v16489_v2 = vld [vmem:[#allocation15_spill] sm:$0xff] }
 0x192   : > { %v1649_v50 = vpop.f32.mrf.mxu3  ;;  %v4718_v31 = vpack.c.bf16 %v4563_v55, %v4562_v38  ;;  %v16488_v38 = vld [vmem:[#allocation14_spill] sm:$0xff]  ;;  %v5419_v55 = vunpack.c.h.b16 %v4970_v15  ;;  %v10039_v54 = vld [vmem:[%s10259_s18 + $0x314] sm:$0xf] }
 0x193   : > { %v1650_v30 = vadd.f32 %v1649_v50, %v1560_v28  ;;  %v1385_v57 = vpop.f32.mrf.mxu0  ;;  %v1474_v60 = vpop.f32.mrf.mxu1  ;;  %v11478_v18 = vpack.c.bf16 %v3675_v8, %v3674_v46  ;;  %16486 = vst [vmem:[#allocation75_spill] sm:$0xff] %v11480_v24  ;;  %v3150_v46 = vperm.slane %v16489_v2, %v10678_v3 }
 0x194   : > { %v1475_v59 = vadd.f32 %v1474_v60, %v1385_v57  ;;  %v4974_v49 = vsel %vm4846_vm13, %v3822_v20, %v4718_v31 }
 0x195   : > { %v2838_v36 = vpack.c.bf16 %v1650_v30, %v1472_v32  ;;  %1700 = vmatmul.bf16.gmra.mxu0 %v16487_v52  ;;  %v5426_v4 = vunpack.c.l.b16 %v4974_v49  ;;  %1878 = vmatmul.bf16.gmra.mxu2 %v16487_v52  ;;  %v5427_v9 = vunpack.c.h.b16 %v4974_v49  ;;  %v4058_v25 = vunpack.c.l.bf16 %v11478_v18  ;;  %v9481_v52 = vld [vmem:[%s10259_s18 + $0x130] sm:$0xf0] }
 0x196   : > { %1789 = vmatmul.bf16.gmra.mxu1 %v16488_v38  ;;  %v4059_v20 = vunpack.c.h.bf16 %v11478_v18 }
 0x197   : > { %v3394_v28 = vunpack.c.l.bf16 %v2838_v36  ;;  %v3395_v50 = vunpack.c.h.bf16 %v2838_v36  ;;  %1967 = vmatmul.bf16.gmra.mxu3 %v16488_v38  ;;  %v11488_v22 = vpack.c.b16 %v5426_v4, %v5418_v35  ;;  %v11490_v32 = vpack.c.b16 %v5427_v9, %v5419_v55 }
 0x198   : > { %v1563_v30 = vpop.f32.mrf.mxu2  ;;  %v4570_v35 = vmul.f32 0.20019531, %v4058_v25  ;;  %v4571_v55 = vmul.f32 0.20019531, %v4059_v20  ;;  %v11496_v9 = vunpack.c.l.bf16 %v3150_v46  ;;  %vm11498_vm14 = vcmp.gt.f32.partialorder %v4058_v25, 0.0 }
 0x199   : > { %v3682_v8 = vadd.f32 %v11480_v24, %v3394_v28  ;;  %v3683_v31 = vadd.f32 %v11480_v24, %v3395_v50  ;;  %v9975_v24 = vld [vmem:[%s10259_s18 + $0x114] sm:$0xf]  ;;  %vm11508_vm15 = vcmp.gt.f32.partialorder %v4059_v20, 0.0 }
 0x19a   : > { %v1652_v57 = vpop.f32.mrf.mxu3  ;;  %16490 = vst [vmem:[#allocation15_spill] sm:$0xff] %v11496_v9  ;;  %v4722_v25 = vpack.c.bf16 %v4571_v55, %v4570_v35  ;;  %vm4850_vm2 = vmpackc.low %vm11508_vm15, %vm11498_vm14 }
 0x19b   : > { %v3830_v60 = vpack.c.bf16 %v3683_v31, %v3682_v8  ;;  %v1653_v15 = vadd.f32 %v1652_v57, %v1563_v30  ;;  %v1387_v49 = vpop.f32.mrf.mxu0  ;;  %v1476_v36 = vpop.f32.mrf.mxu1  ;;  %v16493_v8 = vld [vmem:[#allocation13_spill] sm:$0xff] }
 0x19c   : > { %v1477_v4 = vadd.f32 %v1476_v36, %v1387_v49  ;;  %v3159_v31 = vperm.slane %v16493_v8, %v10678_v3  ;;  %v9484_v49 = vor.u32 %v9975_v24, %v9481_v52  ;;  %v9737_v36 = vld [vmem:[%s10259_s18 + $0x330] sm:$0xf0] }
 0x19d   : > { %v2842_v2 = vpack.c.bf16 %v1653_v15, %v1475_v59  ;;  %v4066_v38 = vunpack.c.l.bf16 %v3830_v60  ;;  %v4067_v28 = vunpack.c.h.bf16 %v3830_v60 }
 0x19e   : > { %2199 = vmatpush.bf16.msra.mxu2 %v9484_v49 }
 0x19f   : > { %v3402_v30 = vunpack.c.l.bf16 %v2842_v2  ;;  %v3403_v57 = vunpack.c.h.bf16 %v2842_v2  ;;  %v4578_v59 = vmul.f32 0.20019531, %v4066_v38  ;;  %v9740_v2 = vor.u32 %v10039_v54, %v9737_v36  ;;  %v9979_v54 = vld [vmem:[%s10259_s18 + $0x12c] sm:$0xf0] }
 0x1a0   : > { %v1565_v41 = vpop.f32.mrf.mxu2  ;;  %v4579_v14 = vmul.f32 0.20019531, %v4067_v28  ;;  %vm11514_vm0 = vcmp.gt.f32.partialorder %v4066_v38, 0.0  ;;  %vm11518_vm1 = vcmp.gt.f32.partialorder %v4067_v28, 0.0  ;;  %v9735_v36 = vld [vmem:[%s10259_s18 + $0x310] sm:$0xf]  ;;  %v11532_v28 = vunpack.c.l.bf16 %v3159_v31 }
 0x1a1   : > { %v3690_v15 = vadd.f32 %v11496_v9, %v3402_v30  ;;  %v3691_v8 = vadd.f32 %v11496_v9, %v3403_v57  ;;  %2288 = vmatpush.bf16.msra.mxu3 %v9740_v2  ;;  %v9479_v57 = vld [vmem:[%s10259_s18 + $0x110] sm:$0xf]  ;;  %vm4854_vm3 = vmpackc.low %vm11518_vm1, %vm11514_vm0 }
 0x1a2   : > { %v1654_v10 = vpop.f32.mrf.mxu3  ;;  %v4726_v9 = vpack.c.bf16 %v4579_v14, %v4578_v59  ;;  %v9480_v49 = vor.u32 %v9979_v54, %v9479_v57  ;;  %v10043_v38 = vld [vmem:[%s10259_s18 + $0x32c] sm:$0xf0]  ;;  %16500 = vst [vmem:[#allocation13_spill] sm:$0xff] %v11532_v28  ;;  %v4978_v14 = vsel %vm4850_vm2, %v11478_v18, %v4722_v25 }
 0x1a3   : > { %v11522_v20 = vpack.c.bf16 %v3691_v8, %v3690_v15  ;;  %v1655_v35 = vadd.f32 %v1654_v10, %v1565_v41  ;;  %v1390_v55 = vpop.f32.mrf.mxu0  ;;  %v1479_v30 = vpop.f32.mrf.mxu1  ;;  %v16501_v8 = vld [vmem:[#allocation16_spill] sm:$0xff]  ;;  %v9736_v10 = vor.u32 %v10043_v38, %v9735_v36  ;;  %v16502_v41 = vld [vmem:[#allocation17_spill] sm:$0xff]  ;;  %v5434_v2 = vunpack.c.l.b16 %v4978_v14 }
 0x1a4   : > { %v1480_v23 = vadd.f32 %v1479_v30, %v1390_v55  ;;  %v4982_v50 = vsel %vm4854_vm3, %v3830_v60, %v4726_v9  ;;  %2021 = vmatpush.bf16.msra.mxu0 %v9480_v49  ;;  %v5435_v52 = vunpack.c.h.b16 %v4978_v14  ;;  %v16503_v18 = vld [vmem:[#allocation8_spill] sm:$0xff] }
 0x1a5   : > { %v2846_v15 = vpack.c.bf16 %v1655_v35, %v1477_v4  ;;  %1705 = vmatmul.bf16.gmra.mxu0 %v16501_v8  ;;  %1883 = vmatmul.bf16.gmra.mxu2 %v16501_v8  ;;  %v4074_v4 = vunpack.c.l.bf16 %v11522_v20  ;;  %v4075_v31 = vunpack.c.h.bf16 %v11522_v20  ;;  %v5442_v24 = vunpack.c.l.b16 %v4982_v50 }
 0x1a6   : > { %1794 = vmatmul.bf16.gmra.mxu1 %v16502_v41  ;;  %v5443_v35 = vunpack.c.h.b16 %v4982_v50  ;;  %v3168_v25 = vperm.slane %v16503_v18, %v10678_v3 }
 0x1a7   : > { %v3410_v46 = vunpack.c.l.bf16 %v2846_v15  ;;  %v3411_v59 = vunpack.c.h.bf16 %v2846_v15  ;;  %1972 = vmatmul.bf16.gmra.mxu3 %v16502_v41  ;;  %2110 = vmatpush.bf16.msra.mxu1 %v9736_v10  ;;  %v11549_v57 = vpack.c.b16 %v5442_v24, %v5434_v2  ;;  %v4586_v10 = vmul.f32 0.20019531, %v4074_v4 }
 0x1a8   : > { %v1568_v9 = vpop.f32.mrf.mxu2  ;;  %v11551_v54 = vpack.c.b16 %v5443_v35, %v5435_v52  ;;  %v4587_v14 = vmul.f32 0.20019531, %v4075_v31  ;;  %v11553_v41 = vunpack.c.l.bf16 %v3168_v25  ;;  %vm11557_vm4 = vcmp.gt.f32.partialorder %v4074_v4, 0.0  ;;  %v16515_v35 = vld [vmem:[#allocation18_spill] sm:$0xff] }
 0x1a9   : > { %v3698_v55 = vadd.f32 %v11532_v28, %v3410_v46  ;;  %v3699_v60 = vadd.f32 %v11532_v28, %v3411_v59  ;;  %v16505_v59 = vld [vmem:[#allocation11_spill] sm:$0xff]  ;;  %vm11561_vm5 = vcmp.gt.f32.partialorder %v4075_v31, 0.0 }
 0x1aa   : > { %v1657_v30 = vpop.f32.mrf.mxu3  ;;  %16504 = vst [vmem:[#allocation8_spill] sm:$0xff] %v11553_v41  ;;  %v3177_v28 = vperm.slane %v16505_v59, %v10678_v3  ;;  %vm4858_vm8 = vmpackc.low %vm11561_vm5, %vm11557_vm4  ;;  %v10031_v3 = vld [vmem:[%s10259_s18 + $0x2d4] sm:$0xf] }
 0x1ab   : > { %v3838_v36 = vpack.c.bf16 %v3699_v60, %v3698_v55  ;;  %v1658_v49 = vadd.f32 %v1657_v30, %v1568_v9  ;;  %v1392_v38 = vpop.f32.mrf.mxu0  ;;  %v1481_v15 = vpop.f32.mrf.mxu1  ;;  %v4730_v55 = vpack.c.bf16 %v4587_v14, %v4586_v10 }
 0x1ac   : > { %v1482_v50 = vadd.f32 %v1481_v15, %v1392_v38 }
 0x1ad   : > { %v2850_v18 = vpack.c.bf16 %v1658_v49, %v1480_v23  ;;  %v4082_v8 = vunpack.c.l.bf16 %v3838_v36  ;;  %v4083_v46 = vunpack.c.h.bf16 %v3838_v36 }
 0x1af   : > { %v3418_v24 = vunpack.c.l.bf16 %v2850_v18  ;;  %v3419_v52 = vunpack.c.h.bf16 %v2850_v18  ;;  %vm11565_vm6 = vcmp.gt.f32.partialorder %v4082_v8, 0.0  ;;  %vm11569_vm7 = vcmp.gt.f32.partialorder %v4083_v46, 0.0 }
 0x1b0   : > { %v4594_v60 = vmul.f32 0.20019531, %v4082_v8  ;;  %v4595_v4 = vmul.f32 0.20019531, %v4083_v46  ;;  %v1570_v49 = vpop.f32.mrf.mxu2  ;;  %vm4862_vm9 = vmpackc.low %vm11569_vm7, %vm11565_vm6  ;;  %v4986_v8 = vsel %vm4858_vm8, %v11522_v20, %v4730_v55  ;;  %v11584_v46 = vunpack.c.l.bf16 %v3177_v28 }
 0x1b1   : > { %v3706_v9 = vadd.f32 %v11553_v41, %v3418_v24  ;;  %v3707_v30 = vadd.f32 %v11553_v41, %v3419_v52  ;;  %v5450_v25 = vunpack.c.l.b16 %v4986_v8 }
 0x1b2   : > { %v1659_v31 = vpop.f32.mrf.mxu3  ;;  %v4734_v38 = vpack.c.bf16 %v4595_v4, %v4594_v60  ;;  %16514 = vst [vmem:[#allocation11_spill] sm:$0xff] %v11584_v46 }
 0x1b3   : > { %v3842_v15 = vpack.c.bf16 %v3707_v30, %v3706_v9  ;;  %v1660_v10 = vadd.f32 %v1659_v31, %v1570_v49  ;;  %v1671_v14 = vpop.f32.mrf.mxu0  ;;  %v1760_v18 = vpop.f32.mrf.mxu1  ;;  %v16516_v9 = vld [vmem:[#allocation19_spill] sm:$0xff]  ;;  %v5451_v30 = vunpack.c.h.b16 %v4986_v8 }
 0x1b4   : > { %v1761_v59 = vadd.f32 %v1760_v18, %v1671_v14  ;;  %v4990_v24 = vsel %vm4862_vm9, %v3838_v36, %v4734_v38 }
 0x1b5   : > { %v4090_v52 = vunpack.c.l.bf16 %v3842_v15  ;;  %v4091_v2 = vunpack.c.h.bf16 %v3842_v15  ;;  %v2854_v60 = vpack.c.bf16 %v1660_v10, %v1482_v50  ;;  %1710 = vmatmul.bf16.gmra.mxu0 %v16515_v35  ;;  %v5458_v4 = vunpack.c.l.b16 %v4990_v24  ;;  %1888 = vmatmul.bf16.gmra.mxu2 %v16515_v35 }
 0x1b6   : > { %1799 = vmatmul.bf16.gmra.mxu1 %v16516_v9  ;;  %v5459_v23 = vunpack.c.h.b16 %v4990_v24 }
 0x1b7   : > { %v4602_v49 = vmul.f32 0.20019531, %v4090_v52  ;;  %v4603_v31 = vmul.f32 0.20019531, %v4091_v2  ;;  %v3426_v20 = vunpack.c.l.bf16 %v2854_v60  ;;  %v3427_v28 = vunpack.c.h.bf16 %v2854_v60  ;;  %1977 = vmatmul.bf16.gmra.mxu3 %v16516_v9 }
 0x1b8   : > { %v11590_v36 = vpack.c.b16 %v5458_v4, %v5450_v25  ;;  %v11592_v50 = vpack.c.b16 %v5459_v23, %v5451_v30  ;;  %v1849_v10 = vpop.f32.mrf.mxu2  ;;  %vm11596_vm10 = vcmp.gt.f32.partialorder %v4090_v52, 0.0  ;;  %vm11600_vm11 = vcmp.gt.f32.partialorder %v4091_v2, 0.0  ;;  %v9967_v23 = vld [vmem:[%s10259_s18 + $0xd4] sm:$0xf] }
 0x1b9   : > { %v3714_v55 = vadd.f32 %v11584_v46, %v3426_v20  ;;  %v3715_v38 = vadd.f32 %v11584_v46, %v3427_v28  ;;  %v4738_v24 = vpack.c.bf16 %v4603_v31, %v4602_v49  ;;  %v9449_v20 = vld [vmem:[%s10259_s18 + $0xf0] sm:$0xf0]  ;;  %vm4866_vm12 = vmpackc.low %vm11600_vm11, %vm11596_vm10 }
 0x1ba   : > { %v1938_v14 = vpop.f32.mrf.mxu3  ;;  %v9452_v28 = vor.u32 %v9967_v23, %v9449_v20  ;;  %v9705_v46 = vld [vmem:[%s10259_s18 + $0x2f0] sm:$0xf0]  ;;  %v9703_v23 = vld [vmem:[%s10259_s18 + $0x2d0] sm:$0xf] }
 0x1bb   : > { %v3846_v60 = vpack.c.bf16 %v3715_v38, %v3714_v55  ;;  %v1939_v4 = vadd.f32 %v1938_v14, %v1849_v10  ;;  %v1673_v25 = vpop.f32.mrf.mxu0  ;;  %v1762_v30 = vpop.f32.mrf.mxu1  ;;  %v9708_v6 = vor.u32 %v10031_v3, %v9705_v46  ;;  %v4994_v2 = vsel %vm4866_vm12, %v3842_v15, %v4738_v24  ;;  %v16525_v46 = vld [vmem:[#allocation25_spill] sm:$0xff] }
 0x1bc   : > { %v1763_v9 = vadd.f32 %v1762_v30, %v1673_v25  ;;  %2200 = vmatpush.bf16.msra.mxu2 %v9452_v28  ;;  %v9447_v25 = vld [vmem:[%s10259_s18 + $0xd0] sm:$0xf]  ;;  %v5467_v28 = vunpack.c.h.b16 %v4994_v2  ;;  %v16526_v10 = vld [vmem:[#allocation21_spill] sm:$0xff] }
 0x1bd   : > { %v4098_v35 = vunpack.c.l.bf16 %v3846_v60  ;;  %v4099_v52 = vunpack.c.h.bf16 %v3846_v60  ;;  %v2731_v41 = vpack.c.bf16 %v1939_v4, %v1761_v59  ;;  %2289 = vmatpush.bf16.msra.mxu3 %v9708_v6  ;;  %v5466_v6 = vunpack.c.l.b16 %v4994_v2  ;;  %v9971_v30 = vld [vmem:[%s10259_s18 + $0xec] sm:$0xf0] }
 0x1bf   : > { %v4610_v49 = vmul.f32 0.20019531, %v4098_v35  ;;  %v4611_v31 = vmul.f32 0.20019531, %v4099_v52  ;;  %v3180_v55 = vunpack.c.l.bf16 %v2731_v41  ;;  %v3181_v38 = vunpack.c.h.bf16 %v2731_v41 }
 0x1c0   : > { %vm11612_vm13 = vcmp.gt.f32.partialorder %v4098_v35, 0.0  ;;  %vm11616_vm14 = vcmp.gt.f32.partialorder %v4099_v52, 0.0  ;;  %v1851_v14 = vpop.f32.mrf.mxu2 }
 0x1c1   : > { %v3468_v59 = vadd.f32 %v16525_v46, %v3180_v55  ;;  %v3469_v15 = vadd.f32 %v16525_v46, %v3181_v38  ;;  %v4742_v18 = vpack.c.bf16 %v4611_v31, %v4610_v49  ;;  %vm4870_vm15 = vmpackc.low %vm11616_vm14, %vm11612_vm13  ;;  %v9448_v55 = vor.u32 %v9971_v30, %v9447_v25  ;;  %v10035_v38 = vld [vmem:[%s10259_s18 + $0x2ec] sm:$0xf0] }
 0x1c2   : > { %v1940_v8 = vpop.f32.mrf.mxu3  ;;  %v9704_v3 = vor.u32 %v10035_v38, %v9703_v23 }
 0x1c3   : > { %v3723_v41 = vpack.c.bf16 %v3469_v15, %v3468_v59  ;;  %v1941_v35 = vadd.f32 %v1940_v8, %v1851_v14  ;;  %v1676_v24 = vpop.f32.mrf.mxu0  ;;  %v1765_v4 = vpop.f32.mrf.mxu1  ;;  %v4998_v20 = vsel %vm4870_vm15, %v3846_v60, %v4742_v18  ;;  %2022 = vmatpush.bf16.msra.mxu0 %v9448_v55 }
 0x1c4   : > { %v1766_v52 = vadd.f32 %v1765_v4, %v1676_v24  ;;  %v5474_v49 = vunpack.c.l.b16 %v4998_v20  ;;  %v5475_v31 = vunpack.c.h.b16 %v4998_v20  ;;  %2111 = vmatpush.bf16.msra.mxu1 %v9704_v3 }
 0x1c5   : > { %v2735_v46 = vpack.c.bf16 %v1941_v35, %v1763_v9  ;;  %1715 = vmatmul.bf16.gmra.mxu0 %v16526_v10  ;;  %1893 = vmatmul.bf16.gmra.mxu2 %v16526_v10  ;;  %v3852_v14 = vunpack.c.l.bf16 %v3723_v41  ;;  %v3853_v60 = vunpack.c.h.bf16 %v3723_v41  ;;  %v16528_v9 = vld [vmem:[#allocation23_spill] sm:$0xff] }
 0x1c6   : > { %1804 = vmatmul.bf16.gmra.mxu1 %v16527_v45  ;;  %v11633_v59 = vpack.c.b16 %v5474_v49, %v5466_v6  ;;  %v11635_v15 = vpack.c.b16 %v5475_v31, %v5467_v28  ;;  %v16537_v10 = vld [vmem:[#allocation27_spill] sm:$0xff] }
 0x1c7   : > { %v3188_v2 = vunpack.c.l.bf16 %v2735_v46  ;;  %v3189_v18 = vunpack.c.h.bf16 %v2735_v46  ;;  %1982 = vmatmul.bf16.gmra.mxu3 %v16527_v45  ;;  %v4364_v25 = vmul.f32 0.20019531, %v3852_v14  ;;  %v4365_v30 = vmul.f32 0.20019531, %v3853_v60 }
 0x1c8   : > { %v1854_v24 = vpop.f32.mrf.mxu2  ;;  %vm11640_vm0 = vcmp.gt.f32.partialorder %v3852_v14, 0.0  ;;  %vm4109_vm1 = vcmp.gt.f32.partialorder %v3853_v60, 0.0 }
 0x1c9   : > { %v3476_v8 = vadd.f32 %v16528_v9, %v3188_v2  ;;  %v3477_v35 = vadd.f32 %v16528_v9, %v3189_v18  ;;  %v4619_v55 = vpack.c.bf16 %v4365_v30, %v4364_v25  ;;  %vm4747_vm4 = vmpackc.low %vm4109_vm1, %vm11640_vm0 }
 0x1ca   : > { %v1943_v4 = vpop.f32.mrf.mxu3 }
 0x1cb   : > { %v3727_v6 = vpack.c.bf16 %v3477_v35, %v3476_v8  ;;  %v1944_v23 = vadd.f32 %v1943_v4, %v1854_v24  ;;  %v1678_v20 = vpop.f32.mrf.mxu0  ;;  %v1767_v28 = vpop.f32.mrf.mxu1  ;;  %v16535_v24 = vld [vmem:[#allocation24_spill] sm:$0xff]  ;;  %v4875_v30 = vsel %vm4747_vm4, %v3723_v41, %v4619_v55 }
 0x1cc   : > { %v1768_v38 = vadd.f32 %v1767_v28, %v1678_v20  ;;  %v5228_v45 = vunpack.c.l.b16 %v4875_v30 }
 0x1cd   : > { %v2739_v49 = vpack.c.bf16 %v1944_v23, %v1766_v52  ;;  %v3860_v31 = vunpack.c.l.bf16 %v3727_v6  ;;  %v3861_v46 = vunpack.c.h.bf16 %v3727_v6 }
 0x1cf   : > { %v3196_v3 = vunpack.c.l.bf16 %v2739_v49  ;;  %v3197_v2 = vunpack.c.h.bf16 %v2739_v49  ;;  %vm11644_vm2 = vcmp.gt.f32.partialorder %v3860_v31, 0.0  ;;  %vm11648_vm3 = vcmp.gt.f32.partialorder %v3861_v46, 0.0 }
 0x1d0   : > { %v4372_v35 = vmul.f32 0.20019531, %v3860_v31  ;;  %v4373_v52 = vmul.f32 0.20019531, %v3861_v46  ;;  %v1856_v23 = vpop.f32.mrf.mxu2  ;;  %vm4751_vm5 = vmpackc.low %vm11648_vm3, %vm11644_vm2 }
 0x1d1   : > { %v3484_v4 = vadd.f32 %v16535_v24, %v3196_v3  ;;  %v3485_v14 = vadd.f32 %v16535_v24, %v3197_v2  ;;  %v16536_v2 = vld [vmem:[#allocation26_spill] sm:$0xff] }
 0x1d2   : > { %v1945_v60 = vpop.f32.mrf.mxu3  ;;  %v4623_v25 = vpack.c.bf16 %v4373_v52, %v4372_v35  ;;  %v5229_v35 = vunpack.c.h.b16 %v4875_v30  ;;  %v16540_v52 = vld [vmem:[#allocation28_spill] sm:$0xff] }
 0x1d3   : > { %v11656_v20 = vpack.c.bf16 %v3485_v14, %v3484_v4  ;;  %v1946_v28 = vadd.f32 %v1945_v60, %v1856_v23  ;;  %v1681_v49 = vpop.f32.mrf.mxu0  ;;  %v1770_v9 = vpop.f32.mrf.mxu1 }
 0x1d4   : > { %v1771_v31 = vadd.f32 %v1770_v9, %v1681_v49  ;;  %v4879_v46 = vsel %vm4751_vm5, %v3727_v6, %v4623_v25 }
 0x1d5   : > { %v2743_v3 = vpack.c.bf16 %v1946_v28, %v1768_v38  ;;  %1720 = vmatmul.bf16.gmra.mxu0 %v16536_v2  ;;  %v5236_v24 = vunpack.c.l.b16 %v4879_v46  ;;  %1898 = vmatmul.bf16.gmra.mxu2 %v16536_v2  ;;  %v3868_v41 = vunpack.c.l.bf16 %v11656_v20  ;;  %v3869_v55 = vunpack.c.h.bf16 %v11656_v20  ;;  %v9959_v2 = vld [vmem:[%s10259_s18 + $0x94] sm:$0xf] }
 0x1d6   : > { %1809 = vmatmul.bf16.gmra.mxu1 %v16537_v10  ;;  %v5237_v18 = vunpack.c.h.b16 %v4879_v46 }
 0x1d7   : > { %v3204_v8 = vunpack.c.l.bf16 %v2743_v3  ;;  %v3205_v9 = vunpack.c.h.bf16 %v2743_v3  ;;  %1987 = vmatmul.bf16.gmra.mxu3 %v16537_v10  ;;  %v11668_v6 = vpack.c.b16 %v5236_v24, %v5228_v45  ;;  %v4380_v25 = vmul.f32 0.20019531, %v3868_v41  ;;  %v10023_v10 = vld [vmem:[%s10259_s18 + $0x294] sm:$0xf] }
 0x1d8   : > { %v11670_v38 = vpack.c.b16 %v5237_v18, %v5229_v35  ;;  %v1859_v23 = vpop.f32.mrf.mxu2  ;;  %v4381_v30 = vmul.f32 0.20019531, %v3869_v55  ;;  %v9420_v45 = vor.u32 %v9959_v2, %v9417_v44  ;;  %v9673_v35 = vld [vmem:[%s10259_s18 + $0x2b0] sm:$0xf0]  ;;  %vm11678_vm6 = vcmp.gt.f32.partialorder %v3868_v41, 0.0 }
 0x1d9   : > { %16538 = vst [vmem:[#allocation76_spill] sm:$0xff] %v11668_v6  ;;  %v3492_v4 = vadd.f32 %v16540_v52, %v3204_v8  ;;  %v3493_v14 = vadd.f32 %v16540_v52, %v3205_v9  ;;  %vm11682_vm7 = vcmp.gt.f32.partialorder %v3869_v55, 0.0  ;;  %v16569_v52 = vld [vmem:[#allocation44_spill] sm:$0xff] }
 0x1da   : > { %16539 = vst [vmem:[#allocation77_spill] sm:$0xff] %v11670_v38  ;;  %v1948_v60 = vpop.f32.mrf.mxu3  ;;  %v9676_v38 = vor.u32 %v10023_v10, %v9673_v35  ;;  %2201 = vmatpush.bf16.msra.mxu2 %v9420_v45  ;;  %vm4755_vm10 = vmpackc.low %vm11682_vm7, %vm11678_vm6  ;;  %v9415_v45 = vld [vmem:[%s10259_s18 + $0x90] sm:$0xf] }
 0x1db   : > { %v3735_v28 = vpack.c.bf16 %v3493_v14, %v3492_v4  ;;  %v1949_v49 = vadd.f32 %v1948_v60, %v1859_v23  ;;  %v1683_v46 = vpop.f32.mrf.mxu0  ;;  %v1772_v3 = vpop.f32.mrf.mxu1  ;;  %v4627_v14 = vpack.c.bf16 %v4381_v30, %v4380_v25  ;;  %v9963_v35 = vld [vmem:[%s10259_s18 + $0xac] sm:$0xf0] }
 0x1dc   : > { %v1773_v24 = vadd.f32 %v1772_v3, %v1683_v46  ;;  %2290 = vmatpush.bf16.msra.mxu3 %v9676_v38  ;;  %v9416_v4 = vor.u32 %v9963_v35, %v9415_v45 }
 0x1dd   : > { %v2747_v18 = vpack.c.bf16 %v1949_v49, %v1771_v31  ;;  %v3876_v6 = vunpack.c.l.bf16 %v3735_v28  ;;  %v3877_v8 = vunpack.c.h.bf16 %v3735_v28 }
 0x1de   : > { %2023 = vmatpush.bf16.msra.mxu0 %v9416_v4 }
 0x1df   : > { %v3212_v23 = vunpack.c.l.bf16 %v2747_v18  ;;  %v3213_v60 = vunpack.c.h.bf16 %v2747_v18  ;;  %vm11686_vm8 = vcmp.gt.f32.partialorder %v3876_v6, 0.0  ;;  %vm11690_vm9 = vcmp.gt.f32.partialorder %v3877_v8, 0.0  ;;  %v9671_v18 = vld [vmem:[%s10259_s18 + $0x290] sm:$0xf] }
 0x1e0   : > { %v4388_v31 = vmul.f32 0.20019531, %v3876_v6  ;;  %v4389_v2 = vmul.f32 0.20019531, %v3877_v8  ;;  %v1861_v25 = vpop.f32.mrf.mxu2  ;;  %vm4759_vm11 = vmpackc.low %vm11690_vm9, %vm11686_vm8  ;;  %v4883_v8 = vsel %vm4755_vm10, %v11656_v20, %v4627_v14 }
 0x1e1   : > { %v3500_v41 = vadd.f32 %v10789_v40, %v3212_v23  ;;  %v3501_v55 = vadd.f32 %v10789_v40, %v3213_v60  ;;  %v10027_v23 = vld [vmem:[%s10259_s18 + $0x2ac] sm:$0xf0]  ;;  %v5244_v10 = vunpack.c.l.b16 %v4883_v8 }
 0x1e2   : > { %v1950_v38 = vpop.f32.mrf.mxu3  ;;  %v4631_v30 = vpack.c.bf16 %v4389_v2, %v4388_v31  ;;  %v9672_v44 = vor.u32 %v10027_v23, %v9671_v18 }
 0x1e3   : > { %v11704_v6 = vpack.c.bf16 %v3501_v55, %v3500_v41  ;;  %v1951_v49 = vadd.f32 %v1950_v38, %v1861_v25  ;;  %v1686_v46 = vpop.f32.mrf.mxu0  ;;  %v1775_v3 = vpop.f32.mrf.mxu1  ;;  %v5245_v41 = vunpack.c.h.b16 %v4883_v8 }
 0x1e4   : > { %v1776_v9 = vadd.f32 %v1775_v3, %v1686_v46  ;;  %v4887_v60 = vsel %vm4759_vm11, %v3735_v28, %v4631_v30  ;;  %2112 = vmatpush.bf16.msra.mxu1 %v9672_v44 }
 0x1e5   : > { %v2751_v31 = vpack.c.bf16 %v1951_v49, %v1773_v24  ;;  %1725 = vmatmul.bf16.gmra.mxu0 %v10823_v33  ;;  %1903 = vmatmul.bf16.gmra.mxu2 %v10823_v33  ;;  %v5252_v2 = vunpack.c.l.b16 %v4887_v60  ;;  %v5253_v55 = vunpack.c.h.b16 %v4887_v60  ;;  %v3884_v20 = vunpack.c.l.bf16 %v11704_v6  ;;  %v16559_v33 = vld [vmem:[#allocation38_spill] sm:$0xff] }
 0x1e6   : > { %1814 = vmatmul.bf16.gmra.mxu1 %v10829_v48  ;;  %v3885_v28 = vunpack.c.h.bf16 %v11704_v6 }
 0x1e7   : > { %v3220_v25 = vunpack.c.l.bf16 %v2751_v31  ;;  %v3221_v38 = vunpack.c.h.bf16 %v2751_v31  ;;  %1992 = vmatmul.bf16.gmra.mxu3 %v10829_v48  ;;  %v11717_v24 = vpack.c.b16 %v5252_v2, %v5244_v10  ;;  %v11719_v14 = vpack.c.b16 %v5253_v55, %v5245_v41  ;;  %v9607_v55 = vld [vmem:[%s10259_s18 + $0x210] sm:$0xf] }
 0x1e8   : > { %v1864_v46 = vpop.f32.mrf.mxu2  ;;  %v4396_v4 = vmul.f32 0.20019531, %v3884_v20  ;;  %v4397_v23 = vmul.f32 0.20019531, %v3885_v28  ;;  %vm11723_vm12 = vcmp.gt.f32.partialorder %v3884_v20, 0.0  ;;  %vm11727_vm13 = vcmp.gt.f32.partialorder %v3885_v28, 0.0 }
 0x1e9   : > { %16549 = vst [vmem:[#allocation78_spill] sm:$0xff] %v11717_v24  ;;  %v3508_v30 = vadd.f32 %v10841_v19, %v3220_v25  ;;  %v3509_v49 = vadd.f32 %v10841_v19, %v3221_v38  ;;  %vm4763_vm0 = vmpackc.low %vm11727_vm13, %vm11723_vm12  ;;  %v9951_v24 = vld [vmem:[%s10259_s18 + $0x54] sm:$0xf]  ;;  %v9947_v25 = vld [vmem:[%s10259_s18 + $0x2c] sm:$0xf0] }
 0x1ea   : > { %16550 = vst [vmem:[#allocation79_spill] sm:$0xff] %v11719_v14  ;;  %v1953_v3 = vpop.f32.mrf.mxu3  ;;  %v4635_v38 = vpack.c.bf16 %v4397_v23, %v4396_v4  ;;  %v10019_v14 = vld [vmem:[%s10259_s18 + $0x26c] sm:$0xf0] }
 0x1eb   : > { %v3743_v45 = vpack.c.bf16 %v3509_v49, %v3508_v30  ;;  %v1954_v35 = vadd.f32 %v1953_v3, %v1864_v46  ;;  %v1688_v18 = vpop.f32.mrf.mxu0  ;;  %v1777_v8 = vpop.f32.mrf.mxu1  ;;  %v9383_v3 = vld [vmem:[%s10259_s18 + $0x50] sm:$0xf] }
 0x1ec   : > { %v1778_v60 = vadd.f32 %v1777_v8, %v1688_v18  ;;  %v9639_v18 = vld [vmem:[%s10259_s18 + $0x250] sm:$0xf]  ;;  %v4891_v19 = vsel %vm4763_vm0, %v11704_v6, %v4635_v38 }
 0x1ed   : > { %v2755_v44 = vpack.c.bf16 %v1954_v35, %v1776_v9  ;;  %v3892_v10 = vunpack.c.l.bf16 %v3743_v45  ;;  %v3893_v2 = vunpack.c.h.bf16 %v3743_v45  ;;  %v9955_v35 = vld [vmem:[%s10259_s18 + $0x6c] sm:$0xf0]  ;;  %v5260_v38 = vunpack.c.l.b16 %v4891_v19 }
 0x1ef   : > { %vm11731_vm14 = vcmp.gt.f32.partialorder %v3892_v10, 0.0  ;;  %vm11735_vm15 = vcmp.gt.f32.partialorder %v3893_v2, 0.0  ;;  %v4404_v20 = vmul.f32 0.20019531, %v3892_v10  ;;  %v4405_v9 = vmul.f32 0.20019531, %v3893_v2 }
 0x1f0   : > { %v3228_v28 = vunpack.c.l.bf16 %v2755_v44  ;;  %v3229_v30 = vunpack.c.h.bf16 %v2755_v44  ;;  %v1866_v49 = vpop.f32.mrf.mxu2  ;;  %vm4767_vm1 = vmpackc.low %vm11735_vm15, %vm11731_vm14  ;;  %v9384_v2 = vor.u32 %v9955_v35, %v9383_v3  ;;  %v9385_v44 = vld [vmem:[%s10259_s18 + $0x70] sm:$0xf0] }
 0x1f1   : > { %v4639_v8 = vpack.c.bf16 %v4405_v9, %v4404_v20  ;;  %v9640_v20 = vor.u32 %v10019_v14, %v9639_v18  ;;  %v9388_v9 = vor.u32 %v9951_v24, %v9385_v44  ;;  %v16560_v14 = vld [vmem:[#allocation39_spill] sm:$0xff]  ;;  %v9351_v24 = vld [vmem:[%s10259_s18 + $0x10] sm:$0xf] }
 0x1f2   : > { %v1955_v46 = vpop.f32.mrf.mxu3  ;;  %v3516_v41 = vadd.f32 %v10858_v63, %v3228_v28  ;;  %v3517_v31 = vadd.f32 %v10858_v63, %v3229_v30  ;;  %2024 = vmatpush.bf16.msra.mxu0 %v9384_v2  ;;  %v9352_v18 = vor.u32 %v9947_v25, %v9351_v24  ;;  %v9839_v63 = vld [vmem:[%s10259_s18 + $0x3d8] sm:$0xf] }
 0x1f3   : > { %v1956_v4 = vadd.f32 %v1955_v46, %v1866_v49  ;;  %v1691_v23 = vpop.f32.mrf.mxu0  ;;  %v1780_v10 = vpop.f32.mrf.mxu1  ;;  %v10015_v49 = vld [vmem:[%s10259_s18 + $0x254] sm:$0xf]  ;;  %v4895_v3 = vsel %vm4767_vm1, %v3743_v45, %v4639_v8  ;;  %v10011_v8 = vld [vmem:[%s10259_s18 + $0x22c] sm:$0xf0]  ;;  %2113 = vmatpush.bf16.msra.mxu1 %v9640_v20  ;;  %2202 = vmatpush.bf16.msra.mxu2 %v9388_v9 }
 0x1f4   : > { %v11759_v48 = vadd.f32 %v1780_v10, %v1691_v23  ;;  %v9641_v46 = vld [vmem:[%s10259_s18 + $0x270] sm:$0xf0]  ;;  %v5268_v45 = vunpack.c.l.b16 %v4895_v3  ;;  %v5269_v28 = vunpack.c.h.b16 %v4895_v3  ;;  %v5261_v10 = vunpack.c.h.b16 %v4891_v19  ;;  %v10068_v19 = vld [vmem:[%s10259_s18 + $0x3f4] sm:$0xf0] }
 0x1f5   : > { %v2759_v35 = vpack.c.bf16 %v1956_v4, %v1778_v60  ;;  %1730 = vmatmul.bf16.gmra.mxu0 %v16559_v33  ;;  %v9644_v6 = vor.u32 %v10015_v49, %v9641_v46  ;;  %1908 = vmatmul.bf16.gmra.mxu2 %v16559_v33  ;;  %v9943_v4 = vld [vmem:[%s10259_s18 + $0x14] sm:$0xf]  ;;  %v9608_v44 = vor.u32 %v10011_v8, %v9607_v55  ;;  %v9583_v33 = vld [vmem:[%s10259_s18 + $0x1d8] sm:$0xf] }
 0x1f6   : > { %1819 = vmatmul.bf16.gmra.mxu1 %v16560_v14  ;;  %v9353_v23 = vld [vmem:[%s10259_s18 + $0x30] sm:$0xf0]  ;;  %v11785_v2 = vpack.c.bf16 %v3517_v31, %v3516_v41  ;;  %v11790_v20 = vpack.c.b16 %v5269_v28, %v5261_v10  ;;  %v10000_v41 = vld [vmem:[%s10259_s18 + $0x1dc] sm:$0xf]  ;;  %2025 = vmatpush.bf16.msra.mxu0 %v9352_v18 }
 0x1f7   : > { %v3236_v60 = vunpack.c.l.bf16 %v2759_v35  ;;  %v3237_v30 = vunpack.c.h.bf16 %v2759_v35  ;;  %1997 = vmatmul.bf16.gmra.mxu3 %v16560_v14  ;;  %v9356_v49 = vor.u32 %v9943_v4, %v9353_v23  ;;  %v10007_v46 = vld [vmem:[%s10259_s18 + $0x214] sm:$0xf]  ;;  %v11783_v35 = vpack.c.b16 %v5268_v45, %v5260_v38  ;;  %v10004_v14 = vld [vmem:[%s10259_s18 + $0x1f4] sm:$0xf0]  ;;  %v9585_v31 = vld [vmem:[%s10259_s18 + $0x1f8] sm:$0xf0]  ;;  %2114 = vmatpush.bf16.msra.mxu1 %v9608_v44 }
 0x1f8   : > { %v9609_v3 = vld [vmem:[%s10259_s18 + $0x230] sm:$0xf0]  ;;  %v1869_v24 = vpop.f32.mrf.mxu2  ;;  %2291 = vmatpush.bf16.msra.mxu3 %v9644_v6  ;;  %16562 = vst [vmem:[#allocation81_spill] sm:$0xff] %v11790_v20  ;;  %v9584_v45 = vor.u32 %v10004_v14, %v9583_v33  ;;  %v9840_v4 = vor.u32 %v10068_v19, %v9839_v63  ;;  %v10064_v6 = vld [vmem:[%s10259_s18 + $0x3dc] sm:$0xf]  ;;  %v9588_v28 = vor.u32 %v10000_v41, %v9585_v31 }
 0x1f9   : > { %16561 = vst [vmem:[#allocation80_spill] sm:$0xff] %v11783_v35  ;;  %v9612_v25 = vor.u32 %v10007_v46, %v9609_v3  ;;  %v16563_v9 = vld [vmem:[#allocation40_spill] sm:$0xff]  ;;  %v9841_v10 = vld [vmem:[%s10259_s18 + $0x3f8] sm:$0xf0]  ;;  %2203 = vmatpush.bf16.msra.mxu2 %v9356_v49  ;;  %v9807_v63 = vld [vmem:[%s10259_s18 + $0x398] sm:$0xf] }
 0x1fa   : > { %v3524_v55 = vadd.f32 %v16563_v9, %v3236_v60  ;;  %v3525_v8 = vadd.f32 %v16563_v9, %v3237_v30  ;;  %v1958_v38 = vpop.f32.mrf.mxu3  ;;  %v9551_v60 = vld [vmem:[%s10259_s18 + $0x198] sm:$0xf]  ;;  %v9844_v33 = vor.u32 %v10064_v6, %v9841_v10  ;;  %v9992_v19 = vld [vmem:[%s10259_s18 + $0x19c] sm:$0xf]  ;;  %2374 = vmatpush.bf16.msrb.mxu0 %v9584_v45 }
 0x1fb   : > { %v1959_v23 = vadd.f32 %v1958_v38, %v1869_v24  ;;  %v1693_v46 = vpop.f32.mrf.mxu0  ;;  %v1782_v3 = vpop.f32.mrf.mxu1  ;;  %v9996_v30 = vld [vmem:[%s10259_s18 + $0x1b4] sm:$0xf0]  ;;  %v9553_v24 = vld [vmem:[%s10259_s18 + $0x1b8] sm:$0xf0]  ;;  %2463 = vmatpush.bf16.msrb.mxu1 %v9840_v4  ;;  %v16564_v4 = vld [vmem:[#allocation43_spill] sm:$0xff] }
 0x1fc   : > { %v1783_v20 = vadd.f32 %v1782_v3, %v1693_v46  ;;  %v10060_v14 = vld [vmem:[%s10259_s18 + $0x3b4] sm:$0xf0]  ;;  %2292 = vmatpush.bf16.msra.mxu3 %v9612_v25  ;;  %v9552_v18 = vor.u32 %v9996_v30, %v9551_v60  ;;  %v10056_v38 = vld [vmem:[%s10259_s18 + $0x39c] sm:$0xf]  ;;  %v11807_v31 = vpack.c.bf16 %v3525_v8, %v3524_v55  ;;  %v9556_v49 = vor.u32 %v9992_v19, %v9553_v24 }
 0x1fd   : > { %v2763_v35 = vpack.c.bf16 %v1959_v23, %v11759_v48  ;;  %v9809_v41 = vld [vmem:[%s10259_s18 + $0x3b8] sm:$0xf0]  ;;  %2552 = vmatpush.bf16.msrb.mxu2 %v9588_v28  ;;  %v9808_v44 = vor.u32 %v10060_v14, %v9807_v63  ;;  %v3900_v48 = vunpack.c.l.bf16 %v11785_v2  ;;  %v3901_v23 = vunpack.c.h.bf16 %v11785_v2  ;;  %v9519_v46 = vld [vmem:[%s10259_s18 + $0x158] sm:$0xf] }
 0x1fe   : > { %v9812_v6 = vor.u32 %v10056_v38, %v9809_v41  ;;  %v9988_v55 = vld [vmem:[%s10259_s18 + $0x174] sm:$0xf0]  ;;  %2375 = vmatpush.bf16.msrb.mxu0 %v9552_v18  ;;  %v9984_v30 = vld [vmem:[%s10259_s18 + $0x15c] sm:$0xf]  ;;  %v3908_v19 = vunpack.c.l.bf16 %v11807_v31  ;;  %v9684_v24 = vor.u32 %v10024_v39, %v9681_v12 }
 0x1ff   : > { %v3244_v25 = vunpack.c.l.bf16 %v2763_v35  ;;  %v3245_v45 = vunpack.c.h.bf16 %v2763_v35  ;;  %v9775_v8 = vld [vmem:[%s10259_s18 + $0x358] sm:$0xf]  ;;  %v9521_v63 = vld [vmem:[%s10259_s18 + $0x178] sm:$0xf0]  ;;  %2464 = vmatpush.bf16.msrb.mxu1 %v9808_v44  ;;  %vm11822_vm2 = vcmp.gt.f32.partialorder %v3900_v48, 0.0  ;;  %v9520_v44 = vor.u32 %v9988_v55, %v9519_v46 }
 0x200   : > { %2641 = vmatpush.bf16.msrb.mxu3 %v9844_v33  ;;  %v1871_v10 = vpop.f32.mrf.mxu2  ;;  %v10052_v60 = vld [vmem:[%s10259_s18 + $0x374] sm:$0xf0]  ;;  %v10048_v35 = vld [vmem:[%s10259_s18 + $0x35c] sm:$0xf]  ;;  %vm11828_vm3 = vcmp.gt.f32.partialorder %v3901_v23, 0.0  ;;  %v9524_v9 = vor.u32 %v9984_v30, %v9521_v63  ;;  %v4412_v30 = vmul.f32 0.20019531, %v3900_v48 }
 0x201   : > { %v3532_v3 = vadd.f32 %v16564_v4, %v3244_v25  ;;  %v3533_v28 = vadd.f32 %v16564_v4, %v3245_v45  ;;  %2553 = vmatpush.bf16.msrb.mxu2 %v9556_v49  ;;  %v9777_v33 = vld [vmem:[%s10259_s18 + $0x378] sm:$0xf0]  ;;  %v9776_v4 = vor.u32 %v10052_v60, %v9775_v8  ;;  %v10044_v46 = vld [vmem:[%s10259_s18 + $0x334] sm:$0xf0]  ;;  %v4413_v63 = vmul.f32 0.20019531, %v3901_v23  ;;  %vm4771_vm7 = vmpackc.low %vm11828_vm3, %vm11822_vm2 }
 0x202   : > { %v1960_v14 = vpop.f32.mrf.mxu3  ;;  %v9976_v55 = vld [vmem:[%s10259_s18 + $0x11c] sm:$0xf]  ;;  %2376 = vmatpush.bf16.msrb.mxu0 %v9520_v44  ;;  %v9711_v23 = vld [vmem:[%s10259_s18 + $0x2d8] sm:$0xf]  ;;  %vm11851_vm4 = vcmp.gt.f32.partialorder %v3908_v19, 0.0  ;;  %v16573_v44 = vunpack.c.h.bf16 %v11807_v31  ;;  %v11869_v1 = vmul.f32 0.20019531, %v3908_v19 }
 0x203   : > { %v11826_v38 = vpack.c.bf16 %v3533_v28, %v3532_v3  ;;  %v1961_v18 = vadd.f32 %v1960_v14, %v1871_v10  ;;  %v1696_v41 = vpop.f32.mrf.mxu0  ;;  %v1785_v25 = vpop.f32.mrf.mxu1  ;;  %v9487_v3 = vld [vmem:[%s10259_s18 + $0x118] sm:$0xf]  ;;  %v10040_v8 = vld [vmem:[%s10259_s18 + $0x31c] sm:$0xf]  ;;  %2465 = vmatpush.bf16.msrb.mxu1 %v9776_v4  ;;  %v9492_v48 = vor.u32 %v9976_v55, %v9489_v26  ;;  %v4643_v29 = vpack.c.bf16 %v4413_v63, %v4412_v30 }
 0x204   : > { %2642 = vmatpush.bf16.msrb.mxu3 %v9812_v6  ;;  %v11832_v45 = vadd.f32 %v1785_v25, %v1696_v41  ;;  %v9980_v28 = vld [vmem:[%s10259_s18 + $0x134] sm:$0xf0]  ;;  %v9780_v6 = vor.u32 %v10048_v35, %v9777_v33  ;;  %v9745_v60 = vld [vmem:[%s10259_s18 + $0x338] sm:$0xf0]  ;;  %vm11857_vm5 = vcmp.gt.f32.partialorder %v16573_v44, 0.0 }
 0x205   : > { %v9743_v10 = vld [vmem:[%s10259_s18 + $0x318] sm:$0xf]  ;;  %v2767_v40 = vpack.c.bf16 %v1961_v18, %v1783_v20  ;;  %1735 = vmatmul.bf16.gmra.mxu0 %v16569_v52  ;;  %1913 = vmatmul.bf16.gmra.mxu2 %v16569_v52  ;;  %v9488_v20 = vor.u32 %v9980_v28, %v9487_v3  ;;  %v3916_v18 = vunpack.c.l.bf16 %v11826_v38  ;;  %v16576_v28 = vld [vmem:[#allocation46_spill] sm:$0xff]  ;;  %v9457_v55 = vld [vmem:[%s10259_s18 + $0xf8] sm:$0xf0]  ;;  %v3917_v44 = vunpack.c.h.bf16 %v11826_v38 }
 0x206   : > { %1824 = vmatmul.bf16.gmra.mxu1 %v16570_v16  ;;  %v9455_v35 = vld [vmem:[%s10259_s18 + $0xd8] sm:$0xf]  ;;  %2554 = vmatpush.bf16.msrb.mxu2 %v9524_v9  ;;  %v9744_v14 = vor.u32 %v10044_v46, %v9743_v10  ;;  %v9748_v10 = vor.u32 %v10040_v8, %v9745_v60  ;;  %v9968_v46 = vld [vmem:[%s10259_s18 + $0xdc] sm:$0xf]  ;;  %vm4775_vm9 = vmpackc.low %vm11857_vm5, %vm11851_vm4 }
 0x207   : > { %v3252_v41 = vunpack.c.l.bf16 %v2767_v40  ;;  %v3253_v25 = vunpack.c.h.bf16 %v2767_v40  ;;  %2002 = vmatmul.bf16.gmra.mxu3 %v16570_v16  ;;  %v9972_v33 = vld [vmem:[%s10259_s18 + $0xf4] sm:$0xf0]  ;;  %2377 = vmatpush.bf16.msrb.mxu0 %v9488_v20  ;;  %vm11875_vm6 = vcmp.gt.f32.partialorder %v3916_v18, 0.0  ;;  %v11879_v19 = vmul.f32 0.20019531, %v3916_v18 }
 0x208   : > { %v1874_v9 = vpop.f32.mrf.mxu2  ;;  %2643 = vmatpush.bf16.msrb.mxu3 %v9780_v6  ;;  %v10036_v26 = vld [vmem:[%s10259_s18 + $0x2f4] sm:$0xf0]  ;;  %v9456_v5 = vor.u32 %v9972_v33, %v9455_v35  ;;  %2466 = vmatpush.bf16.msrb.mxu1 %v9744_v14  ;;  %v9460_v30 = vor.u32 %v9968_v46, %v9457_v55  ;;  %v9960_v33 = vld [vmem:[%s10259_s18 + $0x9c] sm:$0xf]  ;;  %v9716_v18 = vor.u32 %v10032_v17, %v9713_v42  ;;  %v16579_v14 = vunpack.c.h.bf16 %v11807_v31 }
 0x209   : > { %v3540_v16 = vadd.f32 %v16576_v28, %v3252_v41  ;;  %v3541_v4 = vadd.f32 %v16576_v28, %v3253_v25  ;;  %v9423_v25 = vld [vmem:[%s10259_s18 + $0x98] sm:$0xf]  ;;  %vm11912_vm8 = vcmp.gt.f32.partialorder %v3917_v44, 0.0 }
 0x20a   : > { %v1963_v52 = vpop.f32.mrf.mxu3  ;;  %v9964_v28 = vld [vmem:[%s10259_s18 + $0xb4] sm:$0xf0]  ;;  %2555 = vmatpush.bf16.msrb.mxu2 %v9492_v48  ;;  %v4421_v48 = vmul.f32 0.20019531, %v16579_v14  ;;  %vm4779_vm10 = vmpackc.low %vm11912_vm8, %vm11875_vm6 }
 0x20b   : > { %v11871_v41 = vpack.c.bf16 %v3541_v4, %v3540_v16  ;;  %v1964_v6 = vadd.f32 %v1963_v52, %v1874_v9  ;;  %v1698_v8 = vpop.f32.mrf.mxu0  ;;  %v1787_v60 = vpop.f32.mrf.mxu1  ;;  %v9712_v52 = vor.u32 %v10036_v26, %v9711_v23  ;;  %v9679_v63 = vld [vmem:[%s10259_s18 + $0x298] sm:$0xf]  ;;  %v9425_v9 = vld [vmem:[%s10259_s18 + $0xb8] sm:$0xf0]  ;;  %v9424_v58 = vor.u32 %v9964_v28, %v9423_v25  ;;  %2378 = vmatpush.bf16.msrb.mxu0 %v9456_v5 }
 0x20c   : > { %v11885_v16 = vadd.f32 %v1787_v60, %v1698_v8  ;;  %v10028_v20 = vld [vmem:[%s10259_s18 + $0x2b4] sm:$0xf0]  ;;  %2644 = vmatpush.bf16.msrb.mxu3 %v9748_v10  ;;  %v4429_v8 = vmul.f32 0.20019531, %v3917_v44  ;;  %v9428_v49 = vor.u32 %v9960_v33, %v9425_v9  ;;  %v4647_v5 = vpack.c.bf16 %v4421_v48, %v11869_v1 }
 0x20d   : > { %v2771_v4 = vpack.c.bf16 %v1964_v6, %v11832_v45  ;;  %v11902_v45 = vsel %vm4771_vm7, %v11785_v2, %v4643_v29  ;;  %v9680_v42 = vor.u32 %v10028_v20, %v9679_v63  ;;  %v9391_v10 = vld [vmem:[%s10259_s18 + $0x58] sm:$0xf]  ;;  %v3924_v46 = vunpack.c.l.bf16 %v11871_v41  ;;  %2467 = vmatpush.bf16.msrb.mxu1 %v9712_v52  ;;  %v9952_v29 = vld [vmem:[%s10259_s18 + $0x5c] sm:$0xf] }
 0x20e   : > { %v9956_v28 = vld [vmem:[%s10259_s18 + $0x74] sm:$0xf0]  ;;  %2556 = vmatpush.bf16.msrb.mxu2 %v9460_v30  ;;  %v9393_v20 = vld [vmem:[%s10259_s18 + $0x78] sm:$0xf0]  ;;  %v3925_v12 = vunpack.c.h.bf16 %v11871_v41  ;;  %v4651_v39 = vpack.c.bf16 %v4429_v8, %v11879_v19  ;;  %v4903_v40 = vsel %vm4775_vm9, %v11807_v31, %v4647_v5 }
 0x20f   : > { %v3260_v23 = vunpack.c.l.bf16 %v2771_v4  ;;  %v3261_v17 = vunpack.c.h.bf16 %v2771_v4  ;;  %v11907_v26 = vld [vmem:[%s10259_s18 + $0x258] sm:$0xf]  ;;  %v10016_v52 = vld [vmem:[%s10259_s18 + $0x25c] sm:$0xf]  ;;  %v9392_v33 = vor.u32 %v9956_v28, %v9391_v10  ;;  %2379 = vmatpush.bf16.msrb.mxu0 %v9424_v58  ;;  %v4436_v19 = vmul.f32 0.20019531, %v3924_v46 }
 0x210   : > { %v10020_v55 = vld [vmem:[%s10259_s18 + $0x274] sm:$0xf0]  ;;  %v1876_v63 = vpop.f32.mrf.mxu2  ;;  %2645 = vmatpush.bf16.msrb.mxu3 %v9716_v18  ;;  %v9649_v30 = vld [vmem:[%s10259_s18 + $0x278] sm:$0xf0]  ;;  %v9396_v8 = vor.u32 %v9952_v29, %v9393_v20  ;;  %v5276_v28 = vunpack.c.l.b16 %v11902_v45  ;;  %vm11945_vm11 = vcmp.gt.f32.partialorder %v3924_v46, 0.0  ;;  %vm11949_vm12 = vcmp.gt.f32.partialorder %v3925_v12, 0.0 }
 0x211   : > { %v16582_v6 = vld [vmem:[#allocation49_spill] sm:$0xff]  ;;  %v9648_v4 = vor.u32 %v10020_v55, %v11907_v26  ;;  %2468 = vmatpush.bf16.msrb.mxu1 %v9680_v42  ;;  %v4437_v5 = vmul.f32 0.20019531, %v3925_v12  ;;  %vm4783_vm13 = vmpackc.low %vm11949_vm12, %vm11945_vm11 }
 0x212   : > { %v3548_v60 = vadd.f32 %v16582_v6, %v3260_v23  ;;  %v3549_v25 = vadd.f32 %v16582_v6, %v3261_v17  ;;  %v1965_v44 = vpop.f32.mrf.mxu3  ;;  %v9359_v48 = vld [vmem:[%s10259_s18 + $0x18] sm:$0xf]  ;;  %2557 = vmatpush.bf16.msrb.mxu2 %v9428_v49  ;;  %v9652_v23 = vor.u32 %v10016_v52, %v9649_v30  ;;  %v9944_v55 = vld [vmem:[%s10259_s18 + $0x1c] sm:$0xf] }
 0x213   : > { %v1966_v18 = vadd.f32 %v1965_v44, %v1876_v63  ;;  %v1701_v9 = vpop.f32.mrf.mxu0  ;;  %v1790_v14 = vpop.f32.mrf.mxu1  ;;  %v9948_v17 = vld [vmem:[%s10259_s18 + $0x34] sm:$0xf0]  ;;  %v10008_v49 = vld [vmem:[%s10259_s18 + $0x21c] sm:$0xf]  ;;  %2380 = vmatpush.bf16.msrb.mxu0 %v9392_v33  ;;  %v4655_v52 = vpack.c.bf16 %v4437_v5, %v4436_v19  ;;  %v5285_v33 = vunpack.c.h.b16 %v4903_v40  ;;  %v5277_v19 = vunpack.c.h.b16 %v11902_v45 }
 0x214   : > { %v11929_v1 = vpack.c.bf16 %v3549_v25, %v3548_v60  ;;  %v1791_v3 = vadd.f32 %v1790_v14, %v1701_v9  ;;  %v9615_v58 = vld [vmem:[%s10259_s18 + $0x218] sm:$0xf]  ;;  %2646 = vmatpush.bf16.msrb.mxu3 %v9684_v24  ;;  %v9361_v60 = vld [vmem:[%s10259_s18 + $0x38] sm:$0xf0]  ;;  %v5284_v25 = vunpack.c.l.b16 %v4903_v40  ;;  %v9360_v35 = vor.u32 %v9948_v17, %v9359_v48 }
 0x215   : > { %v10012_v10 = vld [vmem:[%s10259_s18 + $0x234] sm:$0xf0]  ;;  %v2775_v26 = vpack.c.bf16 %v1966_v18, %v11885_v16  ;;  %1740 = vmatmul.bf16.gmra.mxu0 %v11034_v27  ;;  %v4907_v16 = vsel %vm4779_vm10, %v11826_v38, %v4651_v39  ;;  %1918 = vmatmul.bf16.gmra.mxu2 %v11034_v27  ;;  %v9617_v46 = vld [vmem:[%s10259_s18 + $0x238] sm:$0xf0]  ;;  %v9364_v38 = vor.u32 %v9944_v55, %v9361_v60 }
 0x216   : > { %1829 = vmatmul.bf16.gmra.mxu1 %v11039_v47  ;;  %v3932_v24 = vunpack.c.l.bf16 %v11929_v1  ;;  %v3933_v29 = vunpack.c.h.bf16 %v11929_v1  ;;  %v9616_v2 = vor.u32 %v10012_v10, %v9615_v58  ;;  %2558 = vmatpush.bf16.msrb.mxu2 %v9396_v8  ;;  %v11966_v30 = vpack.c.b16 %v5284_v25, %v5276_v28 }
 0x217   : > { %v3268_v63 = vunpack.c.l.bf16 %v2775_v26  ;;  %v3269_v20 = vunpack.c.h.bf16 %v2775_v26  ;;  %2007 = vmatmul.bf16.gmra.mxu3 %v11039_v47  ;;  %2469 = vmatpush.bf16.msrb.mxu1 %v9648_v4  ;;  %v9620_v12 = vor.u32 %v10008_v49, %v9617_v46  ;;  %v4911_v48 = vsel %vm4783_vm13, %v11871_v41, %v4655_v52 }
 0x218   : > { %v1879_v18 = vpop.f32.mrf.mxu2  ;;  %2647 = vmatpush.bf16.msrb.mxu3 %v9652_v23  ;;  %v4444_v4 = vmul.f32 0.20019531, %v3932_v24  ;;  %v4445_v14 = vmul.f32 0.20019531, %v3933_v29  ;;  %2381 = vmatpush.bf16.msrb.mxu0 %v9360_v35  ;;  %v5300_v23 = vunpack.c.l.b16 %v4911_v48  ;;  %v5301_v28 = vunpack.c.h.b16 %v4911_v48 }
 0x219   : > { %v3556_v39 = vadd.f32 %v11058_v21, %v3268_v63  ;;  %v3557_v44 = vadd.f32 %v11058_v21, %v3269_v20  ;;  %v5292_v55 = vunpack.c.l.b16 %v4907_v16  ;;  %v5293_v60 = vunpack.c.h.b16 %v4907_v16 }
 0x21a   : > { %v1968_v9 = vpop.f32.mrf.mxu3  ;;  %2559 = vmatpush.bf16.msrb.mxu2 %v9364_v38  ;;  %v11976_v40 = vpack.c.b16 %v5285_v33, %v5277_v19  ;;  %vm11978_vm14 = vcmp.gt.f32.partialorder %v3932_v24, 0.0  ;;  %vm11986_vm15 = vcmp.gt.f32.partialorder %v3933_v29, 0.0  ;;  %v4659_v16 = vpack.c.bf16 %v4445_v14, %v4444_v4 }
 0x21b   : > { %v3767_v8 = vpack.c.bf16 %v3557_v44, %v3556_v39  ;;  %v1969_v17 = vadd.f32 %v1968_v9, %v1879_v18  ;;  %v1703_v58 = vpop.f32.mrf.mxu0  ;;  %v1792_v10 = vpop.f32.mrf.mxu1  ;;  %2470 = vmatpush.bf16.msrb.mxu1 %v9616_v2  ;;  %v11982_v49 = vpack.c.b16 %v5300_v23, %v5292_v55  ;;  %v11984_v46 = vpack.c.b16 %v5301_v28, %v5293_v60  ;;  %vm4787_vm2 = vmpackc.low %vm11986_vm15, %vm11978_vm14 }
 0x21c   : > { %v1793_v26 = vadd.f32 %v1792_v10, %v1703_v58  ;;  %2648 = vmatpush.bf16.msrb.mxu3 %v9620_v12  ;;  %v4915_v9 = vsel %vm4787_vm2, %v11929_v1, %v4659_v16 }
 0x21d   : > { %v2779_v31 = vpack.c.bf16 %v1969_v17, %v1791_v3  ;;  %v3940_v42 = vunpack.c.l.bf16 %v3767_v8  ;;  %v3941_v41 = vunpack.c.h.bf16 %v3767_v8  ;;  %v5308_v17 = vunpack.c.l.b16 %v4915_v9 }
 0x21e   : > { %v5309_v58 = vunpack.c.h.b16 %v4915_v9 }
 0x21f   : > { %v3276_v5 = vunpack.c.l.bf16 %v2779_v31  ;;  %v3277_v25 = vunpack.c.h.bf16 %v2779_v31  ;;  %vm11990_vm0 = vcmp.gt.f32.partialorder %v3940_v42, 0.0  ;;  %vm11994_vm1 = vcmp.gt.f32.partialorder %v3941_v41, 0.0 }
 0x220   : > { %v4452_v20 = vmul.f32 0.20019531, %v3940_v42  ;;  %v4453_v35 = vmul.f32 0.20019531, %v3941_v41  ;;  %v1881_v52 = vpop.f32.mrf.mxu2  ;;  %vm4791_vm3 = vmpackc.low %vm11994_vm1, %vm11990_vm0 }
 0x221   : > { %v3564_v2 = vadd.f32 %v11074_v34, %v3276_v5  ;;  %v3565_v38 = vadd.f32 %v11074_v34, %v3277_v25 }
 0x222   : > { %v1970_v29 = vpop.f32.mrf.mxu3  ;;  %v4663_v39 = vpack.c.bf16 %v4453_v35, %v4452_v20 }
 0x223   : > { %v3771_v44 = vpack.c.bf16 %v3565_v38, %v3564_v2  ;;  %v1971_v18 = vadd.f32 %v1970_v29, %v1881_v52  ;;  %v1706_v12 = vpop.f32.mrf.mxu0  ;;  %v1795_v33 = vpop.f32.mrf.mxu1 }
 0x224   : > { %v1796_v4 = vadd.f32 %v1795_v33, %v1706_v12  ;;  %v4919_v14 = vsel %vm4791_vm3, %v3767_v8, %v4663_v39  ;;  %v16603_v12 = vld [vmem:[#allocation54_spill] sm:$0xff] }
 0x225   : > { %v2783_v48 = vpack.c.bf16 %v1971_v18, %v1793_v26  ;;  %1745 = vmatmul.bf16.gmra.mxu0 %v11108_v43  ;;  %v5316_v19 = vunpack.c.l.b16 %v4919_v14  ;;  %1923 = vmatmul.bf16.gmra.mxu2 %v11108_v43  ;;  %v5317_v10 = vunpack.c.h.b16 %v4919_v14  ;;  %v3948_v55 = vunpack.c.l.bf16 %v3771_v44 }
 0x226   : > { %1834 = vmatmul.bf16.gmra.mxu1 %v11110_v37  ;;  %v3949_v60 = vunpack.c.h.bf16 %v3771_v44 }
 0x227   : > { %v3284_v23 = vunpack.c.l.bf16 %v2783_v48  ;;  %v3285_v28 = vunpack.c.h.bf16 %v2783_v48  ;;  %2012 = vmatmul.bf16.gmra.mxu3 %v11110_v37  ;;  %v12013_v1 = vpack.c.b16 %v5316_v19, %v5308_v17  ;;  %v12015_v8 = vpack.c.b16 %v5317_v10, %v5309_v58 }
 0x228   : > { %v1884_v42 = vpop.f32.mrf.mxu2  ;;  %v4460_v16 = vmul.f32 0.20019531, %v3948_v55  ;;  %v4461_v3 = vmul.f32 0.20019531, %v3949_v60  ;;  %vm12019_vm4 = vcmp.gt.f32.partialorder %v3948_v55, 0.0  ;;  %vm12023_vm5 = vcmp.gt.f32.partialorder %v3949_v60, 0.0 }
 0x229   : > { %v3572_v26 = vadd.f32 %v11123_v0, %v3284_v23  ;;  %v3573_v31 = vadd.f32 %v11123_v0, %v3285_v28  ;;  %vm4795_vm8 = vmpackc.low %vm12023_vm5, %vm12019_vm4 }
 0x22a   : > { %v1973_v41 = vpop.f32.mrf.mxu3  ;;  %v4667_v18 = vpack.c.bf16 %v4461_v3, %v4460_v16 }
 0x22b   : > { %v3775_v45 = vpack.c.bf16 %v3573_v31, %v3572_v26  ;;  %v1974_v5 = vadd.f32 %v1973_v41, %v1884_v42  ;;  %v1708_v25 = vpop.f32.mrf.mxu0  ;;  %v1797_v63 = vpop.f32.mrf.mxu1 }
 0x22c   : > { %v1798_v24 = vadd.f32 %v1797_v63, %v1708_v25  ;;  %v4923_v60 = vsel %vm4795_vm8, %v3771_v44, %v4667_v18 }
 0x22d   : > { %v2787_v20 = vpack.c.bf16 %v1974_v5, %v1796_v4  ;;  %v3956_v35 = vunpack.c.l.bf16 %v3775_v45  ;;  %v3957_v2 = vunpack.c.h.bf16 %v3775_v45  ;;  %v5324_v63 = vunpack.c.l.b16 %v4923_v60 }
 0x22e   : > { %v5325_v16 = vunpack.c.h.b16 %v4923_v60  ;;  %v16610_v60 = vld [vmem:[#allocation53_spill] sm:$0xff] }
 0x22f   : > { %v3292_v52 = vunpack.c.l.bf16 %v2787_v20  ;;  %v3293_v29 = vunpack.c.h.bf16 %v2787_v20  ;;  %vm12027_vm6 = vcmp.gt.f32.partialorder %v3956_v35, 0.0  ;;  %vm12031_vm7 = vcmp.gt.f32.partialorder %v3957_v2, 0.0 }
 0x230   : > { %v4468_v9 = vmul.f32 0.20019531, %v3956_v35  ;;  %v4469_v4 = vmul.f32 0.20019531, %v3957_v2  ;;  %v1886_v19 = vpop.f32.mrf.mxu2  ;;  %vm4799_vm9 = vmpackc.low %vm12031_vm7, %vm12027_vm6 }
 0x231   : > { %v3580_v14 = vadd.f32 %v11141_v7, %v3292_v52  ;;  %v3581_v48 = vadd.f32 %v11141_v7, %v3293_v29 }
 0x232   : > { %v1975_v17 = vpop.f32.mrf.mxu3  ;;  %v4671_v58 = vpack.c.bf16 %v4469_v4, %v4468_v9  ;;  %v16619_v4 = vld [vmem:[#allocation57_spill] sm:$0xff] }
 0x233   : > { %v3779_v10 = vpack.c.bf16 %v3581_v48, %v3580_v14  ;;  %v1976_v23 = vadd.f32 %v1975_v17, %v1886_v19  ;;  %v1711_v28 = vpop.f32.mrf.mxu0  ;;  %v1800_v55 = vpop.f32.mrf.mxu1 }
 0x234   : > { %v1801_v26 = vadd.f32 %v1800_v55, %v1711_v28  ;;  %v4927_v31 = vsel %vm4799_vm9, %v3775_v45, %v4671_v58  ;;  %v16609_v55 = vld [vmem:[#allocation52_spill] sm:$0xff] }
 0x235   : > { %v3964_v42 = vunpack.c.l.bf16 %v3779_v10  ;;  %v3965_v41 = vunpack.c.h.bf16 %v3779_v10  ;;  %v2791_v5 = vpack.c.bf16 %v1976_v23, %v1798_v24  ;;  %2026 = vmatmul.bf16.vlgmr.msra.gmra.mxu0 %v10370_v51  ;;  %v5332_v25 = vunpack.c.l.b16 %v4927_v31  ;;  %2204 = vmatmul.bf16.vlgmr.msra.gmra.mxu2 %v10370_v51 }
 0x236   : > { %2115 = vmatmul.bf16.vlgmr.msra.gmra.mxu1 %v10375_v53  ;;  %v5333_v3 = vunpack.c.h.b16 %v4927_v31  ;;  %5738 = vmatpush.bf16.msra.mxu0 %v11227_v61 }
 0x237   : > { %v3300_v20 = vunpack.c.l.bf16 %v2791_v5  ;;  %v3301_v35 = vunpack.c.h.bf16 %v2791_v5  ;;  %2293 = vmatmul.bf16.vlgmr.msra.gmra.mxu3 %v10375_v53  ;;  %v4476_v44 = vmul.f32 0.20019531, %v3964_v42  ;;  %v4477_v45 = vmul.f32 0.20019531, %v3965_v41  ;;  %5787 = vmatpush.bf16.msra.mxu1 %v11633_v59 }
 0x238   : > { %5836 = vmatpush.bf16.msra.mxu2 %v11229_v62  ;;  %v12052_v24 = vpack.c.b16 %v5332_v25, %v5324_v63  ;;  %v12054_v2 = vpack.c.b16 %v5333_v3, %v5325_v16  ;;  %5885 = vmatpush.bf16.msra.mxu3 %v11635_v15  ;;  %v1889_v29 = vpop.f32.mrf.mxu2  ;;  %v16604_v62 = vld [vmem:[#allocation55_spill] sm:$0xff]  ;;  %vm12062_vm10 = vcmp.gt.f32.partialorder %v3964_v42, 0.0  ;;  %vm12066_vm11 = vcmp.gt.f32.partialorder %v3965_v41, 0.0  ;;  %v16614_v3 = vld [vmem:[#allocation50_spill] sm:$0xff] }
 0x239   : > { %v3588_v38 = vadd.f32 %v11172_v56, %v3300_v20  ;;  %v3589_v52 = vadd.f32 %v11172_v56, %v3301_v35  ;;  %v4675_v15 = vpack.c.bf16 %v4477_v45, %v4476_v44  ;;  %vm4803_vm12 = vmpackc.low %vm12066_vm11, %vm12062_vm10  ;;  %v16615_v45 = vld [vmem:[#allocation51_spill] sm:$0xff] }
 0x23a   : > { %v1978_v39 = vpop.f32.mrf.mxu3  ;;  %5739 = vmatpush.bf16.msra.mxu0 %v16603_v12 }
 0x23b   : > { %v3783_v18 = vpack.c.bf16 %v3589_v52, %v3588_v38  ;;  %v1979_v61 = vadd.f32 %v1978_v39, %v1889_v29  ;;  %v1713_v33 = vpop.f32.mrf.mxu0  ;;  %v1802_v59 = vpop.f32.mrf.mxu1  ;;  %5788 = vmatpush.bf16.msra.mxu1 %v11590_v36 }
 0x23c   : > { %5837 = vmatpush.bf16.msra.mxu2 %v16604_v62  ;;  %v1803_v9 = vadd.f32 %v1802_v59, %v1713_v33  ;;  %5886 = vmatpush.bf16.msra.mxu3 %v11592_v50  ;;  %v4931_v50 = vsel %vm4803_vm12, %v3779_v10, %v4675_v15  ;;  %v16616_v33 = vld [vmem:[#allocation47_spill] sm:$0xff]  ;;  %v16617_v62 = vld [vmem:[#allocation72_spill] sm:$0xff] }
 0x23d   : > { %v3972_v48 = vunpack.c.l.bf16 %v3783_v18  ;;  %v3973_v19 = vunpack.c.h.bf16 %v3783_v18  ;;  %v2795_v17 = vpack.c.bf16 %v1979_v61, %v1801_v26  ;;  %v16613_v26 = vld [vmem:[#allocation56_spill] sm:$0xff]  ;;  %v5340_v44 = vunpack.c.l.b16 %v4931_v50 }
 0x23e   : > { %5740 = vmatpush.bf16.msra.mxu0 %v16609_v55  ;;  %v5341_v52 = vunpack.c.h.b16 %v4931_v50  ;;  %v16622_v50 = vld [vmem:[#allocation68_spill] sm:$0xff] }
 0x23f   : > { %v4484_v58 = vmul.f32 0.20019531, %v3972_v48  ;;  %v4485_v23 = vmul.f32 0.20019531, %v3973_v19  ;;  %v3308_v36 = vunpack.c.l.bf16 %v2795_v17  ;;  %v3309_v28 = vunpack.c.h.bf16 %v2795_v17  ;;  %5789 = vmatpush.bf16.msra.mxu1 %v11549_v57 }
 0x240   : > { %5838 = vmatpush.bf16.msra.mxu2 %v16610_v60  ;;  %vm12078_vm13 = vcmp.gt.f32.partialorder %v3972_v48, 0.0  ;;  %vm4229_vm14 = vcmp.gt.f32.partialorder %v3973_v19, 0.0  ;;  %5887 = vmatpush.bf16.msra.mxu3 %v11551_v54  ;;  %v1891_v5 = vpop.f32.mrf.mxu2  ;;  %v16620_v48 = vld [vmem:[#allocation73_spill] sm:$0xff] }
 0x241   : > { %v3596_v42 = vadd.f32 %v16613_v26, %v3308_v36  ;;  %v3597_v41 = vadd.f32 %v16613_v26, %v3309_v28  ;;  %v4679_v25 = vpack.c.bf16 %v4485_v23, %v4484_v58  ;;  %vm4807_vm15 = vmpackc.low %vm4229_vm14, %vm12078_vm13  ;;  %v16621_v36 = vld [vmem:[#allocation41_spill] sm:$0xff] }
 0x242   : > { %v1980_v63 = vpop.f32.mrf.mxu3  ;;  %5741 = vmatpush.bf16.msra.mxu0 %v16614_v3 }
 0x243   : > { %v12087_v57 = vpack.c.bf16 %v3597_v41, %v3596_v42  ;;  %v1981_v16 = vadd.f32 %v1980_v63, %v1891_v5  ;;  %v1716_v20 = vpop.f32.mrf.mxu0  ;;  %v1805_v35 = vpop.f32.mrf.mxu1  ;;  %v4935_v10 = vsel %vm4807_vm15, %v3783_v18, %v4679_v25  ;;  %5790 = vmatpush.bf16.msra.mxu1 %v11488_v22  ;;  %v16623_v42 = vld [vmem:[#allocation42_spill] sm:$0xff]  ;;  %v16624_v25 = vld [vmem:[#allocation69_spill] sm:$0xff] }
 0x244   : > { %5839 = vmatpush.bf16.msra.mxu2 %v16615_v45  ;;  %v1806_v54 = vadd.f32 %v1805_v35, %v1716_v20  ;;  %v5348_v38 = vunpack.c.l.b16 %v4935_v10  ;;  %v5349_v29 = vunpack.c.h.b16 %v4935_v10  ;;  %5888 = vmatpush.bf16.msra.mxu3 %v11490_v32  ;;  %v16627_v10 = vld [vmem:[#allocation35_spill] sm:$0xff] }
 0x245   : > { %v2799_v39 = vpack.c.bf16 %v1981_v16, %v1803_v9  ;;  %2031 = vmatmul.bf16.gmra.mxu0 %v10416_v11  ;;  %2209 = vmatmul.bf16.gmra.mxu2 %v10416_v11  ;;  %v3980_v59 = vunpack.c.l.bf16 %v12087_v57  ;;  %v3981_v32 = vunpack.c.h.bf16 %v12087_v57  ;;  %v16618_v9 = vld [vmem:[#allocation48_spill] sm:$0xff] }
 0x246   : > { %2120 = vmatmul.bf16.gmra.mxu1 %v10421_v13  ;;  %v12096_v61 = vpack.c.b16 %v5348_v38, %v5340_v44  ;;  %v12098_v18 = vpack.c.b16 %v5349_v29, %v5341_v52  ;;  %5742 = vmatpush.bf16.msra.mxu0 %v16616_v33  ;;  %v16630_v38 = vld [vmem:[#allocation64_spill] sm:$0xff] }
 0x247   : > { %v3316_v22 = vunpack.c.l.bf16 %v2799_v39  ;;  %v3317_v12 = vunpack.c.h.bf16 %v2799_v39  ;;  %2298 = vmatmul.bf16.gmra.mxu3 %v10421_v13  ;;  %5791 = vmatpush.bf16.msra.mxu1 %v16617_v62  ;;  %v4492_v60 = vmul.f32 0.20019531, %v3980_v59  ;;  %v4493_v31 = vmul.f32 0.20019531, %v3981_v32 }
 0x248   : > { %5840 = vmatpush.bf16.msra.mxu2 %v16618_v9  ;;  %5889 = vmatpush.bf16.msra.mxu3 %v16620_v48  ;;  %v1894_v19 = vpop.f32.mrf.mxu2  ;;  %vm12113_vm0 = vcmp.gt.f32.partialorder %v3980_v59, 0.0  ;;  %vm12118_vm1 = vcmp.gt.f32.partialorder %v3981_v32, 0.0  ;;  %v16637_v32 = vld [vmem:[#allocation65_spill] sm:$0xff] }
 0x249   : > { %v3604_v14 = vadd.f32 %v16619_v4, %v3316_v22  ;;  %v3605_v15 = vadd.f32 %v16619_v4, %v3317_v12  ;;  %v4683_v45 = vpack.c.bf16 %v4493_v31, %v4492_v60  ;;  %v16636_v12 = vld [vmem:[#allocation58_spill] sm:$0xff]  ;;  %vm4811_vm4 = vmpackc.low %vm12118_vm1, %vm12113_vm0 }
 0x24a   : > { %v1983_v17 = vpop.f32.mrf.mxu3  ;;  %5743 = vmatpush.bf16.msra.mxu0 %v16621_v36 }
 0x24b   : > { %v3791_v58 = vpack.c.bf16 %v3605_v15, %v3604_v14  ;;  %v1984_v23 = vadd.f32 %v1983_v17, %v1894_v19  ;;  %v1718_v28 = vpop.f32.mrf.mxu0  ;;  %v1807_v55 = vpop.f32.mrf.mxu1  ;;  %5792 = vmatpush.bf16.msra.mxu1 %v16622_v50  ;;  %v16638_v19 = vld [vmem:[#allocation30_spill] sm:$0xff]  ;;  %v4939_v36 = vsel %vm4811_vm4, %v12087_v57, %v4683_v45  ;;  %v16646_v45 = vld [vmem:[#allocation59_spill] sm:$0xff] }
 0x24c   : > { %5841 = vmatpush.bf16.msra.mxu2 %v16623_v42  ;;  %v1808_v41 = vadd.f32 %v1807_v55, %v1718_v28  ;;  %5890 = vmatpush.bf16.msra.mxu3 %v16624_v25  ;;  %v16639_v28 = vld [vmem:[#allocation60_spill] sm:$0xff]  ;;  %v16640_v55 = vld [vmem:[#allocation31_spill] sm:$0xff]  ;;  %v16641_v42 = vld [vmem:[#allocation61_spill] sm:$0xff]  ;;  %v5357_v3 = vunpack.c.h.b16 %v4939_v36 }
 0x24d   : > { %v2803_v5 = vpack.c.bf16 %v1984_v23, %v1806_v54  ;;  %v3988_v63 = vunpack.c.l.bf16 %v3791_v58  ;;  %v3989_v16 = vunpack.c.h.bf16 %v3791_v58  ;;  %v16631_v54 = vld [vmem:[#allocation36_spill] sm:$0xff] }
 0x24e   : > { %5744 = vmatpush.bf16.msra.mxu0 %v16627_v10 }
 0x24f   : > { %v3324_v20 = vunpack.c.l.bf16 %v2803_v5  ;;  %v3325_v35 = vunpack.c.h.bf16 %v2803_v5  ;;  %5793 = vmatpush.bf16.msra.mxu1 %v16630_v38  ;;  %vm12124_vm2 = vcmp.gt.f32.partialorder %v3988_v63, 0.0  ;;  %vm12128_vm3 = vcmp.gt.f32.partialorder %v3989_v16, 0.0  ;;  %v16642_v5 = vld [vmem:[#allocation2_spill] sm:$0xff] }
 0x250   : > { %5842 = vmatpush.bf16.msra.mxu2 %v16631_v54  ;;  %v4500_v39 = vmul.f32 0.20019531, %v3988_v63  ;;  %v4501_v22 = vmul.f32 0.20019531, %v3989_v16  ;;  %5891 = vmatpush.bf16.msra.mxu3 %v16637_v32  ;;  %v1896_v62 = vpop.f32.mrf.mxu2  ;;  %vm4815_vm5 = vmpackc.low %vm12128_vm3, %vm12124_vm2  ;;  %v16643_v63 = vld [vmem:[#allocation3_spill] sm:$0xff]  ;;  %v5356_v16 = vunpack.c.l.b16 %v4939_v36 }
 0x251   : > { %v3612_v33 = vadd.f32 %v16636_v12, %v3324_v20  ;;  %v3613_v59 = vadd.f32 %v16636_v12, %v3325_v35 }
 0x252   : > { %v1985_v9 = vpop.f32.mrf.mxu3  ;;  %v4687_v14 = vpack.c.bf16 %v4501_v22, %v4500_v39  ;;  %5745 = vmatpush.bf16.msra.mxu0 %v16638_v19 }
 0x253   : > { %v3795_v15 = vpack.c.bf16 %v3613_v59, %v3612_v33  ;;  %v1986_v48 = vadd.f32 %v1985_v9, %v1896_v62  ;;  %v1721_v17 = vpop.f32.mrf.mxu0  ;;  %v1810_v23 = vpop.f32.mrf.mxu1  ;;  %5794 = vmatpush.bf16.msra.mxu1 %v16639_v28 }
 0x254   : > { %5843 = vmatpush.bf16.msra.mxu2 %v16640_v55  ;;  %v1811_v60 = vadd.f32 %v1810_v23, %v1721_v17  ;;  %v4943_v31 = vsel %vm4815_vm5, %v3791_v58, %v4687_v14  ;;  %5892 = vmatpush.bf16.msra.mxu3 %v16641_v42 }
 0x255   : > { %v2807_v50 = vpack.c.bf16 %v1986_v48, %v1808_v41  ;;  %2036 = vmatmul.bf16.gmra.mxu0 %v16642_v5  ;;  %v5364_v25 = vunpack.c.l.b16 %v4943_v31  ;;  %2214 = vmatmul.bf16.gmra.mxu2 %v16642_v5  ;;  %v5365_v20 = vunpack.c.h.b16 %v4943_v31  ;;  %v3996_v10 = vunpack.c.l.bf16 %v3795_v15 }
 0x256   : > { %2125 = vmatmul.bf16.gmra.mxu1 %v16643_v63  ;;  %v3997_v44 = vunpack.c.h.bf16 %v3795_v15 }
 0x257   : > { %v3332_v57 = vunpack.c.l.bf16 %v2807_v50  ;;  %v3333_v35 = vunpack.c.h.bf16 %v2807_v50  ;;  %2303 = vmatmul.bf16.gmra.mxu3 %v16643_v63  ;;  %v12152_v58 = vpack.c.b16 %v5364_v25, %v5356_v16  ;;  %v12154_v41 = vpack.c.b16 %v5365_v20, %v5357_v3  ;;  %v16655_v25 = vld [vmem:[#allocation62_spill] sm:$0xff] }
 0x258   : > { %v1899_v52 = vpop.f32.mrf.mxu2  ;;  %v4508_v32 = vmul.f32 0.20019531, %v3996_v10  ;;  %v4509_v62 = vmul.f32 0.20019531, %v3997_v44  ;;  %vm12158_vm6 = vcmp.gt.f32.partialorder %v3996_v10, 0.0  ;;  %vm12162_vm7 = vcmp.gt.f32.partialorder %v3997_v44, 0.0 }
 0x259   : > { %16644 = vst [vmem:[#allocation49_spill] sm:$0xff] %v12152_v58  ;;  %v3620_v38 = vadd.f32 %v16646_v45, %v3332_v57  ;;  %v3621_v54 = vadd.f32 %v16646_v45, %v3333_v35  ;;  %vm4819_vm10 = vmpackc.low %vm12162_vm7, %vm12158_vm6 }
 0x25a   : > { %16645 = vst [vmem:[#allocation54_spill] sm:$0xff] %v12154_v41  ;;  %v1988_v29 = vpop.f32.mrf.mxu3  ;;  %v4691_v55 = vpack.c.bf16 %v4509_v62, %v4508_v32  ;;  %v16657_v62 = vld [vmem:[#allocation5_spill] sm:$0xff] }
 0x25b   : > { %v3799_v39 = vpack.c.bf16 %v3621_v54, %v3620_v38  ;;  %v1989_v22 = vadd.f32 %v1988_v29, %v1899_v52  ;;  %v1723_v33 = vpop.f32.mrf.mxu0  ;;  %v1812_v59 = vpop.f32.mrf.mxu1 }
 0x25c   : > { %v1813_v9 = vadd.f32 %v1812_v59, %v1723_v33  ;;  %v4947_v52 = vsel %vm4819_vm10, %v3795_v15, %v4691_v55  ;;  %v16656_v59 = vld [vmem:[#allocation4_spill] sm:$0xff] }
 0x25d   : > { %v2811_v14 = vpack.c.bf16 %v1989_v22, %v1811_v60  ;;  %v4004_v48 = vunpack.c.l.bf16 %v3799_v39  ;;  %v4005_v19 = vunpack.c.h.bf16 %v3799_v39 }
 0x25f   : > { %v3340_v23 = vunpack.c.l.bf16 %v2811_v14  ;;  %v3341_v36 = vunpack.c.h.bf16 %v2811_v14  ;;  %vm12166_vm8 = vcmp.gt.f32.partialorder %v4004_v48, 0.0  ;;  %vm12170_vm9 = vcmp.gt.f32.partialorder %v4005_v19, 0.0 }
 0x260   : > { %v4516_v60 = vmul.f32 0.20019531, %v4004_v48  ;;  %v4517_v42 = vmul.f32 0.20019531, %v4005_v19  ;;  %v1901_v20 = vpop.f32.mrf.mxu2  ;;  %vm4823_vm11 = vmpackc.low %vm12170_vm9, %vm12166_vm8  ;;  %v5372_v14 = vunpack.c.l.b16 %v4947_v52  ;;  %v5373_v48 = vunpack.c.h.b16 %v4947_v52 }
 0x261   : > { %v3628_v16 = vadd.f32 %v16655_v25, %v3340_v23  ;;  %v3629_v3 = vadd.f32 %v16655_v25, %v3341_v36 }
 0x262   : > { %v1990_v57 = vpop.f32.mrf.mxu3  ;;  %v4695_v35 = vpack.c.bf16 %v4517_v42, %v4516_v60 }
 0x263   : > { %v3803_v10 = vpack.c.bf16 %v3629_v3, %v3628_v16  ;;  %v1991_v44 = vadd.f32 %v1990_v57, %v1901_v20  ;;  %v1726_v38 = vpop.f32.mrf.mxu0  ;;  %v1815_v54 = vpop.f32.mrf.mxu1 }
 0x264   : > { %v1816_v29 = vadd.f32 %v1815_v54, %v1726_v38  ;;  %v4951_v22 = vsel %vm4823_vm11, %v3799_v39, %v4695_v35 }
 0x265   : > { %v2815_v33 = vpack.c.bf16 %v1991_v44, %v1813_v9  ;;  %2041 = vmatmul.bf16.gmra.mxu0 %v16656_v59  ;;  %v5380_v32 = vunpack.c.l.b16 %v4951_v22  ;;  %2219 = vmatmul.bf16.gmra.mxu2 %v16656_v59  ;;  %v5381_v19 = vunpack.c.h.b16 %v4951_v22  ;;  %v4012_v36 = vunpack.c.l.bf16 %v3803_v10  ;;  %v16660_v9 = vld [vmem:[#allocation63_spill] sm:$0xff] }
 0x266   : > { %2130 = vmatmul.bf16.gmra.mxu1 %v16657_v62  ;;  %v4013_v28 = vunpack.c.h.bf16 %v3803_v10 }
 0x267   : > { %v3348_v17 = vunpack.c.l.bf16 %v2815_v33  ;;  %v3349_v23 = vunpack.c.h.bf16 %v2815_v33  ;;  %2308 = vmatmul.bf16.gmra.mxu3 %v16657_v62  ;;  %v12188_v15 = vpack.c.b16 %v5380_v32, %v5372_v14  ;;  %v12190_v39 = vpack.c.b16 %v5381_v19, %v5373_v48 }
 0x268   : > { %v1904_v50 = vpop.f32.mrf.mxu2  ;;  %v4524_v57 = vmul.f32 0.20019531, %v4012_v36  ;;  %v4525_v35 = vmul.f32 0.20019531, %v4013_v28  ;;  %vm12194_vm12 = vcmp.gt.f32.partialorder %v4012_v36, 0.0  ;;  %vm12198_vm13 = vcmp.gt.f32.partialorder %v4013_v28, 0.0  ;;  %v16669_v36 = vld [vmem:[#allocation66_spill] sm:$0xff] }
 0x269   : > { %16658 = vst [vmem:[#allocation55_spill] sm:$0xff] %v12188_v15  ;;  %v3636_v55 = vadd.f32 %v16660_v9, %v3348_v17  ;;  %v3637_v31 = vadd.f32 %v16660_v9, %v3349_v23  ;;  %vm4827_vm0 = vmpackc.low %vm12198_vm13, %vm12194_vm12  ;;  %v16673_v17 = vld [vmem:[#allocation67_spill] sm:$0xff] }
 0x26a   : > { %16659 = vst [vmem:[#allocation52_spill] sm:$0xff] %v12190_v39  ;;  %v1993_v60 = vpop.f32.mrf.mxu3  ;;  %v4699_v48 = vpack.c.bf16 %v4525_v35, %v4524_v57  ;;  %v6601_v35 = vld [vmem:[%s16041_s4 + $0x3c] sm:$0xf] }
 0x26b   : > { %v3807_v42 = vpack.c.bf16 %v3637_v31, %v3636_v55  ;;  %v1994_v16 = vadd.f32 %v1993_v60, %v1904_v50  ;;  %v1728_v3 = vpop.f32.mrf.mxu0  ;;  %v1817_v20 = vpop.f32.mrf.mxu1  ;;  %6739 = vperm.xlu0 %10148, %v6601_v35  }
 0x26c   : > { %v1818_v44 = vadd.f32 %v1817_v20, %v1728_v3 }
 0x26d   : > { %v2819_v38 = vpack.c.bf16 %v1994_v16, %v1816_v29  ;;  %v4020_v54 = vunpack.c.l.bf16 %v3807_v42  ;;  %v4021_v52 = vunpack.c.h.bf16 %v3807_v42 }
 0x26f   : > { %v3356_v33 = vunpack.c.l.bf16 %v2819_v38  ;;  %v3357_v32 = vunpack.c.h.bf16 %v2819_v38  ;;  %vm12202_vm14 = vcmp.gt.f32.partialorder %v4020_v54, 0.0  ;;  %vm12206_vm15 = vcmp.gt.f32.partialorder %v4021_v52, 0.0  ;;  %v6598_v38 = vld [vmem:[%s16041_s4 + $0x30] sm:$0xf] }
 0x270   : > { %v4532_v29 = vmul.f32 0.20019531, %v4020_v54  ;;  %v4533_v23 = vmul.f32 0.20019531, %v4021_v52  ;;  %v1906_v50 = vpop.f32.mrf.mxu2  ;;  %vm4831_vm1 = vmpackc.low %vm12206_vm15, %vm12202_vm14  ;;  %v4955_v54 = vsel %vm4827_vm0, %v3803_v10, %v4699_v48  ;;  %6712 = vperm.xlu1 %10149, %v6598_v38  }
 0x271   : > { %v3644_v55 = vadd.f32 %v16669_v36, %v3356_v33  ;;  %v3645_v31 = vadd.f32 %v16669_v36, %v3357_v32  ;;  %v16670_v32 = vld [vmem:[#allocation6_spill] sm:$0xff] }
 0x272   : > { %v1995_v28 = vpop.f32.mrf.mxu3  ;;  %v4703_v60 = vpack.c.bf16 %v4533_v23, %v4532_v29  ;;  %v16671_v29 = vld [vmem:[#allocation7_spill] sm:$0xff]  ;;  %v5388_v23 = vunpack.c.l.b16 %v4955_v54 }
 0x273   : > { %v12216_v16 = vpack.c.bf16 %v3645_v31, %v3644_v55  ;;  %v1996_v3 = vadd.f32 %v1995_v28, %v1906_v50  ;;  %v1731_v20 = vpop.f32.mrf.mxu0  ;;  %v1820_v57 = vpop.f32.mrf.mxu1  ;;  %v5389_v55 = vunpack.c.h.b16 %v4955_v54 }
 0x274   : > { %v1821_v52 = vadd.f32 %v1820_v57, %v1731_v20  ;;  %v4959_v22 = vsel %vm4831_vm1, %v3807_v42, %v4703_v60 }
 0x275   : > { %v2823_v33 = vpack.c.bf16 %v1996_v3, %v1818_v44  ;;  %2046 = vmatmul.bf16.gmra.mxu0 %v16670_v32  ;;  %v5396_v14 = vunpack.c.l.b16 %v4959_v22  ;;  %2224 = vmatmul.bf16.gmra.mxu2 %v16670_v32  ;;  %v5397_v31 = vunpack.c.h.b16 %v4959_v22  ;;  %v4028_v10 = vunpack.c.l.bf16 %v12216_v16  ;;  %v6596_v22 = vld [vmem:[%s16041_s4 + $0x28] sm:$0xf] }
 0x276   : > { %2135 = vmatmul.bf16.gmra.mxu1 %v16671_v29  ;;  %v4029_v48 = vunpack.c.h.bf16 %v12216_v16  ;;  %6694 = vperm.xlu0 %10148, %v6596_v22  }
 0x277   : > { %v3364_v19 = vunpack.c.l.bf16 %v2823_v33  ;;  %v3365_v50 = vunpack.c.h.bf16 %v2823_v33  ;;  %2313 = vmatmul.bf16.gmra.mxu3 %v16671_v29  ;;  %v12234_v42 = vpack.c.b16 %v5396_v14, %v5388_v23  ;;  %v12236_v44 = vpack.c.b16 %v5397_v31, %v5389_v55  ;;  %v6597_v33 = vld [vmem:[%s16041_s4 + $0x2c] sm:$0xf] }
 0x278   : > { %v1909_v3 = vpop.f32.mrf.mxu2  ;;  %v4540_v14 = vmul.f32 0.20019531, %v4028_v10  ;;  %v4541_v23 = vmul.f32 0.20019531, %v4029_v48  ;;  %6703 = vperm.xlu1 %10149, %v6597_v33   ;;  %vm12246_vm2 = vcmp.gt.f32.partialorder %v4028_v10, 0.0  ;;  %vm12250_vm3 = vcmp.gt.f32.partialorder %v4029_v48, 0.0 }
 0x279   : > { %16672 = vst [vmem:[#allocation53_spill] sm:$0xff] %v12236_v44  ;;  %v3652_v28 = vadd.f32 %v16673_v17, %v3364_v19  ;;  %v3653_v60 = vadd.f32 %v16673_v17, %v3365_v50  ;;  %vm4835_vm6 = vmpackc.low %vm12250_vm3, %vm12246_vm2 }
 0x27a   : > { %v1998_v20 = vpop.f32.mrf.mxu3  ;;  %v4707_v17 = vpack.c.bf16 %v4541_v23, %v4540_v14 }
 0x27b   : > { %v3815_v57 = vpack.c.bf16 %v3653_v60, %v3652_v28  ;;  %v1999_v35 = vadd.f32 %v1998_v20, %v1909_v3  ;;  %v1733_v38 = vpop.f32.mrf.mxu0  ;;  %v1822_v54 = vpop.f32.mrf.mxu1 }
 0x27c   : > { %v1823_v55 = vadd.f32 %v1822_v54, %v1733_v38  ;;  %v4963_v28 = vsel %vm4835_vm6, %v12216_v16, %v4707_v17 }
 0x27d   : > { %v2827_v31 = vpack.c.bf16 %v1999_v35, %v1821_v52  ;;  %v4036_v19 = vunpack.c.l.bf16 %v3815_v57  ;;  %v4037_v50 = vunpack.c.h.bf16 %v3815_v57  ;;  %v16682_v35 = vld [vmem:[#allocation70_spill] sm:$0xff] }
 0x27f   : > { %v3372_v60 = vunpack.c.l.bf16 %v2827_v31  ;;  %v3373_v3 = vunpack.c.h.bf16 %v2827_v31  ;;  %vm12254_vm4 = vcmp.gt.f32.partialorder %v4036_v19, 0.0  ;;  %vm12258_vm5 = vcmp.gt.f32.partialorder %v4037_v50, 0.0 }
 0x280   : > { %v4548_v52 = vmul.f32 0.20019531, %v4036_v19  ;;  %v4549_v10 = vmul.f32 0.20019531, %v4037_v50  ;;  %v1911_v33 = vpop.f32.mrf.mxu2  ;;  %v6595_v19 = vld [vmem:[%s16041_s4 + $0x24] sm:$0xf]  ;;  %v6592_v50 = vld [vmem:[%s16041_s4 + $0x18] sm:$0xf]  ;;  %vm4839_vm7 = vmpackc.low %vm12258_vm5, %vm12254_vm4 }
 0x281   : > { %v3660_v54 = vadd.f32 %v16682_v35, %v3372_v60  ;;  %v3661_v22 = vadd.f32 %v16682_v35, %v3373_v3  ;;  %6685 = vperm.xlu0 %10148, %v6595_v19   ;;  %6658 = vperm.xlu1 %10149, %v6592_v50  }
 0x282   : > { %v2000_v48 = vpop.f32.mrf.mxu3  ;;  %v4711_v31 = vpack.c.bf16 %v4549_v10, %v4548_v52  ;;  %v16683_v52 = vld [vmem:[#allocation9_spill] sm:$0xff] }
 0x283   : > { %v12268_v14 = vpack.c.bf16 %v3661_v22, %v3660_v54  ;;  %v2001_v23 = vadd.f32 %v2000_v48, %v1911_v33  ;;  %v1736_v32 = vpop.f32.mrf.mxu0  ;;  %v1825_v36 = vpop.f32.mrf.mxu1  ;;  %v16684_v54 = vld [vmem:[#allocation10_spill] sm:$0xff]  ;;  %v5404_v22 = vunpack.c.l.b16 %v4963_v28  ;;  %v5405_v33 = vunpack.c.h.b16 %v4963_v28 }
 0x284   : > { %v1826_v60 = vadd.f32 %v1825_v36, %v1736_v32  ;;  %v4967_v3 = vsel %vm4839_vm7, %v3815_v57, %v4711_v31  ;;  %v16685_v57 = vld [vmem:[#allocation71_spill] sm:$0xff] }
 0x285   : > { %v2831_v20 = vpack.c.bf16 %v2001_v23, %v1823_v55  ;;  %2051 = vmatmul.bf16.gmra.mxu0 %v16683_v52  ;;  %v5412_v10 = vunpack.c.l.b16 %v4967_v3  ;;  %2229 = vmatmul.bf16.gmra.mxu2 %v16683_v52  ;;  %v5413_v29 = vunpack.c.h.b16 %v4967_v3  ;;  %v4044_v36 = vunpack.c.l.bf16 %v12268_v14 }
 0x286   : > { %2140 = vmatmul.bf16.gmra.mxu1 %v16684_v54  ;;  %v4045_v16 = vunpack.c.h.bf16 %v12268_v14 }
 0x287   : > { %v3380_v48 = vunpack.c.l.bf16 %v2831_v20  ;;  %v3381_v38 = vunpack.c.h.bf16 %v2831_v20  ;;  %2318 = vmatmul.bf16.gmra.mxu3 %v16684_v54  ;;  %v12287_v32 = vpack.c.b16 %v5412_v10, %v5404_v22  ;;  %v12289_v17 = vpack.c.b16 %v5413_v29, %v5405_v33  ;;  %v6590_v54 = vld [vmem:[%s16041_s4 + $0x10] sm:$0xf]  ;;  %v6591_v10 = vld [vmem:[%s16041_s4 + $0x14] sm:$0xf] }
 0x288   : > { %v1914_v23 = vpop.f32.mrf.mxu2  ;;  %v4556_v22 = vmul.f32 0.20019531, %v4044_v36  ;;  %v4557_v33 = vmul.f32 0.20019531, %v4045_v16  ;;  %vm12299_vm8 = vcmp.gt.f32.partialorder %v4044_v36, 0.0  ;;  %vm12303_vm9 = vcmp.gt.f32.partialorder %v4045_v16, 0.0 }
 0x289   : > { %v3668_v55 = vadd.f32 %v16685_v57, %v3380_v48  ;;  %v3669_v31 = vadd.f32 %v16685_v57, %v3381_v38  ;;  %6640 = vperm.xlu0 %10148, %v6590_v54   ;;  %6649 = vperm.xlu1 %10149, %v6591_v10   ;;  %vm4843_vm12 = vmpackc.low %vm12303_vm9, %vm12299_vm8  ;;  %v16697_v54 = vld [vmem:[#allocation75_spill] sm:$0xff] }
 0x28a   : > { %v2003_v19 = vpop.f32.mrf.mxu3  ;;  %v4715_v52 = vpack.c.bf16 %v4557_v33, %v4556_v22 }
 0x28b   : > { %v3823_v50 = vpack.c.bf16 %v3669_v31, %v3668_v55  ;;  %v2004_v28 = vadd.f32 %v2003_v19, %v1914_v23  ;;  %v1738_v3 = vpop.f32.mrf.mxu0  ;;  %v1827_v20 = vpop.f32.mrf.mxu1  ;;  %v16696_v19 = vld [vmem:[#allocation14_spill] sm:$0xff] }
 0x28c   : > { %v1828_v29 = vadd.f32 %v1827_v20, %v1738_v3 }
 0x28d   : > { %v2835_v48 = vpack.c.bf16 %v2004_v28, %v1826_v60  ;;  %v4052_v38 = vunpack.c.l.bf16 %v3823_v50  ;;  %v4053_v57 = vunpack.c.h.bf16 %v3823_v50  ;;  %v16694_v28 = vld [vmem:[#allocation74_spill] sm:$0xff] }
 0x28f   : > { %v3388_v31 = vunpack.c.l.bf16 %v2835_v48  ;;  %v3389_v23 = vunpack.c.h.bf16 %v2835_v48  ;;  %vm12307_vm10 = vcmp.gt.f32.partialorder %v4052_v38, 0.0  ;;  %vm12311_vm11 = vcmp.gt.f32.partialorder %v4053_v57, 0.0 }
 0x290   : > { %v4564_v60 = vmul.f32 0.20019531, %v4052_v38  ;;  %v4565_v36 = vmul.f32 0.20019531, %v4053_v57  ;;  %v1916_v10 = vpop.f32.mrf.mxu2  ;;  %vm4847_vm13 = vmpackc.low %vm12311_vm11, %vm12307_vm10  ;;  %v4971_v57 = vsel %vm4843_vm12, %v12268_v14, %v4715_v52 }
 0x291   : > { %v3676_v3 = vadd.f32 %v16694_v28, %v3388_v31  ;;  %v3677_v20 = vadd.f32 %v16694_v28, %v3389_v23 }
 0x292   : > { %v2005_v16 = vpop.f32.mrf.mxu3  ;;  %v4719_v48 = vpack.c.bf16 %v4565_v36, %v4564_v60  ;;  %v16695_v60 = vld [vmem:[#allocation12_spill] sm:$0xff]  ;;  %v5420_v36 = vunpack.c.l.b16 %v4971_v57 }
 0x293   : > { %v12321_v22 = vpack.c.bf16 %v3677_v20, %v3676_v3  ;;  %v2006_v33 = vadd.f32 %v2005_v16, %v1916_v10  ;;  %v1741_v9 = vpop.f32.mrf.mxu0  ;;  %v1830_v62 = vpop.f32.mrf.mxu1  ;;  %v5421_v3 = vunpack.c.h.b16 %v4971_v57 }
 0x294   : > { %v1831_v38 = vadd.f32 %v1830_v62, %v1741_v9  ;;  %v4975_v31 = vsel %vm4847_vm13, %v3823_v50, %v4719_v48  ;;  %v6589_v62 = vld [vmem:[%s16041_s4 + $0xc] sm:$0xf]  ;;  %v6586_v9 = vld [vmem:[%s16041_s4] sm:$0xf] }
 0x295   : > { %v2839_v23 = vpack.c.bf16 %v2006_v33, %v1828_v29  ;;  %2056 = vmatmul.bf16.gmra.mxu0 %v16695_v60  ;;  %v5428_v55 = vunpack.c.l.b16 %v4975_v31  ;;  %2234 = vmatmul.bf16.gmra.mxu2 %v16695_v60  ;;  %v5429_v20 = vunpack.c.h.b16 %v4975_v31  ;;  %v4060_v14 = vunpack.c.l.bf16 %v12321_v22 }
 0x296   : > { %2145 = vmatmul.bf16.gmra.mxu1 %v16696_v19  ;;  %v4061_v52 = vunpack.c.h.bf16 %v12321_v22  ;;  %6631 = vperm.xlu0 %10148, %v6589_v62  }
 0x297   : > { %v3396_v10 = vunpack.c.l.bf16 %v2839_v23  ;;  %v3397_v35 = vunpack.c.h.bf16 %v2839_v23  ;;  %2323 = vmatmul.bf16.gmra.mxu3 %v16696_v19  ;;  %6604 = vperm.xlu1 %10149, %v6586_v9   ;;  %v12340_v50 = vpack.c.b16 %v5428_v55, %v5420_v36  ;;  %v12342_v29 = vpack.c.b16 %v5429_v20, %v5421_v3  ;;  %v8280_v20 = vld [vmem:[%s16043_s6 + $0x18] sm:$0xf]  ;;  %v8279_v55 = vld [vmem:[%s16043_s6 + $0x14] sm:$0xf] }
 0x298   : > { %v1919_v33 = vpop.f32.mrf.mxu2  ;;  %v4572_v28 = vmul.f32 0.20019531, %v4060_v14  ;;  %v4573_v59 = vmul.f32 0.20019531, %v4061_v52  ;;  %vm12346_vm14 = vcmp.gt.f32.partialorder %v4060_v14, 0.0  ;;  %vm12356_vm15 = vcmp.gt.f32.partialorder %v4061_v52, 0.0 }
 0x299   : > { %v3684_v16 = vadd.f32 %v16697_v54, %v3396_v10  ;;  %v3685_v48 = vadd.f32 %v16697_v54, %v3397_v35  ;;  %v8281_v10 = vld [vmem:[%s16043_s6 + $0x1c] sm:$0xf]  ;;  %vm4851_vm2 = vmpackc.low %vm12356_vm15, %vm12346_vm14  ;;  %v8276_v35 = vld [vmem:[%s16043_s6 + $0x8] sm:$0xf] }
 0x29a   : > { %v2008_v57 = vpop.f32.mrf.mxu3 }
 0x29b   : > { %v3831_v31 = vpack.c.bf16 %v3685_v48, %v3684_v16  ;;  %v2009_v23 = vadd.f32 %v2008_v57, %v1919_v33  ;;  %v1743_v19 = vpop.f32.mrf.mxu0  ;;  %v1832_v60 = vpop.f32.mrf.mxu1  ;;  %v16706_v16 = vld [vmem:[#allocation15_spill] sm:$0xff] }
 0x29c   : > { %v1833_v25 = vadd.f32 %v1832_v60, %v1743_v19  ;;  %v16708_v60 = vld [vmem:[#allocation17_spill] sm:$0xff] }
 0x29d   : > { %v2843_v45 = vpack.c.bf16 %v2009_v23, %v1831_v38  ;;  %v4068_v62 = vunpack.c.l.bf16 %v3831_v31  ;;  %v4069_v9 = vunpack.c.h.bf16 %v3831_v31  ;;  %v4723_v38 = vpack.c.bf16 %v4573_v59, %v4572_v28 }
 0x29e   : > { %8338 = vperm.xlu0 %10148, %v8280_v20  }
 0x29f   : > { %v3404_v36 = vunpack.c.l.bf16 %v2843_v45  ;;  %v3405_v3 = vunpack.c.h.bf16 %v2843_v45  ;;  %8347 = vperm.xlu1 %10149, %v8281_v10   ;;  %vm12360_vm0 = vcmp.gt.f32.partialorder %v4068_v62, 0.0  ;;  %vm12364_vm1 = vcmp.gt.f32.partialorder %v4069_v9, 0.0 }
 0x2a0   : > { %v4580_v19 = vmul.f32 0.20019531, %v4068_v62  ;;  %v4581_v14 = vmul.f32 0.20019531, %v4069_v9  ;;  %v1921_v33 = vpop.f32.mrf.mxu2  ;;  %vm4855_vm3 = vmpackc.low %vm12364_vm1, %vm12360_vm0  ;;  %v4979_v62 = vsel %vm4851_vm2, %v12321_v22, %v4723_v38 }
 0x2a1   : > { %v3692_v48 = vadd.f32 %v16706_v16, %v3404_v36  ;;  %v3693_v52 = vadd.f32 %v16706_v16, %v3405_v3  ;;  %v5436_v45 = vunpack.c.l.b16 %v4979_v62  ;;  %v5437_v22 = vunpack.c.h.b16 %v4979_v62  ;;  %v6600_v16 = vld [vmem:[%s16041_s4 + $0x38] sm:$0xf] }
 0x2a2   : > { %v2010_v57 = vpop.f32.mrf.mxu3  ;;  %v4727_v23 = vpack.c.bf16 %v4581_v14, %v4580_v19  ;;  %v16707_v19 = vld [vmem:[#allocation16_spill] sm:$0xff]  ;;  %6730 = vperm.xlu2 %10150, %v6600_v16  }
 0x2a3   : > { %v12374_v59 = vpack.c.bf16 %v3693_v52, %v3692_v48  ;;  %v2011_v28 = vadd.f32 %v2010_v57, %v1921_v33  ;;  %v1746_v20 = vpop.f32.mrf.mxu0  ;;  %v1835_v10 = vpop.f32.mrf.mxu1 }
 0x2a4   : > { %v1836_v9 = vadd.f32 %v1835_v10, %v1746_v20  ;;  %v4983_v36 = vsel %vm4855_vm3, %v3831_v31, %v4727_v23  ;;  %v16709_v23 = vld [vmem:[#allocation13_spill] sm:$0xff] }
 0x2a5   : > { %v2847_v3 = vpack.c.bf16 %v2011_v28, %v1833_v25  ;;  %2061 = vmatmul.bf16.gmra.mxu0 %v16707_v19  ;;  %v5444_v14 = vunpack.c.l.b16 %v4983_v36  ;;  %2239 = vmatmul.bf16.gmra.mxu2 %v16707_v19  ;;  %v5445_v38 = vunpack.c.h.b16 %v4983_v36  ;;  %v4076_v48 = vunpack.c.l.bf16 %v12374_v59 }
 0x2a6   : > { %2150 = vmatmul.bf16.gmra.mxu1 %v16708_v60  ;;  %v4077_v52 = vunpack.c.h.bf16 %v12374_v59  ;;  %8329 = vperm.xlu0 %10148, %v8279_v55  }
 0x2a7   : > { %v3412_v31 = vunpack.c.l.bf16 %v2847_v3  ;;  %v3413_v25 = vunpack.c.h.bf16 %v2847_v3  ;;  %2328 = vmatmul.bf16.gmra.mxu3 %v16708_v60  ;;  %8302 = vperm.xlu1 %10149, %v8276_v35   ;;  %v12393_v33 = vpack.c.b16 %v5444_v14, %v5436_v45  ;;  %v12395_v57 = vpack.c.b16 %v5445_v38, %v5437_v22  ;;  %v8274_v22 = vld [vmem:[%s16043_s6] sm:$0xf]  ;;  %v8275_v38 = vld [vmem:[%s16043_s6 + $0x4] sm:$0xf] }
 0x2a8   : > { %v1924_v10 = vpop.f32.mrf.mxu2  ;;  %v4588_v55 = vmul.f32 0.20019531, %v4076_v48  ;;  %v4589_v35 = vmul.f32 0.20019531, %v4077_v52  ;;  %vm12408_vm4 = vcmp.gt.f32.partialorder %v4076_v48, 0.0  ;;  %vm12412_vm5 = vcmp.gt.f32.partialorder %v4077_v52, 0.0 }
 0x2a9   : > { %v3700_v28 = vadd.f32 %v16709_v23, %v3412_v31  ;;  %v3701_v20 = vadd.f32 %v16709_v23, %v3413_v25  ;;  %vm4859_vm8 = vmpackc.low %vm12412_vm5, %vm12408_vm4 }
 0x2aa   : > { %v2013_v62 = vpop.f32.mrf.mxu3  ;;  %v4731_v16 = vpack.c.bf16 %v4589_v35, %v4588_v55 }
 0x2ab   : > { %v3839_v36 = vpack.c.bf16 %v3701_v20, %v3700_v28  ;;  %v2014_v3 = vadd.f32 %v2013_v62, %v1924_v10  ;;  %v1748_v19 = vpop.f32.mrf.mxu0  ;;  %v1837_v60 = vpop.f32.mrf.mxu1 }
 0x2ac   : > { %v1838_v14 = vadd.f32 %v1837_v60, %v1748_v19 }
 0x2ad   : > { %v2851_v45 = vpack.c.bf16 %v2014_v3, %v1836_v9  ;;  %v4084_v31 = vunpack.c.l.bf16 %v3839_v36  ;;  %v4085_v25 = vunpack.c.h.bf16 %v3839_v36  ;;  %v16718_v3 = vld [vmem:[#allocation8_spill] sm:$0xff] }
 0x2ae   : > { %8284 = vperm.xlu0 %10148, %v8274_v22  }
 0x2af   : > { %v3420_v20 = vunpack.c.l.bf16 %v2851_v45  ;;  %v3421_v10 = vunpack.c.h.bf16 %v2851_v45  ;;  %8293 = vperm.xlu1 %10149, %v8275_v38   ;;  %vm12416_vm6 = vcmp.gt.f32.partialorder %v4084_v31, 0.0  ;;  %vm12420_vm7 = vcmp.gt.f32.partialorder %v4085_v25, 0.0 }
 0x2b0   : > { %v4596_v48 = vmul.f32 0.20019531, %v4084_v31  ;;  %v4597_v62 = vmul.f32 0.20019531, %v4085_v25  ;;  %v1926_v45 = vpop.f32.mrf.mxu2  ;;  %v6599_v31 = vld [vmem:[%s16041_s4 + $0x34] sm:$0xf]  ;;  %vm4863_vm9 = vmpackc.low %vm12420_vm7, %vm12416_vm6  ;;  %v4987_v25 = vsel %vm4859_vm8, %v12374_v59, %v4731_v16 }
 0x2b1   : > { %v3708_v23 = vadd.f32 %v16718_v3, %v3420_v20  ;;  %v3709_v52 = vadd.f32 %v16718_v3, %v3421_v10  ;;  %6721 = vperm.xlu2 %10150, %v6599_v31   ;;  %v5453_v9 = vunpack.c.h.b16 %v4987_v25 }
 0x2b2   : > { %v2015_v54 = vpop.f32.mrf.mxu3  ;;  %v4735_v63 = vpack.c.bf16 %v4597_v62, %v4596_v48  ;;  %v16720_v62 = vld [vmem:[#allocation19_spill] sm:$0xff] }
 0x2b3   : > { %v3843_v55 = vpack.c.bf16 %v3709_v52, %v3708_v23  ;;  %v2016_v35 = vadd.f32 %v2015_v54, %v1926_v45  ;;  %v2027_v22 = vpop.f32.mrf.mxu0  ;;  %v2116_v38 = vpop.f32.mrf.mxu1  ;;  %v16719_v54 = vld [vmem:[#allocation18_spill] sm:$0xff]  ;;  %v5452_v52 = vunpack.c.l.b16 %v4987_v25 }
 0x2b4   : > { %v2117_v20 = vadd.f32 %v2116_v38, %v2027_v22  ;;  %v4991_v28 = vsel %vm4863_vm9, %v3839_v36, %v4735_v63 }
 0x2b5   : > { %v4092_v10 = vunpack.c.l.bf16 %v3843_v55  ;;  %v4093_v19 = vunpack.c.h.bf16 %v3843_v55  ;;  %v2855_v23 = vpack.c.bf16 %v2016_v35, %v1838_v14  ;;  %2066 = vmatmul.bf16.gmra.mxu0 %v16719_v54  ;;  %v5460_v48 = vunpack.c.l.b16 %v4991_v28  ;;  %2244 = vmatmul.bf16.gmra.mxu2 %v16719_v54  ;;  %v16721_v14 = vld [vmem:[#allocation11_spill] sm:$0xff] }
 0x2b6   : > { %2155 = vmatmul.bf16.gmra.mxu1 %v16720_v62  ;;  %v5461_v45 = vunpack.c.h.b16 %v4991_v28 }
 0x2b7   : > { %v3428_v60 = vunpack.c.l.bf16 %v2855_v23  ;;  %v3429_v3 = vunpack.c.h.bf16 %v2855_v23  ;;  %2333 = vmatmul.bf16.gmra.mxu3 %v16720_v62  ;;  %v4604_v59 = vmul.f32 0.20019531, %v4092_v10  ;;  %v4605_v16 = vmul.f32 0.20019531, %v4093_v19  ;;  %v6594_v23 = vld [vmem:[%s16041_s4 + $0x20] sm:$0xf] }
 0x2b8   : > { %v12442_v63 = vpack.c.b16 %v5460_v48, %v5452_v52  ;;  %v12444_v36 = vpack.c.b16 %v5461_v45, %v5453_v9  ;;  %v2205_v38 = vpop.f32.mrf.mxu2  ;;  %vm4348_vm10 = vcmp.gt.f32.partialorder %v4092_v10, 0.0  ;;  %vm4349_vm11 = vcmp.gt.f32.partialorder %v4093_v19, 0.0 }
 0x2b9   : > { %v3716_v35 = vadd.f32 %v16721_v14, %v3428_v60  ;;  %v3717_v22 = vadd.f32 %v16721_v14, %v3429_v3  ;;  %6676 = vperm.xlu2 %10150, %v6594_v23   ;;  %v4739_v48 = vpack.c.bf16 %v4605_v16, %v4604_v59  ;;  %vm4867_vm12 = vmpackc.low %vm4349_vm11, %vm4348_vm10 }
 0x2ba   : > { %v2294_v31 = vpop.f32.mrf.mxu3 }
 0x2bb   : > { %v3847_v54 = vpack.c.bf16 %v3717_v22, %v3716_v35  ;;  %v2295_v5 = vadd.f32 %v2294_v31, %v2205_v38  ;;  %v2029_v25 = vpop.f32.mrf.mxu0  ;;  %v2118_v28 = vpop.f32.mrf.mxu1  ;;  %v4995_v35 = vsel %vm4867_vm12, %v3843_v55, %v4739_v48  ;;  %v16722_v22 = vld [vmem:[#allocation25_spill] sm:$0xff] }
 0x2bc   : > { %v2119_v62 = vadd.f32 %v2118_v28, %v2029_v25 }
 0x2bd   : > { %v4100_v52 = vunpack.c.l.bf16 %v3847_v54  ;;  %v4101_v9 = vunpack.c.h.bf16 %v3847_v54  ;;  %v2732_v45 = vpack.c.bf16 %v2295_v5, %v2117_v20  ;;  %v6593_v20 = vld [vmem:[%s16041_s4 + $0x1c] sm:$0xf] }
 0x2bf   : > { %v4612_v60 = vmul.f32 0.20019531, %v4100_v52  ;;  %v4613_v3 = vmul.f32 0.20019531, %v4101_v9  ;;  %v3182_v14 = vunpack.c.l.bf16 %v2732_v45  ;;  %v3183_v41 = vunpack.c.h.bf16 %v2732_v45  ;;  %v16723_v45 = vld [vmem:[#allocation21_spill] sm:$0xff] }
 0x2c0   : > { %vm4356_vm13 = vcmp.gt.f32.partialorder %v4100_v52, 0.0  ;;  %vm4357_vm14 = vcmp.gt.f32.partialorder %v4101_v9, 0.0  ;;  %v2207_v25 = vpop.f32.mrf.mxu2  ;;  %v5468_v52 = vunpack.c.l.b16 %v4995_v35 }
 0x2c1   : > { %v3470_v38 = vadd.f32 %v16722_v22, %v3182_v14  ;;  %v3471_v31 = vadd.f32 %v16722_v22, %v3183_v41  ;;  %v4743_v28 = vpack.c.bf16 %v4613_v3, %v4612_v60  ;;  %vm4871_vm15 = vmpackc.low %vm4357_vm14, %vm4356_vm13  ;;  %6667 = vperm.xlu2 %10150, %v6593_v20   ;;  %v5469_v14 = vunpack.c.h.b16 %v4995_v35  ;;  %v16724_v60 = vld [vmem:[#allocation22_spill] sm:$0xff] }
 0x2c2   : > { %v2296_v10 = vpop.f32.mrf.mxu3 }
 0x2c3   : > { %v3724_v19 = vpack.c.bf16 %v3471_v31, %v3470_v38  ;;  %v2297_v59 = vadd.f32 %v2296_v10, %v2207_v25  ;;  %v2032_v16 = vpop.f32.mrf.mxu0  ;;  %v2121_v5 = vpop.f32.mrf.mxu1  ;;  %v4999_v23 = vsel %vm4871_vm15, %v3847_v54, %v4743_v28  ;;  %v16725_v10 = vld [vmem:[#allocation23_spill] sm:$0xff] }
 0x2c4   : > { %v2122_v9 = vadd.f32 %v2121_v5, %v2032_v16  ;;  %v5476_v55 = vunpack.c.l.b16 %v4999_v23  ;;  %v5477_v48 = vunpack.c.h.b16 %v4999_v23 }
 0x2c5   : > { %v2736_v41 = vpack.c.bf16 %v2297_v59, %v2119_v62  ;;  %2071 = vmatmul.bf16.gmra.mxu0 %v16723_v45  ;;  %2249 = vmatmul.bf16.gmra.mxu2 %v16723_v45  ;;  %v3854_v54 = vunpack.c.l.bf16 %v3724_v19  ;;  %v3855_v28 = vunpack.c.h.bf16 %v3724_v19 }
 0x2c6   : > { %2160 = vmatmul.bf16.gmra.mxu1 %v16724_v60  ;;  %v12459_v3 = vpack.c.b16 %v5476_v55, %v5468_v52  ;;  %v12461_v38 = vpack.c.b16 %v5477_v48, %v5469_v14  ;;  %v6588_v52 = vld [vmem:[%s16041_s4 + $0x8] sm:$0xf] }
 0x2c7   : > { %v3190_v31 = vunpack.c.l.bf16 %v2736_v41  ;;  %v3191_v25 = vunpack.c.h.bf16 %v2736_v41  ;;  %2338 = vmatmul.bf16.gmra.mxu3 %v16724_v60  ;;  %v4366_v55 = vmul.f32 0.20019531, %v3854_v54  ;;  %v4367_v14 = vmul.f32 0.20019531, %v3855_v28 }
 0x2c8   : > { %v2210_v59 = vpop.f32.mrf.mxu2  ;;  %vm12469_vm0 = vcmp.gt.f32.partialorder %v3854_v54, 0.0  ;;  %vm12473_vm1 = vcmp.gt.f32.partialorder %v3855_v28, 0.0 }
 0x2c9   : > { %v3478_v35 = vadd.f32 %v16725_v10, %v3190_v31  ;;  %v3479_v62 = vadd.f32 %v16725_v10, %v3191_v25  ;;  %6622 = vperm.xlu2 %10150, %v6588_v52   ;;  %vm4748_vm4 = vmpackc.low %vm12473_vm1, %vm12469_vm0 }
 0x2ca   : > { %v2299_v16 = vpop.f32.mrf.mxu3 }
 0x2cb   : > { %v3728_v5 = vpack.c.bf16 %v3479_v62, %v3478_v35  ;;  %v2300_v20 = vadd.f32 %v2299_v16, %v2210_v59  ;;  %v2034_v23 = vpop.f32.mrf.mxu0  ;;  %v2123_v45 = vpop.f32.mrf.mxu1  ;;  %v4620_v59 = vpack.c.bf16 %v4367_v14, %v4366_v55  ;;  %v16735_v62 = vld [vmem:[#allocation26_spill] sm:$0xff] }
 0x2cc   : > { %v2124_v48 = vadd.f32 %v2123_v45, %v2034_v23 }
 0x2cd   : > { %v2740_v41 = vpack.c.bf16 %v2300_v20, %v2122_v9  ;;  %v3862_v60 = vunpack.c.l.bf16 %v3728_v5  ;;  %v3863_v22 = vunpack.c.h.bf16 %v3728_v5  ;;  %v16734_v20 = vld [vmem:[#allocation24_spill] sm:$0xff] }
 0x2cf   : > { %v3198_v25 = vunpack.c.l.bf16 %v2740_v41  ;;  %v3199_v35 = vunpack.c.h.bf16 %v2740_v41  ;;  %vm12477_vm2 = vcmp.gt.f32.partialorder %v3862_v60, 0.0  ;;  %vm12481_vm3 = vcmp.gt.f32.partialorder %v3863_v22, 0.0 }
 0x2d0   : > { %v4374_v9 = vmul.f32 0.20019531, %v3862_v60  ;;  %v4375_v54 = vmul.f32 0.20019531, %v3863_v22  ;;  %v2212_v41 = vpop.f32.mrf.mxu2  ;;  %v6587_v22 = vld [vmem:[%s16041_s4 + $0x4] sm:$0xf]  ;;  %vm4752_vm5 = vmpackc.low %vm12481_vm3, %vm12477_vm2  ;;  %v4876_v60 = vsel %vm4748_vm4, %v3724_v19, %v4620_v59 }
 0x2d1   : > { %v3486_v23 = vadd.f32 %v16734_v20, %v3198_v25  ;;  %v3487_v52 = vadd.f32 %v16734_v20, %v3199_v35  ;;  %6613 = vperm.xlu2 %10150, %v6587_v22  }
 0x2d2   : > { %v2301_v28 = vpop.f32.mrf.mxu3  ;;  %v4624_v10 = vpack.c.bf16 %v4375_v54, %v4374_v9  ;;  %v16736_v54 = vld [vmem:[#allocation27_spill] sm:$0xff] }
 0x2d3   : > { %v12491_v55 = vpack.c.bf16 %v3487_v52, %v3486_v23  ;;  %v2302_v14 = vadd.f32 %v2301_v28, %v2212_v41  ;;  %v2037_v58 = vpop.f32.mrf.mxu0  ;;  %v2126_v39 = vpop.f32.mrf.mxu1  ;;  %v5230_v23 = vunpack.c.l.b16 %v4876_v60  ;;  %v5231_v52 = vunpack.c.h.b16 %v4876_v60 }
 0x2d4   : > { %v2127_v25 = vadd.f32 %v2126_v39, %v2037_v58  ;;  %v4880_v31 = vsel %vm4752_vm5, %v3728_v5, %v4624_v10  ;;  %v16739_v5 = vld [vmem:[#allocation28_spill] sm:$0xff] }
 0x2d5   : > { %v2744_v35 = vpack.c.bf16 %v2302_v14, %v2124_v48  ;;  %2076 = vmatmul.bf16.gmra.mxu0 %v16735_v62  ;;  %v5238_v9 = vunpack.c.l.b16 %v4880_v31  ;;  %2254 = vmatmul.bf16.gmra.mxu2 %v16735_v62  ;;  %v5239_v41 = vunpack.c.h.b16 %v4880_v31  ;;  %v3870_v19 = vunpack.c.l.bf16 %v12491_v55 }
 0x2d6   : > { %2165 = vmatmul.bf16.gmra.mxu1 %v16736_v54  ;;  %v3871_v58 = vunpack.c.h.bf16 %v12491_v55 }
 0x2d7   : > { %v3206_v28 = vunpack.c.l.bf16 %v2744_v35  ;;  %v3207_v16 = vunpack.c.h.bf16 %v2744_v35  ;;  %2343 = vmatmul.bf16.gmra.mxu3 %v16736_v54  ;;  %v12506_v39 = vpack.c.b16 %v5238_v9, %v5230_v23  ;;  %v12508_v10 = vpack.c.b16 %v5239_v41, %v5231_v52  ;;  %v8278_v54 = vld [vmem:[%s16043_s6 + $0x10] sm:$0xf] }
 0x2d8   : > { %v2215_v45 = vpop.f32.mrf.mxu2  ;;  %v4382_v62 = vmul.f32 0.20019531, %v3870_v19  ;;  %v4383_v20 = vmul.f32 0.20019531, %v3871_v58  ;;  %vm12515_vm6 = vcmp.gt.f32.partialorder %v3870_v19, 0.0  ;;  %vm12519_vm7 = vcmp.gt.f32.partialorder %v3871_v58, 0.0 }
 0x2d9   : > { %16737 = vst [vmem:[#allocation56_spill] sm:$0xff] %v12506_v39  ;;  %v3494_v48 = vadd.f32 %v16739_v5, %v3206_v28  ;;  %v3495_v59 = vadd.f32 %v16739_v5, %v3207_v16  ;;  %8320 = vperm.xlu2 %10150, %v8278_v54   ;;  %vm4756_vm10 = vmpackc.low %vm12519_vm7, %vm12515_vm6 }
 0x2da   : > { %16738 = vst [vmem:[#allocation50_spill] sm:$0xff] %v12508_v10  ;;  %v2304_v14 = vpop.f32.mrf.mxu3 }
 0x2db   : > { %v3736_v22 = vpack.c.bf16 %v3495_v59, %v3494_v48  ;;  %v2305_v60 = vadd.f32 %v2304_v14, %v2215_v45  ;;  %v2039_v31 = vpop.f32.mrf.mxu0  ;;  %v2128_v35 = vpop.f32.mrf.mxu1  ;;  %v4628_v45 = vpack.c.bf16 %v4383_v20, %v4382_v62  ;;  %v16749_v59 = vld [vmem:[#allocation32_spill] sm:$0xff] }
 0x2dc   : > { %v2129_v9 = vadd.f32 %v2128_v35, %v2039_v31 }
 0x2dd   : > { %v2748_v23 = vpack.c.bf16 %v2305_v60, %v2127_v25  ;;  %v3878_v52 = vunpack.c.l.bf16 %v3736_v22  ;;  %v3879_v41 = vunpack.c.h.bf16 %v3736_v22  ;;  %v16748_v60 = vld [vmem:[#allocation29_spill] sm:$0xff] }
 0x2df   : > { %v3214_v16 = vunpack.c.l.bf16 %v2748_v23  ;;  %v3215_v48 = vunpack.c.h.bf16 %v2748_v23  ;;  %vm12523_vm8 = vcmp.gt.f32.partialorder %v3878_v52, 0.0  ;;  %vm12527_vm9 = vcmp.gt.f32.partialorder %v3879_v41, 0.0 }
 0x2e0   : > { %v4390_v25 = vmul.f32 0.20019531, %v3878_v52  ;;  %v4391_v19 = vmul.f32 0.20019531, %v3879_v41  ;;  %v2217_v23 = vpop.f32.mrf.mxu2  ;;  %v8277_v52 = vld [vmem:[%s16043_s6 + $0xc] sm:$0xf]  ;;  %vm4760_vm11 = vmpackc.low %vm12527_vm9, %vm12523_vm8  ;;  %v4884_v41 = vsel %vm4756_vm10, %v12491_v55, %v4628_v45 }
 0x2e1   : > { %v3502_v31 = vadd.f32 %v16748_v60, %v3214_v16  ;;  %v3503_v35 = vadd.f32 %v16748_v60, %v3215_v48  ;;  %8311 = vperm.xlu2 %10150, %v8277_v52  }
 0x2e2   : > { %v2306_v58 = vpop.f32.mrf.mxu3  ;;  %v4632_v10 = vpack.c.bf16 %v4391_v19, %v4390_v25  ;;  %v16750_v19 = vld [vmem:[#allocation33_spill] sm:$0xff] }
 0x2e3   : > { %v3740_v20 = vpack.c.bf16 %v3503_v35, %v3502_v31  ;;  %v2307_v62 = vadd.f32 %v2306_v58, %v2217_v23  ;;  %v2042_v39 = vpop.f32.mrf.mxu0  ;;  %v2131_v5 = vpop.f32.mrf.mxu1  ;;  %v5246_v31 = vunpack.c.l.b16 %v4884_v41  ;;  %v5247_v35 = vunpack.c.h.b16 %v4884_v41 }
 0x2e4   : > { %v2132_v16 = vadd.f32 %v2131_v5, %v2042_v39  ;;  %v4888_v28 = vsel %vm4760_vm11, %v3736_v22, %v4632_v10  ;;  %v16753_v5 = vld [vmem:[#allocation34_spill] sm:$0xff] }
 0x2e5   : > { %v2752_v48 = vpack.c.bf16 %v2307_v62, %v2129_v9  ;;  %2081 = vmatmul.bf16.gmra.mxu0 %v16749_v59  ;;  %v5254_v25 = vunpack.c.l.b16 %v4888_v28  ;;  %2259 = vmatmul.bf16.gmra.mxu2 %v16749_v59  ;;  %v5255_v23 = vunpack.c.h.b16 %v4888_v28  ;;  %v3886_v54 = vunpack.c.l.bf16 %v3740_v20 }
 0x2e6   : > { %2170 = vmatmul.bf16.gmra.mxu1 %v16750_v19  ;;  %v3887_v55 = vunpack.c.h.bf16 %v3740_v20 }
 0x2e7   : > { %v3222_v14 = vunpack.c.l.bf16 %v2752_v48  ;;  %v3223_v58 = vunpack.c.h.bf16 %v2752_v48  ;;  %2348 = vmatmul.bf16.gmra.mxu3 %v16750_v19  ;;  %v12549_v39 = vpack.c.b16 %v5254_v25, %v5246_v31  ;;  %v12551_v10 = vpack.c.b16 %v5255_v23, %v5247_v35 }
 0x2e8   : > { %v2220_v45 = vpop.f32.mrf.mxu2  ;;  %v4398_v60 = vmul.f32 0.20019531, %v3886_v54  ;;  %v4399_v48 = vmul.f32 0.20019531, %v3887_v55  ;;  %vm12555_vm12 = vcmp.gt.f32.partialorder %v3886_v54, 0.0  ;;  %vm12559_vm13 = vcmp.gt.f32.partialorder %v3887_v55, 0.0  ;;  %v16762_v54 = vld [vmem:[#allocation37_spill] sm:$0xff] }
 0x2e9   : > { %16751 = vst [vmem:[#allocation51_spill] sm:$0xff] %v12549_v39  ;;  %v3510_v22 = vadd.f32 %v16753_v5, %v3222_v14  ;;  %v3511_v9 = vadd.f32 %v16753_v5, %v3223_v58  ;;  %vm4764_vm0 = vmpackc.low %vm12559_vm13, %vm12555_vm12 }
 0x2ea   : > { %16752 = vst [vmem:[#allocation47_spill] sm:$0xff] %v12551_v10  ;;  %v2309_v62 = vpop.f32.mrf.mxu3  ;;  %v4636_v14 = vpack.c.bf16 %v4399_v48, %v4398_v60  ;;  %v16763_v10 = vld [vmem:[#allocation38_spill] sm:$0xff] }
 0x2eb   : > { %v3744_v52 = vpack.c.bf16 %v3511_v9, %v3510_v22  ;;  %v2310_v59 = vadd.f32 %v2309_v62, %v2220_v45  ;;  %v2044_v41 = vpop.f32.mrf.mxu0  ;;  %v2133_v28 = vpop.f32.mrf.mxu1 }
 0x2ec   : > { %v2134_v12 = vadd.f32 %v2133_v28, %v2044_v41 }
 0x2ed   : > { %v2756_v19 = vpack.c.bf16 %v2310_v59, %v2132_v16  ;;  %v3894_v15 = vunpack.c.l.bf16 %v3744_v52  ;;  %v3895_v44 = vunpack.c.h.bf16 %v3744_v52 }
 0x2ef   : > { %v3230_v31 = vunpack.c.l.bf16 %v2756_v19  ;;  %v3231_v35 = vunpack.c.h.bf16 %v2756_v19  ;;  %vm12563_vm14 = vcmp.gt.f32.partialorder %v3894_v15, 0.0  ;;  %vm12567_vm15 = vcmp.gt.f32.partialorder %v3895_v44, 0.0 }
 0x2f0   : > { %v4406_v16 = vmul.f32 0.20019531, %v3894_v15  ;;  %v4407_v59 = vmul.f32 0.20019531, %v3895_v44  ;;  %v2222_v19 = vpop.f32.mrf.mxu2  ;;  %vm4768_vm1 = vmpackc.low %vm12567_vm15, %vm12563_vm14  ;;  %v4892_v15 = vsel %vm4764_vm0, %v3740_v20, %v4636_v14  ;;  %v16765_v20 = vld [vmem:[#allocation40_spill] sm:$0xff] }
 0x2f1   : > { %v3518_v9 = vadd.f32 %v16762_v54, %v3230_v31  ;;  %v3519_v45 = vadd.f32 %v16762_v54, %v3231_v35  ;;  %v5262_v25 = vunpack.c.l.b16 %v4892_v15 }
 0x2f2   : > { %v2311_v55 = vpop.f32.mrf.mxu3  ;;  %v4640_v62 = vpack.c.bf16 %v4407_v59, %v4406_v16  ;;  %v16764_v16 = vld [vmem:[#allocation39_spill] sm:$0xff]  ;;  %v5263_v59 = vunpack.c.h.b16 %v4892_v15 }
 0x2f3   : > { %v3748_v60 = vpack.c.bf16 %v3519_v45, %v3518_v9  ;;  %v2312_v41 = vadd.f32 %v2311_v55, %v2222_v19  ;;  %v2047_v28 = vpop.f32.mrf.mxu0  ;;  %v2136_v48 = vpop.f32.mrf.mxu1 }
 0x2f4   : > { %v2137_v44 = vadd.f32 %v2136_v48, %v2047_v28  ;;  %v4896_v31 = vsel %vm4768_vm1, %v3744_v52, %v4640_v62 }
 0x2f5   : > { %v2760_v35 = vpack.c.bf16 %v2312_v41, %v2134_v12  ;;  %2086 = vmatmul.bf16.gmra.mxu0 %v16763_v10  ;;  %2264 = vmatmul.bf16.gmra.mxu2 %v16763_v10  ;;  %v5270_v23 = vunpack.c.l.b16 %v4896_v31  ;;  %v5271_v9 = vunpack.c.h.b16 %v4896_v31  ;;  %v3902_v58 = vunpack.c.l.bf16 %v3748_v60 }
 0x2f6   : > { %2175 = vmatmul.bf16.gmra.mxu1 %v16764_v16  ;;  %v3903_v22 = vunpack.c.h.bf16 %v3748_v60 }
 0x2f7   : > { %v3238_v45 = vunpack.c.l.bf16 %v2760_v35  ;;  %v3239_v19 = vunpack.c.h.bf16 %v2760_v35  ;;  %2353 = vmatmul.bf16.gmra.mxu3 %v16764_v16  ;;  %v12587_v55 = vpack.c.b16 %v5270_v23, %v5262_v25  ;;  %v12589_v62 = vpack.c.b16 %v5271_v9, %v5263_v59 }
 0x2f8   : > { %v2225_v52 = vpop.f32.mrf.mxu2  ;;  %v4414_v39 = vmul.f32 0.20019531, %v3902_v58  ;;  %v4415_v35 = vmul.f32 0.20019531, %v3903_v22  ;;  %vm12591_vm2 = vcmp.gt.f32.partialorder %v3902_v58, 0.0  ;;  %vm12595_vm3 = vcmp.gt.f32.partialorder %v3903_v22, 0.0 }
 0x2f9   : > { %v3526_v14 = vadd.f32 %v16765_v20, %v3238_v45  ;;  %v3527_v12 = vadd.f32 %v16765_v20, %v3239_v19  ;;  %16766 = vst [vmem:[#allocation72_spill] sm:$0xff] %v12587_v55  ;;  %vm4772_vm6 = vmpackc.low %vm12595_vm3, %vm12591_vm2 }
 0x2fa   : > { %16767 = vst [vmem:[#allocation48_spill] sm:$0xff] %v12589_v62  ;;  %v2314_v41 = vpop.f32.mrf.mxu3  ;;  %v4644_v59 = vpack.c.bf16 %v4415_v35, %v4414_v39  ;;  %v16777_v62 = vld [vmem:[#allocation44_spill] sm:$0xff] }
 0x2fb   : > { %v3752_v28 = vpack.c.bf16 %v3527_v12, %v3526_v14  ;;  %v2315_v48 = vadd.f32 %v2314_v41, %v2225_v52  ;;  %v2049_v15 = vpop.f32.mrf.mxu0  ;;  %v2138_v31 = vpop.f32.mrf.mxu1  ;;  %v16776_v12 = vld [vmem:[#allocation43_spill] sm:$0xff] }
 0x2fc   : > { %v2139_v10 = vadd.f32 %v2138_v31, %v2049_v15 }
 0x2fd   : > { %v2764_v16 = vpack.c.bf16 %v2315_v48, %v2137_v44  ;;  %v3910_v54 = vunpack.c.l.bf16 %v3752_v28  ;;  %v3911_v5 = vunpack.c.h.bf16 %v3752_v28 }
 0x2ff   : > { %v3246_v19 = vunpack.c.l.bf16 %v2764_v16  ;;  %v3247_v25 = vunpack.c.h.bf16 %v2764_v16  ;;  %vm12599_vm4 = vcmp.gt.f32.partialorder %v3910_v54, 0.0  ;;  %vm12603_vm5 = vcmp.gt.f32.partialorder %v3911_v5, 0.0 }
 0x300   : > { %v4422_v44 = vmul.f32 0.20019531, %v3910_v54  ;;  %v4423_v58 = vmul.f32 0.20019531, %v3911_v5  ;;  %v2227_v16 = vpop.f32.mrf.mxu2  ;;  %vm4776_vm7 = vmpackc.low %vm12603_vm5, %vm12599_vm4  ;;  %v4900_v5 = vsel %vm4772_vm6, %v3748_v60, %v4644_v59  ;;  %v16779_v60 = vld [vmem:[#allocation46_spill] sm:$0xff] }
 0x301   : > { %v3534_v52 = vadd.f32 %v16776_v12, %v3246_v19  ;;  %v3535_v41 = vadd.f32 %v16776_v12, %v3247_v25  ;;  %v5278_v45 = vunpack.c.l.b16 %v4900_v5 }
 0x302   : > { %v2316_v22 = vpop.f32.mrf.mxu3  ;;  %v4648_v48 = vpack.c.bf16 %v4423_v58, %v4422_v44  ;;  %v16778_v44 = vld [vmem:[#allocation45_spill] sm:$0xff]  ;;  %v5279_v58 = vunpack.c.h.b16 %v4900_v5 }
 0x303   : > { %v3756_v39 = vpack.c.bf16 %v3535_v41, %v3534_v52  ;;  %v2317_v15 = vadd.f32 %v2316_v22, %v2227_v16  ;;  %v2052_v31 = vpop.f32.mrf.mxu0  ;;  %v2141_v35 = vpop.f32.mrf.mxu1 }
 0x304   : > { %v2142_v54 = vadd.f32 %v2141_v35, %v2052_v31  ;;  %v4904_v19 = vsel %vm4776_vm7, %v3752_v28, %v4648_v48 }
 0x305   : > { %v2768_v25 = vpack.c.bf16 %v2317_v15, %v2139_v10  ;;  %2091 = vmatmul.bf16.gmra.mxu0 %v16777_v62  ;;  %2269 = vmatmul.bf16.gmra.mxu2 %v16777_v62  ;;  %v5286_v23 = vunpack.c.l.b16 %v4904_v19  ;;  %v5287_v52 = vunpack.c.h.b16 %v4904_v19  ;;  %v3918_v9 = vunpack.c.l.bf16 %v3756_v39 }
 0x306   : > { %2180 = vmatmul.bf16.gmra.mxu1 %v16778_v44  ;;  %v3919_v14 = vunpack.c.h.bf16 %v3756_v39 }
 0x307   : > { %v3254_v41 = vunpack.c.l.bf16 %v2768_v25  ;;  %v3255_v16 = vunpack.c.h.bf16 %v2768_v25  ;;  %2358 = vmatmul.bf16.gmra.mxu3 %v16778_v44  ;;  %v12623_v22 = vpack.c.b16 %v5286_v23, %v5278_v45  ;;  %v12625_v48 = vpack.c.b16 %v5287_v52, %v5279_v58 }
 0x308   : > { %v2230_v28 = vpop.f32.mrf.mxu2  ;;  %v4430_v55 = vmul.f32 0.20019531, %v3918_v9  ;;  %v4431_v25 = vmul.f32 0.20019531, %v3919_v14  ;;  %vm12627_vm8 = vcmp.gt.f32.partialorder %v3918_v9, 0.0  ;;  %vm12631_vm9 = vcmp.gt.f32.partialorder %v3919_v14, 0.0 }
 0x309   : > { %v3542_v59 = vadd.f32 %v16779_v60, %v3254_v41  ;;  %v3543_v10 = vadd.f32 %v16779_v60, %v3255_v16  ;;  %16780 = vst [vmem:[#allocation57_spill] sm:$0xff] %v12623_v22  ;;  %vm4780_vm12 = vmpackc.low %vm12631_vm9, %vm12627_vm8 }
 0x30a   : > { %16781 = vst [vmem:[#allocation73_spill] sm:$0xff] %v12625_v48  ;;  %v2319_v15 = vpop.f32.mrf.mxu3  ;;  %v4652_v58 = vpack.c.bf16 %v4431_v25, %v4430_v55 }
 0x30b   : > { %v3760_v31 = vpack.c.bf16 %v3543_v10, %v3542_v59  ;;  %v2320_v35 = vadd.f32 %v2319_v15, %v2230_v28  ;;  %v2054_v5 = vpop.f32.mrf.mxu0  ;;  %v2143_v19 = vpop.f32.mrf.mxu1 }
 0x30c   : > { %v2144_v62 = vadd.f32 %v2143_v19, %v2054_v5  ;;  %v4908_v19 = vsel %vm4780_vm12, %v3756_v39, %v4652_v58 }
 0x30d   : > { %v2772_v44 = vpack.c.bf16 %v2320_v35, %v2142_v54  ;;  %v3926_v12 = vunpack.c.l.bf16 %v3760_v31  ;;  %v3927_v20 = vunpack.c.h.bf16 %v3760_v31  ;;  %v5294_v41 = vunpack.c.l.b16 %v4908_v19 }
 0x30f   : > { %v3262_v16 = vunpack.c.l.bf16 %v2772_v44  ;;  %v3263_v45 = vunpack.c.h.bf16 %v2772_v44  ;;  %vm12635_vm10 = vcmp.gt.f32.partialorder %v3926_v12, 0.0  ;;  %v4438_v59 = vmul.f32 0.20019531, %v3926_v12 }
 0x310   : > { %v2232_v9 = vpop.f32.mrf.mxu2  ;;  %vm4183_vm11 = vcmp.gt.f32.partialorder %v3927_v20, 0.0  ;;  %v4439_v28 = vmul.f32 0.20019531, %v3927_v20 }
 0x311   : > { %v3550_v54 = vadd.f32 %v16582_v6, %v3262_v16  ;;  %v3551_v10 = vadd.f32 %v16582_v6, %v3263_v45  ;;  %vm4784_vm13 = vmpackc.low %vm4183_vm11, %vm12635_vm10 }
 0x312   : > { %v2321_v15 = vpop.f32.mrf.mxu3  ;;  %v4656_v5 = vpack.c.bf16 %v4439_v28, %v4438_v59  ;;  %v5295_v59 = vunpack.c.h.b16 %v4908_v19 }
 0x313   : > { %v3764_v44 = vpack.c.bf16 %v3551_v10, %v3550_v54  ;;  %v2322_v55 = vadd.f32 %v2321_v15, %v2232_v9  ;;  %v2057_v14 = vpop.f32.mrf.mxu0  ;;  %v2146_v35 = vpop.f32.mrf.mxu1 }
 0x314   : > { %v2147_v12 = vadd.f32 %v2146_v35, %v2057_v14  ;;  %v4912_v20 = vsel %vm4784_vm13, %v3760_v31, %v4656_v5 }
 0x315   : > { %v2776_v25 = vpack.c.bf16 %v2322_v55, %v2144_v62  ;;  %2096 = vmatmul.bf16.gmra.mxu0 %v11034_v27  ;;  %2274 = vmatmul.bf16.gmra.mxu2 %v11034_v27  ;;  %v5302_v16 = vunpack.c.l.b16 %v4912_v20  ;;  %v5303_v45 = vunpack.c.h.b16 %v4912_v20  ;;  %v3934_v39 = vunpack.c.l.bf16 %v3764_v44 }
 0x316   : > { %2185 = vmatmul.bf16.gmra.mxu1 %v11039_v47  ;;  %v3935_v58 = vunpack.c.h.bf16 %v3764_v44 }
 0x317   : > { %v3270_v23 = vunpack.c.l.bf16 %v2776_v25  ;;  %v3271_v54 = vunpack.c.h.bf16 %v2776_v25  ;;  %2363 = vmatmul.bf16.gmra.mxu3 %v11039_v47  ;;  %v12653_v31 = vpack.c.b16 %v5302_v16, %v5294_v41  ;;  %v12655_v28 = vpack.c.b16 %v5303_v45, %v5295_v59 }
 0x318   : > { %v2235_v10 = vpop.f32.mrf.mxu2  ;;  %v4446_v5 = vmul.f32 0.20019531, %v3934_v39  ;;  %v4447_v25 = vmul.f32 0.20019531, %v3935_v58  ;;  %vm12657_vm14 = vcmp.gt.f32.partialorder %v3934_v39, 0.0  ;;  %vm12661_vm15 = vcmp.gt.f32.partialorder %v3935_v58, 0.0 }
 0x319   : > { %v3558_v52 = vadd.f32 %v11058_v21, %v3270_v23  ;;  %v3559_v62 = vadd.f32 %v11058_v21, %v3271_v54  ;;  %16788 = vst [vmem:[#allocation41_spill] sm:$0xff] %v12653_v31  ;;  %vm4788_vm2 = vmpackc.low %vm12661_vm15, %vm12657_vm14 }
 0x31a   : > { %v2324_v9 = vpop.f32.mrf.mxu3  ;;  %16789 = vst [vmem:[#allocation68_spill] sm:$0xff] %v12655_v28  ;;  %v4660_v45 = vpack.c.bf16 %v4447_v25, %v4446_v5 }
 0x31b   : > { %v3768_v15 = vpack.c.bf16 %v3559_v62, %v3558_v52  ;;  %v2325_v55 = vadd.f32 %v2324_v9, %v2235_v10  ;;  %v2059_v14 = vpop.f32.mrf.mxu0  ;;  %v2148_v35 = vpop.f32.mrf.mxu1 }
 0x31c   : > { %v2149_v20 = vadd.f32 %v2148_v35, %v2059_v14 }
 0x31d   : > { %v2780_v48 = vpack.c.bf16 %v2325_v55, %v2147_v12  ;;  %v3942_v22 = vunpack.c.l.bf16 %v3768_v15  ;;  %v3943_v19 = vunpack.c.h.bf16 %v3768_v15 }
 0x31f   : > { %v3278_v54 = vunpack.c.l.bf16 %v2780_v48  ;;  %v3279_v41 = vunpack.c.h.bf16 %v2780_v48  ;;  %vm12665_vm0 = vcmp.gt.f32.partialorder %v3942_v22, 0.0  ;;  %vm12669_vm1 = vcmp.gt.f32.partialorder %v3943_v19, 0.0 }
 0x320   : > { %v4454_v12 = vmul.f32 0.20019531, %v3942_v22  ;;  %v4455_v39 = vmul.f32 0.20019531, %v3943_v19  ;;  %v2237_v48 = vpop.f32.mrf.mxu2  ;;  %vm4792_vm3 = vmpackc.low %vm12669_vm1, %vm12665_vm0  ;;  %v4916_v22 = vsel %vm4788_vm2, %v3764_v44, %v4660_v45 }
 0x321   : > { %v3566_v62 = vadd.f32 %v11074_v34, %v3278_v54  ;;  %v3567_v10 = vadd.f32 %v11074_v34, %v3279_v41  ;;  %v5310_v23 = vunpack.c.l.b16 %v4916_v22 }
 0x322   : > { %v2326_v58 = vpop.f32.mrf.mxu3  ;;  %v4664_v9 = vpack.c.bf16 %v4455_v39, %v4454_v12 }
 0x323   : > { %v3772_v55 = vpack.c.bf16 %v3567_v10, %v3566_v62  ;;  %v2327_v14 = vadd.f32 %v2326_v58, %v2237_v48  ;;  %v2062_v35 = vpop.f32.mrf.mxu0  ;;  %v2151_v5 = vpop.f32.mrf.mxu1  ;;  %v5311_v62 = vunpack.c.h.b16 %v4916_v22 }
 0x324   : > { %v2152_v25 = vadd.f32 %v2151_v5, %v2062_v35  ;;  %v4920_v19 = vsel %vm4792_vm3, %v3768_v15, %v4664_v9 }
 0x325   : > { %v2784_v54 = vpack.c.bf16 %v2327_v14, %v2149_v20  ;;  %2101 = vmatmul.bf16.gmra.mxu0 %v11108_v43  ;;  %v5318_v41 = vunpack.c.l.b16 %v4920_v19  ;;  %2279 = vmatmul.bf16.gmra.mxu2 %v11108_v43  ;;  %v5319_v16 = vunpack.c.h.b16 %v4920_v19  ;;  %v3950_v59 = vunpack.c.l.bf16 %v3772_v55 }
 0x326   : > { %2190 = vmatmul.bf16.gmra.mxu1 %v11110_v37  ;;  %v3951_v52 = vunpack.c.h.bf16 %v3772_v55 }
 0x327   : > { %v3286_v12 = vunpack.c.l.bf16 %v2784_v54  ;;  %v3287_v39 = vunpack.c.h.bf16 %v2784_v54  ;;  %2368 = vmatmul.bf16.gmra.mxu3 %v11110_v37  ;;  %v12689_v45 = vpack.c.b16 %v5318_v41, %v5310_v23  ;;  %v12691_v48 = vpack.c.b16 %v5319_v16, %v5311_v62 }
 0x328   : > { %v2240_v20 = vpop.f32.mrf.mxu2  ;;  %v4462_v5 = vmul.f32 0.20019531, %v3950_v59  ;;  %v4463_v19 = vmul.f32 0.20019531, %v3951_v52  ;;  %vm12693_vm4 = vcmp.gt.f32.partialorder %v3950_v59, 0.0  ;;  %vm12697_vm5 = vcmp.gt.f32.partialorder %v3951_v52, 0.0 }
 0x329   : > { %v3574_v44 = vadd.f32 %v11123_v0, %v3286_v12  ;;  %v3575_v15 = vadd.f32 %v11123_v0, %v3287_v39  ;;  %vm4796_vm8 = vmpackc.low %vm12697_vm5, %vm12693_vm4 }
 0x32a   : > { %v2329_v10 = vpop.f32.mrf.mxu3  ;;  %v4668_v16 = vpack.c.bf16 %v4463_v19, %v4462_v5 }
 0x32b   : > { %v3776_v58 = vpack.c.bf16 %v3575_v15, %v3574_v44  ;;  %v2330_v9 = vadd.f32 %v2329_v10, %v2240_v20  ;;  %v2064_v14 = vpop.f32.mrf.mxu0  ;;  %v2153_v35 = vpop.f32.mrf.mxu1 }
 0x32c   : > { %v2154_v54 = vadd.f32 %v2153_v35, %v2064_v14 }
 0x32d   : > { %v2788_v28 = vpack.c.bf16 %v2330_v9, %v2152_v25  ;;  %v3958_v31 = vunpack.c.l.bf16 %v3776_v58  ;;  %v3959_v22 = vunpack.c.h.bf16 %v3776_v58 }
 0x32f   : > { %v3294_v39 = vunpack.c.l.bf16 %v2788_v28  ;;  %v3295_v41 = vunpack.c.h.bf16 %v2788_v28  ;;  %vm12701_vm6 = vcmp.gt.f32.partialorder %v3958_v31, 0.0  ;;  %vm12705_vm7 = vcmp.gt.f32.partialorder %v3959_v22, 0.0 }
 0x330   : > { %v4470_v25 = vmul.f32 0.20019531, %v3958_v31  ;;  %v4471_v59 = vmul.f32 0.20019531, %v3959_v22  ;;  %v2242_v28 = vpop.f32.mrf.mxu2  ;;  %vm4800_vm9 = vmpackc.low %vm12705_vm7, %vm12701_vm6  ;;  %v4924_v31 = vsel %vm4796_vm8, %v3772_v55, %v4668_v16 }
 0x331   : > { %v3582_v15 = vadd.f32 %v11141_v7, %v3294_v39  ;;  %v3583_v20 = vadd.f32 %v11141_v7, %v3295_v41  ;;  %v5326_v23 = vunpack.c.l.b16 %v4924_v31  ;;  %v5327_v55 = vunpack.c.h.b16 %v4924_v31 }
 0x332   : > { %v2331_v52 = vpop.f32.mrf.mxu3  ;;  %v4672_v10 = vpack.c.bf16 %v4471_v59, %v4470_v25 }
 0x333   : > { %v3780_v9 = vpack.c.bf16 %v3583_v20, %v3582_v15  ;;  %v2332_v14 = vadd.f32 %v2331_v52, %v2242_v28  ;;  %v2067_v35 = vpop.f32.mrf.mxu0  ;;  %v2156_v5 = vpop.f32.mrf.mxu1 }
 0x334   : > { %v2157_v19 = vadd.f32 %v2156_v5, %v2067_v35  ;;  %v4928_v22 = vsel %vm4800_vm9, %v3776_v58, %v4672_v10 }
 0x335   : > { %v3966_v39 = vunpack.c.l.bf16 %v3780_v9  ;;  %v3967_v41 = vunpack.c.h.bf16 %v3780_v9  ;;  %v2792_v25 = vpack.c.bf16 %v2332_v14, %v2154_v54  ;;  %2382 = vmatmul.bf16.vlgmr.msrb.gmra.mxu0 %v10370_v51  ;;  %v5334_v12 = vunpack.c.l.b16 %v4928_v22  ;;  %2560 = vmatmul.bf16.vlgmr.msrb.gmra.mxu2 %v10370_v51 }
 0x336   : > { %2471 = vmatmul.bf16.vlgmr.msrb.gmra.mxu1 %v10375_v53  ;;  %v5335_v59 = vunpack.c.h.b16 %v4928_v22  ;;  %5934 = vmatpush.bf16.msrb.mxu0 %v12096_v61 }
 0x337   : > { %v3302_v15 = vunpack.c.l.bf16 %v2792_v25  ;;  %v3303_v62 = vunpack.c.h.bf16 %v2792_v25  ;;  %2649 = vmatmul.bf16.vlgmr.msrb.gmra.mxu3 %v10375_v53  ;;  %v4478_v58 = vmul.f32 0.20019531, %v3966_v39  ;;  %v4479_v16 = vmul.f32 0.20019531, %v3967_v41  ;;  %5983 = vmatpush.bf16.msrb.mxu1 %v12459_v3 }
 0x338   : > { %6032 = vmatpush.bf16.msrb.mxu2 %v12098_v18  ;;  %v12726_v54 = vpack.c.b16 %v5334_v12, %v5326_v23  ;;  %6081 = vmatpush.bf16.msrb.mxu3 %v12461_v38  ;;  %v2245_v20 = vpop.f32.mrf.mxu2  ;;  %v12731_v28 = vpack.c.b16 %v5335_v59, %v5327_v55  ;;  %vm12736_vm10 = vcmp.gt.f32.partialorder %v3966_v39, 0.0  ;;  %vm12740_vm11 = vcmp.gt.f32.partialorder %v3967_v41, 0.0 }
 0x339   : > { %v3590_v44 = vadd.f32 %v11172_v56, %v3302_v15  ;;  %v3591_v51 = vadd.f32 %v11172_v56, %v3303_v62  ;;  %v4676_v35 = vpack.c.bf16 %v4479_v16, %v4478_v58  ;;  %vm4804_vm12 = vmpackc.low %vm12740_vm11, %vm12736_vm10 }
 0x33a   : > { %v2334_v53 = vpop.f32.mrf.mxu3  ;;  %5935 = vmatpush.bf16.msrb.mxu0 %v12052_v24 }
 0x33b   : > { %v3784_v61 = vpack.c.bf16 %v3591_v51, %v3590_v44  ;;  %v2335_v52 = vadd.f32 %v2334_v53, %v2245_v20  ;;  %v2069_v10 = vpop.f32.mrf.mxu0  ;;  %v2158_v3 = vpop.f32.mrf.mxu1  ;;  %5984 = vmatpush.bf16.msrb.mxu1 %v12442_v63 }
 0x33c   : > { %6033 = vmatpush.bf16.msrb.mxu2 %v12054_v2  ;;  %v2159_v18 = vadd.f32 %v2158_v3, %v2069_v10  ;;  %6082 = vmatpush.bf16.msrb.mxu3 %v12444_v36  ;;  %v4932_v36 = vsel %vm4804_vm12, %v3780_v9, %v4676_v35  ;;  %v16812_v3 = vld [vmem:[#allocation80_spill] sm:$0xff]  ;;  %v16820_v2 = vld [vmem:[#allocation55_spill] sm:$0xff] }
 0x33d   : > { %v3974_v5 = vunpack.c.l.bf16 %v3784_v61  ;;  %v3975_v31 = vunpack.c.h.bf16 %v3784_v61  ;;  %v2796_v22 = vpack.c.bf16 %v2335_v52, %v2157_v19  ;;  %v5342_v62 = vunpack.c.l.b16 %v4932_v36 }
 0x33e   : > { %5936 = vmatpush.bf16.msrb.mxu0 %v12013_v1  ;;  %v5343_v58 = vunpack.c.h.b16 %v4932_v36  ;;  %v16821_v36 = vld [vmem:[#allocation79_spill] sm:$0xff] }
 0x33f   : > { %v4486_v24 = vmul.f32 0.20019531, %v3974_v5  ;;  %v4487_v25 = vmul.f32 0.20019531, %v3975_v31  ;;  %v3310_v63 = vunpack.c.l.bf16 %v2796_v22  ;;  %v3311_v12 = vunpack.c.h.bf16 %v2796_v22  ;;  %5985 = vmatpush.bf16.msrb.mxu1 %v12393_v33 }
 0x340   : > { %6034 = vmatpush.bf16.msrb.mxu2 %v12015_v8  ;;  %vm12752_vm13 = vcmp.gt.f32.partialorder %v3974_v5, 0.0  ;;  %vm4231_vm14 = vcmp.gt.f32.partialorder %v3975_v31, 0.0  ;;  %6083 = vmatpush.bf16.msrb.mxu3 %v12395_v57  ;;  %v2247_v1 = vpop.f32.mrf.mxu2  ;;  %v16814_v5 = vld [vmem:[#allocation53_spill] sm:$0xff] }
 0x341   : > { %v3598_v19 = vadd.f32 %v16613_v26, %v3310_v63  ;;  %v3599_v39 = vadd.f32 %v16613_v26, %v3311_v12  ;;  %v4680_v41 = vpack.c.bf16 %v4487_v25, %v4486_v24  ;;  %vm4808_vm15 = vmpackc.low %vm4231_vm14, %vm12752_vm13  ;;  %v16817_v63 = vld [vmem:[#allocation78_spill] sm:$0xff] }
 0x342   : > { %v2336_v23 = vpop.f32.mrf.mxu3  ;;  %5937 = vmatpush.bf16.msrb.mxu0 %v11982_v49 }
 0x343   : > { %v12761_v33 = vpack.c.bf16 %v3599_v39, %v3598_v19  ;;  %v2337_v8 = vadd.f32 %v2336_v23, %v2247_v1  ;;  %v2072_v59 = vpop.f32.mrf.mxu0  ;;  %v2161_v15 = vpop.f32.mrf.mxu1  ;;  %v4936_v9 = vsel %vm4808_vm15, %v3784_v61, %v4680_v41  ;;  %5986 = vmatpush.bf16.msrb.mxu1 %v12340_v50  ;;  %v16826_v23 = vld [vmem:[#allocation58_spill] sm:$0xff] }
 0x344   : > { %6035 = vmatpush.bf16.msrb.mxu2 %v11984_v46  ;;  %v2162_v57 = vadd.f32 %v2161_v15, %v2072_v59  ;;  %v5350_v55 = vunpack.c.l.b16 %v4936_v9  ;;  %v5351_v16 = vunpack.c.h.b16 %v4936_v9  ;;  %6084 = vmatpush.bf16.msrb.mxu3 %v12342_v29  ;;  %v16827_v15 = vld [vmem:[#allocation52_spill] sm:$0xff] }
 0x345   : > { %v2800_v44 = vpack.c.bf16 %v2337_v8, %v2159_v18  ;;  %2387 = vmatmul.bf16.gmra.mxu0 %v10416_v11  ;;  %2565 = vmatmul.bf16.gmra.mxu2 %v10416_v11  ;;  %v3982_v46 = vunpack.c.l.bf16 %v12761_v33  ;;  %v3983_v29 = vunpack.c.h.bf16 %v12761_v33 }
 0x346   : > { %2476 = vmatmul.bf16.gmra.mxu1 %v10421_v13  ;;  %v12770_v49 = vpack.c.b16 %v5350_v55, %v5342_v62  ;;  %v12772_v51 = vpack.c.b16 %v5351_v16, %v5343_v58  ;;  %5938 = vmatpush.bf16.msrb.mxu0 %v11966_v30  ;;  %v16828_v16 = vld [vmem:[#allocation76_spill] sm:$0xff] }
 0x347   : > { %v3318_v50 = vunpack.c.l.bf16 %v2800_v44  ;;  %v3319_v20 = vunpack.c.h.bf16 %v2800_v44  ;;  %2654 = vmatmul.bf16.gmra.mxu3 %v10421_v13  ;;  %5987 = vmatpush.bf16.msrb.mxu1 %v12287_v32  ;;  %v4494_v14 = vmul.f32 0.20019531, %v3982_v46  ;;  %v4495_v38 = vmul.f32 0.20019531, %v3983_v29  ;;  %v16813_v32 = vld [vmem:[#allocation81_spill] sm:$0xff] }
 0x348   : > { %6036 = vmatpush.bf16.msrb.mxu2 %v11976_v40  ;;  %6085 = vmatpush.bf16.msrb.mxu3 %v12289_v17  ;;  %v2250_v61 = vpop.f32.mrf.mxu2  ;;  %vm12787_vm0 = vcmp.gt.f32.partialorder %v3982_v46, 0.0  ;;  %vm12792_vm1 = vcmp.gt.f32.partialorder %v3983_v29, 0.0  ;;  %v16829_v46 = vld [vmem:[#allocation49_spill] sm:$0xff] }
 0x349   : > { %v3606_v11 = vadd.f32 %v16619_v4, %v3318_v50  ;;  %v3607_v53 = vadd.f32 %v16619_v4, %v3319_v20  ;;  %vm4812_vm4 = vmpackc.low %vm12792_vm1, %vm12787_vm0  ;;  %v16830_v29 = vld [vmem:[#allocation77_spill] sm:$0xff] }
 0x34a   : > { %v2339_v52 = vpop.f32.mrf.mxu3  ;;  %5939 = vmatpush.bf16.msrb.mxu0 %v16812_v3 }
 0x34b   : > { %v3792_v10 = vpack.c.bf16 %v3607_v53, %v3606_v11  ;;  %v2340_v13 = vadd.f32 %v2339_v52, %v2250_v61  ;;  %v2074_v30 = vpop.f32.mrf.mxu0  ;;  %v2163_v18 = vpop.f32.mrf.mxu1  ;;  %5988 = vmatpush.bf16.msrb.mxu1 %v12234_v42  ;;  %v4684_v42 = vpack.c.bf16 %v4495_v38, %v4494_v14  ;;  %v16831_v52 = vld [vmem:[#allocation54_spill] sm:$0xff] }
 0x34c   : > { %6037 = vmatpush.bf16.msrb.mxu2 %v16813_v32  ;;  %v2164_v40 = vadd.f32 %v2163_v18, %v2074_v30  ;;  %6086 = vmatpush.bf16.msrb.mxu3 %v16814_v5  ;;  %v16833_v30 = vld [vmem:[#allocation3_spill] sm:$0xff] }
 0x34d   : > { %v2804_v35 = vpack.c.bf16 %v2340_v13, %v2162_v57  ;;  %v3990_v31 = vunpack.c.l.bf16 %v3792_v10  ;;  %v3991_v17 = vunpack.c.h.bf16 %v3792_v10  ;;  %v4940_v20 = vsel %vm4812_vm4, %v12761_v33, %v4684_v42  ;;  %v16832_v13 = vld [vmem:[#allocation2_spill] sm:$0xff] }
 0x34e   : > { %5940 = vmatpush.bf16.msrb.mxu0 %v16817_v63  ;;  %v5358_v18 = vunpack.c.l.b16 %v4940_v20  ;;  %v5359_v14 = vunpack.c.h.b16 %v4940_v20  ;;  %v16843_v20 = vld [vmem:[#allocation62_spill] sm:$0xff] }
 0x34f   : > { %v3326_v24 = vunpack.c.l.bf16 %v2804_v35  ;;  %v3327_v25 = vunpack.c.h.bf16 %v2804_v35  ;;  %5989 = vmatpush.bf16.msrb.mxu1 %v16820_v2  ;;  %vm12798_vm2 = vcmp.gt.f32.partialorder %v3990_v31, 0.0  ;;  %vm12802_vm3 = vcmp.gt.f32.partialorder %v3991_v17, 0.0 }
 0x350   : > { %6038 = vmatpush.bf16.msrb.mxu2 %v16821_v36  ;;  %v4502_v1 = vmul.f32 0.20019531, %v3990_v31  ;;  %v4503_v41 = vmul.f32 0.20019531, %v3991_v17  ;;  %6087 = vmatpush.bf16.msrb.mxu3 %v16827_v15  ;;  %v2252_v9 = vpop.f32.mrf.mxu2  ;;  %vm4816_vm5 = vmpackc.low %vm12802_vm3, %vm12798_vm2  ;;  %v16834_v31 = vld [vmem:[#allocation59_spill] sm:$0xff] }
 0x351   : > { %v3614_v8 = vadd.f32 %v16826_v23, %v3326_v24  ;;  %v3615_v59 = vadd.f32 %v16826_v23, %v3327_v25 }
 0x352   : > { %v2341_v62 = vpop.f32.mrf.mxu3  ;;  %v4688_v57 = vpack.c.bf16 %v4503_v41, %v4502_v1  ;;  %5941 = vmatpush.bf16.msrb.mxu0 %v16828_v16 }
 0x353   : > { %v3796_v55 = vpack.c.bf16 %v3615_v59, %v3614_v8  ;;  %v2342_v58 = vadd.f32 %v2341_v62, %v2252_v9  ;;  %v2077_v44 = vpop.f32.mrf.mxu0  ;;  %v2166_v50 = vpop.f32.mrf.mxu1  ;;  %5990 = vmatpush.bf16.msrb.mxu1 %v16829_v46 }
 0x354   : > { %6039 = vmatpush.bf16.msrb.mxu2 %v16830_v29  ;;  %v2167_v11 = vadd.f32 %v2166_v50, %v2077_v44  ;;  %v4944_v53 = vsel %vm4816_vm5, %v3792_v10, %v4688_v57  ;;  %6088 = vmatpush.bf16.msrb.mxu3 %v16831_v52 }
 0x355   : > { %v2808_v61 = vpack.c.bf16 %v2342_v58, %v2164_v40  ;;  %2392 = vmatmul.bf16.gmra.mxu0 %v16832_v13  ;;  %v5366_v3 = vunpack.c.l.b16 %v4944_v53  ;;  %2570 = vmatmul.bf16.gmra.mxu2 %v16832_v13  ;;  %v5367_v38 = vunpack.c.h.b16 %v4944_v53  ;;  %v3998_v35 = vunpack.c.l.bf16 %v3796_v55 }
 0x356   : > { %2481 = vmatmul.bf16.gmra.mxu1 %v16833_v30  ;;  %v3999_v5 = vunpack.c.h.bf16 %v3796_v55 }
 0x357   : > { %v3334_v33 = vunpack.c.l.bf16 %v2808_v61  ;;  %v3335_v32 = vunpack.c.h.bf16 %v2808_v61  ;;  %2659 = vmatmul.bf16.gmra.mxu3 %v16833_v30  ;;  %v12826_v10 = vpack.c.b16 %v5366_v3, %v5358_v18  ;;  %v12828_v40 = vpack.c.b16 %v5367_v38, %v5359_v14 }
 0x358   : > { %v2255_v24 = vpop.f32.mrf.mxu2  ;;  %v4510_v36 = vmul.f32 0.20019531, %v3998_v35  ;;  %v4511_v19 = vmul.f32 0.20019531, %v3999_v5  ;;  %vm12832_vm6 = vcmp.gt.f32.partialorder %v3998_v35, 0.0  ;;  %vm12836_vm7 = vcmp.gt.f32.partialorder %v3999_v5, 0.0  ;;  %v16845_v5 = vld [vmem:[#allocation5_spill] sm:$0xff] }
 0x359   : > { %v3622_v17 = vadd.f32 %v16834_v31, %v3334_v33  ;;  %v3623_v22 = vadd.f32 %v16834_v31, %v3335_v32  ;;  %vm4820_vm10 = vmpackc.low %vm12836_vm7, %vm12832_vm6  ;;  %v16844_v32 = vld [vmem:[#allocation4_spill] sm:$0xff] }
 0x35a   : > { %v2344_v25 = vpop.f32.mrf.mxu3  ;;  %v4692_v57 = vpack.c.bf16 %v4511_v19, %v4510_v36  ;;  %v16846_v36 = vld [vmem:[#allocation63_spill] sm:$0xff] }
 0x35b   : > { %v3800_v63 = vpack.c.bf16 %v3623_v22, %v3622_v17  ;;  %v2345_v12 = vadd.f32 %v2344_v25, %v2255_v24  ;;  %v2079_v42 = vpop.f32.mrf.mxu0  ;;  %v2168_v2 = vpop.f32.mrf.mxu1 }
 0x35c   : > { %v2169_v39 = vadd.f32 %v2168_v2, %v2079_v42  ;;  %v4948_v18 = vsel %vm4820_vm10, %v3796_v55, %v4692_v57 }
 0x35d   : > { %v2812_v1 = vpack.c.bf16 %v2345_v12, %v2167_v11  ;;  %v4006_v41 = vunpack.c.l.bf16 %v3800_v63  ;;  %v4007_v8 = vunpack.c.h.bf16 %v3800_v63  ;;  %v5374_v17 = vunpack.c.l.b16 %v4948_v18 }
 0x35e   : > { %v5375_v22 = vunpack.c.h.b16 %v4948_v18 }
 0x35f   : > { %v3342_v15 = vunpack.c.l.bf16 %v2812_v1  ;;  %v3343_v9 = vunpack.c.h.bf16 %v2812_v1  ;;  %vm12840_vm8 = vcmp.gt.f32.partialorder %v4006_v41, 0.0  ;;  %vm12844_vm9 = vcmp.gt.f32.partialorder %v4007_v8, 0.0 }
 0x360   : > { %v4518_v44 = vmul.f32 0.20019531, %v4006_v41  ;;  %v4519_v50 = vmul.f32 0.20019531, %v4007_v8  ;;  %v2257_v11 = vpop.f32.mrf.mxu2  ;;  %vm4824_vm11 = vmpackc.low %vm12844_vm9, %vm12840_vm8 }
 0x361   : > { %v3630_v46 = vadd.f32 %v16843_v20, %v3342_v15  ;;  %v3631_v29 = vadd.f32 %v16843_v20, %v3343_v9 }
 0x362   : > { %v2346_v53 = vpop.f32.mrf.mxu3  ;;  %v4696_v61 = vpack.c.bf16 %v4519_v50, %v4518_v44 }
 0x363   : > { %v3804_v52 = vpack.c.bf16 %v3631_v29, %v3630_v46  ;;  %v2347_v13 = vadd.f32 %v2346_v53, %v2257_v11  ;;  %v2082_v3 = vpop.f32.mrf.mxu0  ;;  %v2171_v30 = vpop.f32.mrf.mxu1 }
 0x364   : > { %v2172_v14 = vadd.f32 %v2171_v30, %v2082_v3  ;;  %v4952_v38 = vsel %vm4824_vm11, %v3800_v63, %v4696_v61 }
 0x365   : > { %v2816_v33 = vpack.c.bf16 %v2347_v13, %v2169_v39  ;;  %2397 = vmatmul.bf16.gmra.mxu0 %v16844_v32  ;;  %v5382_v35 = vunpack.c.l.b16 %v4952_v38  ;;  %2575 = vmatmul.bf16.gmra.mxu2 %v16844_v32  ;;  %v5383_v24 = vunpack.c.h.b16 %v4952_v38  ;;  %v4014_v42 = vunpack.c.l.bf16 %v3804_v52 }
 0x366   : > { %2486 = vmatmul.bf16.gmra.mxu1 %v16845_v5  ;;  %v4015_v2 = vunpack.c.h.bf16 %v3804_v52 }
 0x367   : > { %v3350_v25 = vunpack.c.l.bf16 %v2816_v33  ;;  %v3351_v12 = vunpack.c.h.bf16 %v2816_v33  ;;  %2664 = vmatmul.bf16.gmra.mxu3 %v16845_v5  ;;  %v12862_v55 = vpack.c.b16 %v5382_v35, %v5374_v17  ;;  %v12864_v63 = vpack.c.b16 %v5383_v24, %v5375_v22 }
 0x368   : > { %v2260_v1 = vpop.f32.mrf.mxu2  ;;  %v4526_v62 = vmul.f32 0.20019531, %v4014_v42  ;;  %v4527_v57 = vmul.f32 0.20019531, %v4015_v2  ;;  %vm12868_vm12 = vcmp.gt.f32.partialorder %v4014_v42, 0.0  ;;  %vm12872_vm13 = vcmp.gt.f32.partialorder %v4015_v2, 0.0 }
 0x369   : > { %v3638_v19 = vadd.f32 %v16846_v36, %v3350_v25  ;;  %v3639_v39 = vadd.f32 %v16846_v36, %v3351_v12  ;;  %vm4828_vm0 = vmpackc.low %vm12872_vm13, %vm12868_vm12 }
 0x36a   : > { %v2349_v41 = vpop.f32.mrf.mxu3  ;;  %v4700_v61 = vpack.c.bf16 %v4527_v57, %v4526_v62 }
 0x36b   : > { %v3808_v8 = vpack.c.bf16 %v3639_v39, %v3638_v19  ;;  %v2350_v59 = vadd.f32 %v2349_v41, %v2260_v1  ;;  %v2084_v15 = vpop.f32.mrf.mxu0  ;;  %v2173_v9 = vpop.f32.mrf.mxu1  ;;  %v16856_v39 = vld [vmem:[#allocation6_spill] sm:$0xff]  ;;  %v16857_v41 = vld [vmem:[#allocation7_spill] sm:$0xff] }
 0x36c   : > { %v2174_v58 = vadd.f32 %v2173_v9, %v2084_v15  ;;  %v4956_v12 = vsel %vm4828_vm0, %v3804_v52, %v4700_v61 }
 0x36d   : > { %v2820_v16 = vpack.c.bf16 %v2350_v59, %v2172_v14  ;;  %v4022_v44 = vunpack.c.l.bf16 %v3808_v8  ;;  %v4023_v50 = vunpack.c.h.bf16 %v3808_v8  ;;  %v16855_v14 = vld [vmem:[#allocation66_spill] sm:$0xff]  ;;  %v5390_v59 = vunpack.c.l.b16 %v4956_v12 }
 0x36e   : > { %v5391_v15 = vunpack.c.h.b16 %v4956_v12 }
 0x36f   : > { %v3358_v29 = vunpack.c.l.bf16 %v2820_v16  ;;  %v3359_v11 = vunpack.c.h.bf16 %v2820_v16  ;;  %vm12876_vm14 = vcmp.gt.f32.partialorder %v4022_v44, 0.0  ;;  %vm12880_vm15 = vcmp.gt.f32.partialorder %v4023_v50, 0.0 }
 0x370   : > { %v4534_v30 = vmul.f32 0.20019531, %v4022_v44  ;;  %v4535_v18 = vmul.f32 0.20019531, %v4023_v50  ;;  %v2262_v32 = vpop.f32.mrf.mxu2  ;;  %vm4832_vm1 = vmpackc.low %vm12880_vm15, %vm12876_vm14 }
 0x371   : > { %v3646_v38 = vadd.f32 %v16855_v14, %v3358_v29  ;;  %v3647_v33 = vadd.f32 %v16855_v14, %v3359_v11 }
 0x372   : > { %v2351_v35 = vpop.f32.mrf.mxu3  ;;  %v4704_v5 = vpack.c.bf16 %v4535_v18, %v4534_v30 }
 0x373   : > { %v3812_v17 = vpack.c.bf16 %v3647_v33, %v3646_v38  ;;  %v2352_v22 = vadd.f32 %v2351_v35, %v2262_v32  ;;  %v2087_v24 = vpop.f32.mrf.mxu0  ;;  %v2176_v25 = vpop.f32.mrf.mxu1 }
 0x374   : > { %v2177_v42 = vadd.f32 %v2176_v25, %v2087_v24  ;;  %v4960_v2 = vsel %vm4832_vm1, %v3808_v8, %v4704_v5 }
 0x375   : > { %v2824_v19 = vpack.c.bf16 %v2352_v22, %v2174_v58  ;;  %2402 = vmatmul.bf16.gmra.mxu0 %v16856_v39  ;;  %v5398_v1 = vunpack.c.l.b16 %v4960_v2  ;;  %2580 = vmatmul.bf16.gmra.mxu2 %v16856_v39  ;;  %v5399_v9 = vunpack.c.h.b16 %v4960_v2  ;;  %v4030_v16 = vunpack.c.l.bf16 %v3812_v17  ;;  %v16858_v58 = vld [vmem:[#allocation67_spill] sm:$0xff] }
 0x376   : > { %2491 = vmatmul.bf16.gmra.mxu1 %v16857_v41  ;;  %v4031_v44 = vunpack.c.h.bf16 %v3812_v17 }
 0x377   : > { %v3366_v62 = vunpack.c.l.bf16 %v2824_v19  ;;  %v3367_v57 = vunpack.c.h.bf16 %v2824_v19  ;;  %2669 = vmatmul.bf16.gmra.mxu3 %v16857_v41  ;;  %v12898_v52 = vpack.c.b16 %v5398_v1, %v5390_v59  ;;  %v12900_v8 = vpack.c.b16 %v5399_v9, %v5391_v15  ;;  %v16867_v1 = vld [vmem:[#allocation70_spill] sm:$0xff] }
 0x378   : > { %v2265_v29 = vpop.f32.mrf.mxu2  ;;  %v4542_v30 = vmul.f32 0.20019531, %v4030_v16  ;;  %v4543_v18 = vmul.f32 0.20019531, %v4031_v44  ;;  %vm12904_vm2 = vcmp.gt.f32.partialorder %v4030_v16, 0.0  ;;  %vm12908_vm3 = vcmp.gt.f32.partialorder %v4031_v44, 0.0 }
 0x379   : > { %v3654_v50 = vadd.f32 %v16858_v58, %v3366_v62  ;;  %v3655_v46 = vadd.f32 %v16858_v58, %v3367_v57  ;;  %vm4836_vm6 = vmpackc.low %vm12908_vm3, %vm12904_vm2 }
 0x37a   : > { %v2354_v11 = vpop.f32.mrf.mxu3  ;;  %v4708_v12 = vpack.c.bf16 %v4543_v18, %v4542_v30  ;;  %v16869_v30 = vld [vmem:[#allocation10_spill] sm:$0xff] }
 0x37b   : > { %v3816_v53 = vpack.c.bf16 %v3655_v46, %v3654_v50  ;;  %v2355_v61 = vadd.f32 %v2354_v11, %v2265_v29  ;;  %v2089_v13 = vpop.f32.mrf.mxu0  ;;  %v2178_v3 = vpop.f32.mrf.mxu1 }
 0x37c   : > { %v2179_v38 = vadd.f32 %v2178_v3, %v2089_v13  ;;  %v4964_v46 = vsel %vm4836_vm6, %v3812_v17, %v4708_v12  ;;  %v16868_v13 = vld [vmem:[#allocation9_spill] sm:$0xff] }
 0x37d   : > { %v2828_v33 = vpack.c.bf16 %v2355_v61, %v2177_v42  ;;  %v4038_v32 = vunpack.c.l.bf16 %v3816_v53  ;;  %v4039_v35 = vunpack.c.h.bf16 %v3816_v53  ;;  %v5406_v18 = vunpack.c.l.b16 %v4964_v46 }
 0x37f   : > { %v3374_v22 = vunpack.c.l.bf16 %v2828_v33  ;;  %v3375_v24 = vunpack.c.h.bf16 %v2828_v33  ;;  %vm12912_vm4 = vcmp.gt.f32.partialorder %v4038_v32, 0.0  ;;  %vm12916_vm5 = vcmp.gt.f32.partialorder %v4039_v35, 0.0 }
 0x380   : > { %v4550_v42 = vmul.f32 0.20019531, %v4038_v32  ;;  %v4551_v39 = vmul.f32 0.20019531, %v4039_v35  ;;  %v2267_v15 = vpop.f32.mrf.mxu2  ;;  %vm4840_vm7 = vmpackc.low %vm12916_vm5, %vm12912_vm4  ;;  %v5407_v33 = vunpack.c.h.b16 %v4964_v46 }
 0x381   : > { %v3662_v41 = vadd.f32 %v16867_v1, %v3374_v22  ;;  %v3663_v59 = vadd.f32 %v16867_v1, %v3375_v24 }
 0x382   : > { %v2356_v9 = vpop.f32.mrf.mxu3  ;;  %v4712_v62 = vpack.c.bf16 %v4551_v39, %v4550_v42 }
 0x383   : > { %v3820_v57 = vpack.c.bf16 %v3663_v59, %v3662_v41  ;;  %v2357_v16 = vadd.f32 %v2356_v9, %v2267_v15  ;;  %v2092_v44 = vpop.f32.mrf.mxu0  ;;  %v2181_v50 = vpop.f32.mrf.mxu1 }
 0x384   : > { %v2182_v29 = vadd.f32 %v2181_v50, %v2092_v44  ;;  %v4968_v11 = vsel %vm4840_vm7, %v3816_v53, %v4712_v62 }
 0x385   : > { %v2832_v61 = vpack.c.bf16 %v2357_v16, %v2179_v38  ;;  %2407 = vmatmul.bf16.gmra.mxu0 %v16868_v13  ;;  %v5414_v3 = vunpack.c.l.b16 %v4968_v11  ;;  %2585 = vmatmul.bf16.gmra.mxu2 %v16868_v13  ;;  %v5415_v32 = vunpack.c.h.b16 %v4968_v11  ;;  %v4046_v22 = vunpack.c.l.bf16 %v3820_v57  ;;  %v16870_v38 = vld [vmem:[#allocation71_spill] sm:$0xff] }
 0x386   : > { %2496 = vmatmul.bf16.gmra.mxu1 %v16869_v30  ;;  %v4047_v24 = vunpack.c.h.bf16 %v3820_v57 }
 0x387   : > { %v3382_v35 = vunpack.c.l.bf16 %v2832_v61  ;;  %v3383_v5 = vunpack.c.h.bf16 %v2832_v61  ;;  %2674 = vmatmul.bf16.gmra.mxu3 %v16869_v30  ;;  %v12934_v17 = vpack.c.b16 %v5414_v3, %v5406_v18  ;;  %v12936_v53 = vpack.c.b16 %v5415_v32, %v5407_v33  ;;  %v16879_v32 = vld [vmem:[#allocation74_spill] sm:$0xff] }
 0x388   : > { %v2270_v2 = vpop.f32.mrf.mxu2  ;;  %v4558_v15 = vmul.f32 0.20019531, %v4046_v22  ;;  %v4559_v9 = vmul.f32 0.20019531, %v4047_v24  ;;  %vm12940_vm8 = vcmp.gt.f32.partialorder %v4046_v22, 0.0  ;;  %vm12944_vm9 = vcmp.gt.f32.partialorder %v4047_v24, 0.0 }
 0x389   : > { %v3670_v25 = vadd.f32 %v16870_v38, %v3382_v35  ;;  %v3671_v12 = vadd.f32 %v16870_v38, %v3383_v5  ;;  %vm4844_vm12 = vmpackc.low %vm12944_vm9, %vm12940_vm8 }
 0x38a   : > { %v2359_v19 = vpop.f32.mrf.mxu3  ;;  %v4716_v3 = vpack.c.bf16 %v4559_v9, %v4558_v15 }
 0x38b   : > { %v3824_v42 = vpack.c.bf16 %v3671_v12, %v3670_v25  ;;  %v2360_v39 = vadd.f32 %v2359_v19, %v2270_v2  ;;  %v2094_v41 = vpop.f32.mrf.mxu0  ;;  %v2183_v59 = vpop.f32.mrf.mxu1 }
 0x38c   : > { %v2184_v62 = vadd.f32 %v2183_v59, %v2094_v41  ;;  %v4972_v41 = vsel %vm4844_vm12, %v3820_v57, %v4716_v3 }
 0x38d   : > { %v2836_v16 = vpack.c.bf16 %v2360_v39, %v2182_v29  ;;  %v4054_v44 = vunpack.c.l.bf16 %v3824_v42  ;;  %v4055_v50 = vunpack.c.h.bf16 %v3824_v42  ;;  %v5422_v46 = vunpack.c.l.b16 %v4972_v41 }
 0x38f   : > { %v3390_v11 = vunpack.c.l.bf16 %v2836_v16  ;;  %v3391_v61 = vunpack.c.h.bf16 %v2836_v16  ;;  %vm12948_vm10 = vcmp.gt.f32.partialorder %v4054_v44, 0.0  ;;  %vm12952_vm11 = vcmp.gt.f32.partialorder %v4055_v50, 0.0  ;;  %v16880_v16 = vld [vmem:[#allocation12_spill] sm:$0xff] }
 0x390   : > { %v4566_v29 = vmul.f32 0.20019531, %v4054_v44  ;;  %v4567_v33 = vmul.f32 0.20019531, %v4055_v50  ;;  %v2272_v22 = vpop.f32.mrf.mxu2  ;;  %vm4848_vm13 = vmpackc.low %vm12952_vm11, %vm12948_vm10  ;;  %v16881_v50 = vld [vmem:[#allocation14_spill] sm:$0xff] }
 0x391   : > { %v3678_v35 = vadd.f32 %v16879_v32, %v3390_v11  ;;  %v3679_v5 = vadd.f32 %v16879_v32, %v3391_v61  ;;  %v5423_v11 = vunpack.c.h.b16 %v4972_v41 }
 0x392   : > { %v2361_v24 = vpop.f32.mrf.mxu3  ;;  %v4720_v25 = vpack.c.bf16 %v4567_v33, %v4566_v29 }
 0x393   : > { %v3828_v12 = vpack.c.bf16 %v3679_v5, %v3678_v35  ;;  %v2362_v2 = vadd.f32 %v2361_v24, %v2272_v22  ;;  %v2097_v19 = vpop.f32.mrf.mxu0  ;;  %v2186_v39 = vpop.f32.mrf.mxu1 }
 0x394   : > { %v2187_v59 = vadd.f32 %v2186_v39, %v2097_v19  ;;  %v4976_v15 = vsel %vm4848_vm13, %v3824_v42, %v4720_v25 }
 0x395   : > { %v2840_v9 = vpack.c.bf16 %v2362_v2, %v2184_v62  ;;  %2412 = vmatmul.bf16.gmra.mxu0 %v16880_v16  ;;  %v5430_v44 = vunpack.c.l.b16 %v4976_v15  ;;  %2590 = vmatmul.bf16.gmra.mxu2 %v16880_v16  ;;  %v5431_v61 = vunpack.c.h.b16 %v4976_v15  ;;  %v4062_v30 = vunpack.c.l.bf16 %v3828_v12  ;;  %v16882_v62 = vld [vmem:[#allocation75_spill] sm:$0xff] }
 0x396   : > { %2501 = vmatmul.bf16.gmra.mxu1 %v16881_v50  ;;  %v4063_v18 = vunpack.c.h.bf16 %v3828_v12 }
 0x397   : > { %v3398_v13 = vunpack.c.l.bf16 %v2840_v9  ;;  %v3399_v29 = vunpack.c.h.bf16 %v2840_v9  ;;  %2679 = vmatmul.bf16.gmra.mxu3 %v16881_v50  ;;  %v12970_v57 = vpack.c.b16 %v5430_v44, %v5422_v46  ;;  %v12972_v42 = vpack.c.b16 %v5431_v61, %v5423_v11  ;;  %v16893_v44 = vld [vmem:[#allocation17_spill] sm:$0xff] }
 0x398   : > { %v2275_v35 = vpop.f32.mrf.mxu2  ;;  %v4574_v19 = vmul.f32 0.20019531, %v4062_v30  ;;  %v4575_v39 = vmul.f32 0.20019531, %v4063_v18  ;;  %vm12976_vm14 = vcmp.gt.f32.partialorder %v4062_v30, 0.0  ;;  %vm12980_vm15 = vcmp.gt.f32.partialorder %v4063_v18, 0.0 }
 0x399   : > { %v3686_v3 = vadd.f32 %v16882_v62, %v3398_v13  ;;  %v3687_v33 = vadd.f32 %v16882_v62, %v3399_v29  ;;  %vm4852_vm2 = vmpackc.low %vm12980_vm15, %vm12976_vm14 }
 0x39a   : > { %v2364_v5 = vpop.f32.mrf.mxu3  ;;  %v4724_v61 = vpack.c.bf16 %v4575_v39, %v4574_v19 }
 0x39b   : > { %v3832_v22 = vpack.c.bf16 %v3687_v33, %v3686_v3  ;;  %v2365_v24 = vadd.f32 %v2364_v5, %v2275_v35  ;;  %v2099_v25 = vpop.f32.mrf.mxu0  ;;  %v2188_v2 = vpop.f32.mrf.mxu1  ;;  %v16891_v3 = vld [vmem:[#allocation15_spill] sm:$0xff] }
 0x39c   : > { %v2189_v41 = vadd.f32 %v2188_v2, %v2099_v25 }
 0x39d   : > { %v2844_v15 = vpack.c.bf16 %v2365_v24, %v2187_v59  ;;  %v4070_v9 = vunpack.c.l.bf16 %v3832_v22  ;;  %v4071_v16 = vunpack.c.h.bf16 %v3832_v22 }
 0x39f   : > { %v3406_v50 = vunpack.c.l.bf16 %v2844_v15  ;;  %v3407_v46 = vunpack.c.h.bf16 %v2844_v15  ;;  %vm12984_vm0 = vcmp.gt.f32.partialorder %v4070_v9, 0.0  ;;  %vm12988_vm1 = vcmp.gt.f32.partialorder %v4071_v16, 0.0 }
 0x3a0   : > { %v4582_v59 = vmul.f32 0.20019531, %v4070_v9  ;;  %v4583_v30 = vmul.f32 0.20019531, %v4071_v16  ;;  %v2277_v5 = vpop.f32.mrf.mxu2  ;;  %vm4856_vm3 = vmpackc.low %vm12988_vm1, %vm12984_vm0  ;;  %v4980_v15 = vsel %vm4852_vm2, %v3828_v12, %v4724_v61 }
 0x3a1   : > { %v3694_v33 = vadd.f32 %v16891_v3, %v3406_v50  ;;  %v3695_v35 = vadd.f32 %v16891_v3, %v3407_v46  ;;  %v16892_v46 = vld [vmem:[#allocation16_spill] sm:$0xff]  ;;  %v5438_v11 = vunpack.c.l.b16 %v4980_v15 }
 0x3a2   : > { %v2366_v18 = vpop.f32.mrf.mxu3  ;;  %v4728_v24 = vpack.c.bf16 %v4583_v30, %v4582_v59  ;;  %v5439_v30 = vunpack.c.h.b16 %v4980_v15 }
 0x3a3   : > { %v3836_v25 = vpack.c.bf16 %v3695_v35, %v3694_v33  ;;  %v2367_v2 = vadd.f32 %v2366_v18, %v2277_v5  ;;  %v2102_v19 = vpop.f32.mrf.mxu0  ;;  %v2191_v39 = vpop.f32.mrf.mxu1 }
 0x3a4   : > { %v2192_v9 = vadd.f32 %v2191_v39, %v2102_v19  ;;  %v4984_v16 = vsel %vm4856_vm3, %v3832_v22, %v4728_v24 }
 0x3a5   : > { %v2848_v50 = vpack.c.bf16 %v2367_v2, %v2189_v41  ;;  %2417 = vmatmul.bf16.gmra.mxu0 %v16892_v46  ;;  %v5446_v59 = vunpack.c.l.b16 %v4984_v16  ;;  %2595 = vmatmul.bf16.gmra.mxu2 %v16892_v46  ;;  %v5447_v33 = vunpack.c.h.b16 %v4984_v16  ;;  %v4078_v13 = vunpack.c.l.bf16 %v3836_v25  ;;  %v16894_v41 = vld [vmem:[#allocation13_spill] sm:$0xff] }
 0x3a6   : > { %2506 = vmatmul.bf16.gmra.mxu1 %v16893_v44  ;;  %v4079_v29 = vunpack.c.h.bf16 %v3836_v25 }
 0x3a7   : > { %v3414_v35 = vunpack.c.l.bf16 %v2848_v50  ;;  %v3415_v5 = vunpack.c.h.bf16 %v2848_v50  ;;  %2684 = vmatmul.bf16.gmra.mxu3 %v16893_v44  ;;  %v13006_v12 = vpack.c.b16 %v5446_v59, %v5438_v11  ;;  %v13008_v22 = vpack.c.b16 %v5447_v33, %v5439_v30  ;;  %v16905_v33 = vld [vmem:[#allocation19_spill] sm:$0xff] }
 0x3a8   : > { %v2280_v24 = vpop.f32.mrf.mxu2  ;;  %v4590_v46 = vmul.f32 0.20019531, %v4078_v13  ;;  %v4591_v50 = vmul.f32 0.20019531, %v4079_v29  ;;  %vm13012_vm4 = vcmp.gt.f32.partialorder %v4078_v13, 0.0  ;;  %vm13016_vm5 = vcmp.gt.f32.partialorder %v4079_v29, 0.0 }
 0x3a9   : > { %v3702_v61 = vadd.f32 %v16894_v41, %v3414_v35  ;;  %v3703_v18 = vadd.f32 %v16894_v41, %v3415_v5  ;;  %vm4860_vm8 = vmpackc.low %vm13016_vm5, %vm13012_vm4 }
 0x3aa   : > { %v2369_v2 = vpop.f32.mrf.mxu3  ;;  %v4732_v35 = vpack.c.bf16 %v4591_v50, %v4590_v46 }
 0x3ab   : > { %v3840_v19 = vpack.c.bf16 %v3703_v18, %v3702_v61  ;;  %v2370_v39 = vadd.f32 %v2369_v2, %v2280_v24  ;;  %v2104_v15 = vpop.f32.mrf.mxu0  ;;  %v2193_v16 = vpop.f32.mrf.mxu1  ;;  %v16903_v18 = vld [vmem:[#allocation8_spill] sm:$0xff] }
 0x3ac   : > { %v2194_v3 = vadd.f32 %v2193_v16, %v2104_v15 }
 0x3ad   : > { %v2852_v44 = vpack.c.bf16 %v2370_v39, %v2192_v9  ;;  %v4086_v32 = vunpack.c.l.bf16 %v3840_v19  ;;  %v4087_v62 = vunpack.c.h.bf16 %v3840_v19 }
 0x3af   : > { %v3422_v11 = vunpack.c.l.bf16 %v2852_v44  ;;  %v3423_v30 = vunpack.c.h.bf16 %v2852_v44  ;;  %vm13020_vm6 = vcmp.gt.f32.partialorder %v4086_v32, 0.0  ;;  %vm13024_vm7 = vcmp.gt.f32.partialorder %v4087_v62, 0.0 }
 0x3b0   : > { %v4598_v9 = vmul.f32 0.20019531, %v4086_v32  ;;  %v4599_v13 = vmul.f32 0.20019531, %v4087_v62  ;;  %v2282_v39 = vpop.f32.mrf.mxu2  ;;  %vm4864_vm9 = vmpackc.low %vm13024_vm7, %vm13020_vm6  ;;  %v4988_v32 = vsel %vm4860_vm8, %v3836_v25, %v4732_v35 }
 0x3b1   : > { %v3710_v24 = vadd.f32 %v16903_v18, %v3422_v11  ;;  %v3711_v2 = vadd.f32 %v16903_v18, %v3423_v30 }
 0x3b2   : > { %v2371_v29 = vpop.f32.mrf.mxu3  ;;  %v4736_v15 = vpack.c.bf16 %v4599_v13, %v4598_v9  ;;  %v16904_v13 = vld [vmem:[#allocation18_spill] sm:$0xff] }
 0x3b3   : > { %v3844_v16 = vpack.c.bf16 %v3711_v2, %v3710_v24  ;;  %v2372_v46 = vadd.f32 %v2371_v29, %v2282_v39  ;;  %v2383_v50 = vpop.f32.mrf.mxu0  ;;  %v2472_v44 = vpop.f32.mrf.mxu1  ;;  %v5454_v24 = vunpack.c.l.b16 %v4988_v32  ;;  %v5455_v2 = vunpack.c.h.b16 %v4988_v32 }
 0x3b4   : > { %v2473_v62 = vadd.f32 %v2472_v44, %v2383_v50  ;;  %v4992_v11 = vsel %vm4864_vm9, %v3840_v19, %v4736_v15 }
 0x3b5   : > { %v4094_v30 = vunpack.c.l.bf16 %v3844_v16  ;;  %v4095_v18 = vunpack.c.h.bf16 %v3844_v16  ;;  %v2856_v9 = vpack.c.bf16 %v2372_v46, %v2194_v3  ;;  %2422 = vmatmul.bf16.gmra.mxu0 %v16904_v13  ;;  %v5462_v59 = vunpack.c.l.b16 %v4992_v11  ;;  %2600 = vmatmul.bf16.gmra.mxu2 %v16904_v13  ;;  %v16906_v3 = vld [vmem:[#allocation11_spill] sm:$0xff] }
 0x3b6   : > { %2511 = vmatmul.bf16.gmra.mxu1 %v16905_v33  ;;  %v5463_v39 = vunpack.c.h.b16 %v4992_v11 }
 0x3b7   : > { %v3430_v5 = vunpack.c.l.bf16 %v2856_v9  ;;  %v3431_v29 = vunpack.c.h.bf16 %v2856_v9  ;;  %2689 = vmatmul.bf16.gmra.mxu3 %v16905_v33  ;;  %v4606_v25 = vmul.f32 0.20019531, %v4094_v30  ;;  %v4607_v35 = vmul.f32 0.20019531, %v4095_v18 }
 0x3b8   : > { %v13042_v19 = vpack.c.b16 %v5462_v59, %v5454_v24  ;;  %v13044_v61 = vpack.c.b16 %v5463_v39, %v5455_v2  ;;  %v2561_v50 = vpop.f32.mrf.mxu2  ;;  %vm4350_vm10 = vcmp.gt.f32.partialorder %v4094_v30, 0.0  ;;  %vm4351_vm11 = vcmp.gt.f32.partialorder %v4095_v18, 0.0 }
 0x3b9   : > { %v3718_v15 = vadd.f32 %v16906_v3, %v3430_v5  ;;  %v3719_v46 = vadd.f32 %v16906_v3, %v3431_v29  ;;  %v4740_v9 = vpack.c.bf16 %v4607_v35, %v4606_v25  ;;  %vm4868_vm12 = vmpackc.low %vm4351_vm11, %vm4350_vm10  ;;  %v16907_v29 = vld [vmem:[#allocation25_spill] sm:$0xff] }
 0x3ba   : > { %v2650_v44 = vpop.f32.mrf.mxu3 }
 0x3bb   : > { %v3848_v13 = vpack.c.bf16 %v3719_v46, %v3718_v15  ;;  %v2651_v41 = vadd.f32 %v2650_v44, %v2561_v50  ;;  %v2385_v32 = vpop.f32.mrf.mxu0  ;;  %v2474_v11 = vpop.f32.mrf.mxu1  ;;  %v4996_v5 = vsel %vm4868_vm12, %v3844_v16, %v4740_v9  ;;  %v16908_v16 = vld [vmem:[#allocation21_spill] sm:$0xff]  ;;  %v16909_v9 = vld [vmem:[#allocation22_spill] sm:$0xff] }
 0x3bc   : > { %v2475_v38 = vadd.f32 %v2474_v11, %v2385_v32  ;;  %v5470_v32 = vunpack.c.l.b16 %v4996_v5  ;;  %v5471_v3 = vunpack.c.h.b16 %v4996_v5 }
 0x3bd   : > { %v4102_v33 = vunpack.c.l.bf16 %v3848_v13  ;;  %v4103_v1 = vunpack.c.h.bf16 %v3848_v13  ;;  %v2733_v59 = vpack.c.bf16 %v2651_v41, %v2473_v62 }
 0x3bf   : > { %v4614_v24 = vmul.f32 0.20019531, %v4102_v33  ;;  %v4615_v2 = vmul.f32 0.20019531, %v4103_v1  ;;  %v3184_v39 = vunpack.c.l.bf16 %v2733_v59  ;;  %v3185_v58 = vunpack.c.h.bf16 %v2733_v59 }
 0x3c0   : > { %vm4358_vm13 = vcmp.gt.f32.partialorder %v4102_v33, 0.0  ;;  %vm4359_vm14 = vcmp.gt.f32.partialorder %v4103_v1, 0.0  ;;  %v2563_v50 = vpop.f32.mrf.mxu2 }
 0x3c1   : > { %v3472_v15 = vadd.f32 %v16907_v29, %v3184_v39  ;;  %v3473_v46 = vadd.f32 %v16907_v29, %v3185_v58  ;;  %v4744_v44 = vpack.c.bf16 %v4615_v2, %v4614_v24  ;;  %vm4872_vm15 = vmpackc.low %vm4359_vm14, %vm4358_vm13 }
 0x3c2   : > { %v2652_v30 = vpop.f32.mrf.mxu3 }
 0x3c3   : > { %v3725_v18 = vpack.c.bf16 %v3473_v46, %v3472_v15  ;;  %v2653_v25 = vadd.f32 %v2652_v30, %v2563_v50  ;;  %v2388_v35 = vpop.f32.mrf.mxu0  ;;  %v2477_v41 = vpop.f32.mrf.mxu1  ;;  %v5000_v62 = vsel %vm4872_vm15, %v3848_v13, %v4744_v44  ;;  %v16910_v15 = vld [vmem:[#allocation23_spill] sm:$0xff] }
 0x3c4   : > { %v2478_v11 = vadd.f32 %v2477_v41, %v2388_v35  ;;  %v5478_v59 = vunpack.c.l.b16 %v5000_v62  ;;  %v5479_v33 = vunpack.c.h.b16 %v5000_v62 }
 0x3c5   : > { %v2737_v1 = vpack.c.bf16 %v2653_v25, %v2475_v38  ;;  %2427 = vmatmul.bf16.gmra.mxu0 %v16908_v16  ;;  %2605 = vmatmul.bf16.gmra.mxu2 %v16908_v16  ;;  %v3856_v13 = vunpack.c.l.bf16 %v3725_v18  ;;  %v3857_v29 = vunpack.c.h.bf16 %v3725_v18 }
 0x3c6   : > { %2516 = vmatmul.bf16.gmra.mxu1 %v16909_v9  ;;  %v13053_v58 = vpack.c.b16 %v5478_v59, %v5470_v32  ;;  %v13055_v24 = vpack.c.b16 %v5479_v33, %v5471_v3 }
 0x3c7   : > { %v3192_v2 = vunpack.c.l.bf16 %v2737_v1  ;;  %v3193_v39 = vunpack.c.h.bf16 %v2737_v1  ;;  %2694 = vmatmul.bf16.gmra.mxu3 %v16909_v9  ;;  %v4368_v41 = vmul.f32 0.20019531, %v3856_v13  ;;  %v4369_v62 = vmul.f32 0.20019531, %v3857_v29  ;;  %v16921_v1 = vld [vmem:[#allocation27_spill] sm:$0xff] }
 0x3c8   : > { %v2566_v46 = vpop.f32.mrf.mxu2  ;;  %vm13060_vm0 = vcmp.gt.f32.partialorder %v3856_v13, 0.0  ;;  %vm13064_vm1 = vcmp.gt.f32.partialorder %v3857_v29, 0.0 }
 0x3c9   : > { %v3480_v5 = vadd.f32 %v16910_v15, %v3192_v2  ;;  %v3481_v38 = vadd.f32 %v16910_v15, %v3193_v39  ;;  %v4621_v39 = vpack.c.bf16 %v4369_v62, %v4368_v41  ;;  %vm4749_vm4 = vmpackc.low %vm13064_vm1, %vm13060_vm0 }
 0x3ca   : > { %v2655_v50 = vpop.f32.mrf.mxu3 }
 0x3cb   : > { %v3729_v44 = vpack.c.bf16 %v3481_v38, %v3480_v5  ;;  %v2656_v30 = vadd.f32 %v2655_v50, %v2566_v46  ;;  %v2390_v25 = vpop.f32.mrf.mxu0  ;;  %v2479_v35 = vpop.f32.mrf.mxu1  ;;  %v16919_v38 = vld [vmem:[#allocation24_spill] sm:$0xff] }
 0x3cc   : > { %v2480_v3 = vadd.f32 %v2479_v35, %v2390_v25 }
 0x3cd   : > { %v2741_v32 = vpack.c.bf16 %v2656_v30, %v2478_v11  ;;  %v3864_v59 = vunpack.c.l.bf16 %v3729_v44  ;;  %v3865_v33 = vunpack.c.h.bf16 %v3729_v44 }
 0x3cf   : > { %v3200_v16 = vunpack.c.l.bf16 %v2741_v32  ;;  %v3201_v9 = vunpack.c.h.bf16 %v2741_v32  ;;  %vm13068_vm2 = vcmp.gt.f32.partialorder %v3864_v59, 0.0  ;;  %vm13072_vm3 = vcmp.gt.f32.partialorder %v3865_v33, 0.0 }
 0x3d0   : > { %v4376_v11 = vmul.f32 0.20019531, %v3864_v59  ;;  %v4377_v13 = vmul.f32 0.20019531, %v3865_v33  ;;  %v2568_v30 = vpop.f32.mrf.mxu2  ;;  %vm4753_vm5 = vmpackc.low %vm13072_vm3, %vm13068_vm2  ;;  %v4877_v59 = vsel %vm4749_vm4, %v3725_v18, %v4621_v39 }
 0x3d1   : > { %v3488_v46 = vadd.f32 %v16919_v38, %v3200_v16  ;;  %v3489_v50 = vadd.f32 %v16919_v38, %v3201_v9  ;;  %v16920_v38 = vld [vmem:[#allocation26_spill] sm:$0xff]  ;;  %v5232_v2 = vunpack.c.l.b16 %v4877_v59 }
 0x3d2   : > { %v2657_v29 = vpop.f32.mrf.mxu3  ;;  %v4625_v25 = vpack.c.bf16 %v4377_v13, %v4376_v11  ;;  %v5233_v13 = vunpack.c.h.b16 %v4877_v59 }
 0x3d3   : > { %v3733_v35 = vpack.c.bf16 %v3489_v50, %v3488_v46  ;;  %v2658_v41 = vadd.f32 %v2657_v29, %v2568_v30  ;;  %v2393_v62 = vpop.f32.mrf.mxu0  ;;  %v2482_v32 = vpop.f32.mrf.mxu1 }
 0x3d4   : > { %v2483_v33 = vadd.f32 %v2482_v32, %v2393_v62  ;;  %v4881_v16 = vsel %vm4753_vm5, %v3729_v44, %v4625_v25 }
 0x3d5   : > { %v2745_v9 = vpack.c.bf16 %v2658_v41, %v2480_v3  ;;  %2432 = vmatmul.bf16.gmra.mxu0 %v16920_v38  ;;  %v5240_v11 = vunpack.c.l.b16 %v4881_v16  ;;  %2610 = vmatmul.bf16.gmra.mxu2 %v16920_v38  ;;  %v5241_v46 = vunpack.c.h.b16 %v4881_v16  ;;  %v3872_v15 = vunpack.c.l.bf16 %v3733_v35  ;;  %v16924_v3 = vld [vmem:[#allocation28_spill] sm:$0xff] }
 0x3d6   : > { %2521 = vmatmul.bf16.gmra.mxu1 %v16921_v1  ;;  %v3873_v5 = vunpack.c.h.bf16 %v3733_v35 }
 0x3d7   : > { %v3208_v50 = vunpack.c.l.bf16 %v2745_v9  ;;  %v3209_v30 = vunpack.c.h.bf16 %v2745_v9  ;;  %2699 = vmatmul.bf16.gmra.mxu3 %v16921_v1  ;;  %v13090_v18 = vpack.c.b16 %v5240_v11, %v5232_v2  ;;  %v13092_v44 = vpack.c.b16 %v5241_v46, %v5233_v13  ;;  %v16935_v11 = vld [vmem:[#allocation33_spill] sm:$0xff] }
 0x3d8   : > { %v2571_v25 = vpop.f32.mrf.mxu2  ;;  %v4384_v38 = vmul.f32 0.20019531, %v3872_v15  ;;  %v4385_v9 = vmul.f32 0.20019531, %v3873_v5  ;;  %vm13096_vm6 = vcmp.gt.f32.partialorder %v3872_v15, 0.0  ;;  %vm13100_vm7 = vcmp.gt.f32.partialorder %v3873_v5, 0.0 }
 0x3d9   : > { %16922 = vst [vmem:[#allocation42_spill] sm:$0xff] %v13090_v18  ;;  %v3496_v39 = vadd.f32 %v16924_v3, %v3208_v50  ;;  %v3497_v29 = vadd.f32 %v16924_v3, %v3209_v30  ;;  %vm4757_vm10 = vmpackc.low %vm13100_vm7, %vm13096_vm6 }
 0x3da   : > { %16923 = vst [vmem:[#allocation69_spill] sm:$0xff] %v13092_v44  ;;  %v2660_v41 = vpop.f32.mrf.mxu3  ;;  %v4629_v50 = vpack.c.bf16 %v4385_v9, %v4384_v38 }
 0x3db   : > { %v3737_v62 = vpack.c.bf16 %v3497_v29, %v3496_v39  ;;  %v2661_v32 = vadd.f32 %v2660_v41, %v2571_v25  ;;  %v2395_v59 = vpop.f32.mrf.mxu0  ;;  %v2484_v16 = vpop.f32.mrf.mxu1  ;;  %v16933_v39 = vld [vmem:[#allocation29_spill] sm:$0xff] }
 0x3dc   : > { %v2485_v14 = vadd.f32 %v2484_v16, %v2395_v59 }
 0x3dd   : > { %v2749_v1 = vpack.c.bf16 %v2661_v32, %v2483_v33  ;;  %v3880_v36 = vunpack.c.l.bf16 %v3737_v62  ;;  %v3881_v20 = vunpack.c.h.bf16 %v3737_v62 }
 0x3df   : > { %v3216_v2 = vunpack.c.l.bf16 %v2749_v1  ;;  %v3217_v13 = vunpack.c.h.bf16 %v2749_v1  ;;  %vm13104_vm8 = vcmp.gt.f32.partialorder %v3880_v36, 0.0  ;;  %vm13108_vm9 = vcmp.gt.f32.partialorder %v3881_v20, 0.0 }
 0x3e0   : > { %v4392_v33 = vmul.f32 0.20019531, %v3880_v36  ;;  %v4393_v15 = vmul.f32 0.20019531, %v3881_v20  ;;  %v2573_v41 = vpop.f32.mrf.mxu2  ;;  %vm4761_vm11 = vmpackc.low %vm13108_vm9, %vm13104_vm8  ;;  %v4885_v20 = vsel %vm4757_vm10, %v3733_v35, %v4629_v50 }
 0x3e1   : > { %v3504_v29 = vadd.f32 %v16933_v39, %v3216_v2  ;;  %v3505_v25 = vadd.f32 %v16933_v39, %v3217_v13  ;;  %v16934_v13 = vld [vmem:[#allocation32_spill] sm:$0xff]  ;;  %v5248_v46 = vunpack.c.l.b16 %v4885_v20 }
 0x3e2   : > { %v2662_v5 = vpop.f32.mrf.mxu3  ;;  %v4633_v32 = vpack.c.bf16 %v4393_v15, %v4392_v33  ;;  %v5249_v15 = vunpack.c.h.b16 %v4885_v20 }
 0x3e3   : > { %v3741_v59 = vpack.c.bf16 %v3505_v25, %v3504_v29  ;;  %v2663_v16 = vadd.f32 %v2662_v5, %v2573_v41  ;;  %v2398_v38 = vpop.f32.mrf.mxu0  ;;  %v2487_v9 = vpop.f32.mrf.mxu1 }
 0x3e4   : > { %v2488_v36 = vadd.f32 %v2487_v9, %v2398_v38  ;;  %v4889_v1 = vsel %vm4761_vm11, %v3737_v62, %v4633_v32 }
 0x3e5   : > { %v2753_v2 = vpack.c.bf16 %v2663_v16, %v2485_v14  ;;  %2437 = vmatmul.bf16.gmra.mxu0 %v16934_v13  ;;  %v5256_v33 = vunpack.c.l.b16 %v4889_v1  ;;  %2615 = vmatmul.bf16.gmra.mxu2 %v16934_v13  ;;  %v5257_v39 = vunpack.c.h.b16 %v4889_v1  ;;  %v3888_v30 = vunpack.c.l.bf16 %v3741_v59  ;;  %v16938_v14 = vld [vmem:[#allocation34_spill] sm:$0xff] }
 0x3e6   : > { %2526 = vmatmul.bf16.gmra.mxu1 %v16935_v11  ;;  %v3889_v3 = vunpack.c.h.bf16 %v3741_v59 }
 0x3e7   : > { %v3224_v29 = vunpack.c.l.bf16 %v2753_v2  ;;  %v3225_v25 = vunpack.c.h.bf16 %v2753_v2  ;;  %2704 = vmatmul.bf16.gmra.mxu3 %v16935_v11  ;;  %v13126_v35 = vpack.c.b16 %v5256_v33, %v5248_v46  ;;  %v13128_v62 = vpack.c.b16 %v5257_v39, %v5249_v15  ;;  %v16949_v33 = vld [vmem:[#allocation39_spill] sm:$0xff] }
 0x3e8   : > { %v2576_v5 = vpop.f32.mrf.mxu2  ;;  %v4400_v1 = vmul.f32 0.20019531, %v3888_v30  ;;  %v4401_v2 = vmul.f32 0.20019531, %v3889_v3  ;;  %vm13132_vm12 = vcmp.gt.f32.partialorder %v3888_v30, 0.0  ;;  %vm13136_vm13 = vcmp.gt.f32.partialorder %v3889_v3, 0.0 }
 0x3e9   : > { %16936 = vst [vmem:[#allocation35_spill] sm:$0xff] %v13126_v35  ;;  %v3512_v50 = vadd.f32 %v16938_v14, %v3224_v29  ;;  %v3513_v41 = vadd.f32 %v16938_v14, %v3225_v25  ;;  %vm4765_vm0 = vmpackc.low %vm13136_vm13, %vm13132_vm12 }
 0x3ea   : > { %16937 = vst [vmem:[#allocation64_spill] sm:$0xff] %v13128_v62  ;;  %v2665_v32 = vpop.f32.mrf.mxu3  ;;  %v4637_v29 = vpack.c.bf16 %v4401_v2, %v4400_v1 }
 0x3eb   : > { %v3745_v16 = vpack.c.bf16 %v3513_v41, %v3512_v50  ;;  %v2666_v38 = vadd.f32 %v2665_v32, %v2576_v5  ;;  %v2400_v9 = vpop.f32.mrf.mxu0  ;;  %v2489_v20 = vpop.f32.mrf.mxu1  ;;  %v16947_v50 = vld [vmem:[#allocation37_spill] sm:$0xff] }
 0x3ec   : > { %v2490_v13 = vadd.f32 %v2489_v20, %v2400_v9 }
 0x3ed   : > { %v2757_v11 = vpack.c.bf16 %v2666_v38, %v2488_v36  ;;  %v3896_v44 = vunpack.c.l.bf16 %v3745_v16  ;;  %v3897_v18 = vunpack.c.h.bf16 %v3745_v16 }
 0x3ef   : > { %v3232_v46 = vunpack.c.l.bf16 %v2757_v11  ;;  %v3233_v15 = vunpack.c.h.bf16 %v2757_v11  ;;  %vm13140_vm14 = vcmp.gt.f32.partialorder %v3896_v44, 0.0  ;;  %vm13144_vm15 = vcmp.gt.f32.partialorder %v3897_v18, 0.0 }
 0x3f0   : > { %v4408_v36 = vmul.f32 0.20019531, %v3896_v44  ;;  %v4409_v30 = vmul.f32 0.20019531, %v3897_v18  ;;  %v2578_v32 = vpop.f32.mrf.mxu2  ;;  %vm4769_vm1 = vmpackc.low %vm13144_vm15, %vm13140_vm14  ;;  %v4893_v18 = vsel %vm4765_vm0, %v3741_v59, %v4637_v29 }
 0x3f1   : > { %v3520_v41 = vadd.f32 %v16947_v50, %v3232_v46  ;;  %v3521_v5 = vadd.f32 %v16947_v50, %v3233_v15  ;;  %v16948_v15 = vld [vmem:[#allocation38_spill] sm:$0xff]  ;;  %v5264_v39 = vunpack.c.l.b16 %v4893_v18 }
 0x3f2   : > { %v2667_v3 = vpop.f32.mrf.mxu3  ;;  %v4641_v38 = vpack.c.bf16 %v4409_v30, %v4408_v36  ;;  %v5265_v30 = vunpack.c.h.b16 %v4893_v18 }
 0x3f3   : > { %v3749_v9 = vpack.c.bf16 %v3521_v5, %v3520_v41  ;;  %v2668_v20 = vadd.f32 %v2667_v3, %v2578_v32  ;;  %v2403_v1 = vpop.f32.mrf.mxu0  ;;  %v2492_v2 = vpop.f32.mrf.mxu1 }
 0x3f4   : > { %v2493_v44 = vadd.f32 %v2492_v2, %v2403_v1  ;;  %v4897_v11 = vsel %vm4769_vm1, %v3745_v16, %v4641_v38 }
 0x3f5   : > { %v2761_v46 = vpack.c.bf16 %v2668_v20, %v2490_v13  ;;  %2442 = vmatmul.bf16.gmra.mxu0 %v16948_v15  ;;  %v5272_v36 = vunpack.c.l.b16 %v4897_v11  ;;  %2620 = vmatmul.bf16.gmra.mxu2 %v16948_v15  ;;  %v5273_v50 = vunpack.c.h.b16 %v4897_v11  ;;  %v3904_v25 = vunpack.c.l.bf16 %v3749_v9  ;;  %v16951_v13 = vld [vmem:[#allocation40_spill] sm:$0xff] }
 0x3f6   : > { %2531 = vmatmul.bf16.gmra.mxu1 %v16949_v33  ;;  %v3905_v14 = vunpack.c.h.bf16 %v3749_v9 }
 0x3f7   : > { %v3240_v41 = vunpack.c.l.bf16 %v2761_v46  ;;  %v3241_v5 = vunpack.c.h.bf16 %v2761_v46  ;;  %2709 = vmatmul.bf16.gmra.mxu3 %v16949_v33  ;;  %v13162_v59 = vpack.c.b16 %v5272_v36, %v5264_v39  ;;  %v13164_v16 = vpack.c.b16 %v5273_v50, %v5265_v30  ;;  %v16962_v36 = vld [vmem:[#allocation45_spill] sm:$0xff] }
 0x3f8   : > { %v2581_v3 = vpop.f32.mrf.mxu2  ;;  %v4416_v11 = vmul.f32 0.20019531, %v3904_v25  ;;  %v4417_v46 = vmul.f32 0.20019531, %v3905_v14  ;;  %vm13168_vm2 = vcmp.gt.f32.partialorder %v3904_v25, 0.0  ;;  %vm13172_vm3 = vcmp.gt.f32.partialorder %v3905_v14, 0.0 }
 0x3f9   : > { %16950 = vst [vmem:[#allocation36_spill] sm:$0xff] %v13164_v16  ;;  %v3528_v29 = vadd.f32 %v16951_v13, %v3240_v41  ;;  %v3529_v32 = vadd.f32 %v16951_v13, %v3241_v5  ;;  %vm4773_vm6 = vmpackc.low %vm13172_vm3, %vm13168_vm2 }
 0x3fa   : > { %v2670_v38 = vpop.f32.mrf.mxu3  ;;  %v4645_v41 = vpack.c.bf16 %v4417_v46, %v4416_v11 }
 0x3fb   : > { %v3753_v20 = vpack.c.bf16 %v3529_v32, %v3528_v29  ;;  %v2671_v1 = vadd.f32 %v2670_v38, %v2581_v3  ;;  %v2405_v2 = vpop.f32.mrf.mxu0  ;;  %v2494_v18 = vpop.f32.mrf.mxu1  ;;  %v16960_v29 = vld [vmem:[#allocation43_spill] sm:$0xff] }
 0x3fc   : > { %v2495_v15 = vadd.f32 %v2494_v18, %v2405_v2 }
 0x3fd   : > { %v2765_v33 = vpack.c.bf16 %v2671_v1, %v2493_v44  ;;  %v3912_v62 = vunpack.c.l.bf16 %v3753_v20  ;;  %v3913_v35 = vunpack.c.h.bf16 %v3753_v20 }
 0x3ff   : > { %v3248_v39 = vunpack.c.l.bf16 %v2765_v33  ;;  %v3249_v30 = vunpack.c.h.bf16 %v2765_v33  ;;  %vm13176_vm4 = vcmp.gt.f32.partialorder %v3912_v62, 0.0  ;;  %vm13180_vm5 = vcmp.gt.f32.partialorder %v3913_v35, 0.0 }
 0x400   : > { %v4424_v44 = vmul.f32 0.20019531, %v3912_v62  ;;  %v4425_v25 = vmul.f32 0.20019531, %v3913_v35  ;;  %v2583_v38 = vpop.f32.mrf.mxu2  ;;  %vm4777_vm7 = vmpackc.low %vm13180_vm5, %vm13176_vm4  ;;  %v4901_v35 = vsel %vm4773_vm6, %v3749_v9, %v4645_v41 }
 0x401   : > { %v3536_v32 = vadd.f32 %v16960_v29, %v3248_v39  ;;  %v3537_v3 = vadd.f32 %v16960_v29, %v3249_v30  ;;  %v16961_v30 = vld [vmem:[#allocation44_spill] sm:$0xff]  ;;  %v5280_v50 = vunpack.c.l.b16 %v4901_v35 }
 0x402   : > { %v2672_v14 = vpop.f32.mrf.mxu3  ;;  %v4649_v1 = vpack.c.bf16 %v4425_v25, %v4424_v44  ;;  %v5281_v25 = vunpack.c.h.b16 %v4901_v35 }
 0x403   : > { %v3757_v2 = vpack.c.bf16 %v3537_v3, %v3536_v32  ;;  %v2673_v18 = vadd.f32 %v2672_v14, %v2583_v38  ;;  %v2408_v11 = vpop.f32.mrf.mxu0  ;;  %v2497_v46 = vpop.f32.mrf.mxu1 }
 0x404   : > { %v2498_v62 = vadd.f32 %v2497_v46, %v2408_v11  ;;  %v4905_v33 = vsel %vm4777_vm7, %v3753_v20, %v4649_v1 }
 0x405   : > { %v2769_v39 = vpack.c.bf16 %v2673_v18, %v2495_v15  ;;  %2447 = vmatmul.bf16.gmra.mxu0 %v16961_v30  ;;  %v5288_v44 = vunpack.c.l.b16 %v4905_v33  ;;  %2625 = vmatmul.bf16.gmra.mxu2 %v16961_v30  ;;  %v5289_v29 = vunpack.c.h.b16 %v4905_v33  ;;  %v3920_v5 = vunpack.c.l.bf16 %v3757_v2 }
 0x406   : > { %2536 = vmatmul.bf16.gmra.mxu1 %v16962_v36  ;;  %v3921_v13 = vunpack.c.h.bf16 %v3757_v2 }
 0x407   : > { %v3256_v32 = vunpack.c.l.bf16 %v2769_v39  ;;  %v3257_v3 = vunpack.c.h.bf16 %v2769_v39  ;;  %2714 = vmatmul.bf16.gmra.mxu3 %v16962_v36  ;;  %v13198_v9 = vpack.c.b16 %v5288_v44, %v5280_v50  ;;  %v13200_v20 = vpack.c.b16 %v5289_v29, %v5281_v25 }
 0x408   : > { %v2586_v38 = vpop.f32.mrf.mxu2  ;;  %v4432_v35 = vmul.f32 0.20019531, %v3920_v5  ;;  %v4433_v33 = vmul.f32 0.20019531, %v3921_v13  ;;  %vm13204_vm8 = vcmp.gt.f32.partialorder %v3920_v5, 0.0  ;;  %vm13208_vm9 = vcmp.gt.f32.partialorder %v3921_v13, 0.0 }
 0x409   : > { %v3544_v15 = vadd.f32 %v16779_v60, %v3256_v32  ;;  %v3545_v41 = vadd.f32 %v16779_v60, %v3257_v3  ;;  %vm4781_vm12 = vmpackc.low %vm13208_vm9, %vm13204_vm8 }
 0x40a   : > { %v2675_v14 = vpop.f32.mrf.mxu3  ;;  %v4653_v29 = vpack.c.bf16 %v4433_v33, %v4432_v35 }
 0x40b   : > { %v3761_v1 = vpack.c.bf16 %v3545_v41, %v3544_v15  ;;  %v2676_v18 = vadd.f32 %v2675_v14, %v2586_v38  ;;  %v2410_v11 = vpop.f32.mrf.mxu0  ;;  %v2499_v46 = vpop.f32.mrf.mxu1 }
 0x40c   : > { %v2500_v39 = vadd.f32 %v2499_v46, %v2410_v11 }
 0x40d   : > { %v2773_v30 = vpack.c.bf16 %v2676_v18, %v2498_v62  ;;  %v3928_v36 = vunpack.c.l.bf16 %v3761_v1  ;;  %v3929_v16 = vunpack.c.h.bf16 %v3761_v1 }
 0x40f   : > { %v3264_v50 = vunpack.c.l.bf16 %v2773_v30  ;;  %v3265_v25 = vunpack.c.h.bf16 %v2773_v30  ;;  %vm13212_vm10 = vcmp.gt.f32.partialorder %v3928_v36, 0.0  ;;  %vm13216_vm11 = vcmp.gt.f32.partialorder %v3929_v16, 0.0 }
 0x410   : > { %v4440_v62 = vmul.f32 0.20019531, %v3928_v36  ;;  %v4441_v5 = vmul.f32 0.20019531, %v3929_v16  ;;  %v2588_v38 = vpop.f32.mrf.mxu2  ;;  %vm4785_vm13 = vmpackc.low %vm13216_vm11, %vm13212_vm10  ;;  %v4909_v16 = vsel %vm4781_vm12, %v3757_v2, %v4653_v29 }
 0x411   : > { %v3552_v15 = vadd.f32 %v16582_v6, %v3264_v50  ;;  %v3553_v41 = vadd.f32 %v16582_v6, %v3265_v25  ;;  %v5296_v44 = vunpack.c.l.b16 %v4909_v16  ;;  %v5297_v50 = vunpack.c.h.b16 %v4909_v16 }
 0x412   : > { %v2677_v13 = vpop.f32.mrf.mxu3  ;;  %v4657_v14 = vpack.c.bf16 %v4441_v5, %v4440_v62 }
 0x413   : > { %v3765_v18 = vpack.c.bf16 %v3553_v41, %v3552_v15  ;;  %v2678_v11 = vadd.f32 %v2677_v13, %v2588_v38  ;;  %v2413_v46 = vpop.f32.mrf.mxu0  ;;  %v2502_v35 = vpop.f32.mrf.mxu1 }
 0x414   : > { %v2503_v33 = vadd.f32 %v2502_v35, %v2413_v46  ;;  %v4913_v6 = vsel %vm4785_vm13, %v3761_v1, %v4657_v14 }
 0x415   : > { %v2777_v30 = vpack.c.bf16 %v2678_v11, %v2500_v39  ;;  %2452 = vmatmul.bf16.gmra.mxu0 %v11034_v27  ;;  %v5304_v36 = vunpack.c.l.b16 %v4913_v6  ;;  %2630 = vmatmul.bf16.gmra.mxu2 %v11034_v27  ;;  %v5305_v25 = vunpack.c.h.b16 %v4913_v6  ;;  %v3936_v32 = vunpack.c.l.bf16 %v3765_v18 }
 0x416   : > { %2541 = vmatmul.bf16.gmra.mxu1 %v11039_v47  ;;  %v3937_v3 = vunpack.c.h.bf16 %v3765_v18 }
 0x417   : > { %v3272_v60 = vunpack.c.l.bf16 %v2777_v30  ;;  %v3273_v62 = vunpack.c.h.bf16 %v2777_v30  ;;  %2719 = vmatmul.bf16.gmra.mxu3 %v11039_v47  ;;  %v13234_v2 = vpack.c.b16 %v5304_v36, %v5296_v44  ;;  %v13236_v1 = vpack.c.b16 %v5305_v25, %v5297_v50 }
 0x418   : > { %v2591_v5 = vpop.f32.mrf.mxu2  ;;  %v4448_v14 = vmul.f32 0.20019531, %v3936_v32  ;;  %v4449_v11 = vmul.f32 0.20019531, %v3937_v3  ;;  %vm13240_vm14 = vcmp.gt.f32.partialorder %v3936_v32, 0.0  ;;  %vm13244_vm15 = vcmp.gt.f32.partialorder %v3937_v3, 0.0 }
 0x419   : > { %v3560_v39 = vadd.f32 %v11058_v21, %v3272_v60  ;;  %v3561_v29 = vadd.f32 %v11058_v21, %v3273_v62  ;;  %vm4789_vm2 = vmpackc.low %vm13244_vm15, %vm13240_vm14 }
 0x41a   : > { %v2680_v15 = vpop.f32.mrf.mxu3  ;;  %v4661_v44 = vpack.c.bf16 %v4449_v11, %v4448_v14 }
 0x41b   : > { %v3769_v27 = vpack.c.bf16 %v3561_v29, %v3560_v39  ;;  %v2681_v41 = vadd.f32 %v2680_v15, %v2591_v5  ;;  %v2415_v38 = vpop.f32.mrf.mxu0  ;;  %v2504_v13 = vpop.f32.mrf.mxu1 }
 0x41c   : > { %v2505_v46 = vadd.f32 %v2504_v13, %v2415_v38  ;;  %v4917_v38 = vsel %vm4789_vm2, %v3765_v18, %v4661_v44 }
 0x41d   : > { %v2781_v47 = vpack.c.bf16 %v2681_v41, %v2503_v33  ;;  %v3944_v35 = vunpack.c.l.bf16 %v3769_v27  ;;  %v3945_v16 = vunpack.c.h.bf16 %v3769_v27  ;;  %v5312_v11 = vunpack.c.l.b16 %v4917_v38 }
 0x41f   : > { %v3280_v30 = vunpack.c.l.bf16 %v2781_v47  ;;  %v3281_v36 = vunpack.c.h.bf16 %v2781_v47  ;;  %vm13248_vm0 = vcmp.gt.f32.partialorder %v3944_v35, 0.0  ;;  %v4456_v25 = vmul.f32 0.20019531, %v3944_v35 }
 0x420   : > { %v2593_v62 = vpop.f32.mrf.mxu2  ;;  %vm4201_vm1 = vcmp.gt.f32.partialorder %v3945_v16, 0.0  ;;  %v4457_v32 = vmul.f32 0.20019531, %v3945_v16  ;;  %v5313_v35 = vunpack.c.h.b16 %v4917_v38 }
 0x421   : > { %v3568_v33 = vadd.f32 %v11074_v34, %v3280_v30  ;;  %v3569_v60 = vadd.f32 %v11074_v34, %v3281_v36  ;;  %vm4793_vm3 = vmpackc.low %vm4201_vm1, %vm13248_vm0 }
 0x422   : > { %v2682_v39 = vpop.f32.mrf.mxu3  ;;  %v4665_v41 = vpack.c.bf16 %v4457_v32, %v4456_v25 }
 0x423   : > { %v13258_v3 = vpack.c.bf16 %v3569_v60, %v3568_v33  ;;  %v2683_v29 = vadd.f32 %v2682_v39, %v2593_v62  ;;  %v2418_v5 = vpop.f32.mrf.mxu0  ;;  %v2507_v15 = vpop.f32.mrf.mxu1 }
 0x424   : > { %v2508_v13 = vadd.f32 %v2507_v15, %v2418_v5  ;;  %v4921_v14 = vsel %vm4793_vm3, %v3769_v27, %v4665_v41  ;;  %v9847_v41 = vld [vmem:[%s16040_s3] sm:$0xf] }
 0x425   : > { %v2785_v34 = vpack.c.bf16 %v2683_v29, %v2505_v46  ;;  %2457 = vmatmul.bf16.gmra.mxu0 %v11108_v43  ;;  %2635 = vmatmul.bf16.gmra.mxu2 %v11108_v43  ;;  %v5320_v47 = vunpack.c.l.b16 %v4921_v14  ;;  %v5321_v16 = vunpack.c.h.b16 %v4921_v14  ;;  %v3952_v18 = vunpack.c.l.bf16 %v13258_v3 }
 0x426   : > { %2546 = vmatmul.bf16.gmra.mxu1 %v11110_v37  ;;  %v3953_v36 = vunpack.c.h.bf16 %v13258_v3 }
 0x427   : > { %v3288_v6 = vunpack.c.l.bf16 %v2785_v34  ;;  %v3289_v30 = vunpack.c.h.bf16 %v2785_v34  ;;  %2724 = vmatmul.bf16.gmra.mxu3 %v11110_v37  ;;  %v13268_v46 = vpack.c.b16 %v5320_v47, %v5312_v11  ;;  %v13270_v21 = vpack.c.b16 %v5321_v16, %v5313_v35  ;;  %v9849_v11 = vld [vmem:[%s16040_s3 + $0x8] sm:$0xf0] }
 0x428   : > { %v2596_v44 = vpop.f32.mrf.mxu2  ;;  %v4464_v32 = vmul.f32 0.20019531, %v3952_v18  ;;  %v4465_v37 = vmul.f32 0.20019531, %v3953_v36  ;;  %vm13280_vm4 = vcmp.gt.f32.partialorder %v3952_v18, 0.0  ;;  %vm13290_vm5 = vcmp.gt.f32.partialorder %v3953_v36, 0.0 }
 0x429   : > { %v3576_v27 = vadd.f32 %v11123_v0, %v3288_v6  ;;  %v3577_v43 = vadd.f32 %v11123_v0, %v3289_v30  ;;  %v10102_v0 = vld [vmem:[%s16040_s3 + $0x4] sm:$0xf0]  ;;  %vm4797_vm8 = vmpackc.low %vm13290_vm5, %vm13280_vm4 }
 0x42a   : > { %v2685_v50 = vpop.f32.mrf.mxu3  ;;  %v4669_v35 = vpack.c.bf16 %v4465_v37, %v4464_v32  ;;  %v13304_v36 = vor.u32 %v10102_v0, %v9847_v41 }
 0x42b   : > { %v3777_v25 = vpack.c.bf16 %v3577_v43, %v3576_v27  ;;  %v2686_v33 = vadd.f32 %v2685_v50, %v2596_v44  ;;  %v2420_v60 = vpop.f32.mrf.mxu0  ;;  %v2509_v62 = vpop.f32.mrf.mxu1 }
 0x42c   : > { %v2510_v39 = vadd.f32 %v2509_v62, %v2420_v60  ;;  %16985 = vst [vmem:[#allocation65_spill] sm:$0xff] %v13304_v36 }
 0x42d   : > { %v2789_v29 = vpack.c.bf16 %v2686_v33, %v2508_v13  ;;  %v3960_v5 = vunpack.c.l.bf16 %v3777_v25  ;;  %v3961_v15 = vunpack.c.h.bf16 %v3777_v25  ;;  %v10101_v13 = vld [vmem:[%s16040_s3 + $0x4] sm:$0xf] }
 0x42e   : > { %v13306_v33 = vor.u32 %v10101_v13, %v9849_v11 }
 0x42f   : > { %v3296_v34 = vunpack.c.l.bf16 %v2789_v29  ;;  %v3297_v14 = vunpack.c.h.bf16 %v2789_v29  ;;  %vm13294_vm6 = vcmp.gt.f32.partialorder %v3960_v5, 0.0  ;;  %vm13298_vm7 = vcmp.gt.f32.partialorder %v3961_v15, 0.0 }
 0x430   : > { %v4472_v30 = vmul.f32 0.20019531, %v3960_v5  ;;  %v4473_v18 = vmul.f32 0.20019531, %v3961_v15  ;;  %v2598_v44 = vpop.f32.mrf.mxu2  ;;  %16986 = vst [vmem:[#allocation30_spill] sm:$0xff] %v13306_v33  ;;  %vm4801_vm9 = vmpackc.low %vm13298_vm7, %vm13294_vm6 }
 0x431   : > { %v3584_v27 = vadd.f32 %v11141_v7, %v3296_v34  ;;  %v3585_v43 = vadd.f32 %v11141_v7, %v3297_v14  ;;  %v4925_v7 = vsel %vm4797_vm8, %v13258_v3, %v4669_v35 }
 0x432   : > { %v2687_v50 = vpop.f32.mrf.mxu3  ;;  %v4673_v60 = vpack.c.bf16 %v4473_v18, %v4472_v30  ;;  %v5328_v14 = vunpack.c.l.b16 %v4925_v7  ;;  %v5329_v13 = vunpack.c.h.b16 %v4925_v7 }
 0x433   : > { %v13312_v62 = vpack.c.bf16 %v3585_v43, %v3584_v27  ;;  %v2688_v32 = vadd.f32 %v2687_v50, %v2598_v44  ;;  %v2423_v37 = vpop.f32.mrf.mxu0  ;;  %v2512_v29 = vpop.f32.mrf.mxu1 }
 0x434   : > { %v2513_v5 = vadd.f32 %v2512_v29, %v2423_v37  ;;  %v4929_v15 = vsel %vm4801_vm9, %v3777_v25, %v4673_v60 }
 0x435   : > { %v3968_v41 = vunpack.c.l.bf16 %v13312_v62  ;;  %v3969_v0 = vunpack.c.h.bf16 %v13312_v62  ;;  %v2793_v38 = vpack.c.bf16 %v2688_v32, %v2510_v39  ;;  %5746 = vmatmul.bf16.vlgmr.msra.gmra.mxu0 %v13304_v36  ;;  %v5336_v34 = vunpack.c.l.b16 %v4929_v15  ;;  %5844 = vmatmul.bf16.vlgmr.msra.gmra.mxu2 %v13304_v36 }
 0x436   : > { %5795 = vmatmul.bf16.vlgmr.msra.gmra.mxu1 %v13306_v33  ;;  %v5337_v11 = vunpack.c.h.b16 %v4929_v15  ;;  %6130 = vmatpush.bf16.msra.mxu0 %v12770_v49 }
 0x437   : > { %v3304_v47 = vunpack.c.l.bf16 %v2793_v38  ;;  %v3305_v16 = vunpack.c.h.bf16 %v2793_v38  ;;  %5893 = vmatmul.bf16.vlgmr.msra.gmra.mxu3 %v13306_v33  ;;  %v4480_v3 = vmul.f32 0.20019531, %v3968_v41  ;;  %v4481_v25 = vmul.f32 0.20019531, %v3969_v0  ;;  %6179 = vmatpush.bf16.msra.mxu1 %v13053_v58 }
 0x438   : > { %6228 = vmatpush.bf16.msra.mxu2 %v12772_v51  ;;  %v13328_v39 = vpack.c.b16 %v5336_v34, %v5328_v14  ;;  %v13330_v35 = vpack.c.b16 %v5337_v11, %v5329_v13  ;;  %6277 = vmatpush.bf16.msra.mxu3 %v13055_v24  ;;  %v2601_v18 = vpop.f32.mrf.mxu2  ;;  %vm13338_vm10 = vcmp.gt.f32.partialorder %v3968_v41, 0.0  ;;  %vm13342_vm11 = vcmp.gt.f32.partialorder %v3969_v0, 0.0 }
 0x439   : > { %v3592_v6 = vadd.f32 %v11172_v56, %v3304_v47  ;;  %v3593_v30 = vadd.f32 %v11172_v56, %v3305_v16  ;;  %v4677_v24 = vpack.c.bf16 %v4481_v25, %v4480_v3  ;;  %vm4805_vm12 = vmpackc.low %vm13342_vm11, %vm13338_vm10  ;;  %v16995_v16 = vld [vmem:[#allocation41_spill] sm:$0xff] }
 0x43a   : > { %v2690_v27 = vpop.f32.mrf.mxu3  ;;  %6131 = vmatpush.bf16.msra.mxu0 %v12726_v54  ;;  %v9855_v54 = vld [vmem:[%s16040_s3 + $0x10] sm:$0xf]  ;;  %v16997_v56 = vld [vmem:[#allocation57_spill] sm:$0xff] }
 0x43b   : > { %v3785_v43 = vpack.c.bf16 %v3593_v30, %v3592_v6  ;;  %v2691_v49 = vadd.f32 %v2690_v27, %v2601_v18  ;;  %v2425_v44 = vpop.f32.mrf.mxu0  ;;  %v2514_v58 = vpop.f32.mrf.mxu1  ;;  %6180 = vmatpush.bf16.msra.mxu1 %v13042_v19  ;;  %v4933_v0 = vsel %vm4805_vm12, %v13312_v62, %v4677_v24  ;;  %v16996_v6 = vld [vmem:[#allocation68_spill] sm:$0xff]  ;;  %v16998_v24 = vld [vmem:[#allocation73_spill] sm:$0xff] }
 0x43c   : > { %6229 = vmatpush.bf16.msra.mxu2 %v12731_v28  ;;  %v2515_v51 = vadd.f32 %v2514_v58, %v2425_v44  ;;  %6278 = vmatpush.bf16.msra.mxu3 %v13044_v61  ;;  %v10104_v28 = vld [vmem:[%s16040_s3 + $0x14] sm:$0xf0]  ;;  %v9857_v61 = vld [vmem:[%s16040_s3 + $0x18] sm:$0xf0]  ;;  %v5344_v25 = vunpack.c.l.b16 %v4933_v0  ;;  %v5345_v27 = vunpack.c.h.b16 %v4933_v0  ;;  %v9863_v0 = vld [vmem:[%s16040_s3 + $0x20] sm:$0xf] }
 0x43d   : > { %v3976_v60 = vunpack.c.l.bf16 %v3785_v43  ;;  %v3977_v32 = vunpack.c.h.bf16 %v3785_v43  ;;  %v2797_v37 = vpack.c.bf16 %v2691_v49, %v2513_v5  ;;  %v10103_v5 = vld [vmem:[%s16040_s3 + $0x14] sm:$0xf] }
 0x43e   : > { %6132 = vmatpush.bf16.msra.mxu0 %v12689_v45  ;;  %v13380_v11 = vor.u32 %v10103_v5, %v9857_v61 }
 0x43f   : > { %v4488_v19 = vmul.f32 0.20019531, %v3976_v60  ;;  %v4489_v29 = vmul.f32 0.20019531, %v3977_v32  ;;  %v3312_v7 = vunpack.c.l.bf16 %v2797_v37  ;;  %v3313_v15 = vunpack.c.h.bf16 %v2797_v37  ;;  %6181 = vmatpush.bf16.msra.mxu1 %v13006_v12 }
 0x440   : > { %6230 = vmatpush.bf16.msra.mxu2 %v12691_v48  ;;  %vm13366_vm13 = vcmp.gt.f32.partialorder %v3976_v60, 0.0  ;;  %vm13370_vm14 = vcmp.gt.f32.partialorder %v3977_v32, 0.0  ;;  %6279 = vmatpush.bf16.msra.mxu3 %v13008_v22  ;;  %v2603_v14 = vpop.f32.mrf.mxu2  ;;  %v13378_v12 = vor.u32 %v10104_v28, %v9855_v54 }
 0x441   : > { %v3600_v38 = vadd.f32 %v16613_v26, %v3312_v7  ;;  %v3601_v34 = vadd.f32 %v16613_v26, %v3313_v15  ;;  %v4681_v48 = vpack.c.bf16 %v4489_v29, %v4488_v19  ;;  %vm4809_vm15 = vmpackc.low %vm13370_vm14, %vm13366_vm13  ;;  %v16999_v29 = vld [vmem:[#allocation72_spill] sm:$0xff] }
 0x442   : > { %v2692_v13 = vpop.f32.mrf.mxu3  ;;  %6133 = vmatpush.bf16.msra.mxu0 %v16995_v16 }
 0x443   : > { %v13386_v47 = vpack.c.bf16 %v3601_v34, %v3600_v38  ;;  %v2693_v62 = vadd.f32 %v2692_v13, %v2603_v14  ;;  %v2428_v26 = vpop.f32.mrf.mxu0  ;;  %v2517_v3 = vpop.f32.mrf.mxu1  ;;  %v4937_v22 = vsel %vm4809_vm15, %v3785_v43, %v4681_v48  ;;  %6182 = vmatpush.bf16.msra.mxu1 %v12970_v57  ;;  %v10106_v38 = vld [vmem:[%s16040_s3 + $0x24] sm:$0xf0]  ;;  %v9865_v13 = vld [vmem:[%s16040_s3 + $0x28] sm:$0xf0] }
 0x444   : > { %6231 = vmatpush.bf16.msra.mxu2 %v16996_v6  ;;  %v2518_v30 = vadd.f32 %v2517_v3, %v2428_v26  ;;  %v5352_v18 = vunpack.c.l.b16 %v4937_v22  ;;  %v5353_v49 = vunpack.c.h.b16 %v4937_v22  ;;  %6280 = vmatpush.bf16.msra.mxu3 %v12972_v42  ;;  %v17003_v48 = vld [vmem:[#allocation51_spill] sm:$0xff]  ;;  %v10107_v22 = vld [vmem:[%s16040_s3 + $0x34] sm:$0xf] }
 0x445   : > { %v2801_v44 = vpack.c.bf16 %v2693_v62, %v2515_v51  ;;  %5751 = vmatmul.bf16.gmra.mxu0 %v13378_v12  ;;  %5849 = vmatmul.bf16.gmra.mxu2 %v13378_v12  ;;  %v3984_v51 = vunpack.c.l.bf16 %v13386_v47  ;;  %v3985_v42 = vunpack.c.h.bf16 %v13386_v47  ;;  %v17006_v26 = vld [vmem:[#allocation47_spill] sm:$0xff]  ;;  %v9871_v62 = vld [vmem:[%s16040_s3 + $0x30] sm:$0xf] }
 0x446   : > { %5800 = vmatmul.bf16.gmra.mxu1 %v13380_v11  ;;  %v13395_v58 = vpack.c.b16 %v5352_v18, %v5344_v25  ;;  %v13397_v43 = vpack.c.b16 %v5353_v49, %v5345_v27  ;;  %6134 = vmatpush.bf16.msra.mxu0 %v16997_v56 }
 0x447   : > { %v3320_v57 = vunpack.c.l.bf16 %v2801_v44  ;;  %v3321_v50 = vunpack.c.h.bf16 %v2801_v44  ;;  %5898 = vmatmul.bf16.gmra.mxu3 %v13380_v11  ;;  %6183 = vmatpush.bf16.msra.mxu1 %v12934_v17  ;;  %v4496_v5 = vmul.f32 0.20019531, %v3984_v51  ;;  %v4497_v61 = vmul.f32 0.20019531, %v3985_v42  ;;  %v17000_v17 = vld [vmem:[#allocation48_spill] sm:$0xff] }
 0x448   : > { %6232 = vmatpush.bf16.msra.mxu2 %v16998_v24  ;;  %6281 = vmatpush.bf16.msra.mxu3 %v12936_v53  ;;  %v2606_v37 = vpop.f32.mrf.mxu2  ;;  %vm13418_vm0 = vcmp.gt.f32.partialorder %v3984_v51, 0.0  ;;  %vm13429_vm1 = vcmp.gt.f32.partialorder %v3985_v42, 0.0  ;;  %v17011_v51 = vld [vmem:[#allocation56_spill] sm:$0xff]  ;;  %v17012_v24 = vld [vmem:[#allocation50_spill] sm:$0xff] }
 0x449   : > { %v3608_v60 = vadd.f32 %v16619_v4, %v3320_v57  ;;  %v3609_v32 = vadd.f32 %v16619_v4, %v3321_v50  ;;  %v4685_v16 = vpack.c.bf16 %v4497_v61, %v4496_v5  ;;  %vm4813_vm4 = vmpackc.low %vm13429_vm1, %vm13418_vm0 }
 0x44a   : > { %v2695_v54 = vpop.f32.mrf.mxu3  ;;  %6135 = vmatpush.bf16.msra.mxu0 %v16999_v29 }
 0x44b   : > { %v3793_v28 = vpack.c.bf16 %v3609_v32, %v3608_v60  ;;  %v2696_v19 = vadd.f32 %v2695_v54, %v2606_v37  ;;  %v2430_v7 = vpop.f32.mrf.mxu0  ;;  %v2519_v15 = vpop.f32.mrf.mxu1  ;;  %6184 = vmatpush.bf16.msra.mxu1 %v12898_v52 }
 0x44c   : > { %6233 = vmatpush.bf16.msra.mxu2 %v17000_v17  ;;  %v2520_v41 = vadd.f32 %v2519_v15, %v2430_v7  ;;  %6282 = vmatpush.bf16.msra.mxu3 %v12900_v8  ;;  %v10105_v8 = vld [vmem:[%s16040_s3 + $0x24] sm:$0xf] }
 0x44d   : > { %v2805_v45 = vpack.c.bf16 %v2696_v19, %v2518_v30  ;;  %v3992_v4 = vunpack.c.l.bf16 %v3793_v28  ;;  %v3993_v53 = vunpack.c.h.bf16 %v3793_v28  ;;  %v13448_v44 = vor.u32 %v10105_v8, %v9865_v13 }
 0x44e   : > { %6136 = vmatpush.bf16.msra.mxu0 %v17003_v48 }
 0x44f   : > { %v3328_v52 = vunpack.c.l.bf16 %v2805_v45  ;;  %v3329_v14 = vunpack.c.h.bf16 %v2805_v45  ;;  %6185 = vmatpush.bf16.msra.mxu1 %v12862_v55  ;;  %vm13435_vm2 = vcmp.gt.f32.partialorder %v3992_v4, 0.0  ;;  %vm13439_vm3 = vcmp.gt.f32.partialorder %v3993_v53, 0.0 }
 0x450   : > { %6234 = vmatpush.bf16.msra.mxu2 %v17006_v26  ;;  %v4504_v25 = vmul.f32 0.20019531, %v3992_v4  ;;  %v4505_v6 = vmul.f32 0.20019531, %v3993_v53  ;;  %6283 = vmatpush.bf16.msra.mxu3 %v12864_v63  ;;  %v2608_v27 = vpop.f32.mrf.mxu2  ;;  %v13446_v55 = vor.u32 %v10106_v38, %v9863_v0  ;;  %vm4817_vm5 = vmpackc.low %vm13439_vm3, %vm13435_vm2  ;;  %v4941_v63 = vsel %vm4813_vm4, %v13386_v47, %v4685_v16 }
 0x451   : > { %v3616_v30 = vadd.f32 %v16826_v23, %v3328_v52  ;;  %v3617_v18 = vadd.f32 %v16826_v23, %v3329_v14  ;;  %v5360_v19 = vunpack.c.l.b16 %v4941_v63  ;;  %v5361_v29 = vunpack.c.h.b16 %v4941_v63 }
 0x452   : > { %v2697_v49 = vpop.f32.mrf.mxu3  ;;  %v4689_v57 = vpack.c.bf16 %v4505_v6, %v4504_v25  ;;  %6137 = vmatpush.bf16.msra.mxu0 %v17011_v51  ;;  %v9873_v25 = vld [vmem:[%s16040_s3 + $0x38] sm:$0xf0] }
 0x453   : > { %v13454_v50 = vpack.c.bf16 %v3617_v18, %v3616_v30  ;;  %v2698_v56 = vadd.f32 %v2697_v49, %v2608_v27  ;;  %v2433_v23 = vpop.f32.mrf.mxu0  ;;  %v2522_v42 = vpop.f32.mrf.mxu1  ;;  %6186 = vmatpush.bf16.msra.mxu1 %v12826_v10  ;;  %v9879_v18 = vld [vmem:[%s16040_s3 + $0x40] sm:$0xf]  ;;  %v10110_v27 = vld [vmem:[%s16040_s3 + $0x44] sm:$0xf0] }
 0x454   : > { %6235 = vmatpush.bf16.msra.mxu2 %v17012_v24  ;;  %v2523_v60 = vadd.f32 %v2522_v42, %v2433_v23  ;;  %v4945_v32 = vsel %vm4817_vm5, %v3793_v28, %v4689_v57  ;;  %6284 = vmatpush.bf16.msra.mxu3 %v12828_v40 }
 0x455   : > { %v2809_v37 = vpack.c.bf16 %v2698_v56, %v2520_v41  ;;  %5756 = vmatmul.bf16.gmra.mxu0 %v13446_v55  ;;  %v5368_v54 = vunpack.c.l.b16 %v4945_v32  ;;  %5854 = vmatmul.bf16.gmra.mxu2 %v13446_v55  ;;  %v5369_v7 = vunpack.c.h.b16 %v4945_v32  ;;  %v4000_v10 = vunpack.c.l.bf16 %v13454_v50  ;;  %v17021_v56 = vld [vmem:[#allocation62_spill] sm:$0xff] }
 0x456   : > { %5805 = vmatmul.bf16.gmra.mxu1 %v13448_v44  ;;  %v4001_v28 = vunpack.c.h.bf16 %v13454_v50 }
 0x457   : > { %v3336_v47 = vunpack.c.l.bf16 %v2809_v37  ;;  %v3337_v15 = vunpack.c.h.bf16 %v2809_v37  ;;  %5903 = vmatmul.bf16.gmra.mxu3 %v13448_v44  ;;  %v13471_v5 = vpack.c.b16 %v5368_v54, %v5360_v19  ;;  %v13473_v40 = vpack.c.b16 %v5369_v7, %v5361_v29 }
 0x458   : > { %v2611_v41 = vpop.f32.mrf.mxu2  ;;  %v4512_v34 = vmul.f32 0.20019531, %v4000_v10  ;;  %v4513_v52 = vmul.f32 0.20019531, %v4001_v28  ;;  %vm13483_vm6 = vcmp.gt.f32.partialorder %v4000_v10, 0.0  ;;  %vm13493_vm7 = vcmp.gt.f32.partialorder %v4001_v28, 0.0 }
 0x459   : > { %v3624_v61 = vadd.f32 %v16834_v31, %v3336_v47  ;;  %v3625_v17 = vadd.f32 %v16834_v31, %v3337_v15  ;;  %v10108_v31 = vld [vmem:[%s16040_s3 + $0x34] sm:$0xf0]  ;;  %vm4821_vm10 = vmpackc.low %vm13493_vm7, %vm13483_vm6 }
 0x45a   : > { %v2700_v45 = vpop.f32.mrf.mxu3  ;;  %v4693_v30 = vpack.c.bf16 %v4513_v52, %v4512_v34  ;;  %v13507_v63 = vor.u32 %v10108_v31, %v9871_v62  ;;  %v17024_v34 = vld [vmem:[#allocation63_spill] sm:$0xff] }
 0x45b   : > { %v3801_v4 = vpack.c.bf16 %v3625_v17, %v3624_v61  ;;  %v2701_v53 = vadd.f32 %v2700_v45, %v2611_v41  ;;  %v2435_v0 = vpop.f32.mrf.mxu0  ;;  %v2524_v38 = vpop.f32.mrf.mxu1 }
 0x45c   : > { %v2525_v14 = vadd.f32 %v2524_v38, %v2435_v0  ;;  %17022 = vst [vmem:[#allocation60_spill] sm:$0xff] %v13507_v63  ;;  %v4949_v7 = vsel %vm4821_vm10, %v13454_v50, %v4693_v30 }
 0x45d   : > { %v2813_v48 = vpack.c.bf16 %v2701_v53, %v2523_v60  ;;  %v4008_v8 = vunpack.c.l.bf16 %v3801_v4  ;;  %v4009_v13 = vunpack.c.h.bf16 %v3801_v4  ;;  %v13509_v60 = vor.u32 %v10107_v22, %v9873_v25 }
 0x45e   : > { %v5376_v61 = vunpack.c.l.b16 %v4949_v7  ;;  %v5377_v17 = vunpack.c.h.b16 %v4949_v7  ;;  %v17033_v7 = vld [vmem:[#allocation66_spill] sm:$0xff] }
 0x45f   : > { %v3344_v26 = vunpack.c.l.bf16 %v2813_v48  ;;  %v3345_v3 = vunpack.c.h.bf16 %v2813_v48  ;;  %vm13497_vm8 = vcmp.gt.f32.partialorder %v4008_v8, 0.0  ;;  %vm13501_vm9 = vcmp.gt.f32.partialorder %v4009_v13, 0.0  ;;  %17023 = vst [vmem:[#allocation31_spill] sm:$0xff] %v13509_v60 }
 0x460   : > { %v4520_v49 = vmul.f32 0.20019531, %v4008_v8  ;;  %v4521_v57 = vmul.f32 0.20019531, %v4009_v13  ;;  %v2613_v42 = vpop.f32.mrf.mxu2  ;;  %vm4825_vm11 = vmpackc.low %vm13501_vm9, %vm13497_vm8 }
 0x461   : > { %v3632_v51 = vadd.f32 %v17021_v56, %v3344_v26  ;;  %v3633_v23 = vadd.f32 %v17021_v56, %v3345_v3 }
 0x462   : > { %v2702_v24 = vpop.f32.mrf.mxu3  ;;  %v4697_v32 = vpack.c.bf16 %v4521_v57, %v4520_v49 }
 0x463   : > { %v13515_v37 = vpack.c.bf16 %v3633_v23, %v3632_v51  ;;  %v2703_v54 = vadd.f32 %v2702_v24, %v2613_v42  ;;  %v2438_v19 = vpop.f32.mrf.mxu0  ;;  %v2527_v29 = vpop.f32.mrf.mxu1  ;;  %v10109_v51 = vld [vmem:[%s16040_s3 + $0x44] sm:$0xf]  ;;  %v9881_v23 = vld [vmem:[%s16040_s3 + $0x48] sm:$0xf0] }
 0x464   : > { %v2528_v47 = vadd.f32 %v2527_v29, %v2438_v19  ;;  %v4953_v15 = vsel %vm4825_vm11, %v3801_v4, %v4697_v32 }
 0x465   : > { %v2817_v10 = vpack.c.bf16 %v2703_v54, %v2525_v14  ;;  %5761 = vmatmul.bf16.gmra.mxu0 %v13507_v63  ;;  %v5384_v28 = vunpack.c.l.b16 %v4953_v15  ;;  %5859 = vmatmul.bf16.gmra.mxu2 %v13507_v63  ;;  %v5385_v41 = vunpack.c.h.b16 %v4953_v15  ;;  %v4016_v0 = vunpack.c.l.bf16 %v13515_v37 }
 0x466   : > { %5810 = vmatmul.bf16.gmra.mxu1 %v13509_v60  ;;  %v4017_v50 = vunpack.c.h.bf16 %v13515_v37 }
 0x467   : > { %v3352_v45 = vunpack.c.l.bf16 %v2817_v10  ;;  %v3353_v53 = vunpack.c.h.bf16 %v2817_v10  ;;  %5908 = vmatmul.bf16.gmra.mxu3 %v13509_v60  ;;  %v13528_v4 = vpack.c.b16 %v5384_v28, %v5376_v61  ;;  %v13530_v38 = vpack.c.b16 %v5385_v41, %v5377_v17 }
 0x468   : > { %v2616_v48 = vpop.f32.mrf.mxu2  ;;  %v4528_v26 = vmul.f32 0.20019531, %v4016_v0  ;;  %v4529_v3 = vmul.f32 0.20019531, %v4017_v50  ;;  %vm13540_vm12 = vcmp.gt.f32.partialorder %v4016_v0, 0.0  ;;  %vm13550_vm13 = vcmp.gt.f32.partialorder %v4017_v50, 0.0 }
 0x469   : > { %v3640_v52 = vadd.f32 %v17024_v34, %v3352_v45  ;;  %v3641_v14 = vadd.f32 %v17024_v34, %v3353_v53  ;;  %v13564_v28 = vor.u32 %v10110_v27, %v9879_v18  ;;  %v13566_v17 = vor.u32 %v10109_v51, %v9881_v23  ;;  %vm4829_vm0 = vmpackc.low %vm13550_vm13, %vm13540_vm12 }
 0x46a   : > { %v2705_v8 = vpop.f32.mrf.mxu3  ;;  %v4701_v24 = vpack.c.bf16 %v4529_v3, %v4528_v26 }
 0x46b   : > { %v3809_v13 = vpack.c.bf16 %v3641_v14, %v3640_v52  ;;  %v2706_v62 = vadd.f32 %v2705_v8, %v2616_v48  ;;  %v2440_v31 = vpop.f32.mrf.mxu0  ;;  %v2529_v16 = vpop.f32.mrf.mxu1  ;;  %17034 = vst [vmem:[#allocation61_spill] sm:$0xff] %v13564_v28 }
 0x46c   : > { %v2530_v22 = vadd.f32 %v2529_v16, %v2440_v31  ;;  %17035 = vst [vmem:[#allocation46_spill] sm:$0xff] %v13566_v17  ;;  %v4957_v34 = vsel %vm4829_vm0, %v13515_v37, %v4701_v24 }
 0x46d   : > { %v2821_v25 = vpack.c.bf16 %v2706_v62, %v2528_v47  ;;  %v4024_v6 = vunpack.c.l.bf16 %v3809_v13  ;;  %v4025_v30 = vunpack.c.h.bf16 %v3809_v13  ;;  %v5392_v62 = vunpack.c.l.b16 %v4957_v34 }
 0x46e   : > { %v5393_v31 = vunpack.c.h.b16 %v4957_v34 }
 0x46f   : > { %v3360_v57 = vunpack.c.l.bf16 %v2821_v25  ;;  %v3361_v56 = vunpack.c.h.bf16 %v2821_v25  ;;  %vm13554_vm14 = vcmp.gt.f32.partialorder %v4024_v6, 0.0  ;;  %vm13558_vm15 = vcmp.gt.f32.partialorder %v4025_v30, 0.0 }
 0x470   : > { %v4536_v19 = vmul.f32 0.20019531, %v4024_v6  ;;  %v4537_v29 = vmul.f32 0.20019531, %v4025_v30  ;;  %v2618_v10 = vpop.f32.mrf.mxu2  ;;  %vm4833_vm1 = vmpackc.low %vm13558_vm15, %vm13554_vm14  ;;  %v17036_v6 = vld [vmem:[#allocation67_spill] sm:$0xff] }
 0x471   : > { %v3648_v47 = vadd.f32 %v17033_v7, %v3360_v57  ;;  %v3649_v15 = vadd.f32 %v17033_v7, %v3361_v56  ;;  %v9887_v7 = vld [vmem:[%s16040_s3 + $0x50] sm:$0xf] }
 0x472   : > { %v2707_v61 = vpop.f32.mrf.mxu3  ;;  %v4705_v41 = vpack.c.bf16 %v4537_v29, %v4536_v19 }
 0x473   : > { %v13572_v45 = vpack.c.bf16 %v3649_v15, %v3648_v47  ;;  %v2708_v53 = vadd.f32 %v2707_v61, %v2618_v10  ;;  %v2443_v0 = vpop.f32.mrf.mxu0  ;;  %v2532_v50 = vpop.f32.mrf.mxu1  ;;  %v10112_v47 = vld [vmem:[%s16040_s3 + $0x54] sm:$0xf0] }
 0x474   : > { %v2533_v52 = vadd.f32 %v2532_v50, %v2443_v0  ;;  %v4961_v14 = vsel %vm4833_vm1, %v3809_v13, %v4705_v41  ;;  %v10111_v41 = vld [vmem:[%s16040_s3 + $0x54] sm:$0xf]  ;;  %v13644_v15 = vpop.permute.xlu1 %6712 }
 0x475   : > { %v2825_v48 = vpack.c.bf16 %v2708_v53, %v2530_v22  ;;  %5766 = vmatmul.bf16.gmra.mxu0 %v13564_v28  ;;  %v5400_v8 = vunpack.c.l.b16 %v4961_v14  ;;  %5864 = vmatmul.bf16.gmra.mxu2 %v13564_v28  ;;  %v5401_v16 = vunpack.c.h.b16 %v4961_v14  ;;  %v4032_v25 = vunpack.c.l.bf16 %v13572_v45  ;;  %v9889_v53 = vld [vmem:[%s16040_s3 + $0x58] sm:$0xf0]  ;;  %17049 = vst [vmem:[#allocation78_spill] sm:$0xff] %v13644_v15 }
 0x476   : > { %5815 = vmatmul.bf16.gmra.mxu1 %v13566_v17  ;;  %v4033_v37 = vunpack.c.h.bf16 %v13572_v45 }
 0x477   : > { %v3368_v26 = vunpack.c.l.bf16 %v2825_v48  ;;  %v3369_v3 = vunpack.c.h.bf16 %v2825_v48  ;;  %5913 = vmatmul.bf16.gmra.mxu3 %v13566_v17  ;;  %v13585_v13 = vpack.c.b16 %v5400_v8, %v5392_v62  ;;  %v13587_v22 = vpack.c.b16 %v5401_v16, %v5393_v31  ;;  %v17045_v8 = vld [vmem:[#allocation70_spill] sm:$0xff] }
 0x478   : > { %v2621_v27 = vpop.f32.mrf.mxu2  ;;  %v4544_v42 = vmul.f32 0.20019531, %v4032_v25  ;;  %v4545_v24 = vmul.f32 0.20019531, %v4033_v37  ;;  %vm13597_vm2 = vcmp.gt.f32.partialorder %v4032_v25, 0.0  ;;  %vm13607_vm3 = vcmp.gt.f32.partialorder %v4033_v37, 0.0 }
 0x479   : > { %v3656_v30 = vadd.f32 %v17036_v6, %v3368_v26  ;;  %v3657_v18 = vadd.f32 %v17036_v6, %v3369_v3  ;;  %v13621_v26 = vor.u32 %v10112_v47, %v9887_v7  ;;  %v13623_v25 = vor.u32 %v10111_v41, %v9889_v53  ;;  %vm4837_vm6 = vmpackc.low %vm13607_vm3, %vm13597_vm2 }
 0x47a   : > { %v2710_v49 = vpop.f32.mrf.mxu3  ;;  %v4709_v50 = vpack.c.bf16 %v4545_v24, %v4544_v42 }
 0x47b   : > { %v3817_v57 = vpack.c.bf16 %v3657_v18, %v3656_v30  ;;  %v2711_v56 = vadd.f32 %v2710_v49, %v2621_v27  ;;  %v2445_v51 = vpop.f32.mrf.mxu0  ;;  %v2534_v23 = vpop.f32.mrf.mxu1  ;;  %17046 = vst [vmem:[#allocation80_spill] sm:$0xff] %v13621_v26 }
 0x47c   : > { %v2535_v32 = vadd.f32 %v2534_v23, %v2445_v51  ;;  %17047 = vst [vmem:[#allocation81_spill] sm:$0xff] %v13623_v25  ;;  %v4965_v49 = vsel %vm4837_vm6, %v13572_v45, %v4709_v50 }
 0x47d   : > { %v2829_v54 = vpack.c.bf16 %v2711_v56, %v2533_v52  ;;  %v4040_v19 = vunpack.c.l.bf16 %v3817_v57  ;;  %v4041_v29 = vunpack.c.h.bf16 %v3817_v57  ;;  %v13638_v56 = vpop.permute.xlu2 %6730  ;;  %v5408_v24 = vunpack.c.l.b16 %v4965_v49 }
 0x47e   : > { %17048 = vst [vmem:[#allocation53_spill] sm:$0xff] %v13638_v56 }
 0x47f   : > { %v3376_v10 = vunpack.c.l.bf16 %v2829_v54  ;;  %v3377_v61 = vunpack.c.h.bf16 %v2829_v54  ;;  %vm13611_vm4 = vcmp.gt.f32.partialorder %v4040_v19, 0.0  ;;  %vm13615_vm5 = vcmp.gt.f32.partialorder %v4041_v29, 0.0 }
 0x480   : > { %v4552_v14 = vmul.f32 0.20019531, %v4040_v19  ;;  %v4553_v48 = vmul.f32 0.20019531, %v4041_v29  ;;  %v2623_v16 = vpop.f32.mrf.mxu2  ;;  %vm4841_vm7 = vmpackc.low %vm13615_vm5, %vm13611_vm4  ;;  %v5409_v54 = vunpack.c.h.b16 %v4965_v49 }
 0x481   : > { %v3664_v62 = vadd.f32 %v17045_v8, %v3376_v10  ;;  %v3665_v31 = vadd.f32 %v17045_v8, %v3377_v61  ;;  %v17050_v10 = vld [vmem:[#allocation71_spill] sm:$0xff] }
 0x482   : > { %v2712_v3 = vpop.f32.mrf.mxu3  ;;  %v4713_v37 = vpack.c.bf16 %v4553_v48, %v4552_v14 }
 0x483   : > { %v3821_v6 = vpack.c.bf16 %v3665_v31, %v3664_v62  ;;  %v2713_v30 = vadd.f32 %v2712_v3, %v2623_v16  ;;  %v13629_v18 = vpop.f32.mrf.mxu0  ;;  %v13631_v27 = vpop.f32.mrf.mxu1  ;;  %v9895_v16 = vld [vmem:[%s16040_s3 + $0x60] sm:$0xf]  ;;  %v10114_v3 = vld [vmem:[%s16040_s3 + $0x64] sm:$0xf0] }
 0x484   : > { %v4969_v51 = vsel %vm4841_vm7, %v3817_v57, %v4713_v37  ;;  %v10113_v37 = vld [vmem:[%s16040_s3 + $0x64] sm:$0xf] }
 0x485   : > { %v2833_v23 = vpack.c.bf16 %v2713_v30, %v2535_v32  ;;  %5771 = vmatmul.bf16.gmra.mxu0 %v13621_v26  ;;  %v5416_v42 = vunpack.c.l.b16 %v4969_v51  ;;  %5869 = vmatmul.bf16.gmra.mxu2 %v13621_v26  ;;  %v5417_v19 = vunpack.c.h.b16 %v4969_v51  ;;  %v4048_v47 = vunpack.c.l.bf16 %v3821_v6  ;;  %v13652_v31 = vpop.permute.xlu2 %6721  ;;  %v9897_v30 = vld [vmem:[%s16040_s3 + $0x68] sm:$0xf0] }
 0x486   : > { %5820 = vmatmul.bf16.gmra.mxu1 %v13623_v25  ;;  %v4049_v45 = vunpack.c.h.bf16 %v3821_v6  ;;  %17051 = vst [vmem:[#allocation55_spill] sm:$0xff] %v13652_v31 }
 0x487   : > { %v3384_v29 = vunpack.c.l.bf16 %v2833_v23  ;;  %v3385_v7 = vunpack.c.h.bf16 %v2833_v23  ;;  %5918 = vmatmul.bf16.gmra.mxu3 %v13623_v25  ;;  %v13646_v57 = vpack.c.b16 %v5416_v42, %v5408_v24  ;;  %v13648_v32 = vpack.c.b16 %v5417_v19, %v5409_v54 }
 0x488   : > { %v2626_v53 = vpop.f32.mrf.mxu2  ;;  %v4560_v14 = vmul.f32 0.20019531, %v4048_v47  ;;  %v4561_v48 = vmul.f32 0.20019531, %v4049_v45  ;;  %vm13666_vm8 = vcmp.gt.f32.partialorder %v4048_v47, 0.0  ;;  %vm13670_vm9 = vcmp.gt.f32.partialorder %v4049_v45, 0.0 }
 0x489   : > { %v3672_v61 = vadd.f32 %v17050_v10, %v3384_v29  ;;  %v3673_v41 = vadd.f32 %v17050_v10, %v3385_v7  ;;  %v13678_v29 = vor.u32 %v10114_v3, %v9895_v16  ;;  %v13680_v7 = vpop.permute.xlu1 %6703  ;;  %v13682_v10 = vor.u32 %v10113_v37, %v9897_v30  ;;  %vm4845_vm12 = vmpackc.low %vm13670_vm9, %vm13666_vm8 }
 0x48a   : > { %v2715_v0 = vpop.f32.mrf.mxu3  ;;  %v4717_v23 = vpack.c.bf16 %v4561_v48, %v4560_v14  ;;  %17059 = vst [vmem:[#allocation58_spill] sm:$0xff] %v13680_v7 }
 0x48b   : > { %v3825_v50 = vpack.c.bf16 %v3673_v41, %v3672_v61  ;;  %v2450_v34 = vpop.f32.mrf.mxu0  ;;  %v2539_v52 = vpop.f32.mrf.mxu1  ;;  %17058 = vst [vmem:[#allocation79_spill] sm:$0xff] %v13678_v29 }
 0x48c   : > { %17060 = vst [vmem:[#allocation52_spill] sm:$0xff] %v13682_v10  ;;  %v4973_v14 = vsel %vm4845_vm12, %v3821_v6, %v4717_v23 }
 0x48d   : > { %v4056_v8 = vunpack.c.l.bf16 %v3825_v50  ;;  %v4057_v62 = vunpack.c.h.bf16 %v3825_v50  ;;  %v5425_v16 = vunpack.c.h.b16 %v4973_v14  ;;  %v13694_v37 = vpop.permute.xlu2 %6676 }
 0x48e   : > { %17061 = vst [vmem:[#allocation76_spill] sm:$0xff] %v13694_v37 }
 0x48f   : > { %vm13674_vm10 = vcmp.gt.f32.partialorder %v4056_v8, 0.0  ;;  %vm4313_vm11 = vcmp.gt.f32.partialorder %v4057_v62, 0.0  ;;  %v4568_v24 = vmul.f32 0.20019531, %v4056_v8  ;;  %v4569_v54 = vmul.f32 0.20019531, %v4057_v62 }
 0x490   : > { %v2628_v19 = vpop.f32.mrf.mxu2  ;;  %vm4849_vm13 = vmpackc.low %vm4313_vm11, %vm13674_vm10  ;;  %v5424_v62 = vunpack.c.l.b16 %v4973_v14  ;;  %v10115_v14 = vld [vmem:[%s16040_s3 + $0x74] sm:$0xf] }
 0x491   : > { %v4721_v45 = vpack.c.bf16 %v4569_v54, %v4568_v24  ;;  %v13700_v42 = vpop.permute.xlu1 %6658  ;;  %v9903_v54 = vld [vmem:[%s16040_s3 + $0x70] sm:$0xf] }
 0x492   : > { %v2717_v47 = vpop.f32.mrf.mxu3  ;;  %17062 = vst [vmem:[#allocation49_spill] sm:$0xff] %v13700_v42 }
 0x493   : > { %v2453_v61 = vpop.f32.mrf.mxu0  ;;  %v2542_v41 = vpop.f32.mrf.mxu1  ;;  %v4977_v48 = vsel %vm4849_vm13, %v3825_v50, %v4721_v45  ;;  %v2718_v24 = vadd.f32 %v2717_v47, %v2628_v19  ;;  %v10116_v45 = vld [vmem:[%s16040_s3 + $0x74] sm:$0xf0]  ;;  %v2716_v19 = vadd.f32 %v2715_v0, %v2626_v53  ;;  %v2540_v47 = vadd.f32 %v2539_v52, %v2450_v34 }
 0x494   : > { %v5432_v8 = vunpack.c.l.b16 %v4977_v48  ;;  %v5433_v3 = vunpack.c.h.b16 %v4977_v48  ;;  %v9905_v48 = vld [vmem:[%s16040_s3 + $0x78] sm:$0xf0]  ;;  %v2543_v7 = vadd.f32 %v2542_v41, %v2453_v61  ;;  %v13728_v52 = vpop.permute.xlu0 %6739 }
 0x495   : > { %5776 = vmatmul.bf16.gmra.mxu0 %v13678_v29  ;;  %5874 = vmatmul.bf16.gmra.mxu2 %v13678_v29  ;;  %v2841_v56 = vpack.c.bf16 %v2718_v24, %v2540_v47  ;;  %v13720_v31 = vor.u32 %v10115_v14, %v9905_v48  ;;  %17066 = vst [vmem:[#allocation3_spill] sm:$0xff] %v13728_v52  ;;  %v17074_v52 = vld [vmem:[#allocation11_spill] sm:$0xff] }
 0x496   : > { %5825 = vmatmul.bf16.gmra.mxu1 %v13682_v10  ;;  %v13696_v30 = vpack.c.b16 %v5432_v8, %v5424_v62  ;;  %v13698_v49 = vpack.c.b16 %v5433_v3, %v5425_v16  ;;  %v2538_v8 = vadd.f32 %v13631_v27, %v13629_v18  ;;  %v13716_v16 = vor.u32 %v10116_v45, %v9903_v54  ;;  %v13718_v3 = vpop.permute.xlu2 %6667 }
 0x497   : > { %5923 = vmatmul.bf16.gmra.mxu3 %v13682_v10  ;;  %17064 = vst [vmem:[#allocation54_spill] sm:$0xff] %v13718_v3  ;;  %v3400_v18 = vunpack.c.l.bf16 %v2841_v56  ;;  %v3401_v27 = vunpack.c.h.bf16 %v2841_v56 }
 0x498   : > { %v2631_v6 = vpop.f32.mrf.mxu2  ;;  %17063 = vst [vmem:[#allocation77_spill] sm:$0xff] %v13716_v16  ;;  %v2837_v37 = vpack.c.bf16 %v2716_v19, %v2538_v8 }
 0x499   : > { %17065 = vst [vmem:[#allocation2_spill] sm:$0xff] %v13720_v31  ;;  %v13725_v0 = vpop.permute.xlu1 %6649 }
 0x49a   : > { %v2720_v50 = vpop.f32.mrf.mxu3  ;;  %v3393_v61 = vunpack.c.h.bf16 %v2837_v37 }
 0x49b   : > { %v2455_v51 = vpop.f32.mrf.mxu0  ;;  %v2544_v23 = vpop.f32.mrf.mxu1  ;;  %v2721_v10 = vadd.f32 %v2720_v50, %v2631_v6  ;;  %v17067_v50 = vld [vmem:[#allocation75_spill] sm:$0xff] }
 0x49c   : > { %v2545_v17 = vadd.f32 %v2544_v23, %v2455_v51  ;;  %v3688_v51 = vadd.f32 %v17067_v50, %v3400_v18  ;;  %v3689_v56 = vadd.f32 %v17067_v50, %v3401_v27  ;;  %v17070_v18 = vld [vmem:[#allocation15_spill] sm:$0xff] }
 0x49d   : > { %v2845_v34 = vpack.c.bf16 %v2721_v10, %v2543_v7  ;;  %v17068_v10 = vld [vmem:[#allocation74_spill] sm:$0xff] }
 0x49e   : > { %v3681_v8 = vadd.f32 %v17068_v10, %v3393_v61  ;;  %v13734_v19 = vpop.permute.xlu2 %6622 }
 0x49f   : > { %v3408_v24 = vunpack.c.l.bf16 %v2845_v34  ;;  %v3409_v54 = vunpack.c.h.bf16 %v2845_v34 }
 0x4a0   : > { %v2633_v62 = vpop.f32.mrf.mxu2 }
 0x4a1   : > { %v3696_v27 = vadd.f32 %v17070_v18, %v3408_v24 }
 0x4a2   : > { %v2722_v15 = vpop.f32.mrf.mxu3 }
 0x4a3   : > { %v2723_v29 = vadd.f32 %v2722_v15, %v2633_v62  ;;  %v2458_v25 = vpop.f32.mrf.mxu0  ;;  %v2547_v26 = vpop.f32.mrf.mxu1  ;;  %v3392_v15 = vunpack.c.l.bf16 %v2837_v37  ;;  %v17069_v37 = vld [vmem:[#allocation13_spill] sm:$0xff] }
 0x4a4   : > { %v2548_v41 = vadd.f32 %v2547_v26, %v2458_v25  ;;  %v13736_v25 = vpack.c.bf16 %v3689_v56, %v3688_v51  ;;  %v13746_v51 = vpop.permute.xlu0 %6694  ;;  %v17073_v56 = vld [vmem:[#allocation20_spill] sm:$0xff] }
 0x4a5   : > { %5781 = vmatmul.bf16.gmra.mxu0 %v13716_v16  ;;  %v2849_v53 = vpack.c.bf16 %v2723_v29, %v2545_v17  ;;  %5879 = vmatmul.bf16.gmra.mxu2 %v13716_v16  ;;  %v3680_v48 = vadd.f32 %v17068_v10, %v3392_v15  ;;  %v6605_v15 = vpop.permute.xlu1 %6604  ;;  %17072 = vst [vmem:[#allocation59_spill] sm:$0xff] %v13746_v51 }
 0x4a6   : > { %5830 = vmatmul.bf16.gmra.mxu1 %v13720_v31  ;;  %v4072_v24 = vunpack.c.l.bf16 %v13736_v25 }
 0x4a7   : > { %5928 = vmatmul.bf16.gmra.mxu3 %v13720_v31  ;;  %v3416_v17 = vunpack.c.l.bf16 %v2849_v53  ;;  %v3417_v29 = vunpack.c.h.bf16 %v2849_v53  ;;  %v3697_v53 = vadd.f32 %v17070_v18, %v3409_v54  ;;  %v13742_v50 = vpack.c.bf16 %v3681_v8, %v3680_v48 }
 0x4a8   : > { %v2636_v6 = vpop.f32.mrf.mxu2  ;;  %v4073_v54 = vunpack.c.h.bf16 %v13736_v25  ;;  %vm13788_vm14 = vcmp.gt.f32.partialorder %v4072_v24, 0.0 }
 0x4a9   : > { %v3704_v47 = vadd.f32 %v17069_v37, %v3416_v17  ;;  %v3705_v62 = vadd.f32 %v17069_v37, %v3417_v29  ;;  %v6610_v17 = vperm.slane %v6605_v15, %v17073_v56  ;;  %v17075_v31 = vunpack.c.h.bf16 %v13742_v50 }
 0x4aa   : > { %v2725_v23 = vpop.f32.mrf.mxu3  ;;  %vm13792_vm15 = vcmp.gt.f32.partialorder %v4073_v54, 0.0 }
 0x4ab   : > { %v2726_v45 = vadd.f32 %v2725_v23, %v2636_v6  ;;  %v2460_v14 = vpop.f32.mrf.mxu0  ;;  %v2549_v7 = vpop.f32.mrf.mxu1  ;;  %v17071_v23 = vld [vmem:[#allocation8_spill] sm:$0xff]  ;;  %v13786_v16 = vmul.f32 0.20019531, %v17075_v31  ;;  %vm4857_vm13 = vmpackc.low %vm13792_vm15, %vm13788_vm14 }
 0x4ac   : > { %v2550_v8 = vadd.f32 %v2549_v7, %v2460_v14 }
 0x4ad   : > { %v2853_v26 = vpack.c.bf16 %v2726_v45, %v2548_v41  ;;  %v13749_v45 = vpack.c.bf16 %v3705_v62, %v3704_v47 }
 0x4af   : > { %v3424_v34 = vunpack.c.l.bf16 %v2853_v26  ;;  %v3425_v6 = vunpack.c.h.bf16 %v2853_v26  ;;  %v13753_v26 = vpack.c.bf16 %v3697_v53, %v3696_v27  ;;  %v13762_v27 = vunpack.c.l.bf16 %v6610_v17 }
 0x4b0   : > { %v2638_v41 = vpop.f32.mrf.mxu2  ;;  %v4088_v14 = vunpack.c.l.bf16 %v13749_v45  ;;  %v4089_v7 = vunpack.c.h.bf16 %v13749_v45  ;;  %v13768_v53 = vmul.f32 0.20019531, %v4072_v24 }
 0x4b1   : > { %v3712_v61 = vadd.f32 %v17071_v23, %v3424_v34  ;;  %v3713_v10 = vadd.f32 %v17071_v23, %v3425_v6  ;;  %v16250_v23 = vunpack.c.l.bf16 %v13742_v50  ;;  %v4080_v17 = vunpack.c.l.bf16 %v13753_v26 }
 0x4b2   : > { %v2727_v29 = vpop.f32.mrf.mxu3  ;;  %v4600_v51 = vmul.f32 0.20019531, %v4088_v14  ;;  %v4601_v28 = vmul.f32 0.20019531, %v4089_v7  ;;  %vm13814_vm3 = vcmp.gt.f32.partialorder %v4088_v14, 0.0  ;;  %vm13818_vm4 = vcmp.gt.f32.partialorder %v4089_v7, 0.0 }
 0x4b3   : > { %v13755_v48 = vpack.c.bf16 %v3713_v10, %v3712_v61  ;;  %v2728_v37 = vadd.f32 %v2727_v29, %v2638_v41  ;;  %v5747_v18 = vpop.f32.mrf.mxu0  ;;  %v5796_v34 = vpop.f32.mrf.mxu1  ;;  %v13773_v29 = vmul.f32 0.20019531, %v4073_v54  ;;  %v4592_v42 = vmul.f32 0.20019531, %v4080_v17  ;;  %vm4865_vm9 = vmpackc.low %vm13818_vm4, %vm13814_vm3 }
 0x4b4   : > { %v5797_v6 = vadd.f32 %v5796_v34, %v5747_v18  ;;  %v6614_v61 = vpop.permute.xlu2 %6613  ;;  %v13779_v34 = vmul.f32 0.20019531, %v16250_v23  ;;  %vm13810_vm2 = vcmp.gt.f32.partialorder %v4080_v17, 0.0 }
 0x4b5   : > { %v4096_v15 = vunpack.c.l.bf16 %v13755_v48  ;;  %v4097_v47 = vunpack.c.h.bf16 %v13755_v48  ;;  %v2857_v62 = vpack.c.bf16 %v2728_v37, %v2550_v8  ;;  %5942 = vmatmul.bf16.vlgmr.msrb.gmra.mxu0 %v13304_v36  ;;  %6040 = vmatmul.bf16.vlgmr.msrb.gmra.mxu2 %v13304_v36  ;;  %v6619_v8 = vperm.slane %v6614_v61, %v17073_v56 }
 0x4b6   : > { %5991 = vmatmul.bf16.vlgmr.msrb.gmra.mxu1 %v13306_v33  ;;  %6326 = vmatpush.bf16.msrb.mxu0 %v13395_v58  ;;  %v4081_v58 = vunpack.c.h.bf16 %v13753_v26  ;;  %v4729_v31 = vpack.c.bf16 %v13773_v29, %v13768_v53  ;;  %v4725_v23 = vpack.c.bf16 %v13786_v16, %v13779_v34 }
 0x4b7   : > { %v3432_v10 = vunpack.c.l.bf16 %v2857_v62  ;;  %v3433_v41 = vunpack.c.h.bf16 %v2857_v62  ;;  %6089 = vmatmul.bf16.vlgmr.msrb.gmra.mxu3 %v13306_v33  ;;  %v4608_v37 = vmul.f32 0.20019531, %v4096_v15  ;;  %v4609_v18 = vmul.f32 0.20019531, %v4097_v47  ;;  %6424 = vmatpush.bf16.msrb.mxu2 %v13397_v43 }
 0x4b8   : > { %v5845_v36 = vpop.f32.mrf.mxu2  ;;  %vm13800_vm0 = vcmp.gt.f32.partialorder %v4096_v15, 0.0  ;;  %vm13804_vm1 = vcmp.gt.f32.partialorder %v4097_v47, 0.0  ;;  %v4593_v63 = vmul.f32 0.20019531, %v4081_v58  ;;  %v4737_v15 = vpack.c.bf16 %v4601_v28, %v4600_v51 }
 0x4b9   : > { %v3720_v62 = vadd.f32 %v17074_v52, %v3432_v10  ;;  %v3721_v33 = vadd.f32 %v17074_v52, %v3433_v41  ;;  %vm4869_vm5 = vmpackc.low %vm13804_vm1, %vm13800_vm0  ;;  %vm13837_vm8 = vcmp.gt.f32.partialorder %v4081_v58, 0.0  ;;  %v17096_v58 = vunpack.c.l.bf16 %v13742_v50 }
 0x4ba   : > { %v5894_v61 = vpop.f32.mrf.mxu3  ;;  %6327 = vmatpush.bf16.msrb.mxu0 %v13328_v39  ;;  %v4733_v17 = vpack.c.bf16 %v4593_v63, %v4592_v42  ;;  %v17099_v63 = vunpack.c.h.bf16 %v13742_v50  ;;  %vm4861_vm0 = vmpackc.low %vm13837_vm8, %vm13810_vm2  ;;  %v4985_v43 = vsel %vm4857_vm13, %v13736_v25, %v4729_v31  ;;  %v6628_v31 = vperm.slane %v13734_v19, %v17073_v56 }
 0x4bb   : > { %v3849_v10 = vpack.c.bf16 %v3721_v33, %v3720_v62  ;;  %v5895_v52 = vadd.f32 %v5894_v61, %v5845_v36  ;;  %v5749_v41 = vpop.f32.mrf.mxu0  ;;  %v5798_v3 = vpop.f32.mrf.mxu1  ;;  %6425 = vmatpush.bf16.msrb.mxu2 %v13330_v35  ;;  %v4741_v36 = vpack.c.bf16 %v4609_v18, %v4608_v37  ;;  %vm13856_vm11 = vcmp.gt.f32.partialorder %v17096_v58, 0.0 }
 0x4bc   : > { %v5799_v24 = vadd.f32 %v5798_v3, %v5749_v41  ;;  %v13808_v33 = vpop.permute.xlu0 %6685  ;;  %vm13862_vm12 = vcmp.gt.f32.partialorder %v17099_v63, 0.0  ;;  %v17102_v63 = vld [vmem:[#allocation36_spill] sm:$0xff] }
 0x4bd   : > { %v4104_v39 = vunpack.c.l.bf16 %v3849_v10  ;;  %v4105_v62 = vunpack.c.h.bf16 %v3849_v10  ;;  %v6522_v61 = vpack.c.bf16 %v5895_v52, %v5797_v6  ;;  %v4997_v28 = vsel %vm4869_vm5, %v13755_v48, %v4741_v36  ;;  %vm4853_vm14 = vmpackc.low %vm13862_vm12, %vm13856_vm11 }
 0x4be   : > { %6328 = vmatpush.bf16.msrb.mxu0 %v13268_v46  ;;  %v13847_v52 = vunpack.c.l.bf16 %v6619_v8  ;;  %v4993_v48 = vsel %vm4865_vm9, %v13749_v45, %v4737_v15  ;;  %v5473_v15 = vunpack.c.h.b16 %v4997_v28  ;;  %v4981_v51 = vsel %vm4853_vm14, %v13742_v50, %v4725_v23 }
 0x4bf   : > { %v4616_v47 = vmul.f32 0.20019531, %v4104_v39  ;;  %v4617_v29 = vmul.f32 0.20019531, %v4105_v62  ;;  %v6746_v37 = vunpack.c.l.bf16 %v6522_v61  ;;  %v6747_v18 = vunpack.c.h.bf16 %v6522_v61  ;;  %6426 = vmatpush.bf16.msrb.mxu2 %v13270_v21 }
 0x4c0   : > { %vm13828_vm6 = vcmp.gt.f32.partialorder %v4104_v39, 0.0  ;;  %vm13832_vm7 = vcmp.gt.f32.partialorder %v4105_v62, 0.0  ;;  %v5847_v7 = vpop.f32.mrf.mxu2  ;;  %v5472_v61 = vunpack.c.l.b16 %v4997_v28  ;;  %v5464_v53 = vunpack.c.l.b16 %v4993_v48 }
 0x4c1   : > { %v6890_v46 = vadd.f32 %v13762_v27, %v6746_v37  ;;  %v6891_v60 = vadd.f32 %v13762_v27, %v6747_v18  ;;  %v4745_v21 = vpack.c.bf16 %v4617_v29, %v4616_v47  ;;  %vm4873_vm10 = vmpackc.low %vm13832_vm7, %vm13828_vm6  ;;  %v5465_v37 = vunpack.c.h.b16 %v4993_v48 }
 0x4c2   : > { %v5896_v41 = vpop.f32.mrf.mxu3  ;;  %6329 = vmatpush.bf16.msrb.mxu0 %v13234_v2 }
 0x4c3   : > { %v13866_v8 = vpack.c.bf16 %v6891_v60, %v6890_v46  ;;  %v5897_v36 = vadd.f32 %v5896_v41, %v5847_v7  ;;  %v5752_v39 = vpop.f32.mrf.mxu0  ;;  %v5801_v62 = vpop.f32.mrf.mxu1  ;;  %v5001_v45 = vsel %vm4873_vm10, %v3849_v10, %v4745_v21  ;;  %6427 = vmatpush.bf16.msrb.mxu2 %v13236_v1  ;;  %v4989_v10 = vsel %vm4861_vm0, %v13753_v26, %v4733_v17 }
 0x4c4   : > { %v5802_v35 = vadd.f32 %v5801_v62, %v5752_v39  ;;  %v5480_v3 = vunpack.c.l.b16 %v5001_v45  ;;  %v5481_v47 = vunpack.c.h.b16 %v5001_v45  ;;  %v13885_v18 = vpop.permute.xlu0 %6640  ;;  %v5456_v26 = vunpack.c.l.b16 %v4989_v10 }
 0x4c5   : > { %v6526_v2 = vpack.c.bf16 %v5897_v36, %v5799_v24  ;;  %5947 = vmatmul.bf16.gmra.mxu0 %v13378_v12  ;;  %6045 = vmatmul.bf16.gmra.mxu2 %v13378_v12  ;;  %v7082_v16 = vunpack.c.l.bf16 %v13866_v8  ;;  %v7083_v25 = vunpack.c.h.bf16 %v13866_v8  ;;  %v5457_v34 = vunpack.c.h.b16 %v4989_v10  ;;  %v17105_v10 = vld [vmem:[#allocation35_spill] sm:$0xff] }
 0x4c6   : > { %5996 = vmatmul.bf16.gmra.mxu1 %v13380_v11  ;;  %v5608_v1 = vpack.c.b16 %v5480_v3, %v5472_v61  ;;  %v5609_v29 = vpack.c.b16 %v5481_v47, %v5473_v15  ;;  %6330 = vmatpush.bf16.msrb.mxu0 %v13198_v9  ;;  %v5600_v46 = vpack.c.b16 %v5464_v53, %v5456_v26  ;;  %v5448_v7 = vunpack.c.l.b16 %v4985_v43 }
 0x4c7   : > { %v6754_v24 = vunpack.c.l.bf16 %v6526_v2  ;;  %v6755_v6 = vunpack.c.h.bf16 %v6526_v2  ;;  %6094 = vmatmul.bf16.gmra.mxu3 %v13380_v11  ;;  %6428 = vmatpush.bf16.msrb.mxu2 %v13200_v20  ;;  %v5601_v60 = vpack.c.b16 %v5465_v37, %v5457_v34  ;;  %v5449_v21 = vunpack.c.h.b16 %v4985_v43  ;;  %v17108_v43 = vld [vmem:[#allocation64_spill] sm:$0xff] }
 0x4c8   : > { %6375 = vmatpush.bf16.msrb.mxu1 %v5608_v1  ;;  %6473 = vmatpush.bf16.msrb.mxu3 %v5609_v29  ;;  %v5850_v28 = vpop.f32.mrf.mxu2  ;;  %v7338_v19 = vmul.f32 0.20019531, %v7082_v16  ;;  %v7339_v54 = vmul.f32 0.20019531, %v7083_v25  ;;  %v5440_v36 = vunpack.c.l.b16 %v4981_v51  ;;  %v5441_v39 = vunpack.c.h.b16 %v4981_v51 }
 0x4c9   : > { %v6898_v14 = vadd.f32 %v13847_v52, %v6754_v24  ;;  %v6899_v9 = vadd.f32 %v13847_v52, %v6755_v6  ;;  %v13903_v61 = vunpack.c.l.bf16 %v6628_v31  ;;  %vm13905_vm15 = vcmp.gt.f32.partialorder %v7082_v16, 0.0 }
 0x4ca   : > { %v5899_v20 = vpop.f32.mrf.mxu3  ;;  %6331 = vmatpush.bf16.msrb.mxu0 %v13162_v59  ;;  %v5592_v3 = vpack.c.b16 %v5448_v7, %v5440_v36  ;;  %v5593_v15 = vpack.c.b16 %v5449_v21, %v5441_v39  ;;  %vm13910_vm1 = vcmp.gt.f32.partialorder %v7083_v25, 0.0 }
 0x4cb   : > { %v7022_v17 = vpack.c.bf16 %v6899_v9, %v6898_v14  ;;  %v5900_v41 = vadd.f32 %v5899_v20, %v5850_v28  ;;  %v5754_v48 = vpop.f32.mrf.mxu0  ;;  %v5803_v58 = vpop.f32.mrf.mxu1  ;;  %6429 = vmatpush.bf16.msrb.mxu2 %v17102_v63  ;;  %vm7530_vm4 = vmpackc.low %vm13910_vm1, %vm13905_vm15  ;;  %v17113_v28 = vld [vmem:[#allocation42_spill] sm:$0xff] }
 0x4cc   : > { %v5804_v42 = vadd.f32 %v5803_v58, %v5754_v48  ;;  %6376 = vmatpush.bf16.msrb.mxu1 %v5600_v46  ;;  %6474 = vmatpush.bf16.msrb.mxu3 %v5601_v60  ;;  %v6632_v24 = vpop.permute.xlu0 %6631  ;;  %v17114_v60 = vld [vmem:[#allocation69_spill] sm:$0xff] }
 0x4cd   : > { %v6530_v50 = vpack.c.bf16 %v5900_v41, %v5802_v35  ;;  %v7090_v62 = vunpack.c.l.bf16 %v7022_v17  ;;  %v7091_v45 = vunpack.c.h.bf16 %v7022_v17  ;;  %v7466_v35 = vpack.c.bf16 %v7339_v54, %v7338_v19 }
 0x4ce   : > { %6332 = vmatpush.bf16.msrb.mxu0 %v17105_v10  ;;  %v6637_v26 = vperm.slane %v6632_v24, %v17073_v56 }
 0x4cf   : > { %v6762_v47 = vunpack.c.l.bf16 %v6530_v50  ;;  %v6763_v2 = vunpack.c.h.bf16 %v6530_v50  ;;  %6430 = vmatpush.bf16.msrb.mxu2 %v17108_v43  ;;  %vm13915_vm2 = vcmp.gt.f32.partialorder %v7090_v62, 0.0  ;;  %vm13919_vm3 = vcmp.gt.f32.partialorder %v7091_v45, 0.0 }
 0x4d0   : > { %6377 = vmatpush.bf16.msrb.mxu1 %v5592_v3  ;;  %v7346_v53 = vmul.f32 0.20019531, %v7090_v62  ;;  %v7347_v37 = vmul.f32 0.20019531, %v7091_v45  ;;  %6475 = vmatpush.bf16.msrb.mxu3 %v5593_v15  ;;  %v5852_v25 = vpop.f32.mrf.mxu2  ;;  %vm7534_vm5 = vmpackc.low %vm13919_vm3, %vm13915_vm2  ;;  %v7594_v46 = vsel %vm7530_vm4, %v13866_v8, %v7466_v35  ;;  %v13942_v58 = vunpack.c.l.bf16 %v6637_v26 }
 0x4d1   : > { %v6906_v6 = vadd.f32 %v13903_v61, %v6762_v47  ;;  %v6907_v16 = vadd.f32 %v13903_v61, %v6763_v2  ;;  %v7754_v19 = vunpack.c.l.b16 %v7594_v46  ;;  %v7755_v8 = vunpack.c.h.b16 %v7594_v46 }
 0x4d2   : > { %v5901_v34 = vpop.f32.mrf.mxu3  ;;  %v7470_v31 = vpack.c.bf16 %v7347_v37, %v7346_v53  ;;  %6333 = vmatpush.bf16.msrb.mxu0 %v17113_v28  ;;  %v6646_v45 = vperm.slane %v13885_v18, %v17073_v56 }
 0x4d3   : > { %v13930_v14 = vpack.c.bf16 %v6907_v16, %v6906_v6  ;;  %v5902_v9 = vadd.f32 %v5901_v34, %v5852_v25  ;;  %v5757_v51 = vpop.f32.mrf.mxu0  ;;  %v5806_v20 = vpop.f32.mrf.mxu1  ;;  %6431 = vmatpush.bf16.msrb.mxu2 %v17114_v60 }
 0x4d4   : > { %v5807_v7 = vadd.f32 %v5806_v20, %v5757_v51  ;;  %6378 = vmatpush.bf16.msrb.mxu1 %v13696_v30  ;;  %v7598_v21 = vsel %vm7534_vm5, %v7022_v17, %v7470_v31  ;;  %6476 = vmatpush.bf16.msrb.mxu3 %v13698_v49 }
 0x4d5   : > { %v6534_v41 = vpack.c.bf16 %v5902_v9, %v5804_v42  ;;  %5952 = vmatmul.bf16.gmra.mxu0 %v13446_v55  ;;  %v7762_v48 = vunpack.c.l.b16 %v7598_v21  ;;  %6050 = vmatmul.bf16.gmra.mxu2 %v13446_v55  ;;  %v7763_v54 = vunpack.c.h.b16 %v7598_v21  ;;  %v7098_v30 = vunpack.c.l.bf16 %v13930_v14  ;;  %v17123_v21 = vld [vmem:[#allocation60_spill] sm:$0xff] }
 0x4d6   : > { %6001 = vmatmul.bf16.gmra.mxu1 %v13448_v44  ;;  %v7099_v49 = vunpack.c.h.bf16 %v13930_v14 }
 0x4d7   : > { %v6770_v63 = vunpack.c.l.bf16 %v6534_v41  ;;  %v6771_v36 = vunpack.c.h.bf16 %v6534_v41  ;;  %6099 = vmatmul.bf16.gmra.mxu3 %v13448_v44  ;;  %v13950_v17 = vpack.c.b16 %v7762_v48, %v7754_v19  ;;  %v13952_v42 = vpack.c.b16 %v7763_v54, %v7755_v8  ;;  %v17124_v19 = vld [vmem:[#allocation31_spill] sm:$0xff] }
 0x4d8   : > { %6379 = vmatpush.bf16.msrb.mxu1 %v13646_v57  ;;  %6477 = vmatpush.bf16.msrb.mxu3 %v13648_v32  ;;  %v5855_v62 = vpop.f32.mrf.mxu2  ;;  %v7354_v57 = vmul.f32 0.20019531, %v7098_v30  ;;  %v7355_v10 = vmul.f32 0.20019531, %v7099_v49  ;;  %v13961_v32 = vunpack.c.l.bf16 %v6646_v45  ;;  %vm13963_vm6 = vcmp.gt.f32.partialorder %v7098_v30, 0.0  ;;  %v17125_v45 = vld [vmem:[#allocation49_spill] sm:$0xff] }
 0x4d9   : > { %v6914_v39 = vadd.f32 %v13942_v58, %v6770_v63  ;;  %v6915_v50 = vadd.f32 %v13942_v58, %v6771_v36  ;;  %vm13967_vm7 = vcmp.gt.f32.partialorder %v7099_v49, 0.0 }
 0x4da   : > { %v5904_v3 = vpop.f32.mrf.mxu3  ;;  %v7474_v24 = vpack.c.bf16 %v7355_v10, %v7354_v57  ;;  %vm7538_vm10 = vmpackc.low %vm13967_vm7, %vm13963_vm6 }
 0x4db   : > { %v7030_v15 = vpack.c.bf16 %v6915_v50, %v6914_v39  ;;  %v5905_v59 = vadd.f32 %v5904_v3, %v5855_v62  ;;  %v5759_v47 = vpop.f32.mrf.mxu0  ;;  %v5808_v2 = vpop.f32.mrf.mxu1  ;;  %v6664_v3 = vperm.slane %v17125_v45, %v17073_v56 }
 0x4dc   : > { %v5809_v23 = vadd.f32 %v5808_v2, %v5759_v47  ;;  %6380 = vmatpush.bf16.msrb.mxu1 %v13585_v13  ;;  %6478 = vmatpush.bf16.msrb.mxu3 %v13587_v22 }
 0x4dd   : > { %v6538_v35 = vpack.c.bf16 %v5905_v59, %v5807_v7  ;;  %v7106_v43 = vunpack.c.l.bf16 %v7030_v15  ;;  %v7107_v1 = vunpack.c.h.bf16 %v7030_v15 }
 0x4df   : > { %v6778_v18 = vunpack.c.l.bf16 %v6538_v35  ;;  %v6779_v53 = vunpack.c.h.bf16 %v6538_v35  ;;  %vm13972_vm8 = vcmp.gt.f32.partialorder %v7106_v43, 0.0  ;;  %vm13976_vm9 = vcmp.gt.f32.partialorder %v7107_v1, 0.0 }
 0x4e0   : > { %6381 = vmatpush.bf16.msrb.mxu1 %v13528_v4  ;;  %v7362_v6 = vmul.f32 0.20019531, %v7106_v43  ;;  %v7363_v16 = vmul.f32 0.20019531, %v7107_v1  ;;  %6479 = vmatpush.bf16.msrb.mxu3 %v13530_v38  ;;  %v5857_v34 = vpop.f32.mrf.mxu2  ;;  %v6655_v4 = vperm.slane %v13725_v0, %v17073_v56  ;;  %vm7542_vm11 = vmpackc.low %vm13976_vm9, %vm13972_vm8  ;;  %v7602_v38 = vsel %vm7538_vm10, %v13930_v14, %v7474_v24 }
 0x4e1   : > { %v6922_v25 = vadd.f32 %v13961_v32, %v6778_v18  ;;  %v6923_v26 = vadd.f32 %v13961_v32, %v6779_v53  ;;  %v7770_v8 = vunpack.c.l.b16 %v7602_v38  ;;  %v7771_v54 = vunpack.c.h.b16 %v7602_v38 }
 0x4e2   : > { %v5906_v31 = vpop.f32.mrf.mxu3  ;;  %v7478_v9 = vpack.c.bf16 %v7363_v16, %v7362_v6  ;;  %v13999_v48 = vunpack.c.l.bf16 %v6655_v4  ;;  %v14014_v18 = vunpack.c.l.bf16 %v6664_v3 }
 0x4e3   : > { %v13989_v28 = vpack.c.bf16 %v6923_v26, %v6922_v25  ;;  %v5907_v51 = vadd.f32 %v5906_v31, %v5857_v34  ;;  %v5762_v20 = vpop.f32.mrf.mxu0  ;;  %v5811_v46 = vpop.f32.mrf.mxu1 }
 0x4e4   : > { %v5812_v0 = vadd.f32 %v5811_v46, %v5762_v20  ;;  %6382 = vmatpush.bf16.msrb.mxu1 %v13471_v5  ;;  %v7606_v60 = vsel %vm7542_vm11, %v7030_v15, %v7478_v9  ;;  %6480 = vmatpush.bf16.msrb.mxu3 %v13473_v40  ;;  %v17134_v9 = vld [vmem:[#allocation54_spill] sm:$0xff] }
 0x4e5   : > { %v6542_v7 = vpack.c.bf16 %v5907_v51, %v5809_v23  ;;  %5957 = vmatmul.bf16.gmra.mxu0 %v17123_v21  ;;  %v7778_v41 = vunpack.c.l.b16 %v7606_v60  ;;  %6055 = vmatmul.bf16.gmra.mxu2 %v17123_v21  ;;  %v7779_v63 = vunpack.c.h.b16 %v7606_v60  ;;  %v7114_v5 = vunpack.c.l.bf16 %v13989_v28 }
 0x4e6   : > { %6006 = vmatmul.bf16.gmra.mxu1 %v17124_v19  ;;  %v7115_v40 = vunpack.c.h.bf16 %v13989_v28  ;;  %v6673_v51 = vperm.slane %v17134_v9, %v17073_v56 }
 0x4e7   : > { %v6786_v14 = vunpack.c.l.bf16 %v6542_v7  ;;  %v6787_v36 = vunpack.c.h.bf16 %v6542_v7  ;;  %6104 = vmatmul.bf16.gmra.mxu3 %v17124_v19  ;;  %v14006_v30 = vpack.c.b16 %v7778_v41, %v7770_v8  ;;  %v14008_v49 = vpack.c.b16 %v7779_v63, %v7771_v54 }
 0x4e8   : > { %v5860_v62 = vpop.f32.mrf.mxu2  ;;  %v7370_v10 = vmul.f32 0.20019531, %v7114_v5  ;;  %v7371_v23 = vmul.f32 0.20019531, %v7115_v40  ;;  %vm14016_vm12 = vcmp.gt.f32.partialorder %v7114_v5, 0.0  ;;  %vm14020_vm13 = vcmp.gt.f32.partialorder %v7115_v40, 0.0  ;;  %v17137_v40 = vld [vmem:[#allocation46_spill] sm:$0xff] }
 0x4e9   : > { %v6930_v39 = vadd.f32 %v13999_v48, %v6786_v14  ;;  %v6931_v50 = vadd.f32 %v13999_v48, %v6787_v36  ;;  %vm7546_vm15 = vmpackc.low %vm14020_vm13, %vm14016_vm12  ;;  %v17135_v14 = vld [vmem:[#allocation61_spill] sm:$0xff]  ;;  %v14046_v5 = vunpack.c.l.bf16 %v6673_v51 }
 0x4ea   : > { %v5909_v15 = vpop.f32.mrf.mxu3  ;;  %v7482_v22 = vpack.c.bf16 %v7371_v23, %v7370_v10  ;;  %v17138_v23 = vld [vmem:[#allocation76_spill] sm:$0xff] }
 0x4eb   : > { %v7038_v59 = vpack.c.bf16 %v6931_v50, %v6930_v39  ;;  %v5910_v47 = vadd.f32 %v5909_v15, %v5860_v62  ;;  %v5764_v2 = vpop.f32.mrf.mxu0  ;;  %v5813_v57 = vpop.f32.mrf.mxu1  ;;  %17136 = vst [vmem:[#allocation4_spill] sm:$0xff] %v14046_v5 }
 0x4ec   : > { %v5814_v35 = vadd.f32 %v5813_v57, %v5764_v2  ;;  %v7610_v41 = vsel %vm7546_vm15, %v13989_v28, %v7482_v22 }
 0x4ed   : > { %v6546_v43 = vpack.c.bf16 %v5910_v47, %v5812_v0  ;;  %v7122_v1 = vunpack.c.l.bf16 %v7038_v59  ;;  %v7123_v29 = vunpack.c.h.bf16 %v7038_v59  ;;  %v7786_v39 = vunpack.c.l.b16 %v7610_v41 }
 0x4ee   : > { %v7787_v50 = vunpack.c.h.b16 %v7610_v41 }
 0x4ef   : > { %v6794_v37 = vunpack.c.l.bf16 %v6546_v43  ;;  %v6795_v24 = vunpack.c.h.bf16 %v6546_v43  ;;  %vm14024_vm0 = vcmp.gt.f32.partialorder %v7122_v1, 0.0  ;;  %vm14028_vm14 = vcmp.gt.f32.partialorder %v7123_v29, 0.0 }
 0x4f0   : > { %v7378_v25 = vmul.f32 0.20019531, %v7122_v1  ;;  %v7379_v26 = vmul.f32 0.20019531, %v7123_v29  ;;  %v5862_v31 = vpop.f32.mrf.mxu2  ;;  %vm7550_vm1 = vmpackc.low %vm14028_vm14, %vm14024_vm0 }
 0x4f1   : > { %v6938_v34 = vadd.f32 %v14014_v18, %v6794_v37  ;;  %v6939_v4 = vadd.f32 %v14014_v18, %v6795_v24 }
 0x4f2   : > { %v5911_v20 = vpop.f32.mrf.mxu3  ;;  %v7486_v46 = vpack.c.bf16 %v7379_v26, %v7378_v25 }
 0x4f3   : > { %v7042_v38 = vpack.c.bf16 %v6939_v4, %v6938_v34  ;;  %v5912_v0 = vadd.f32 %v5911_v20, %v5862_v31  ;;  %v5767_v60 = vpop.f32.mrf.mxu0  ;;  %v5816_v7 = vpop.f32.mrf.mxu1 }
 0x4f4   : > { %v5817_v8 = vadd.f32 %v5816_v7, %v5767_v60  ;;  %v7614_v54 = vsel %vm7550_vm1, %v7038_v59, %v7486_v46 }
 0x4f5   : > { %v6550_v63 = vpack.c.bf16 %v5912_v0, %v5814_v35  ;;  %5962 = vmatmul.bf16.gmra.mxu0 %v17135_v14  ;;  %v7794_v36 = vunpack.c.l.b16 %v7614_v54  ;;  %6060 = vmatmul.bf16.gmra.mxu2 %v17135_v14  ;;  %v7795_v62 = vunpack.c.h.b16 %v7614_v54  ;;  %v7130_v28 = vunpack.c.l.bf16 %v7042_v38 }
 0x4f6   : > { %6011 = vmatmul.bf16.gmra.mxu1 %v17137_v40  ;;  %v7131_v15 = vunpack.c.h.bf16 %v7042_v38  ;;  %v6682_v35 = vperm.slane %v17138_v23, %v17073_v56  ;;  %v6691_v54 = vperm.slane %v13808_v33, %v17073_v56 }
 0x4f7   : > { %v6802_v45 = vunpack.c.l.bf16 %v6550_v63  ;;  %v6803_v3 = vunpack.c.h.bf16 %v6550_v63  ;;  %6109 = vmatmul.bf16.gmra.mxu3 %v17137_v40  ;;  %v14051_v59 = vpack.c.b16 %v7794_v36, %v7786_v39  ;;  %v14053_v47 = vpack.c.b16 %v7795_v62, %v7787_v50 }
 0x4f8   : > { %v5865_v10 = vpop.f32.mrf.mxu2  ;;  %v7386_v24 = vmul.f32 0.20019531, %v7130_v28  ;;  %v7387_v13 = vmul.f32 0.20019531, %v7131_v15  ;;  %v14059_v26 = vunpack.c.l.bf16 %v6682_v35  ;;  %vm14061_vm2 = vcmp.gt.f32.partialorder %v7130_v28, 0.0 }
 0x4f9   : > { %v6946_v2 = vadd.f32 %v14046_v5, %v6802_v45  ;;  %v6947_v57 = vadd.f32 %v14046_v5, %v6803_v3  ;;  %vm14065_vm3 = vcmp.gt.f32.partialorder %v7131_v15, 0.0  ;;  %v17148_v15 = vld [vmem:[#allocation80_spill] sm:$0xff] }
 0x4fa   : > { %v5914_v43 = vpop.f32.mrf.mxu3  ;;  %17139 = vst [vmem:[#allocation5_spill] sm:$0xff] %v14059_v26  ;;  %v7490_v51 = vpack.c.bf16 %v7387_v13, %v7386_v24  ;;  %vm7554_vm6 = vmpackc.low %vm14065_vm3, %vm14061_vm2 }
 0x4fb   : > { %v7046_v1 = vpack.c.bf16 %v6947_v57, %v6946_v2  ;;  %v5915_v29 = vadd.f32 %v5914_v43, %v5865_v10  ;;  %v5769_v53 = vpop.f32.mrf.mxu0  ;;  %v5818_v37 = vpop.f32.mrf.mxu1  ;;  %v14092_v57 = vunpack.c.l.bf16 %v6691_v54  ;;  %v17150_v10 = vld [vmem:[#allocation81_spill] sm:$0xff] }
 0x4fc   : > { %v5819_v22 = vadd.f32 %v5818_v37, %v5769_v53  ;;  %v7618_v3 = vsel %vm7554_vm6, %v7042_v38, %v7490_v51 }
 0x4fd   : > { %v6554_v6 = vpack.c.bf16 %v5915_v29, %v5817_v8  ;;  %v7138_v16 = vunpack.c.l.bf16 %v7046_v1  ;;  %v7139_v25 = vunpack.c.h.bf16 %v7046_v1  ;;  %17149 = vst [vmem:[#allocation6_spill] sm:$0xff] %v14092_v57  ;;  %v7802_v23 = vunpack.c.l.b16 %v7618_v3 }
 0x4fe   : > { %v7803_v35 = vunpack.c.h.b16 %v7618_v3  ;;  %v17151_v3 = vld [vmem:[#allocation79_spill] sm:$0xff] }
 0x4ff   : > { %v6810_v4 = vunpack.c.l.bf16 %v6554_v6  ;;  %v6811_v31 = vunpack.c.h.bf16 %v6554_v6  ;;  %vm14069_vm4 = vcmp.gt.f32.partialorder %v7138_v16, 0.0  ;;  %vm14073_vm5 = vcmp.gt.f32.partialorder %v7139_v25, 0.0 }
 0x500   : > { %v7394_v0 = vmul.f32 0.20019531, %v7138_v16  ;;  %v7395_v60 = vmul.f32 0.20019531, %v7139_v25  ;;  %v5867_v8 = vpop.f32.mrf.mxu2  ;;  %vm7558_vm7 = vmpackc.low %vm14073_vm5, %vm14069_vm4 }
 0x501   : > { %v6954_v7 = vadd.f32 %v14059_v26, %v6810_v4  ;;  %v6955_v41 = vadd.f32 %v14059_v26, %v6811_v31 }
 0x502   : > { %v5916_v63 = vpop.f32.mrf.mxu3  ;;  %v7494_v36 = vpack.c.bf16 %v7395_v60, %v7394_v0 }
 0x503   : > { %v7050_v39 = vpack.c.bf16 %v6955_v41, %v6954_v7  ;;  %v5917_v50 = vadd.f32 %v5916_v63, %v5867_v8  ;;  %v14085_v62 = vpop.f32.mrf.mxu0  ;;  %v5821_v45 = vpop.f32.mrf.mxu1 }
 0x504   : > { %v7622_v28 = vsel %vm7558_vm7, %v7046_v1, %v7494_v36 }
 0x505   : > { %v6558_v33 = vpack.c.bf16 %v5917_v50, %v5819_v22  ;;  %5967 = vmatmul.bf16.gmra.mxu0 %v17148_v15  ;;  %v7810_v2 = vunpack.c.l.b16 %v7622_v28  ;;  %6065 = vmatmul.bf16.gmra.mxu2 %v17148_v15  ;;  %v7811_v43 = vunpack.c.h.b16 %v7622_v28  ;;  %v7146_v37 = vunpack.c.l.bf16 %v7050_v39 }
 0x506   : > { %6016 = vmatmul.bf16.gmra.mxu1 %v17150_v10  ;;  %v7147_v38 = vunpack.c.h.bf16 %v7050_v39 }
 0x507   : > { %v6818_v29 = vunpack.c.l.bf16 %v6558_v33  ;;  %v6819_v53 = vunpack.c.h.bf16 %v6558_v33  ;;  %6114 = vmatmul.bf16.gmra.mxu3 %v17150_v10  ;;  %v14097_v1 = vpack.c.b16 %v7810_v2, %v7802_v23  ;;  %v14099_v24 = vpack.c.b16 %v7811_v43, %v7803_v35  ;;  %v17152_v33 = vld [vmem:[#allocation52_spill] sm:$0xff] }
 0x508   : > { %v5870_v6 = vpop.f32.mrf.mxu2  ;;  %v7402_v31 = vmul.f32 0.20019531, %v7146_v37  ;;  %v7403_v9 = vmul.f32 0.20019531, %v7147_v38  ;;  %vm7274_vm8 = vcmp.gt.f32.partialorder %v7146_v37, 0.0  ;;  %vm7275_vm9 = vcmp.gt.f32.partialorder %v7147_v38, 0.0 }
 0x509   : > { %v6962_v13 = vadd.f32 %v14092_v57, %v6818_v29  ;;  %v6963_v22 = vadd.f32 %v14092_v57, %v6819_v53  ;;  %vm7562_vm12 = vmpackc.low %vm7275_vm9, %vm7274_vm8 }
 0x50a   : > { %v5919_v16 = vpop.f32.mrf.mxu3  ;;  %v7498_v46 = vpack.c.bf16 %v7403_v9, %v7402_v31 }
 0x50b   : > { %v7054_v25 = vpack.c.bf16 %v6963_v22, %v6962_v13  ;;  %v5774_v34 = vpop.f32.mrf.mxu0  ;;  %v5823_v4 = vpop.f32.mrf.mxu1  ;;  %v5822_v22 = vadd.f32 %v5821_v45, %v14085_v62 }
 0x50c   : > { %v7626_v36 = vsel %vm7562_vm12, %v7050_v39, %v7498_v46  ;;  %v5824_v31 = vadd.f32 %v5823_v4, %v5774_v34 }
 0x50d   : > { %v7154_v51 = vunpack.c.l.bf16 %v7054_v25  ;;  %v7155_v20 = vunpack.c.h.bf16 %v7054_v25  ;;  %v7818_v2 = vunpack.c.l.b16 %v7626_v36  ;;  %v7819_v23 = vunpack.c.h.b16 %v7626_v36 }
 0x50f   : > { %vm7282_vm10 = vcmp.gt.f32.partialorder %v7154_v51, 0.0  ;;  %vm7283_vm11 = vcmp.gt.f32.partialorder %v7155_v20, 0.0  ;;  %v7410_v0 = vmul.f32 0.20019531, %v7154_v51  ;;  %v7411_v60 = vmul.f32 0.20019531, %v7155_v20 }
 0x510   : > { %v5872_v7 = vpop.f32.mrf.mxu2  ;;  %vm7566_vm13 = vmpackc.low %vm7283_vm11, %vm7282_vm10 }
 0x511   : > { %v7502_v8 = vpack.c.bf16 %v7411_v60, %v7410_v0 }
 0x512   : > { %v5921_v41 = vpop.f32.mrf.mxu3 }
 0x513   : > { %v5777_v54 = vpop.f32.mrf.mxu0  ;;  %v5826_v63 = vpop.f32.mrf.mxu1  ;;  %v7630_v50 = vsel %vm7566_vm13, %v7054_v25, %v7502_v8  ;;  %v5922_v13 = vadd.f32 %v5921_v41, %v5872_v7  ;;  %v5920_v25 = vadd.f32 %v5919_v16, %v5870_v6  ;;  %v17155_v41 = vld [vmem:[#allocation77_spill] sm:$0xff]  ;;  %v17156_v16 = vld [vmem:[#allocation2_spill] sm:$0xff] }
 0x514   : > { %v7826_v28 = vunpack.c.l.b16 %v7630_v50  ;;  %v7827_v35 = vunpack.c.h.b16 %v7630_v50  ;;  %v5827_v46 = vadd.f32 %v5826_v63, %v5777_v54  ;;  %v17153_v50 = vld [vmem:[#allocation58_spill] sm:$0xff]  ;;  %v17158_v54 = vld [vmem:[#allocation55_spill] sm:$0xff] }
 0x515   : > { %5972 = vmatmul.bf16.gmra.mxu0 %v17151_v3  ;;  %6070 = vmatmul.bf16.gmra.mxu2 %v17151_v3  ;;  %v6566_v51 = vpack.c.bf16 %v5922_v13, %v5824_v31  ;;  %v6727_v63 = vperm.slane %v17158_v54, %v17073_v56 }
 0x516   : > { %6021 = vmatmul.bf16.gmra.mxu1 %v17152_v33  ;;  %v14107_v43 = vpack.c.b16 %v7826_v28, %v7818_v2  ;;  %v14109_v29 = vpack.c.b16 %v7827_v35, %v7819_v23  ;;  %v6709_v28 = vperm.slane %v17153_v50, %v17073_v56  ;;  %v6562_v2 = vpack.c.bf16 %v5920_v25, %v5822_v22  ;;  %v17154_v35 = vld [vmem:[#allocation59_spill] sm:$0xff]  ;;  %v17161_v22 = vld [vmem:[#allocation53_spill] sm:$0xff] }
 0x517   : > { %6119 = vmatmul.bf16.gmra.mxu3 %v17152_v33  ;;  %v6700_v7 = vperm.slane %v17154_v35, %v17073_v56  ;;  %v6834_v62 = vunpack.c.l.bf16 %v6566_v51  ;;  %v6835_v45 = vunpack.c.h.bf16 %v6566_v51  ;;  %v6736_v25 = vperm.slane %v17161_v22, %v17073_v56 }
 0x518   : > { %v5875_v53 = vpop.f32.mrf.mxu2  ;;  %v14120_v4 = vunpack.c.l.bf16 %v6709_v28  ;;  %v14132_v54 = vunpack.c.l.bf16 %v6727_v63 }
 0x519   : > { %v14126_v13 = vunpack.c.l.bf16 %v6700_v7 }
 0x51a   : > { %v5924_v37 = vpop.f32.mrf.mxu3  ;;  %17157 = vst [vmem:[#allocation7_spill] sm:$0xff] %v14120_v4  ;;  %v6978_v51 = vadd.f32 %v14120_v4, %v6834_v62  ;;  %v14138_v62 = vunpack.c.l.bf16 %v6736_v25 }
 0x51b   : > { %v5779_v39 = vpop.f32.mrf.mxu0  ;;  %v5828_v38 = vpop.f32.mrf.mxu1  ;;  %v5925_v0 = vadd.f32 %v5924_v37, %v5875_v53  ;;  %v6826_v53 = vunpack.c.l.bf16 %v6562_v2  ;;  %v6827_v37 = vunpack.c.h.bf16 %v6562_v2  ;;  %17160 = vst [vmem:[#allocation9_spill] sm:$0xff] %v14126_v13 }
 0x51c   : > { %v5829_v23 = vadd.f32 %v5828_v38, %v5779_v39  ;;  %v17159_v39 = vld [vmem:[#allocation78_spill] sm:$0xff]  ;;  %17162 = vst [vmem:[#allocation10_spill] sm:$0xff] %v14132_v54 }
 0x51d   : > { %v6570_v34 = vpack.c.bf16 %v5925_v0, %v5827_v46  ;;  %v6718_v38 = vperm.slane %v17159_v39, %v17073_v56  ;;  %v6970_v7 = vadd.f32 %v14126_v13, %v6826_v53  ;;  %v6971_v39 = vadd.f32 %v14126_v13, %v6827_v37  ;;  %17164 = vst [vmem:[#allocation14_spill] sm:$0xff] %v14138_v62  ;;  %v17168_v13 = vld [vmem:[#allocation30_spill] sm:$0xff] }
 0x51f   : > { %v6842_v50 = vunpack.c.l.bf16 %v6570_v34  ;;  %v6843_v28 = vunpack.c.h.bf16 %v6570_v34  ;;  %v14146_v53 = vpack.c.bf16 %v6971_v39, %v6970_v7 }
 0x520   : > { %v5877_v9 = vpop.f32.mrf.mxu2 }
 0x522   : > { %v5926_v20 = vpop.f32.mrf.mxu3 }
 0x523   : > { %v5927_v60 = vadd.f32 %v5926_v20, %v5877_v9  ;;  %v5782_v8 = vpop.f32.mrf.mxu0  ;;  %v5831_v36 = vpop.f32.mrf.mxu1  ;;  %v6979_v20 = vadd.f32 %v14120_v4, %v6835_v45 }
 0x524   : > { %v5832_v31 = vadd.f32 %v5831_v36, %v5782_v8  ;;  %v14136_v8 = vunpack.c.l.bf16 %v6718_v38 }
 0x525   : > { %5977 = vmatmul.bf16.gmra.mxu0 %v17155_v41  ;;  %v6574_v6 = vpack.c.bf16 %v5927_v60, %v5829_v23  ;;  %6075 = vmatmul.bf16.gmra.mxu2 %v17155_v41  ;;  %v14140_v45 = vpack.c.bf16 %v6979_v20, %v6978_v51 }
 0x526   : > { %6026 = vmatmul.bf16.gmra.mxu1 %v17156_v16  ;;  %17163 = vst [vmem:[#allocation12_spill] sm:$0xff] %v14136_v8  ;;  %v6986_v22 = vadd.f32 %v14136_v8, %v6842_v50  ;;  %v6987_v63 = vadd.f32 %v14136_v8, %v6843_v28 }
 0x527   : > { %6124 = vmatmul.bf16.gmra.mxu3 %v17156_v16  ;;  %v6850_v46 = vunpack.c.l.bf16 %v6574_v6  ;;  %v6851_v0 = vunpack.c.h.bf16 %v6574_v6  ;;  %v7171_v50 = vunpack.c.h.bf16 %v14140_v45 }
 0x528   : > { %v5880_v9 = vpop.f32.mrf.mxu2  ;;  %v14156_v28 = vpack.c.bf16 %v6987_v63, %v6986_v22 }
 0x529   : > { %v6994_v6 = vadd.f32 %v14132_v54, %v6850_v46  ;;  %v6995_v34 = vadd.f32 %v14132_v54, %v6851_v0  ;;  %v7170_v0 = vunpack.c.l.bf16 %v14140_v45  ;;  %vm14186_vm14 = vcmp.gt.f32.partialorder %v7171_v50, 0.0 }
 0x52a   : > { %v5929_v60 = vpop.f32.mrf.mxu3 }
 0x52b   : > { %v5930_v2 = vadd.f32 %v5929_v60, %v5880_v9  ;;  %v5784_v23 = vpop.f32.mrf.mxu0  ;;  %v5833_v35 = vpop.f32.mrf.mxu1  ;;  %v14152_v20 = vpack.c.bf16 %v6995_v34, %v6994_v6  ;;  %v17166_v6 = vld [vmem:[#allocation65_spill] sm:$0xff]  ;;  %v7163_v34 = vunpack.c.h.bf16 %v14146_v53  ;;  %v14167_v22 = vmul.f32 0.20019531, %v7170_v0 }
 0x52c   : > { %v5834_v7 = vadd.f32 %v5833_v35, %v5784_v23  ;;  %vm14182_vm0 = vcmp.gt.f32.partialorder %v7170_v0, 0.0 }
 0x52d   : > { %v6578_v36 = vpack.c.bf16 %v5930_v2, %v5832_v31  ;;  %v17165_v31 = vld [vmem:[#allocation3_spill] sm:$0xff]  ;;  %v7186_v23 = vunpack.c.l.bf16 %v14152_v20  ;;  %v7187_v35 = vunpack.c.h.bf16 %v14152_v20  ;;  %vm14245_vm12 = vcmp.gt.f32.partialorder %v7163_v34, 0.0  ;;  %vm7574_vm13 = vmpackc.low %vm14186_vm14, %vm14182_vm0 }
 0x52e   : > { %v6745_v51 = vperm.slane %v17165_v31, %v17073_v56 }
 0x52f   : > { %v6858_v9 = vunpack.c.l.bf16 %v6578_v36  ;;  %v6859_v60 = vunpack.c.h.bf16 %v6578_v36  ;;  %v7442_v4 = vmul.f32 0.20019531, %v7186_v23  ;;  %v7443_v16 = vmul.f32 0.20019531, %v7187_v35 }
 0x530   : > { %v5882_v25 = vpop.f32.mrf.mxu2  ;;  %v14161_v56 = vunpack.c.l.bf16 %v6745_v51  ;;  %vm14204_vm3 = vcmp.gt.f32.partialorder %v7186_v23, 0.0  ;;  %vm14208_vm4 = vcmp.gt.f32.partialorder %v7187_v35, 0.0 }
 0x531   : > { %v7002_v37 = vadd.f32 %v14138_v62, %v6858_v9  ;;  %v7003_v38 = vadd.f32 %v14138_v62, %v6859_v60  ;;  %v16271_v60 = vunpack.c.l.bf16 %v14146_v53  ;;  %vm7582_vm9 = vmpackc.low %vm14208_vm4, %vm14204_vm3 }
 0x532   : > { %v5931_v46 = vpop.f32.mrf.mxu3  ;;  %17167 = vst [vmem:[#allocation16_spill] sm:$0xff] %v14161_v56 }
 0x533   : > { %v7074_v2 = vpack.c.bf16 %v7003_v38, %v7002_v37  ;;  %v5932_v39 = vadd.f32 %v5931_v46, %v5882_v25  ;;  %v5943_v36 = vpop.f32.mrf.mxu0  ;;  %v5992_v9 = vpop.f32.mrf.mxu1  ;;  %v7178_v38 = vunpack.c.l.bf16 %v14156_v28  ;;  %v14171_v25 = vmul.f32 0.20019531, %v7171_v50 }
 0x534   : > { %v5993_v8 = vadd.f32 %v5992_v9, %v5943_v36 }
 0x535   : > { %v7194_v62 = vunpack.c.l.bf16 %v7074_v2  ;;  %v7195_v54 = vunpack.c.h.bf16 %v7074_v2  ;;  %v6582_v31 = vpack.c.bf16 %v5932_v39, %v5834_v7  ;;  %6138 = vmatmul.bf16.vlgmr.msra.gmra.mxu0 %v17166_v6  ;;  %6236 = vmatmul.bf16.vlgmr.msra.gmra.mxu2 %v17166_v6  ;;  %v14175_v7 = vmul.f32 0.20019531, %v16271_v60 }
 0x536   : > { %6187 = vmatmul.bf16.vlgmr.msra.gmra.mxu1 %v17168_v13  ;;  %v7179_v6 = vunpack.c.h.bf16 %v14156_v28  ;;  %v7510_v57 = vpack.c.bf16 %v14171_v25, %v14167_v22  ;;  %vm14200_vm2 = vcmp.gt.f32.partialorder %v7178_v38, 0.0 }
 0x537   : > { %v6866_v63 = vunpack.c.l.bf16 %v6582_v31  ;;  %v6867_v37 = vunpack.c.h.bf16 %v6582_v31  ;;  %6285 = vmatmul.bf16.vlgmr.msra.gmra.mxu3 %v17168_v13  ;;  %v7450_v51 = vmul.f32 0.20019531, %v7194_v62  ;;  %v7451_v46 = vmul.f32 0.20019531, %v7195_v54 }
 0x538   : > { %v6041_v9 = vpop.f32.mrf.mxu2  ;;  %v14180_v31 = vmul.f32 0.20019531, %v7163_v34  ;;  %vm14192_vm15 = vcmp.gt.f32.partialorder %v7194_v62, 0.0  ;;  %vm14196_vm1 = vcmp.gt.f32.partialorder %v7195_v54, 0.0  ;;  %v7518_v54 = vpack.c.bf16 %v7443_v16, %v7442_v4 }
 0x539   : > { %v7010_v39 = vadd.f32 %v14161_v56, %v6866_v63  ;;  %v7011_v36 = vadd.f32 %v14161_v56, %v6867_v37  ;;  %v7434_v56 = vmul.f32 0.20019531, %v7178_v38  ;;  %v7522_v50 = vpack.c.bf16 %v7451_v46, %v7450_v51  ;;  %vm7586_vm5 = vmpackc.low %vm14196_vm1, %vm14192_vm15 }
 0x53a   : > { %v6090_v13 = vpop.f32.mrf.mxu3  ;;  %vm14224_vm8 = vcmp.gt.f32.partialorder %v7179_v6, 0.0  ;;  %v7506_v41 = vpack.c.bf16 %v14180_v31, %v14175_v7  ;;  %v7638_v33 = vsel %vm7574_vm13, %v14140_v45, %v7510_v57 }
 0x53b   : > { %v7078_v60 = vpack.c.bf16 %v7011_v36, %v7010_v39  ;;  %v6091_v63 = vadd.f32 %v6090_v13, %v6041_v9  ;;  %v5945_v3 = vpop.f32.mrf.mxu0  ;;  %v5994_v37 = vpop.f32.mrf.mxu1  ;;  %v7435_v13 = vmul.f32 0.20019531, %v7179_v6  ;;  %v7650_v35 = vsel %vm7586_vm5, %v7074_v2, %v7522_v50  ;;  %vm7578_vm15 = vmpackc.low %vm14224_vm8, %vm14200_vm2 }
 0x53c   : > { %v5995_v10 = vadd.f32 %v5994_v37, %v5945_v3  ;;  %v17189_v2 = vunpack.c.l.bf16 %v14146_v53  ;;  %v7866_v22 = vunpack.c.l.b16 %v7650_v35 }
 0x53d   : > { %v7202_v26 = vunpack.c.l.bf16 %v7078_v60  ;;  %v7203_v5 = vunpack.c.h.bf16 %v7078_v60  ;;  %v6523_v39 = vpack.c.bf16 %v6091_v63, %v5993_v8  ;;  %v7514_v63 = vpack.c.bf16 %v7435_v13, %v7434_v56 }
 0x53e   : > { %vm14241_vm11 = vcmp.gt.f32.partialorder %v17189_v2, 0.0 }
 0x53f   : > { %v7458_v62 = vmul.f32 0.20019531, %v7202_v26  ;;  %v7459_v25 = vmul.f32 0.20019531, %v7203_v5  ;;  %v6748_v51 = vunpack.c.l.bf16 %v6523_v39  ;;  %v6749_v46 = vunpack.c.h.bf16 %v6523_v39  ;;  %vm7570_vm0 = vmpackc.low %vm14245_vm12, %vm14241_vm11 }
 0x540   : > { %vm14216_vm6 = vcmp.gt.f32.partialorder %v7202_v26, 0.0  ;;  %vm14220_vm7 = vcmp.gt.f32.partialorder %v7203_v5, 0.0  ;;  %v6043_v38 = vpop.f32.mrf.mxu2  ;;  %v7646_v26 = vsel %vm7582_vm9, %v14152_v20, %v7518_v54  ;;  %v7867_v54 = vunpack.c.h.b16 %v7650_v35 }
 0x541   : > { %v6892_v4 = vadd.f32 %v13762_v27, %v6748_v51  ;;  %v6893_v15 = vadd.f32 %v13762_v27, %v6749_v46  ;;  %v7526_v9 = vpack.c.bf16 %v7459_v25, %v7458_v62  ;;  %vm7590_vm10 = vmpackc.low %vm14220_vm7, %vm14216_vm6  ;;  %v7858_v36 = vunpack.c.l.b16 %v7646_v26 }
 0x542   : > { %v6092_v5 = vpop.f32.mrf.mxu3  ;;  %v7859_v46 = vunpack.c.h.b16 %v7646_v26  ;;  %v7634_v16 = vsel %vm7570_vm0, %v14146_v53, %v7506_v41 }
 0x543   : > { %v14249_v37 = vpack.c.bf16 %v6893_v15, %v6892_v4  ;;  %v6093_v0 = vadd.f32 %v6092_v5, %v6043_v38  ;;  %v5948_v50 = vpop.f32.mrf.mxu0  ;;  %v5997_v39 = vpop.f32.mrf.mxu1  ;;  %v7654_v13 = vsel %vm7590_vm10, %v7078_v60, %v7526_v9  ;;  %v7642_v60 = vsel %vm7578_vm15, %v14156_v28, %v7514_v63 }
 0x544   : > { %v5998_v20 = vadd.f32 %v5997_v39, %v5948_v50  ;;  %v7874_v3 = vunpack.c.l.b16 %v7654_v13  ;;  %v7875_v62 = vunpack.c.h.b16 %v7654_v13  ;;  %v7850_v7 = vunpack.c.l.b16 %v7642_v60 }
 0x545   : > { %v6527_v34 = vpack.c.bf16 %v6093_v0, %v5995_v10  ;;  %6143 = vmatmul.bf16.gmra.mxu0 %v13378_v12  ;;  %6241 = vmatmul.bf16.gmra.mxu2 %v13378_v12  ;;  %v7084_v10 = vunpack.c.l.bf16 %v14249_v37  ;;  %v7085_v28 = vunpack.c.h.bf16 %v14249_v37  ;;  %v7851_v57 = vunpack.c.h.b16 %v7642_v60 }
 0x546   : > { %6192 = vmatmul.bf16.gmra.mxu1 %v13380_v11  ;;  %v7938_v25 = vpack.c.b16 %v7874_v3, %v7866_v22  ;;  %v7939_v51 = vpack.c.b16 %v7875_v62, %v7867_v54  ;;  %v7930_v15 = vpack.c.b16 %v7858_v36, %v7850_v7  ;;  %v7842_v9 = vunpack.c.l.b16 %v7638_v33 }
 0x547   : > { %v6756_v8 = vunpack.c.l.bf16 %v6527_v34  ;;  %v6757_v23 = vunpack.c.h.bf16 %v6527_v34  ;;  %6290 = vmatmul.bf16.gmra.mxu3 %v13380_v11  ;;  %v7931_v38 = vpack.c.b16 %v7859_v46, %v7851_v57  ;;  %v7843_v63 = vunpack.c.h.b16 %v7638_v33 }
 0x548   : > { %8010 = vmatpush.bf16.msra.mxu0 %v7938_v25  ;;  %8039 = vmatpush.bf16.msra.mxu1 %v7939_v51  ;;  %v6046_v35 = vpop.f32.mrf.mxu2  ;;  %v7340_v6 = vmul.f32 0.20019531, %v7084_v10  ;;  %v7341_v50 = vmul.f32 0.20019531, %v7085_v28  ;;  %v7834_v39 = vunpack.c.l.b16 %v7634_v16  ;;  %v7835_v13 = vunpack.c.h.b16 %v7634_v16 }
 0x549   : > { %v6900_v45 = vadd.f32 %v13847_v52, %v6756_v8  ;;  %v6901_v31 = vadd.f32 %v13847_v52, %v6757_v23  ;;  %vm14276_vm14 = vcmp.gt.f32.partialorder %v7084_v10, 0.0  ;;  %vm14280_vm1 = vcmp.gt.f32.partialorder %v7085_v28, 0.0 }
 0x54a   : > { %v6095_v4 = vpop.f32.mrf.mxu3  ;;  %v7922_v53 = vpack.c.b16 %v7842_v9, %v7834_v39  ;;  %v7923_v62 = vpack.c.b16 %v7843_v63, %v7835_v13  ;;  %v7467_v25 = vpack.c.bf16 %v7341_v50, %v7340_v6  ;;  %vm7531_vm4 = vmpackc.low %vm14280_vm1, %vm14276_vm14 }
 0x54b   : > { %v7023_v5 = vpack.c.bf16 %v6901_v31, %v6900_v45  ;;  %v6096_v26 = vadd.f32 %v6095_v4, %v6046_v35  ;;  %v5950_v2 = vpop.f32.mrf.mxu0  ;;  %v5999_v0 = vpop.f32.mrf.mxu1 }
 0x54c   : > { %v6000_v56 = vadd.f32 %v5999_v0, %v5950_v2  ;;  %8011 = vmatpush.bf16.msra.mxu0 %v7930_v15  ;;  %8040 = vmatpush.bf16.msra.mxu1 %v7931_v38  ;;  %v7595_v16 = vsel %vm7531_vm4, %v14249_v37, %v7467_v25 }
 0x54d   : > { %v6531_v22 = vpack.c.bf16 %v6096_v26, %v5998_v20  ;;  %v7092_v3 = vunpack.c.l.bf16 %v7023_v5  ;;  %v7093_v54 = vunpack.c.h.bf16 %v7023_v5  ;;  %v7756_v63 = vunpack.c.l.b16 %v7595_v16 }
 0x54e   : > { %v7757_v26 = vunpack.c.h.b16 %v7595_v16 }
 0x54f   : > { %v6764_v60 = vunpack.c.l.bf16 %v6531_v22  ;;  %v6765_v41 = vunpack.c.h.bf16 %v6531_v22  ;;  %vm14284_vm2 = vcmp.gt.f32.partialorder %v7092_v3, 0.0  ;;  %vm14288_vm3 = vcmp.gt.f32.partialorder %v7093_v54, 0.0 }
 0x550   : > { %8012 = vmatpush.bf16.msra.mxu0 %v7922_v53  ;;  %8041 = vmatpush.bf16.msra.mxu1 %v7923_v62  ;;  %v7348_v36 = vmul.f32 0.20019531, %v7092_v3  ;;  %v7349_v46 = vmul.f32 0.20019531, %v7093_v54  ;;  %v6048_v10 = vpop.f32.mrf.mxu2  ;;  %vm7535_vm5 = vmpackc.low %vm14288_vm3, %vm14284_vm2 }
 0x551   : > { %v6908_v8 = vadd.f32 %v13903_v61, %v6764_v60  ;;  %v6909_v23 = vadd.f32 %v13903_v61, %v6765_v41 }
 0x552   : > { %v6097_v28 = vpop.f32.mrf.mxu3  ;;  %v7471_v7 = vpack.c.bf16 %v7349_v46, %v7348_v36 }
 0x553   : > { %v14298_v57 = vpack.c.bf16 %v6909_v23, %v6908_v8  ;;  %v6098_v45 = vadd.f32 %v6097_v28, %v6048_v10  ;;  %v5953_v31 = vpop.f32.mrf.mxu0  ;;  %v6002_v35 = vpop.f32.mrf.mxu1 }
 0x554   : > { %v6003_v4 = vadd.f32 %v6002_v35, %v5953_v31  ;;  %8013 = vmatpush.bf16.msra.mxu0 %v14107_v43  ;;  %8042 = vmatpush.bf16.msra.mxu1 %v14109_v29  ;;  %v7599_v15 = vsel %vm7535_vm5, %v7023_v5, %v7471_v7 }
 0x555   : > { %v6535_v38 = vpack.c.bf16 %v6098_v45, %v6000_v56  ;;  %6148 = vmatmul.bf16.gmra.mxu0 %v13446_v55  ;;  %v7764_v9 = vunpack.c.l.b16 %v7599_v15  ;;  %6246 = vmatmul.bf16.gmra.mxu2 %v13446_v55  ;;  %v7765_v2 = vunpack.c.h.b16 %v7599_v15  ;;  %v7100_v43 = vunpack.c.l.bf16 %v14298_v57 }
 0x556   : > { %6197 = vmatmul.bf16.gmra.mxu1 %v13448_v44  ;;  %v7101_v29 = vunpack.c.h.bf16 %v14298_v57 }
 0x557   : > { %v6772_v0 = vunpack.c.l.bf16 %v6535_v38  ;;  %v6773_v6 = vunpack.c.h.bf16 %v6535_v38  ;;  %6295 = vmatmul.bf16.gmra.mxu3 %v13448_v44  ;;  %v14315_v37 = vpack.c.b16 %v7764_v9, %v7756_v63  ;;  %v14317_v5 = vpack.c.b16 %v7765_v2, %v7757_v26 }
 0x558   : > { %8014 = vmatpush.bf16.msra.mxu0 %v14097_v1  ;;  %8043 = vmatpush.bf16.msra.mxu1 %v14099_v24  ;;  %v6051_v39 = vpop.f32.mrf.mxu2  ;;  %v7356_v62 = vmul.f32 0.20019531, %v7100_v43  ;;  %v7357_v34 = vmul.f32 0.20019531, %v7101_v29  ;;  %vm14323_vm6 = vcmp.gt.f32.partialorder %v7100_v43, 0.0  ;;  %vm14327_vm7 = vcmp.gt.f32.partialorder %v7101_v29, 0.0 }
 0x559   : > { %v6916_v50 = vadd.f32 %v13942_v58, %v6772_v0  ;;  %v6917_v56 = vadd.f32 %v13942_v58, %v6773_v6  ;;  %vm7539_vm10 = vmpackc.low %vm14327_vm7, %vm14323_vm6 }
 0x55a   : > { %v6100_v13 = vpop.f32.mrf.mxu3  ;;  %v7475_v36 = vpack.c.bf16 %v7357_v34, %v7356_v62 }
 0x55b   : > { %v7031_v22 = vpack.c.bf16 %v6917_v56, %v6916_v50  ;;  %v6101_v3 = vadd.f32 %v6100_v13, %v6051_v39  ;;  %v5955_v54 = vpop.f32.mrf.mxu0  ;;  %v6004_v53 = vpop.f32.mrf.mxu1 }
 0x55c   : > { %v6005_v60 = vadd.f32 %v6004_v53, %v5955_v54  ;;  %8015 = vmatpush.bf16.msra.mxu0 %v14051_v59  ;;  %8044 = vmatpush.bf16.msra.mxu1 %v14053_v47  ;;  %v7603_v16 = vsel %vm7539_vm10, %v14298_v57, %v7475_v36 }
 0x55d   : > { %v6539_v1 = vpack.c.bf16 %v6101_v3, %v6003_v4  ;;  %v7108_v24 = vunpack.c.l.bf16 %v7031_v22  ;;  %v7109_v41 = vunpack.c.h.bf16 %v7031_v22  ;;  %v7772_v63 = vunpack.c.l.b16 %v7603_v16 }
 0x55e   : > { %v7773_v26 = vunpack.c.h.b16 %v7603_v16 }
 0x55f   : > { %v6780_v25 = vunpack.c.l.bf16 %v6539_v1  ;;  %v6781_v51 = vunpack.c.h.bf16 %v6539_v1  ;;  %vm14333_vm8 = vcmp.gt.f32.partialorder %v7108_v24, 0.0  ;;  %vm14337_vm9 = vcmp.gt.f32.partialorder %v7109_v41, 0.0 }
 0x560   : > { %8016 = vmatpush.bf16.msra.mxu0 %v14006_v30  ;;  %8045 = vmatpush.bf16.msra.mxu1 %v14008_v49  ;;  %v7364_v46 = vmul.f32 0.20019531, %v7108_v24  ;;  %v7365_v8 = vmul.f32 0.20019531, %v7109_v41  ;;  %v6053_v28 = vpop.f32.mrf.mxu2  ;;  %vm7543_vm11 = vmpackc.low %vm14337_vm9, %vm14333_vm8 }
 0x561   : > { %v6924_v23 = vadd.f32 %v13961_v32, %v6780_v25  ;;  %v6925_v10 = vadd.f32 %v13961_v32, %v6781_v51 }
 0x562   : > { %v6102_v7 = vpop.f32.mrf.mxu3  ;;  %v7479_v45 = vpack.c.bf16 %v7365_v8, %v7364_v46 }
 0x563   : > { %v7035_v30 = vpack.c.bf16 %v6925_v10, %v6924_v23  ;;  %v6103_v49 = vadd.f32 %v6102_v7, %v6053_v28  ;;  %v5958_v31 = vpop.f32.mrf.mxu0  ;;  %v6007_v35 = vpop.f32.mrf.mxu1 }
 0x564   : > { %v6008_v4 = vadd.f32 %v6007_v35, %v5958_v31  ;;  %8017 = vmatpush.bf16.msra.mxu0 %v13950_v17  ;;  %8046 = vmatpush.bf16.msra.mxu1 %v13952_v42  ;;  %v7607_v15 = vsel %vm7543_vm11, %v7031_v22, %v7479_v45 }
 0x565   : > { %v6543_v38 = vpack.c.bf16 %v6103_v49, %v6005_v60  ;;  %6153 = vmatmul.bf16.gmra.mxu0 %v17123_v21  ;;  %v7780_v9 = vunpack.c.l.b16 %v7607_v15  ;;  %6251 = vmatmul.bf16.gmra.mxu2 %v17123_v21  ;;  %v7781_v2 = vunpack.c.h.b16 %v7607_v15  ;;  %v7116_v57 = vunpack.c.l.bf16 %v7035_v30 }
 0x566   : > { %6202 = vmatmul.bf16.gmra.mxu1 %v17124_v19  ;;  %v7117_v17 = vunpack.c.h.bf16 %v7035_v30 }
 0x567   : > { %v6788_v0 = vunpack.c.l.bf16 %v6543_v38  ;;  %v6789_v6 = vunpack.c.h.bf16 %v6543_v38  ;;  %6300 = vmatmul.bf16.gmra.mxu3 %v17124_v19  ;;  %v14358_v43 = vpack.c.b16 %v7780_v9, %v7772_v63  ;;  %v14360_v42 = vpack.c.b16 %v7781_v2, %v7773_v26 }
 0x568   : > { %v6056_v56 = vpop.f32.mrf.mxu2  ;;  %v7372_v53 = vmul.f32 0.20019531, %v7116_v57  ;;  %v7373_v62 = vmul.f32 0.20019531, %v7117_v17  ;;  %vm14364_vm12 = vcmp.gt.f32.partialorder %v7116_v57, 0.0  ;;  %vm14368_vm13 = vcmp.gt.f32.partialorder %v7117_v17, 0.0 }
 0x569   : > { %v6932_v29 = vadd.f32 %v13999_v48, %v6788_v0  ;;  %v6933_v50 = vadd.f32 %v13999_v48, %v6789_v6  ;;  %vm7547_vm14 = vmpackc.low %vm14368_vm13, %vm14364_vm12 }
 0x56a   : > { %v6105_v39 = vpop.f32.mrf.mxu3  ;;  %v7483_v20 = vpack.c.bf16 %v7373_v62, %v7372_v53 }
 0x56b   : > { %v7039_v13 = vpack.c.bf16 %v6933_v50, %v6932_v29  ;;  %v6106_v22 = vadd.f32 %v6105_v39, %v6056_v56  ;;  %v5960_v3 = vpop.f32.mrf.mxu0  ;;  %v6009_v54 = vpop.f32.mrf.mxu1  ;;  %v17218_v50 = vld [vmem:[#allocation4_spill] sm:$0xff] }
 0x56c   : > { %v6010_v34 = vadd.f32 %v6009_v54, %v5960_v3  ;;  %v7611_v16 = vsel %vm7547_vm14, %v7035_v30, %v7483_v20 }
 0x56d   : > { %v6547_v60 = vpack.c.bf16 %v6106_v22, %v6008_v4  ;;  %v7124_v1 = vunpack.c.l.bf16 %v7039_v13  ;;  %v7125_v24 = vunpack.c.h.bf16 %v7039_v13  ;;  %v7788_v63 = vunpack.c.l.b16 %v7611_v16 }
 0x56e   : > { %v7789_v26 = vunpack.c.h.b16 %v7611_v16 }
 0x56f   : > { %v6796_v33 = vunpack.c.l.bf16 %v6547_v60  ;;  %v6797_v25 = vunpack.c.h.bf16 %v6547_v60  ;;  %vm14372_vm15 = vcmp.gt.f32.partialorder %v7124_v1, 0.0  ;;  %vm14376_vm0 = vcmp.gt.f32.partialorder %v7125_v24, 0.0 }
 0x570   : > { %v7380_v47 = vmul.f32 0.20019531, %v7124_v1  ;;  %v7381_v46 = vmul.f32 0.20019531, %v7125_v24  ;;  %v6058_v10 = vpop.f32.mrf.mxu2  ;;  %vm7551_vm1 = vmpackc.low %vm14376_vm0, %vm14372_vm15 }
 0x571   : > { %v6940_v8 = vadd.f32 %v14014_v18, %v6796_v33  ;;  %v6941_v23 = vadd.f32 %v14014_v18, %v6797_v25 }
 0x572   : > { %v6107_v28 = vpop.f32.mrf.mxu3  ;;  %v7487_v7 = vpack.c.bf16 %v7381_v46, %v7380_v47 }
 0x573   : > { %v7043_v45 = vpack.c.bf16 %v6941_v23, %v6940_v8  ;;  %v6108_v49 = vadd.f32 %v6107_v28, %v6058_v10  ;;  %v5963_v31 = vpop.f32.mrf.mxu0  ;;  %v6012_v35 = vpop.f32.mrf.mxu1  ;;  %v17227_v10 = vld [vmem:[#allocation5_spill] sm:$0xff] }
 0x574   : > { %v6013_v4 = vadd.f32 %v6012_v35, %v5963_v31  ;;  %v7615_v15 = vsel %vm7551_vm1, %v7039_v13, %v7487_v7 }
 0x575   : > { %v6551_v38 = vpack.c.bf16 %v6108_v49, %v6010_v34  ;;  %6158 = vmatmul.bf16.gmra.mxu0 %v17135_v14  ;;  %v7796_v9 = vunpack.c.l.b16 %v7615_v15  ;;  %6256 = vmatmul.bf16.gmra.mxu2 %v17135_v14  ;;  %v7797_v2 = vunpack.c.h.b16 %v7615_v15  ;;  %v7132_v57 = vunpack.c.l.bf16 %v7043_v45 }
 0x576   : > { %6207 = vmatmul.bf16.gmra.mxu1 %v17137_v40  ;;  %v7133_v17 = vunpack.c.h.bf16 %v7043_v45 }
 0x577   : > { %v6804_v0 = vunpack.c.l.bf16 %v6551_v38  ;;  %v6805_v6 = vunpack.c.h.bf16 %v6551_v38  ;;  %6305 = vmatmul.bf16.gmra.mxu3 %v17137_v40  ;;  %v14394_v30 = vpack.c.b16 %v7796_v9, %v7788_v63  ;;  %v14396_v29 = vpack.c.b16 %v7797_v2, %v7789_v26  ;;  %v17228_v2 = vld [vmem:[#allocation80_spill] sm:$0xff] }
 0x578   : > { %v6061_v13 = vpop.f32.mrf.mxu2  ;;  %v7388_v34 = vmul.f32 0.20019531, %v7132_v57  ;;  %v7389_v60 = vmul.f32 0.20019531, %v7133_v17  ;;  %vm14400_vm2 = vcmp.gt.f32.partialorder %v7132_v57, 0.0  ;;  %vm14404_vm3 = vcmp.gt.f32.partialorder %v7133_v17, 0.0 }
 0x579   : > { %v6948_v56 = vadd.f32 %v17218_v50, %v6804_v0  ;;  %v6949_v39 = vadd.f32 %v17218_v50, %v6805_v6  ;;  %vm7555_vm6 = vmpackc.low %vm14404_vm3, %vm14400_vm2  ;;  %v17229_v6 = vld [vmem:[#allocation81_spill] sm:$0xff] }
 0x57a   : > { %v6110_v22 = vpop.f32.mrf.mxu3  ;;  %v7491_v59 = vpack.c.bf16 %v7389_v60, %v7388_v34 }
 0x57b   : > { %v7047_v3 = vpack.c.bf16 %v6949_v39, %v6948_v56  ;;  %v6111_v54 = vadd.f32 %v6110_v22, %v6061_v13  ;;  %v5965_v53 = vpop.f32.mrf.mxu0  ;;  %v6014_v62 = vpop.f32.mrf.mxu1 }
 0x57c   : > { %v6015_v1 = vadd.f32 %v6014_v62, %v5965_v53  ;;  %v7619_v9 = vsel %vm7555_vm6, %v7043_v45, %v7491_v59 }
 0x57d   : > { %v6555_v24 = vpack.c.bf16 %v6111_v54, %v6013_v4  ;;  %v7140_v41 = vunpack.c.l.bf16 %v7047_v3  ;;  %v7141_v33 = vunpack.c.h.bf16 %v7047_v3  ;;  %v7804_v57 = vunpack.c.l.b16 %v7619_v9 }
 0x57e   : > { %v7805_v17 = vunpack.c.h.b16 %v7619_v9 }
 0x57f   : > { %v6812_v51 = vunpack.c.l.bf16 %v6555_v24  ;;  %v6813_v20 = vunpack.c.h.bf16 %v6555_v24  ;;  %vm14408_vm4 = vcmp.gt.f32.partialorder %v7140_v41, 0.0  ;;  %vm14412_vm5 = vcmp.gt.f32.partialorder %v7141_v33, 0.0 }
 0x580   : > { %v7396_v8 = vmul.f32 0.20019531, %v7140_v41  ;;  %v7397_v23 = vmul.f32 0.20019531, %v7141_v33  ;;  %v6063_v49 = vpop.f32.mrf.mxu2  ;;  %vm7559_vm7 = vmpackc.low %vm14412_vm5, %vm14408_vm4 }
 0x581   : > { %v6956_v28 = vadd.f32 %v17227_v10, %v6812_v51  ;;  %v6957_v7 = vadd.f32 %v17227_v10, %v6813_v20 }
 0x582   : > { %v6112_v31 = vpop.f32.mrf.mxu3  ;;  %v7495_v35 = vpack.c.bf16 %v7397_v23, %v7396_v8 }
 0x583   : > { %v7051_v16 = vpack.c.bf16 %v6957_v7, %v6956_v28  ;;  %v6113_v4 = vadd.f32 %v6112_v31, %v6063_v49  ;;  %v5968_v15 = vpop.f32.mrf.mxu0  ;;  %v6017_v38 = vpop.f32.mrf.mxu1 }
 0x584   : > { %v7623_v63 = vsel %vm7559_vm7, %v7047_v3, %v7495_v35  ;;  %v17230_v3 = vld [vmem:[#allocation6_spill] sm:$0xff] }
 0x585   : > { %v6559_v26 = vpack.c.bf16 %v6113_v4, %v6015_v1  ;;  %6163 = vmatmul.bf16.gmra.mxu0 %v17228_v2  ;;  %v7812_v0 = vunpack.c.l.b16 %v7623_v63  ;;  %6261 = vmatmul.bf16.gmra.mxu2 %v17228_v2  ;;  %v7813_v56 = vunpack.c.h.b16 %v7623_v63  ;;  %v7148_v22 = vunpack.c.l.bf16 %v7051_v16  ;;  %v17231_v4 = vld [vmem:[#allocation79_spill] sm:$0xff]  ;;  %v17232_v63 = vld [vmem:[#allocation52_spill] sm:$0xff] }
 0x586   : > { %6212 = vmatmul.bf16.gmra.mxu1 %v17229_v6  ;;  %v7149_v54 = vunpack.c.h.bf16 %v7051_v16 }
 0x587   : > { %v6820_v39 = vunpack.c.l.bf16 %v6559_v26  ;;  %v6821_v13 = vunpack.c.h.bf16 %v6559_v26  ;;  %6310 = vmatmul.bf16.gmra.mxu3 %v17229_v6  ;;  %v14430_v53 = vpack.c.b16 %v7812_v0, %v7804_v57  ;;  %v14432_v45 = vpack.c.b16 %v7813_v56, %v7805_v17 }
 0x588   : > { %v6066_v60 = vpop.f32.mrf.mxu2  ;;  %v7404_v25 = vmul.f32 0.20019531, %v7148_v22  ;;  %v7405_v51 = vmul.f32 0.20019531, %v7149_v54  ;;  %vm7276_vm8 = vcmp.gt.f32.partialorder %v7148_v22, 0.0  ;;  %vm7277_vm9 = vcmp.gt.f32.partialorder %v7149_v54, 0.0 }
 0x589   : > { %v6964_v62 = vadd.f32 %v17230_v3, %v6820_v39  ;;  %v6965_v34 = vadd.f32 %v17230_v3, %v6821_v13  ;;  %vm7563_vm12 = vmpackc.low %vm7277_vm9, %vm7276_vm8 }
 0x58a   : > { %v6115_v1 = vpop.f32.mrf.mxu3  ;;  %v7499_v59 = vpack.c.bf16 %v7405_v51, %v7404_v25 }
 0x58b   : > { %v7055_v24 = vpack.c.bf16 %v6965_v34, %v6964_v62  ;;  %v5970_v41 = vpop.f32.mrf.mxu0  ;;  %v6019_v33 = vpop.f32.mrf.mxu1  ;;  %v6018_v62 = vadd.f32 %v6017_v38, %v5968_v15  ;;  %v6116_v34 = vadd.f32 %v6115_v1, %v6066_v60 }
 0x58c   : > { %v7627_v31 = vsel %vm7563_vm12, %v7051_v16, %v7499_v59 }
 0x58d   : > { %v7156_v20 = vunpack.c.l.bf16 %v7055_v24  ;;  %v7157_v36 = vunpack.c.h.bf16 %v7055_v24  ;;  %v7820_v26 = vunpack.c.l.b16 %v7627_v31  ;;  %v7821_v0 = vunpack.c.h.b16 %v7627_v31 }
 0x58e   : > { %v6563_v31 = vpack.c.bf16 %v6116_v34, %v6018_v62  ;;  %v17236_v34 = vld [vmem:[#allocation9_spill] sm:$0xff] }
 0x58f   : > { %vm7284_vm10 = vcmp.gt.f32.partialorder %v7156_v20, 0.0  ;;  %vm7285_vm11 = vcmp.gt.f32.partialorder %v7157_v36, 0.0  ;;  %v7412_v47 = vmul.f32 0.20019531, %v7156_v20  ;;  %v7413_v46 = vmul.f32 0.20019531, %v7157_v36 }
 0x590   : > { %v6068_v8 = vpop.f32.mrf.mxu2  ;;  %vm7567_vm13 = vmpackc.low %vm7285_vm11, %vm7284_vm10  ;;  %v6828_v38 = vunpack.c.l.bf16 %v6563_v31  ;;  %v6829_v60 = vunpack.c.h.bf16 %v6563_v31 }
 0x591   : > { %v7503_v28 = vpack.c.bf16 %v7413_v46, %v7412_v47 }
 0x592   : > { %v6117_v23 = vpop.f32.mrf.mxu3 }
 0x593   : > { %v5973_v7 = vpop.f32.mrf.mxu0  ;;  %v6022_v49 = vpop.f32.mrf.mxu1  ;;  %v7631_v35 = vsel %vm7567_vm13, %v7055_v24, %v7503_v28  ;;  %v6118_v54 = vadd.f32 %v6117_v23, %v6068_v8  ;;  %v6020_v24 = vadd.f32 %v6019_v33, %v5970_v41  ;;  %v17235_v33 = vld [vmem:[#allocation7_spill] sm:$0xff] }
 0x594   : > { %v7828_v9 = vunpack.c.l.b16 %v7631_v35  ;;  %v7829_v57 = vunpack.c.h.b16 %v7631_v35  ;;  %v6023_v36 = vadd.f32 %v6022_v49, %v5973_v7 }
 0x595   : > { %6168 = vmatmul.bf16.gmra.mxu0 %v17231_v4  ;;  %6266 = vmatmul.bf16.gmra.mxu2 %v17231_v4  ;;  %v6567_v51 = vpack.c.bf16 %v6118_v54, %v6020_v24  ;;  %v6972_v24 = vadd.f32 %v17236_v34, %v6828_v38 }
 0x596   : > { %6217 = vmatmul.bf16.gmra.mxu1 %v17232_v63  ;;  %v14440_v17 = vpack.c.b16 %v7828_v9, %v7820_v26  ;;  %v14442_v56 = vpack.c.b16 %v7829_v57, %v7821_v0  ;;  %v17233_v9 = vld [vmem:[#allocation77_spill] sm:$0xff] }
 0x597   : > { %6315 = vmatmul.bf16.gmra.mxu3 %v17232_v63  ;;  %v6836_v26 = vunpack.c.l.bf16 %v6567_v51  ;;  %v6837_v0 = vunpack.c.h.bf16 %v6567_v51  ;;  %v17234_v63 = vld [vmem:[#allocation2_spill] sm:$0xff] }
 0x598   : > { %v6071_v39 = vpop.f32.mrf.mxu2 }
 0x599   : > { %v6980_v8 = vadd.f32 %v17235_v33, %v6836_v26  ;;  %v6981_v23 = vadd.f32 %v17235_v33, %v6837_v0 }
 0x59a   : > { %v6120_v13 = vpop.f32.mrf.mxu3 }
 0x59b   : > { %v5975_v16 = vpop.f32.mrf.mxu0  ;;  %v6024_v22 = vpop.f32.mrf.mxu1  ;;  %v6121_v59 = vadd.f32 %v6120_v13, %v6071_v39 }
 0x59c   : > { %v6025_v35 = vadd.f32 %v6024_v22, %v5975_v16 }
 0x59d   : > { %v6571_v15 = vpack.c.bf16 %v6121_v59, %v6023_v36  ;;  %v17237_v36 = vld [vmem:[#allocation10_spill] sm:$0xff] }
 0x59f   : > { %v6844_v13 = vunpack.c.l.bf16 %v6571_v15  ;;  %v6845_v16 = vunpack.c.h.bf16 %v6571_v15 }
 0x5a0   : > { %v6073_v25 = vpop.f32.mrf.mxu2 }
 0x5a2   : > { %v6122_v20 = vpop.f32.mrf.mxu3 }
 0x5a3   : > { %v6123_v47 = vadd.f32 %v6122_v20, %v6073_v25  ;;  %v5978_v46 = vpop.f32.mrf.mxu0  ;;  %v6027_v28 = vpop.f32.mrf.mxu1  ;;  %v6973_v25 = vadd.f32 %v17236_v34, %v6829_v60  ;;  %v14452_v20 = vpack.c.bf16 %v6981_v23, %v6980_v8 }
 0x5a4   : > { %v6028_v1 = vadd.f32 %v6027_v28, %v5978_v46  ;;  %v17238_v46 = vld [vmem:[#allocation12_spill] sm:$0xff] }
 0x5a5   : > { %6173 = vmatmul.bf16.gmra.mxu0 %v17233_v9  ;;  %v6575_v57 = vpack.c.bf16 %v6123_v47, %v6025_v35  ;;  %6271 = vmatmul.bf16.gmra.mxu2 %v17233_v9  ;;  %v6988_v28 = vadd.f32 %v17238_v46, %v6844_v13  ;;  %v6989_v31 = vadd.f32 %v17238_v46, %v6845_v16  ;;  %v7172_v8 = vunpack.c.l.bf16 %v14452_v20 }
 0x5a6   : > { %6222 = vmatmul.bf16.gmra.mxu1 %v17234_v63  ;;  %v14458_v0 = vpack.c.bf16 %v6973_v25, %v6972_v24  ;;  %v7173_v23 = vunpack.c.h.bf16 %v14452_v20 }
 0x5a7   : > { %6320 = vmatmul.bf16.gmra.mxu3 %v17234_v63  ;;  %v6852_v7 = vunpack.c.l.bf16 %v6575_v57  ;;  %v6853_v49 = vunpack.c.h.bf16 %v6575_v57  ;;  %v17239_v57 = vld [vmem:[#allocation14_spill] sm:$0xff]  ;;  %vm14490_vm15 = vcmp.gt.f32.partialorder %v7172_v8, 0.0 }
 0x5a8   : > { %v6076_v41 = vpop.f32.mrf.mxu2  ;;  %v16291_v25 = vunpack.c.l.bf16 %v14458_v0  ;;  %vm14494_vm0 = vcmp.gt.f32.partialorder %v7173_v23, 0.0 }
 0x5a9   : > { %v6996_v59 = vadd.f32 %v17237_v36, %v6852_v7  ;;  %v6997_v47 = vadd.f32 %v17237_v36, %v6853_v49  ;;  %v14466_v7 = vpack.c.bf16 %v6989_v31, %v6988_v28  ;;  %vm7575_vm13 = vmpackc.low %vm14494_vm0, %vm14490_vm15 }
 0x5aa   : > { %v6125_v39 = vpop.f32.mrf.mxu3 }
 0x5ab   : > { %v6126_v22 = vadd.f32 %v6125_v39, %v6076_v41  ;;  %v5980_v54 = vpop.f32.mrf.mxu0  ;;  %v6029_v62 = vpop.f32.mrf.mxu1  ;;  %v7181_v36 = vunpack.c.h.bf16 %v14466_v7 }
 0x5ac   : > { %v6030_v39 = vadd.f32 %v6029_v62, %v5980_v54  ;;  %v14475_v62 = vmul.f32 0.20019531, %v7172_v8 }
 0x5ad   : > { %v6579_v51 = vpack.c.bf16 %v6126_v22, %v6028_v1  ;;  %v14462_v1 = vpack.c.bf16 %v6997_v47, %v6996_v59  ;;  %v17240_v59 = vld [vmem:[#allocation65_spill] sm:$0xff]  ;;  %v7165_v47 = vunpack.c.h.bf16 %v14458_v0  ;;  %vm14532_vm8 = vcmp.gt.f32.partialorder %v7181_v36, 0.0 }
 0x5af   : > { %v6860_v35 = vunpack.c.l.bf16 %v6579_v51  ;;  %v6861_v26 = vunpack.c.h.bf16 %v6579_v51  ;;  %v7188_v28 = vunpack.c.l.bf16 %v14462_v1  ;;  %v7189_v54 = vunpack.c.h.bf16 %v14462_v1 }
 0x5b0   : > { %v6078_v60 = vpop.f32.mrf.mxu2  ;;  %vm14553_vm12 = vcmp.gt.f32.partialorder %v7165_v47, 0.0 }
 0x5b1   : > { %v7004_v15 = vadd.f32 %v17239_v57, %v6860_v35  ;;  %v7005_v38 = vadd.f32 %v17239_v57, %v6861_v26  ;;  %v17241_v57 = vld [vmem:[#allocation30_spill] sm:$0xff]  ;;  %v7444_v34 = vmul.f32 0.20019531, %v7188_v28  ;;  %v7445_v33 = vmul.f32 0.20019531, %v7189_v54 }
 0x5b2   : > { %v6127_v41 = vpop.f32.mrf.mxu3  ;;  %vm14512_vm3 = vcmp.gt.f32.partialorder %v7188_v28, 0.0  ;;  %vm14516_vm4 = vcmp.gt.f32.partialorder %v7189_v54, 0.0 }
 0x5b3   : > { %v7075_v49 = vpack.c.bf16 %v7005_v38, %v7004_v15  ;;  %v6128_v13 = vadd.f32 %v6127_v41, %v6078_v60  ;;  %v6139_v16 = vpop.f32.mrf.mxu0  ;;  %v6188_v22 = vpop.f32.mrf.mxu1  ;;  %v7180_v38 = vunpack.c.l.bf16 %v14466_v7  ;;  %v14479_v60 = vmul.f32 0.20019531, %v7173_v23  ;;  %vm7583_vm9 = vmpackc.low %vm14516_vm4, %vm14512_vm3 }
 0x5b4   : > { %v6189_v24 = vadd.f32 %v6188_v22, %v6139_v16  ;;  %v17242_v16 = vld [vmem:[#allocation16_spill] sm:$0xff] }
 0x5b5   : > { %v7196_v51 = vunpack.c.l.bf16 %v7075_v49  ;;  %v7197_v35 = vunpack.c.h.bf16 %v7075_v49  ;;  %v6583_v26 = vpack.c.bf16 %v6128_v13, %v6030_v39  ;;  %6334 = vmatmul.bf16.vlgmr.msrb.gmra.mxu0 %v17240_v59  ;;  %6432 = vmatmul.bf16.vlgmr.msrb.gmra.mxu2 %v17240_v59  ;;  %v14483_v13 = vmul.f32 0.20019531, %v16291_v25 }
 0x5b6   : > { %6383 = vmatmul.bf16.vlgmr.msrb.gmra.mxu1 %v17241_v57  ;;  %v7511_v3 = vpack.c.bf16 %v14479_v60, %v14475_v62  ;;  %vm14508_vm2 = vcmp.gt.f32.partialorder %v7180_v38, 0.0 }
 0x5b7   : > { %v6868_v31 = vunpack.c.l.bf16 %v6583_v26  ;;  %v6869_v15 = vunpack.c.h.bf16 %v6583_v26  ;;  %6481 = vmatmul.bf16.vlgmr.msrb.gmra.mxu3 %v17241_v57  ;;  %v7452_v41 = vmul.f32 0.20019531, %v7196_v51  ;;  %v7453_v39 = vmul.f32 0.20019531, %v7197_v35 }
 0x5b8   : > { %v6237_v46 = vpop.f32.mrf.mxu2  ;;  %v14488_v26 = vmul.f32 0.20019531, %v7165_v47  ;;  %vm14500_vm14 = vcmp.gt.f32.partialorder %v7196_v51, 0.0  ;;  %vm14504_vm1 = vcmp.gt.f32.partialorder %v7197_v35, 0.0  ;;  %v7519_v51 = vpack.c.bf16 %v7445_v33, %v7444_v34 }
 0x5b9   : > { %v7012_v22 = vadd.f32 %v17242_v16, %v6868_v31  ;;  %v7013_v59 = vadd.f32 %v17242_v16, %v6869_v15  ;;  %v7436_v16 = vmul.f32 0.20019531, %v7180_v38  ;;  %v7523_v23 = vpack.c.bf16 %v7453_v39, %v7452_v41  ;;  %vm7587_vm5 = vmpackc.low %vm14504_vm1, %vm14500_vm14 }
 0x5ba   : > { %v6286_v57 = vpop.f32.mrf.mxu3  ;;  %vm7579_vm14 = vmpackc.low %vm14532_vm8, %vm14508_vm2  ;;  %v7507_v63 = vpack.c.bf16 %v14488_v26, %v14483_v13  ;;  %v7639_v9 = vsel %vm7575_vm13, %v14452_v20, %v7511_v3 }
 0x5bb   : > { %v7079_v25 = vpack.c.bf16 %v7013_v59, %v7012_v22  ;;  %v6287_v31 = vadd.f32 %v6286_v57, %v6237_v46  ;;  %v6141_v4 = vpop.f32.mrf.mxu0  ;;  %v6190_v15 = vpop.f32.mrf.mxu1  ;;  %v7437_v46 = vmul.f32 0.20019531, %v7181_v36  ;;  %v7651_v54 = vsel %vm7587_vm5, %v7075_v49, %v7523_v23 }
 0x5bc   : > { %v6191_v6 = vadd.f32 %v6190_v15, %v6141_v4  ;;  %v17263_v36 = vunpack.c.l.bf16 %v14458_v0  ;;  %v7868_v62 = vunpack.c.l.b16 %v7651_v54 }
 0x5bd   : > { %v7204_v10 = vunpack.c.l.bf16 %v7079_v25  ;;  %v7205_v50 = vunpack.c.h.bf16 %v7079_v25  ;;  %v6524_v22 = vpack.c.bf16 %v6287_v31, %v6189_v24  ;;  %v7515_v31 = vpack.c.bf16 %v7437_v46, %v7436_v16 }
 0x5be   : > { %vm14549_vm11 = vcmp.gt.f32.partialorder %v17263_v36, 0.0 }
 0x5bf   : > { %v7460_v35 = vmul.f32 0.20019531, %v7204_v10  ;;  %v7461_v60 = vmul.f32 0.20019531, %v7205_v50  ;;  %v6750_v41 = vunpack.c.l.bf16 %v6524_v22  ;;  %v6751_v39 = vunpack.c.h.bf16 %v6524_v22  ;;  %vm7571_vm15 = vmpackc.low %vm14553_vm12, %vm14549_vm11 }
 0x5c0   : > { %vm14524_vm6 = vcmp.gt.f32.partialorder %v7204_v10, 0.0  ;;  %vm14528_vm7 = vcmp.gt.f32.partialorder %v7205_v50, 0.0  ;;  %v6239_v38 = vpop.f32.mrf.mxu2  ;;  %v7647_v10 = vsel %vm7583_vm9, %v14462_v1, %v7519_v51  ;;  %v7869_v51 = vunpack.c.h.b16 %v7651_v54 }
 0x5c1   : > { %v6894_v34 = vadd.f32 %v13762_v27, %v6750_v41  ;;  %v6895_v2 = vadd.f32 %v13762_v27, %v6751_v39  ;;  %v7527_v57 = vpack.c.bf16 %v7461_v60, %v7460_v35  ;;  %vm7591_vm10 = vmpackc.low %vm14528_vm7, %vm14524_vm6  ;;  %v7860_v59 = vunpack.c.l.b16 %v7647_v10 }
 0x5c2   : > { %v6288_v50 = vpop.f32.mrf.mxu3  ;;  %v7861_v39 = vunpack.c.h.b16 %v7647_v10 }
 0x5c3   : > { %v14557_v15 = vpack.c.bf16 %v6895_v2, %v6894_v34  ;;  %v6289_v8 = vadd.f32 %v6288_v50, %v6239_v38  ;;  %v6144_v23 = vpop.f32.mrf.mxu0  ;;  %v6193_v22 = vpop.f32.mrf.mxu1  ;;  %v7655_v46 = vsel %vm7591_vm10, %v7079_v25, %v7527_v57  ;;  %v7643_v25 = vsel %vm7579_vm14, %v14466_v7, %v7515_v31 }
 0x5c4   : > { %v6194_v1 = vadd.f32 %v6193_v22, %v6144_v23  ;;  %v7876_v4 = vunpack.c.l.b16 %v7655_v46  ;;  %v7877_v35 = vunpack.c.h.b16 %v7655_v46  ;;  %v7852_v13 = vunpack.c.l.b16 %v7643_v25 }
 0x5c5   : > { %v6528_v47 = vpack.c.bf16 %v6289_v8, %v6191_v6  ;;  %6339 = vmatmul.bf16.gmra.mxu0 %v13378_v12  ;;  %6437 = vmatmul.bf16.gmra.mxu2 %v13378_v12  ;;  %v7086_v6 = vunpack.c.l.bf16 %v14557_v15  ;;  %v7087_v7 = vunpack.c.h.bf16 %v14557_v15  ;;  %v7853_v3 = vunpack.c.h.b16 %v7643_v25 }
 0x5c6   : > { %6388 = vmatmul.bf16.gmra.mxu1 %v13380_v11  ;;  %v7940_v60 = vpack.c.b16 %v7876_v4, %v7868_v62  ;;  %v7941_v41 = vpack.c.b16 %v7877_v35, %v7869_v51  ;;  %v7932_v33 = vpack.c.b16 %v7860_v59, %v7852_v13  ;;  %v7844_v2 = vunpack.c.l.b16 %v7639_v9 }
 0x5c7   : > { %v6758_v24 = vunpack.c.l.bf16 %v6528_v47  ;;  %v6759_v28 = vunpack.c.h.bf16 %v6528_v47  ;;  %6486 = vmatmul.bf16.gmra.mxu3 %v13380_v11  ;;  %v7635_v11 = vsel %vm7571_vm15, %v14458_v0, %v7507_v63  ;;  %v7933_v34 = vpack.c.b16 %v7861_v39, %v7853_v3 }
 0x5c8   : > { %8068 = vmatpush.bf16.msra.mxu2 %v7940_v60  ;;  %8097 = vmatpush.bf16.msra.mxu3 %v7941_v41  ;;  %v6242_v26 = vpop.f32.mrf.mxu2  ;;  %v7845_v38 = vunpack.c.h.b16 %v7639_v9  ;;  %v7342_v36 = vmul.f32 0.20019531, %v7086_v6  ;;  %v7343_v49 = vmul.f32 0.20019531, %v7087_v7  ;;  %v7836_v8 = vunpack.c.l.b16 %v7635_v11 }
 0x5c9   : > { %v6902_v12 = vadd.f32 %v13847_v52, %v6758_v24  ;;  %v6903_v20 = vadd.f32 %v13847_v52, %v6759_v28  ;;  %v7837_v23 = vunpack.c.h.b16 %v7635_v11  ;;  %vm14584_vm0 = vcmp.gt.f32.partialorder %v7086_v6, 0.0 }
 0x5ca   : > { %v6291_v54 = vpop.f32.mrf.mxu3  ;;  %v7924_v0 = vpack.c.b16 %v7844_v2, %v7836_v8  ;;  %vm14588_vm1 = vcmp.gt.f32.partialorder %v7087_v7, 0.0  ;;  %v7468_v63 = vpack.c.bf16 %v7343_v49, %v7342_v36 }
 0x5cb   : > { %v7024_v57 = vpack.c.bf16 %v6903_v20, %v6902_v12  ;;  %v6292_v31 = vadd.f32 %v6291_v54, %v6242_v26  ;;  %v6146_v50 = vpop.f32.mrf.mxu0  ;;  %v6195_v10 = vpop.f32.mrf.mxu1  ;;  %v7925_v4 = vpack.c.b16 %v7845_v38, %v7837_v23  ;;  %vm7532_vm4 = vmpackc.low %vm14588_vm1, %vm14584_vm0 }
 0x5cc   : > { %v6196_v16 = vadd.f32 %v6195_v10, %v6146_v50  ;;  %8069 = vmatpush.bf16.msra.mxu2 %v7932_v33  ;;  %8098 = vmatpush.bf16.msra.mxu3 %v7933_v34  ;;  %v7596_v20 = vsel %vm7532_vm4, %v14557_v15, %v7468_v63 }
 0x5cd   : > { %v6532_v22 = vpack.c.bf16 %v6292_v31, %v6194_v1  ;;  %v7094_v46 = vunpack.c.l.bf16 %v7024_v57  ;;  %v7095_v62 = vunpack.c.h.bf16 %v7024_v57  ;;  %v7758_v34 = vunpack.c.l.b16 %v7596_v20 }
 0x5ce   : > { %v7759_v2 = vunpack.c.h.b16 %v7596_v20 }
 0x5cf   : > { %v6766_v35 = vunpack.c.l.bf16 %v6532_v22  ;;  %v6767_v47 = vunpack.c.h.bf16 %v6532_v22  ;;  %vm14592_vm2 = vcmp.gt.f32.partialorder %v7094_v46, 0.0  ;;  %vm14596_vm3 = vcmp.gt.f32.partialorder %v7095_v62, 0.0 }
 0x5d0   : > { %8070 = vmatpush.bf16.msra.mxu2 %v7924_v0  ;;  %8099 = vmatpush.bf16.msra.mxu3 %v7925_v4  ;;  %v7350_v60 = vmul.f32 0.20019531, %v7094_v46  ;;  %v7351_v41 = vmul.f32 0.20019531, %v7095_v62  ;;  %v6244_v24 = vpop.f32.mrf.mxu2  ;;  %vm7536_vm5 = vmpackc.low %vm14596_vm3, %vm14592_vm2 }
 0x5d1   : > { %v6910_v59 = vadd.f32 %v13903_v61, %v6766_v35  ;;  %v6911_v39 = vadd.f32 %v13903_v61, %v6767_v47 }
 0x5d2   : > { %v6293_v28 = vpop.f32.mrf.mxu3  ;;  %v7472_v6 = vpack.c.bf16 %v7351_v41, %v7350_v60 }
 0x5d3   : > { %v14606_v7 = vpack.c.bf16 %v6911_v39, %v6910_v59  ;;  %v6294_v13 = vadd.f32 %v6293_v28, %v6244_v24  ;;  %v6149_v3 = vpop.f32.mrf.mxu0  ;;  %v6198_v12 = vpop.f32.mrf.mxu1 }
 0x5d4   : > { %v6199_v26 = vadd.f32 %v6198_v12, %v6149_v3  ;;  %8071 = vmatpush.bf16.msra.mxu2 %v14440_v17  ;;  %8100 = vmatpush.bf16.msra.mxu3 %v14442_v56  ;;  %v7600_v11 = vsel %vm7536_vm5, %v7024_v57, %v7472_v6 }
 0x5d5   : > { %v6536_v54 = vpack.c.bf16 %v6294_v13, %v6196_v16  ;;  %6344 = vmatmul.bf16.gmra.mxu0 %v13446_v55  ;;  %v7766_v33 = vunpack.c.l.b16 %v7600_v11  ;;  %6442 = vmatmul.bf16.gmra.mxu2 %v13446_v55  ;;  %v7767_v38 = vunpack.c.h.b16 %v7600_v11  ;;  %v7102_v17 = vunpack.c.l.bf16 %v14606_v7 }
 0x5d6   : > { %6393 = vmatmul.bf16.gmra.mxu1 %v13448_v44  ;;  %v7103_v56 = vunpack.c.h.bf16 %v14606_v7 }
 0x5d7   : > { %v6774_v31 = vunpack.c.l.bf16 %v6536_v54  ;;  %v6775_v50 = vunpack.c.h.bf16 %v6536_v54  ;;  %6491 = vmatmul.bf16.gmra.mxu3 %v13448_v44  ;;  %v14623_v15 = vpack.c.b16 %v7766_v33, %v7758_v34  ;;  %v14625_v57 = vpack.c.b16 %v7767_v38, %v7759_v2 }
 0x5d8   : > { %8072 = vmatpush.bf16.msra.mxu2 %v14430_v53  ;;  %8101 = vmatpush.bf16.msra.mxu3 %v14432_v45  ;;  %v6247_v36 = vpop.f32.mrf.mxu2  ;;  %v7358_v22 = vmul.f32 0.20019531, %v7102_v17  ;;  %v7359_v46 = vmul.f32 0.20019531, %v7103_v56  ;;  %vm14631_vm6 = vcmp.gt.f32.partialorder %v7102_v17, 0.0  ;;  %vm14635_vm7 = vcmp.gt.f32.partialorder %v7103_v56, 0.0 }
 0x5d9   : > { %v6918_v55 = vadd.f32 %v13942_v58, %v6774_v31  ;;  %v6919_v10 = vadd.f32 %v13942_v58, %v6775_v50  ;;  %vm7540_vm10 = vmpackc.low %vm14635_vm7, %vm14631_vm6 }
 0x5da   : > { %v6296_v49 = vpop.f32.mrf.mxu3  ;;  %v7476_v25 = vpack.c.bf16 %v7359_v46, %v7358_v22 }
 0x5db   : > { %v7032_v16 = vpack.c.bf16 %v6919_v10, %v6918_v55  ;;  %v6297_v44 = vadd.f32 %v6296_v49, %v6247_v36  ;;  %v6151_v8 = vpop.f32.mrf.mxu0  ;;  %v6200_v23 = vpop.f32.mrf.mxu1 }
 0x5dc   : > { %v6201_v62 = vadd.f32 %v6200_v23, %v6151_v8  ;;  %8073 = vmatpush.bf16.msra.mxu2 %v14394_v30  ;;  %8102 = vmatpush.bf16.msra.mxu3 %v14396_v29  ;;  %v7604_v6 = vsel %vm7540_vm10, %v14606_v7, %v7476_v25  ;;  %v17305_v23 = vld [vmem:[#allocation79_spill] sm:$0xff] }
 0x5dd   : > { %v6540_v53 = vpack.c.bf16 %v6297_v44, %v6199_v26  ;;  %v7110_v45 = vunpack.c.l.bf16 %v7032_v16  ;;  %v7111_v0 = vunpack.c.h.bf16 %v7032_v16  ;;  %v7774_v26 = vunpack.c.l.b16 %v7604_v6 }
 0x5de   : > { %v7775_v11 = vunpack.c.h.b16 %v7604_v6 }
 0x5df   : > { %v6782_v51 = vunpack.c.l.bf16 %v6540_v53  ;;  %v6783_v35 = vunpack.c.h.bf16 %v6540_v53  ;;  %vm14641_vm8 = vcmp.gt.f32.partialorder %v7110_v45, 0.0  ;;  %vm14645_vm9 = vcmp.gt.f32.partialorder %v7111_v0, 0.0 }
 0x5e0   : > { %8074 = vmatpush.bf16.msra.mxu2 %v14358_v43  ;;  %8103 = vmatpush.bf16.msra.mxu3 %v14360_v42  ;;  %v7366_v63 = vmul.f32 0.20019531, %v7110_v45  ;;  %v7367_v9 = vmul.f32 0.20019531, %v7111_v0  ;;  %v6249_v41 = vpop.f32.mrf.mxu2  ;;  %vm7544_vm11 = vmpackc.low %vm14645_vm9, %vm14641_vm8 }
 0x5e1   : > { %v6926_v1 = vadd.f32 %v13961_v32, %v6782_v51  ;;  %v6927_v60 = vadd.f32 %v13961_v32, %v6783_v35 }
 0x5e2   : > { %v6298_v59 = vpop.f32.mrf.mxu3  ;;  %v7480_v39 = vpack.c.bf16 %v7367_v9, %v7366_v63 }
 0x5e3   : > { %v7036_v43 = vpack.c.bf16 %v6927_v60, %v6926_v1  ;;  %v6299_v42 = vadd.f32 %v6298_v59, %v6249_v41  ;;  %v6154_v24 = vpop.f32.mrf.mxu0  ;;  %v6203_v28 = vpop.f32.mrf.mxu1 }
 0x5e4   : > { %v6204_v13 = vadd.f32 %v6203_v28, %v6154_v24  ;;  %8075 = vmatpush.bf16.msra.mxu2 %v14315_v37  ;;  %8104 = vmatpush.bf16.msra.mxu3 %v14317_v5  ;;  %v7608_v3 = vsel %vm7544_vm11, %v7032_v16, %v7480_v39 }
 0x5e5   : > { %v6544_v12 = vpack.c.bf16 %v6299_v42, %v6201_v62  ;;  %6349 = vmatmul.bf16.gmra.mxu0 %v17123_v21  ;;  %v7782_v20 = vunpack.c.l.b16 %v7608_v3  ;;  %6447 = vmatmul.bf16.gmra.mxu2 %v17123_v21  ;;  %v7783_v54 = vunpack.c.h.b16 %v7608_v3  ;;  %v7118_v7 = vunpack.c.l.bf16 %v7036_v43  ;;  %v17301_v62 = vld [vmem:[#allocation5_spill] sm:$0xff] }
 0x5e6   : > { %6398 = vmatmul.bf16.gmra.mxu1 %v17124_v19  ;;  %v7119_v37 = vunpack.c.h.bf16 %v7036_v43 }
 0x5e7   : > { %v6790_v33 = vunpack.c.l.bf16 %v6544_v12  ;;  %v6791_v34 = vunpack.c.h.bf16 %v6544_v12  ;;  %6496 = vmatmul.bf16.gmra.mxu3 %v17124_v19  ;;  %v14666_v2 = vpack.c.b16 %v7782_v20, %v7774_v26  ;;  %v14668_v5 = vpack.c.b16 %v7783_v54, %v7775_v11  ;;  %v17292_v54 = vld [vmem:[#allocation4_spill] sm:$0xff] }
 0x5e8   : > { %v6252_v50 = vpop.f32.mrf.mxu2  ;;  %v7374_v36 = vmul.f32 0.20019531, %v7118_v7  ;;  %v7375_v49 = vmul.f32 0.20019531, %v7119_v37  ;;  %vm14672_vm12 = vcmp.gt.f32.partialorder %v7118_v7, 0.0  ;;  %vm14676_vm13 = vcmp.gt.f32.partialorder %v7119_v37, 0.0 }
 0x5e9   : > { %v6934_v38 = vadd.f32 %v13999_v48, %v6790_v33  ;;  %v6935_v31 = vadd.f32 %v13999_v48, %v6791_v34  ;;  %vm7548_vm0 = vmpackc.low %vm14676_vm13, %vm14672_vm12 }
 0x5ea   : > { %v6301_v17 = vpop.f32.mrf.mxu3  ;;  %v7484_v53 = vpack.c.bf16 %v7375_v49, %v7374_v36 }
 0x5eb   : > { %v7040_v21 = vpack.c.bf16 %v6935_v31, %v6934_v38  ;;  %v6302_v56 = vadd.f32 %v6301_v17, %v6252_v50  ;;  %v6156_v55 = vpop.f32.mrf.mxu0  ;;  %v6205_v10 = vpop.f32.mrf.mxu1 }
 0x5ec   : > { %v6206_v16 = vadd.f32 %v6205_v10, %v6156_v55  ;;  %v7612_v41 = vsel %vm7548_vm0, %v7036_v43, %v7484_v53 }
 0x5ed   : > { %v6548_v19 = vpack.c.bf16 %v6302_v56, %v6204_v13  ;;  %v7126_v44 = vunpack.c.l.bf16 %v7040_v21  ;;  %v7127_v8 = vunpack.c.h.bf16 %v7040_v21  ;;  %v7790_v28 = vunpack.c.l.b16 %v7612_v41 }
 0x5ee   : > { %v7791_v6 = vunpack.c.h.b16 %v7612_v41 }
 0x5ef   : > { %v6798_v22 = vunpack.c.l.bf16 %v6548_v19  ;;  %v6799_v46 = vunpack.c.h.bf16 %v6548_v19  ;;  %vm14680_vm14 = vcmp.gt.f32.partialorder %v7126_v44, 0.0  ;;  %vm14684_vm15 = vcmp.gt.f32.partialorder %v7127_v8, 0.0 }
 0x5f0   : > { %v7382_v4 = vmul.f32 0.20019531, %v7126_v44  ;;  %v7383_v51 = vmul.f32 0.20019531, %v7127_v8  ;;  %v6254_v25 = vpop.f32.mrf.mxu2  ;;  %vm7552_vm1 = vmpackc.low %vm14684_vm15, %vm14680_vm14 }
 0x5f1   : > { %v6942_v35 = vadd.f32 %v14014_v18, %v6798_v22  ;;  %v6943_v47 = vadd.f32 %v14014_v18, %v6799_v46 }
 0x5f2   : > { %v6303_v30 = vpop.f32.mrf.mxu3  ;;  %v7488_v29 = vpack.c.bf16 %v7383_v51, %v7382_v4 }
 0x5f3   : > { %v7044_v63 = vpack.c.bf16 %v6943_v47, %v6942_v35  ;;  %v6304_v9 = vadd.f32 %v6303_v30, %v6254_v25  ;;  %v6159_v1 = vpop.f32.mrf.mxu0  ;;  %v6208_v60 = vpop.f32.mrf.mxu1 }
 0x5f4   : > { %v6209_v59 = vadd.f32 %v6208_v60, %v6159_v1  ;;  %v7616_v39 = vsel %vm7552_vm1, %v7040_v21, %v7488_v29  ;;  %v17302_v60 = vld [vmem:[#allocation80_spill] sm:$0xff] }
 0x5f5   : > { %v6552_v42 = vpack.c.bf16 %v6304_v9, %v6206_v16  ;;  %6354 = vmatmul.bf16.gmra.mxu0 %v17135_v14  ;;  %v7798_v24 = vunpack.c.l.b16 %v7616_v39  ;;  %6452 = vmatmul.bf16.gmra.mxu2 %v17135_v14  ;;  %v7799_v13 = vunpack.c.h.b16 %v7616_v39  ;;  %v7134_v20 = vunpack.c.l.bf16 %v7044_v63 }
 0x5f6   : > { %6403 = vmatmul.bf16.gmra.mxu1 %v17137_v40  ;;  %v7135_v26 = vunpack.c.h.bf16 %v7044_v63 }
 0x5f7   : > { %v6806_v3 = vunpack.c.l.bf16 %v6552_v42  ;;  %v6807_v12 = vunpack.c.h.bf16 %v6552_v42  ;;  %6501 = vmatmul.bf16.gmra.mxu3 %v17137_v40  ;;  %v14702_v43 = vpack.c.b16 %v7798_v24, %v7790_v28  ;;  %v14704_v11 = vpack.c.b16 %v7799_v13, %v7791_v6 }
 0x5f8   : > { %v6257_v7 = vpop.f32.mrf.mxu2  ;;  %v7390_v17 = vmul.f32 0.20019531, %v7134_v20  ;;  %v7391_v21 = vmul.f32 0.20019531, %v7135_v26  ;;  %vm14708_vm2 = vcmp.gt.f32.partialorder %v7134_v20, 0.0  ;;  %vm14712_vm3 = vcmp.gt.f32.partialorder %v7135_v26, 0.0  ;;  %v17304_v20 = vld [vmem:[#allocation6_spill] sm:$0xff] }
 0x5f9   : > { %v6950_v33 = vadd.f32 %v17292_v54, %v6806_v3  ;;  %v6951_v34 = vadd.f32 %v17292_v54, %v6807_v12  ;;  %vm7556_vm6 = vmpackc.low %vm14712_vm3, %vm14708_vm2 }
 0x5fa   : > { %v6306_v37 = vpop.f32.mrf.mxu3  ;;  %v7492_v44 = vpack.c.bf16 %v7391_v21, %v7390_v17 }
 0x5fb   : > { %v7048_v14 = vpack.c.bf16 %v6951_v34, %v6950_v33  ;;  %v6307_v38 = vadd.f32 %v6306_v37, %v6257_v7  ;;  %v6161_v31 = vpop.f32.mrf.mxu0  ;;  %v6210_v50 = vpop.f32.mrf.mxu1 }
 0x5fc   : > { %v6211_v56 = vadd.f32 %v6210_v50, %v6161_v31  ;;  %v7620_v29 = vsel %vm7556_vm6, %v7044_v63, %v7492_v44 }
 0x5fd   : > { %v6556_v40 = vpack.c.bf16 %v6307_v38, %v6209_v59  ;;  %v7142_v55 = vunpack.c.l.bf16 %v7048_v14  ;;  %v7143_v10 = vunpack.c.h.bf16 %v7048_v14  ;;  %v17303_v59 = vld [vmem:[#allocation81_spill] sm:$0xff]  ;;  %v7806_v39 = vunpack.c.l.b16 %v7620_v29 }
 0x5fe   : > { %v7807_v42 = vunpack.c.h.b16 %v7620_v29 }
 0x5ff   : > { %v6814_v49 = vunpack.c.l.bf16 %v6556_v40  ;;  %v6815_v16 = vunpack.c.h.bf16 %v6556_v40  ;;  %vm14716_vm4 = vcmp.gt.f32.partialorder %v7142_v55, 0.0  ;;  %vm14720_vm5 = vcmp.gt.f32.partialorder %v7143_v10, 0.0 }
 0x600   : > { %v7398_v22 = vmul.f32 0.20019531, %v7142_v55  ;;  %v7399_v46 = vmul.f32 0.20019531, %v7143_v10  ;;  %v6259_v0 = vpop.f32.mrf.mxu2  ;;  %vm7560_vm7 = vmpackc.low %vm14720_vm5, %vm14716_vm4 }
 0x601   : > { %v6958_v53 = vadd.f32 %v17301_v62, %v6814_v49  ;;  %v6959_v45 = vadd.f32 %v17301_v62, %v6815_v16 }
 0x602   : > { %v6308_v4 = vpop.f32.mrf.mxu3  ;;  %v7496_v51 = vpack.c.bf16 %v7399_v46, %v7398_v22  ;;  %v17306_v46 = vld [vmem:[#allocation52_spill] sm:$0xff] }
 0x603   : > { %v7052_v35 = vpack.c.bf16 %v6959_v45, %v6958_v53  ;;  %v6309_v47 = vadd.f32 %v6308_v4, %v6259_v0  ;;  %v6164_v25 = vpop.f32.mrf.mxu0  ;;  %v6213_v30 = vpop.f32.mrf.mxu1 }
 0x604   : > { %v7624_v9 = vsel %vm7560_vm7, %v7048_v14, %v7496_v51 }
 0x605   : > { %v6560_v1 = vpack.c.bf16 %v6309_v47, %v6211_v56  ;;  %6359 = vmatmul.bf16.gmra.mxu0 %v17302_v60  ;;  %v7814_v41 = vunpack.c.l.b16 %v7624_v9  ;;  %6457 = vmatmul.bf16.gmra.mxu2 %v17302_v60  ;;  %v7815_v24 = vunpack.c.h.b16 %v7624_v9  ;;  %v7150_v13 = vunpack.c.l.bf16 %v7052_v35 }
 0x606   : > { %6408 = vmatmul.bf16.gmra.mxu1 %v17303_v59  ;;  %v7151_v3 = vunpack.c.h.bf16 %v7052_v35  ;;  %v6214_v60 = vadd.f32 %v6213_v30, %v6164_v25 }
 0x607   : > { %v6822_v28 = vunpack.c.l.bf16 %v6560_v1  ;;  %v6823_v6 = vunpack.c.h.bf16 %v6560_v1  ;;  %6506 = vmatmul.bf16.gmra.mxu3 %v17303_v59  ;;  %v14738_v12 = vpack.c.b16 %v7814_v41, %v7806_v39  ;;  %v14740_v63 = vpack.c.b16 %v7815_v24, %v7807_v42 }
 0x608   : > { %v6262_v34 = vpop.f32.mrf.mxu2  ;;  %v7406_v31 = vmul.f32 0.20019531, %v7150_v13  ;;  %v7407_v50 = vmul.f32 0.20019531, %v7151_v3  ;;  %vm7278_vm8 = vcmp.gt.f32.partialorder %v7150_v13, 0.0  ;;  %vm7279_vm9 = vcmp.gt.f32.partialorder %v7151_v3, 0.0 }
 0x609   : > { %v6966_v26 = vadd.f32 %v17304_v20, %v6822_v28  ;;  %v6967_v33 = vadd.f32 %v17304_v20, %v6823_v6  ;;  %vm7564_vm12 = vmpackc.low %vm7279_vm9, %vm7278_vm8 }
 0x60a   : > { %v6311_v7 = vpop.f32.mrf.mxu3  ;;  %v7500_v56 = vpack.c.bf16 %v7407_v50, %v7406_v31  ;;  %v17307_v31 = vld [vmem:[#allocation77_spill] sm:$0xff] }
 0x60b   : > { %v7056_v37 = vpack.c.bf16 %v6967_v33, %v6966_v26  ;;  %v6166_v14 = vpop.f32.mrf.mxu0  ;;  %v6215_v38 = vpop.f32.mrf.mxu1  ;;  %v6312_v41 = vadd.f32 %v6311_v7, %v6262_v34 }
 0x60c   : > { %v7628_v44 = vsel %vm7564_vm12, %v7052_v35, %v7500_v56  ;;  %v6216_v59 = vadd.f32 %v6215_v38, %v6166_v14  ;;  %v17308_v56 = vld [vmem:[#allocation2_spill] sm:$0xff]  ;;  %v17309_v38 = vld [vmem:[#allocation7_spill] sm:$0xff] }
 0x60d   : > { %v7158_v17 = vunpack.c.l.bf16 %v7056_v37  ;;  %v7159_v21 = vunpack.c.h.bf16 %v7056_v37  ;;  %v7822_v53 = vunpack.c.l.b16 %v7628_v44  ;;  %v7823_v45 = vunpack.c.h.b16 %v7628_v44 }
 0x60e   : > { %v6564_v33 = vpack.c.bf16 %v6312_v41, %v6214_v60 }
 0x60f   : > { %vm7286_vm10 = vcmp.gt.f32.partialorder %v7158_v17, 0.0  ;;  %vm7287_vm11 = vcmp.gt.f32.partialorder %v7159_v21, 0.0  ;;  %v7414_v40 = vmul.f32 0.20019531, %v7158_v17  ;;  %v7415_v55 = vmul.f32 0.20019531, %v7159_v21 }
 0x610   : > { %v6264_v10 = vpop.f32.mrf.mxu2  ;;  %vm7568_vm13 = vmpackc.low %vm7287_vm11, %vm7286_vm10  ;;  %v6830_v30 = vunpack.c.l.bf16 %v6564_v33  ;;  %v6831_v34 = vunpack.c.h.bf16 %v6564_v33 }
 0x611   : > { %v7504_v49 = vpack.c.bf16 %v7415_v55, %v7414_v40 }
 0x612   : > { %v6313_v36 = vpop.f32.mrf.mxu3 }
 0x613   : > { %v6169_v16 = vpop.f32.mrf.mxu0  ;;  %v6218_v19 = vpop.f32.mrf.mxu1  ;;  %v7632_v8 = vsel %vm7568_vm13, %v7056_v37, %v7504_v49  ;;  %v6314_v1 = vadd.f32 %v6313_v36, %v6264_v10 }
 0x614   : > { %v7830_v22 = vunpack.c.l.b16 %v7632_v8  ;;  %v7831_v0 = vunpack.c.h.b16 %v7632_v8  ;;  %v6219_v28 = vadd.f32 %v6218_v19, %v6169_v16 }
 0x615   : > { %6364 = vmatmul.bf16.gmra.mxu0 %v17305_v23  ;;  %6462 = vmatmul.bf16.gmra.mxu2 %v17305_v23  ;;  %v6568_v42 = vpack.c.bf16 %v6314_v1, %v6216_v59 }
 0x616   : > { %6413 = vmatmul.bf16.gmra.mxu1 %v17306_v46  ;;  %v14748_v4 = vpack.c.b16 %v7830_v22, %v7822_v53  ;;  %v14750_v51 = vpack.c.b16 %v7831_v0, %v7823_v45  ;;  %v17310_v22 = vld [vmem:[#allocation9_spill] sm:$0xff] }
 0x617   : > { %6511 = vmatmul.bf16.gmra.mxu3 %v17306_v46  ;;  %v6838_v50 = vunpack.c.l.bf16 %v6568_v42  ;;  %v6839_v17 = vunpack.c.h.bf16 %v6568_v42  ;;  %v6974_v46 = vadd.f32 %v17310_v22, %v6830_v30  ;;  %v6975_v53 = vadd.f32 %v17310_v22, %v6831_v34  ;;  %v17313_v42 = vld [vmem:[#allocation14_spill] sm:$0xff] }
 0x618   : > { %v6267_v47 = vpop.f32.mrf.mxu2 }
 0x619   : > { %v6982_v40 = vadd.f32 %v17309_v38, %v6838_v50  ;;  %v6983_v55 = vadd.f32 %v17309_v38, %v6839_v17 }
 0x61a   : > { %v6316_v29 = vpop.f32.mrf.mxu3 }
 0x61b   : > { %v6171_v35 = vpop.f32.mrf.mxu0  ;;  %v6220_v9 = vpop.f32.mrf.mxu1  ;;  %v6317_v6 = vadd.f32 %v6316_v29, %v6267_v47  ;;  %v14760_v0 = vpack.c.bf16 %v6983_v55, %v6982_v40  ;;  %v17311_v47 = vld [vmem:[#allocation10_spill] sm:$0xff] }
 0x61c   : > { %v6221_v37 = vadd.f32 %v6220_v9, %v6171_v35  ;;  %v17312_v9 = vld [vmem:[#allocation12_spill] sm:$0xff] }
 0x61d   : > { %v6572_v25 = vpack.c.bf16 %v6317_v6, %v6219_v28  ;;  %v7174_v33 = vunpack.c.l.bf16 %v14760_v0 }
 0x61f   : > { %v6846_v16 = vunpack.c.l.bf16 %v6572_v25  ;;  %v6847_v19 = vunpack.c.h.bf16 %v6572_v25  ;;  %vm14803_vm14 = vcmp.gt.f32.partialorder %v7174_v33, 0.0 }
 0x620   : > { %v6269_v39 = vpop.f32.mrf.mxu2 }
 0x621   : > { %v6990_v1 = vadd.f32 %v17312_v9, %v6846_v16  ;;  %v6991_v60 = vadd.f32 %v17312_v9, %v6847_v19 }
 0x622   : > { %v6318_v24 = vpop.f32.mrf.mxu3 }
 0x623   : > { %v6319_v13 = vadd.f32 %v6318_v24, %v6269_v39  ;;  %v6174_v3 = vpop.f32.mrf.mxu0  ;;  %v6223_v26 = vpop.f32.mrf.mxu1  ;;  %v14766_v39 = vpack.c.bf16 %v6975_v53, %v6974_v46 }
 0x624   : > { %v6224_v7 = vadd.f32 %v6223_v26, %v6174_v3 }
 0x625   : > { %6369 = vmatmul.bf16.gmra.mxu0 %v17307_v31  ;;  %v6576_v21 = vpack.c.bf16 %v6319_v13, %v6221_v37  ;;  %6467 = vmatmul.bf16.gmra.mxu2 %v17307_v31  ;;  %v14773_v13 = vld [vmem:[%s16042_s5] sm:$0xff]  ;;  %v7175_v37 = vunpack.c.h.bf16 %v14760_v0  ;;  %v14779_v31 = vpack.c.bf16 %v6991_v60, %v6990_v1  ;;  %v16299_v34 = vunpack.c.l.bf16 %v14766_v39 }
 0x626   : > { %6418 = vmatmul.bf16.gmra.mxu1 %v17308_v56  ;;  %v7167_v55 = vunpack.c.h.bf16 %v14766_v39 }
 0x627   : > { %6516 = vmatmul.bf16.gmra.mxu3 %v17308_v56  ;;  %v6854_v10 = vunpack.c.l.bf16 %v6576_v21  ;;  %v6855_v36 = vunpack.c.h.bf16 %v6576_v21  ;;  %v14796_v53 = vmul.f32 0.20019531, %v16299_v34  ;;  %v7183_v60 = vunpack.c.h.bf16 %v14779_v31 }
 0x628   : > { %v6272_v14 = vpop.f32.mrf.mxu2  ;;  %vm14807_vm15 = vcmp.gt.f32.partialorder %v7175_v37, 0.0  ;;  %vm14871_vm12 = vcmp.gt.f32.partialorder %v7167_v55, 0.0 }
 0x629   : > { %v6998_v29 = vadd.f32 %v17311_v47, %v6854_v10  ;;  %v6999_v35 = vadd.f32 %v17311_v47, %v6855_v36  ;;  %vm14845_vm8 = vcmp.gt.f32.partialorder %v7183_v60, 0.0  ;;  %vm7576_vm13 = vmpackc.low %vm14807_vm15, %vm14803_vm14 }
 0x62a   : > { %v6321_v49 = vpop.f32.mrf.mxu3 }
 0x62b   : > { %v6322_v44 = vadd.f32 %v6321_v49, %v6272_v14  ;;  %v6176_v8 = vpop.f32.mrf.mxu0  ;;  %v6225_v23 = vpop.f32.mrf.mxu1  ;;  %v14775_v3 = vpack.c.bf16 %v6999_v35, %v6998_v29  ;;  %v14788_v49 = vmul.f32 0.20019531, %v7174_v33 }
 0x62c   : > { %v6226_v17 = vadd.f32 %v6225_v23, %v6176_v8  ;;  %v14792_v8 = vmul.f32 0.20019531, %v7175_v37 }
 0x62d   : > { %v6580_v45 = vpack.c.bf16 %v6322_v44, %v6224_v7  ;;  %v7190_v10 = vunpack.c.l.bf16 %v14775_v3  ;;  %v7191_v36 = vunpack.c.h.bf16 %v14775_v3  ;;  %v7182_v44 = vunpack.c.l.bf16 %v14779_v31 }
 0x62f   : > { %v6862_v41 = vunpack.c.l.bf16 %v6580_v45  ;;  %v6863_v59 = vunpack.c.h.bf16 %v6580_v45  ;;  %v17314_v45 = vld [vmem:[#allocation16_spill] sm:$0xff]  ;;  %vm14821_vm2 = vcmp.gt.f32.partialorder %v7182_v44, 0.0  ;;  %vm14825_vm3 = vcmp.gt.f32.partialorder %v7190_v10, 0.0 }
 0x630   : > { %v6274_v6 = vpop.f32.mrf.mxu2  ;;  %vm14829_vm4 = vcmp.gt.f32.partialorder %v7191_v36, 0.0 }
 0x631   : > { %v7006_v24 = vadd.f32 %v17313_v42, %v6862_v41  ;;  %v7007_v28 = vadd.f32 %v17313_v42, %v6863_v59  ;;  %v14801_v41 = vmul.f32 0.20019531, %v7167_v55  ;;  %vm7584_vm9 = vmpackc.low %vm14829_vm4, %vm14825_vm3 }
 0x632   : > { %v6323_v26 = vpop.f32.mrf.mxu3 }
 0x633   : > { %v7076_v50 = vpack.c.bf16 %v7007_v28, %v7006_v24  ;;  %v6324_v21 = vadd.f32 %v6323_v26, %v6274_v6  ;;  %v6335_v56 = vpop.f32.mrf.mxu0  ;;  %v6384_v25 = vpop.f32.mrf.mxu1  ;;  %v7446_v24 = vmul.f32 0.20019531, %v7190_v10  ;;  %v7447_v28 = vmul.f32 0.20019531, %v7191_v36 }
 0x634   : > { %v6385_v30 = vadd.f32 %v6384_v25, %v6335_v56  ;;  %v7508_v6 = vpack.c.bf16 %v14801_v41, %v14796_v53 }
 0x635   : > { %v7198_v7 = vunpack.c.l.bf16 %v7076_v50  ;;  %v7199_v14 = vunpack.c.h.bf16 %v7076_v50  ;;  %v6584_v40 = vpack.c.bf16 %v6324_v21, %v6226_v17  ;;  %8018 = vmatmul.bf16.vlgmr.msra.gmra.mxu0 %v14773_v13  ;;  %8076 = vmatmul.bf16.vlgmr.msra.gmra.mxu2 %v14773_v13 }
 0x636   : > { %8047 = vmatmul.bf16.vlgmr.msra.gmra.mxu1 %v14773_v13 }
 0x637   : > { %v6870_v16 = vunpack.c.l.bf16 %v6584_v40  ;;  %v6871_v19 = vunpack.c.h.bf16 %v6584_v40  ;;  %8105 = vmatmul.bf16.vlgmr.msra.gmra.mxu3 %v14773_v13  ;;  %v7454_v23 = vmul.f32 0.20019531, %v7198_v7  ;;  %v7455_v46 = vmul.f32 0.20019531, %v7199_v14 }
 0x638   : > { %v6433_v1 = vpop.f32.mrf.mxu2  ;;  %v7438_v40 = vmul.f32 0.20019531, %v7182_v44  ;;  %vm14813_vm0 = vcmp.gt.f32.partialorder %v7198_v7, 0.0  ;;  %vm14817_vm1 = vcmp.gt.f32.partialorder %v7199_v14, 0.0  ;;  %v7520_v14 = vpack.c.bf16 %v7447_v28, %v7446_v24 }
 0x639   : > { %v7014_v29 = vadd.f32 %v17314_v45, %v6870_v16  ;;  %v7015_v35 = vadd.f32 %v17314_v45, %v6871_v19  ;;  %v7512_v16 = vpack.c.bf16 %v14792_v8, %v14788_v49  ;;  %v7524_v37 = vpack.c.bf16 %v7455_v46, %v7454_v23  ;;  %vm7588_vm5 = vmpackc.low %vm14817_vm1, %vm14813_vm0 }
 0x63a   : > { %v6482_v59 = vpop.f32.mrf.mxu3  ;;  %vm7580_vm0 = vmpackc.low %vm14845_vm8, %vm14821_vm2 }
 0x63b   : > { %v7080_v17 = vpack.c.bf16 %v7015_v35, %v7014_v29  ;;  %v6483_v21 = vadd.f32 %v6482_v59, %v6433_v1  ;;  %v6337_v56 = vpop.f32.mrf.mxu0  ;;  %v6386_v25 = vpop.f32.mrf.mxu1  ;;  %v7439_v35 = vmul.f32 0.20019531, %v7183_v60  ;;  %v7652_v36 = vsel %vm7588_vm5, %v7076_v50, %v7524_v37 }
 0x63c   : > { %v6387_v19 = vadd.f32 %v6386_v25, %v6337_v56  ;;  %v17335_v60 = vunpack.c.l.bf16 %v14766_v39  ;;  %v7870_v49 = vunpack.c.l.b16 %v7652_v36  ;;  %v7640_v26 = vsel %vm7576_vm13, %v14760_v0, %v7512_v16 }
 0x63d   : > { %v7206_v45 = vunpack.c.l.bf16 %v7080_v17  ;;  %v7207_v42 = vunpack.c.h.bf16 %v7080_v17  ;;  %v6525_v29 = vpack.c.bf16 %v6483_v21, %v6385_v30 }
 0x63e   : > { %vm14867_vm11 = vcmp.gt.f32.partialorder %v17335_v60, 0.0 }
 0x63f   : > { %v7462_v8 = vmul.f32 0.20019531, %v7206_v45  ;;  %v7463_v59 = vmul.f32 0.20019531, %v7207_v42  ;;  %v6752_v23 = vunpack.c.l.bf16 %v6525_v29  ;;  %v6753_v46 = vunpack.c.h.bf16 %v6525_v29  ;;  %vm7572_vm14 = vmpackc.low %vm14871_vm12, %vm14867_vm11 }
 0x640   : > { %vm14837_vm6 = vcmp.gt.f32.partialorder %v7206_v45, 0.0  ;;  %vm14841_vm7 = vcmp.gt.f32.partialorder %v7207_v42, 0.0  ;;  %v6435_v28 = vpop.f32.mrf.mxu2  ;;  %v14854_v45 = vld [vmem:[%s16042_s5 + $0x8] sm:$0xff]  ;;  %v7516_v42 = vpack.c.bf16 %v7439_v35, %v7438_v40  ;;  %v7636_v44 = vsel %vm7572_vm14, %v14766_v39, %v7508_v6 }
 0x641   : > { %v6896_v24 = vadd.f32 %v13762_v27, %v6752_v23  ;;  %v6897_v34 = vadd.f32 %v13762_v27, %v6753_v46  ;;  %v7528_v21 = vpack.c.bf16 %v7463_v59, %v7462_v8  ;;  %vm7592_vm10 = vmpackc.low %vm14841_vm7, %vm14837_vm6  ;;  %v7648_v27 = vsel %vm7584_vm9, %v14775_v3, %v7520_v14 }
 0x642   : > { %v6484_v50 = vpop.f32.mrf.mxu3  ;;  %v7871_v14 = vunpack.c.h.b16 %v7652_v36  ;;  %v7862_v1 = vunpack.c.l.b16 %v7648_v27  ;;  %v7863_v46 = vunpack.c.h.b16 %v7648_v27 }
 0x643   : > { %v14875_v40 = vpack.c.bf16 %v6897_v34, %v6896_v24  ;;  %v6485_v33 = vadd.f32 %v6484_v50, %v6435_v28  ;;  %v6340_v37 = vpop.f32.mrf.mxu0  ;;  %v6389_v29 = vpop.f32.mrf.mxu1  ;;  %v7656_v35 = vsel %vm7592_vm10, %v7080_v17, %v7528_v21  ;;  %v7644_v17 = vsel %vm7580_vm0, %v14779_v31, %v7516_v42 }
 0x644   : > { %v6390_v3 = vadd.f32 %v6389_v29, %v6340_v37  ;;  %v7878_v7 = vunpack.c.l.b16 %v7656_v35  ;;  %v7879_v8 = vunpack.c.h.b16 %v7656_v35  ;;  %v7854_v53 = vunpack.c.l.b16 %v7644_v17 }
 0x645   : > { %v6529_v55 = vpack.c.bf16 %v6485_v33, %v6387_v19  ;;  %8023 = vmatmul.bf16.gmra.mxu0 %v14854_v45  ;;  %8081 = vmatmul.bf16.gmra.mxu2 %v14854_v45  ;;  %v7088_v19 = vunpack.c.l.bf16 %v14875_v40  ;;  %v7089_v31 = vunpack.c.h.bf16 %v14875_v40  ;;  %v7855_v0 = vunpack.c.h.b16 %v7644_v17 }
 0x646   : > { %8052 = vmatmul.bf16.gmra.mxu1 %v14854_v45  ;;  %v7942_v59 = vpack.c.b16 %v7878_v7, %v7870_v49  ;;  %v7943_v23 = vpack.c.b16 %v7879_v8, %v7871_v14  ;;  %v7934_v34 = vpack.c.b16 %v7862_v1, %v7854_v53  ;;  %v7846_v21 = vunpack.c.l.b16 %v7640_v26 }
 0x647   : > { %v6760_v30 = vunpack.c.l.bf16 %v6529_v55  ;;  %v6761_v10 = vunpack.c.h.bf16 %v6529_v55  ;;  %8110 = vmatmul.bf16.gmra.mxu3 %v14854_v45  ;;  %v7935_v28 = vpack.c.b16 %v7863_v46, %v7855_v0  ;;  %v7847_v42 = vunpack.c.h.b16 %v7640_v26 }
 0x648   : > { %8126 = vmatpush.bf16.msrb.mxu0 %v7942_v59  ;;  %8155 = vmatpush.bf16.msrb.mxu1 %v7943_v23  ;;  %v6438_v36 = vpop.f32.mrf.mxu2  ;;  %v7344_v56 = vmul.f32 0.20019531, %v7088_v19  ;;  %v7345_v37 = vmul.f32 0.20019531, %v7089_v31  ;;  %v7838_v29 = vunpack.c.l.b16 %v7636_v44  ;;  %v7839_v35 = vunpack.c.h.b16 %v7636_v44 }
 0x649   : > { %v6904_v41 = vadd.f32 %v13847_v52, %v6760_v30  ;;  %v6905_v16 = vadd.f32 %v13847_v52, %v6761_v10  ;;  %vm14902_vm15 = vcmp.gt.f32.partialorder %v7088_v19, 0.0  ;;  %vm14906_vm1 = vcmp.gt.f32.partialorder %v7089_v31, 0.0  ;;  %v14923_v19 = vld [vmem:[%s16042_s5 + $0x10] sm:$0xff] }
 0x64a   : > { %v6487_v24 = vpop.f32.mrf.mxu3  ;;  %v7926_v39 = vpack.c.b16 %v7846_v21, %v7838_v29  ;;  %v7927_v14 = vpack.c.b16 %v7847_v42, %v7839_v35  ;;  %v7469_v26 = vpack.c.bf16 %v7345_v37, %v7344_v56  ;;  %vm7533_vm4 = vmpackc.low %vm14906_vm1, %vm14902_vm15 }
 0x64b   : > { %v7025_v50 = vpack.c.bf16 %v6905_v16, %v6904_v41  ;;  %v6488_v27 = vadd.f32 %v6487_v24, %v6438_v36  ;;  %v6342_v60 = vpop.f32.mrf.mxu0  ;;  %v6391_v33 = vpop.f32.mrf.mxu1 }
 0x64c   : > { %v6392_v25 = vadd.f32 %v6391_v33, %v6342_v60  ;;  %8127 = vmatpush.bf16.msrb.mxu0 %v7934_v34  ;;  %8156 = vmatpush.bf16.msrb.mxu1 %v7935_v28 }
 0x64d   : > { %v6533_v52 = vpack.c.bf16 %v6488_v27, %v6390_v3  ;;  %v7096_v49 = vunpack.c.l.bf16 %v7025_v50  ;;  %v7097_v7 = vunpack.c.h.bf16 %v7025_v50 }
 0x64f   : > { %v6768_v55 = vunpack.c.l.bf16 %v6533_v52  ;;  %v6769_v17 = vunpack.c.h.bf16 %v6533_v52  ;;  %vm14910_vm2 = vcmp.gt.f32.partialorder %v7096_v49, 0.0  ;;  %vm14914_vm3 = vcmp.gt.f32.partialorder %v7097_v7, 0.0 }
 0x650   : > { %8128 = vmatpush.bf16.msrb.mxu0 %v7926_v39  ;;  %8157 = vmatpush.bf16.msrb.mxu1 %v7927_v14  ;;  %v7352_v23 = vmul.f32 0.20019531, %v7096_v49  ;;  %v7353_v1 = vmul.f32 0.20019531, %v7097_v7  ;;  %v6440_v10 = vpop.f32.mrf.mxu2  ;;  %vm7537_vm5 = vmpackc.low %vm14914_vm3, %vm14910_vm2 }
 0x651   : > { %v6912_v46 = vadd.f32 %v13903_v61, %v6768_v55  ;;  %v6913_v30 = vadd.f32 %v13903_v61, %v6769_v17  ;;  %v7597_v61 = vsel %vm7533_vm4, %v14875_v40, %v7469_v26 }
 0x652   : > { %v6489_v31 = vpop.f32.mrf.mxu3  ;;  %v7473_v53 = vpack.c.bf16 %v7353_v1, %v7352_v23  ;;  %v7760_v21 = vunpack.c.l.b16 %v7597_v61  ;;  %v7761_v42 = vunpack.c.h.b16 %v7597_v61 }
 0x653   : > { %v14929_v0 = vpack.c.bf16 %v6913_v30, %v6912_v46  ;;  %v6490_v41 = vadd.f32 %v6489_v31, %v6440_v10  ;;  %v6345_v16 = vpop.f32.mrf.mxu0  ;;  %v6394_v36 = vpop.f32.mrf.mxu1 }
 0x654   : > { %v6395_v44 = vadd.f32 %v6394_v36, %v6345_v16  ;;  %8129 = vmatpush.bf16.msrb.mxu0 %v14748_v4  ;;  %8158 = vmatpush.bf16.msrb.mxu1 %v14750_v51  ;;  %v7601_v24 = vsel %vm7537_vm5, %v7025_v50, %v7473_v53 }
 0x655   : > { %v6537_v34 = vpack.c.bf16 %v6490_v41, %v6392_v25  ;;  %8028 = vmatmul.bf16.gmra.mxu0 %v14923_v19  ;;  %v7768_v28 = vunpack.c.l.b16 %v7601_v24  ;;  %8086 = vmatmul.bf16.gmra.mxu2 %v14923_v19  ;;  %v7769_v27 = vunpack.c.h.b16 %v7601_v24  ;;  %v7104_v4 = vunpack.c.l.bf16 %v14929_v0 }
 0x656   : > { %8057 = vmatmul.bf16.gmra.mxu1 %v14923_v19  ;;  %v7105_v51 = vunpack.c.h.bf16 %v14929_v0 }
 0x657   : > { %v6776_v60 = vunpack.c.l.bf16 %v6537_v34  ;;  %v6777_v33 = vunpack.c.h.bf16 %v6537_v34  ;;  %8115 = vmatmul.bf16.gmra.mxu3 %v14923_v19  ;;  %v14946_v40 = vpack.c.b16 %v7768_v28, %v7760_v21  ;;  %v14948_v50 = vpack.c.b16 %v7769_v27, %v7761_v42 }
 0x658   : > { %8130 = vmatpush.bf16.msrb.mxu0 %v14738_v12  ;;  %8159 = vmatpush.bf16.msrb.mxu1 %v14740_v63  ;;  %v6443_v25 = vpop.f32.mrf.mxu2  ;;  %v7360_v39 = vmul.f32 0.20019531, %v7104_v4  ;;  %v7361_v14 = vmul.f32 0.20019531, %v7105_v51  ;;  %vm14954_vm6 = vcmp.gt.f32.partialorder %v7104_v4, 0.0  ;;  %vm14958_vm7 = vcmp.gt.f32.partialorder %v7105_v51, 0.0 }
 0x659   : > { %v6920_v56 = vadd.f32 %v13942_v58, %v6776_v60  ;;  %v6921_v37 = vadd.f32 %v13942_v58, %v6777_v33  ;;  %vm7541_vm10 = vmpackc.low %vm14958_vm7, %vm14954_vm6 }
 0x65a   : > { %v6492_v29 = vpop.f32.mrf.mxu3  ;;  %v7477_v59 = vpack.c.bf16 %v7361_v14, %v7360_v39 }
 0x65b   : > { %v7033_v35 = vpack.c.bf16 %v6921_v37, %v6920_v56  ;;  %v6493_v52 = vadd.f32 %v6492_v29, %v6443_v25  ;;  %v6347_v49 = vpop.f32.mrf.mxu0  ;;  %v6396_v7 = vpop.f32.mrf.mxu1 }
 0x65c   : > { %v6397_v8 = vadd.f32 %v6396_v7, %v6347_v49  ;;  %8131 = vmatpush.bf16.msrb.mxu0 %v14702_v43  ;;  %8160 = vmatpush.bf16.msrb.mxu1 %v14704_v11 }
 0x65d   : > { %v6541_v12 = vpack.c.bf16 %v6493_v52, %v6395_v44  ;;  %v7112_v63 = vunpack.c.l.bf16 %v7033_v35  ;;  %v7113_v55 = vunpack.c.h.bf16 %v7033_v35 }
 0x65f   : > { %v6784_v58 = vunpack.c.l.bf16 %v6541_v12  ;;  %v6785_v6 = vunpack.c.h.bf16 %v6541_v12  ;;  %vm14964_vm8 = vcmp.gt.f32.partialorder %v7112_v63, 0.0  ;;  %vm14968_vm9 = vcmp.gt.f32.partialorder %v7113_v55, 0.0 }
 0x660   : > { %8132 = vmatpush.bf16.msrb.mxu0 %v14666_v2  ;;  %8161 = vmatpush.bf16.msrb.mxu1 %v14668_v5  ;;  %v7368_v3 = vmul.f32 0.20019531, %v7112_v63  ;;  %v7369_v23 = vmul.f32 0.20019531, %v7113_v55  ;;  %v6445_v30 = vpop.f32.mrf.mxu2  ;;  %v14977_v2 = vld [vmem:[%s16042_s5 + $0x18] sm:$0xff]  ;;  %vm7545_vm11 = vmpackc.low %vm14968_vm9, %vm14964_vm8 }
 0x661   : > { %v6928_v1 = vadd.f32 %v13961_v32, %v6784_v58  ;;  %v6929_v46 = vadd.f32 %v13961_v32, %v6785_v6  ;;  %v7605_v32 = vsel %vm7541_vm10, %v14929_v0, %v7477_v59 }
 0x662   : > { %v6494_v5 = vpop.f32.mrf.mxu3  ;;  %v7481_v10 = vpack.c.bf16 %v7369_v23, %v7368_v3  ;;  %v7776_v34 = vunpack.c.l.b16 %v7605_v32  ;;  %v7777_v28 = vunpack.c.h.b16 %v7605_v32 }
 0x663   : > { %v7037_v31 = vpack.c.bf16 %v6929_v46, %v6928_v1  ;;  %v6495_v53 = vadd.f32 %v6494_v5, %v6445_v30  ;;  %v6350_v41 = vpop.f32.mrf.mxu0  ;;  %v6399_v16 = vpop.f32.mrf.mxu1 }
 0x664   : > { %v6400_v36 = vadd.f32 %v6399_v16, %v6350_v41  ;;  %8133 = vmatpush.bf16.msrb.mxu0 %v14623_v15  ;;  %8162 = vmatpush.bf16.msrb.mxu1 %v14625_v57  ;;  %v7609_v61 = vsel %vm7545_vm11, %v7033_v35, %v7481_v10 }
 0x665   : > { %v6545_v44 = vpack.c.bf16 %v6495_v53, %v6397_v8  ;;  %8033 = vmatmul.bf16.gmra.mxu0 %v14977_v2  ;;  %v7784_v24 = vunpack.c.l.b16 %v7609_v61  ;;  %8091 = vmatmul.bf16.gmra.mxu2 %v14977_v2  ;;  %v7785_v21 = vunpack.c.h.b16 %v7609_v61  ;;  %v7120_v0 = vunpack.c.l.bf16 %v7037_v31 }
 0x666   : > { %8062 = vmatmul.bf16.gmra.mxu1 %v14977_v2  ;;  %v7121_v15 = vunpack.c.h.bf16 %v7037_v31 }
 0x667   : > { %v6792_v42 = vunpack.c.l.bf16 %v6545_v44  ;;  %v6793_v27 = vunpack.c.h.bf16 %v6545_v44  ;;  %8120 = vmatmul.bf16.gmra.mxu3 %v14977_v2  ;;  %v14994_v60 = vpack.c.b16 %v7784_v24, %v7776_v34  ;;  %v14996_v57 = vpack.c.b16 %v7785_v21, %v7777_v28 }
 0x668   : > { %v6448_v51 = vpop.f32.mrf.mxu2  ;;  %v7376_v52 = vmul.f32 0.20019531, %v7120_v0  ;;  %v7377_v49 = vmul.f32 0.20019531, %v7121_v15  ;;  %vm15000_vm12 = vcmp.gt.f32.partialorder %v7120_v0, 0.0  ;;  %vm15004_vm13 = vcmp.gt.f32.partialorder %v7121_v15, 0.0 }
 0x669   : > { %v6936_v33 = vadd.f32 %v13999_v48, %v6792_v42  ;;  %v6937_v4 = vadd.f32 %v13999_v48, %v6793_v27  ;;  %vm7549_vm15 = vmpackc.low %vm15004_vm13, %vm15000_vm12 }
 0x66a   : > { %v6497_v56 = vpop.f32.mrf.mxu3  ;;  %v7485_v17 = vpack.c.bf16 %v7377_v49, %v7376_v52 }
 0x66b   : > { %v7041_v37 = vpack.c.bf16 %v6937_v4, %v6936_v33  ;;  %v6498_v25 = vadd.f32 %v6497_v56, %v6448_v51  ;;  %v6352_v29 = vpop.f32.mrf.mxu0  ;;  %v6401_v35 = vpop.f32.mrf.mxu1 }
 0x66c   : > { %v6402_v7 = vadd.f32 %v6401_v35, %v6352_v29  ;;  %v7613_v53 = vsel %vm7549_vm15, %v7037_v31, %v7485_v17 }
 0x66d   : > { %v6549_v39 = vpack.c.bf16 %v6498_v25, %v6400_v36  ;;  %v7128_v14 = vunpack.c.l.bf16 %v7041_v37  ;;  %v7129_v8 = vunpack.c.h.bf16 %v7041_v37  ;;  %v7792_v36 = vunpack.c.l.b16 %v7613_v53 }
 0x66e   : > { %v7793_v61 = vunpack.c.h.b16 %v7613_v53 }
 0x66f   : > { %v6800_v63 = vunpack.c.l.bf16 %v6549_v39  ;;  %v6801_v55 = vunpack.c.h.bf16 %v6549_v39  ;;  %vm15008_vm0 = vcmp.gt.f32.partialorder %v7128_v14, 0.0  ;;  %vm15012_vm14 = vcmp.gt.f32.partialorder %v7129_v8, 0.0 }
 0x670   : > { %v7384_v26 = vmul.f32 0.20019531, %v7128_v14  ;;  %v7385_v59 = vmul.f32 0.20019531, %v7129_v8  ;;  %v6450_v3 = vpop.f32.mrf.mxu2  ;;  %vm7553_vm1 = vmpackc.low %vm15012_vm14, %vm15008_vm0 }
 0x671   : > { %v6944_v43 = vadd.f32 %v14014_v18, %v6800_v63  ;;  %v6945_v11 = vadd.f32 %v14014_v18, %v6801_v55 }
 0x672   : > { %v6499_v23 = vpop.f32.mrf.mxu3  ;;  %v7489_v1 = vpack.c.bf16 %v7385_v59, %v7384_v26 }
 0x673   : > { %v7045_v46 = vpack.c.bf16 %v6945_v11, %v6944_v43  ;;  %v6500_v30 = vadd.f32 %v6499_v23, %v6450_v3  ;;  %v6355_v5 = vpop.f32.mrf.mxu0  ;;  %v6404_v10 = vpop.f32.mrf.mxu1 }
 0x674   : > { %v6405_v41 = vadd.f32 %v6404_v10, %v6355_v5  ;;  %v7617_v18 = vsel %vm7553_vm1, %v7041_v37, %v7489_v1  ;;  %v8339_v5 = vpop.permute.xlu0 %8338 }
 0x675   : > { %v6553_v16 = vpack.c.bf16 %v6500_v30, %v6402_v7  ;;  %8134 = vmatmul.bf16.vlgmr.msrb.gmra.mxu0 %v14773_v13  ;;  %v7800_v32 = vunpack.c.l.b16 %v7617_v18  ;;  %v7801_v44 = vunpack.c.h.b16 %v7617_v18  ;;  %v7136_v28 = vunpack.c.l.bf16 %v7045_v46 }
 0x676   : > { %8163 = vmatmul.bf16.vlgmr.msrb.gmra.mxu1 %v14773_v13  ;;  %v7137_v21 = vunpack.c.h.bf16 %v7045_v46 }
 0x677   : > { %v6808_v24 = vunpack.c.l.bf16 %v6553_v16  ;;  %v6809_v34 = vunpack.c.h.bf16 %v6553_v16  ;;  %v15028_v42 = vpack.c.b16 %v7800_v32, %v7792_v36  ;;  %v15030_v27 = vpack.c.b16 %v7801_v44, %v7793_v61 }
 0x678   : > { %v6453_v15 = vpop.f32.mrf.mxu2  ;;  %v7392_v37 = vmul.f32 0.20019531, %v7136_v28  ;;  %v7393_v25 = vmul.f32 0.20019531, %v7137_v21  ;;  %vm7264_vm2 = vcmp.gt.f32.partialorder %v7136_v28, 0.0  ;;  %vm7265_vm3 = vcmp.gt.f32.partialorder %v7137_v21, 0.0 }
 0x679   : > { %v6952_v31 = vadd.f32 %v17292_v54, %v6808_v24  ;;  %v6953_v0 = vadd.f32 %v17292_v54, %v6809_v34  ;;  %vm7557_vm6 = vmpackc.low %vm7265_vm3, %vm7264_vm2 }
 0x67a   : > { %v6502_v33 = vpop.f32.mrf.mxu3  ;;  %v7493_v49 = vpack.c.bf16 %v7393_v25, %v7392_v37 }
 0x67b   : > { %v7049_v4 = vpack.c.bf16 %v6953_v0, %v6952_v31  ;;  %v6503_v51 = vadd.f32 %v6502_v33, %v6453_v15  ;;  %v6357_v13 = vpop.f32.mrf.mxu0  ;;  %v6406_v56 = vpop.f32.mrf.mxu1 }
 0x67c   : > { %v7621_v55 = vsel %vm7557_vm6, %v7045_v46, %v7493_v49  ;;  %v15042_v36 = vpop.permute.xlu0 %8329  ;;  %v6407_v28 = vadd.f32 %v6406_v56, %v6357_v13 }
 0x67d   : > { %v6557_v29 = vpack.c.bf16 %v6503_v51, %v6405_v41  ;;  %v7144_v35 = vunpack.c.l.bf16 %v7049_v4  ;;  %v7145_v52 = vunpack.c.h.bf16 %v7049_v4  ;;  %v7808_v58 = vunpack.c.l.b16 %v7621_v55  ;;  %v8348_v41 = vpop.permute.xlu1 %8347 }
 0x67e   : > { %v7809_v6 = vunpack.c.h.b16 %v7621_v55 }
 0x67f   : > { %vm7272_vm4 = vcmp.gt.f32.partialorder %v7144_v35, 0.0  ;;  %vm7273_vm5 = vcmp.gt.f32.partialorder %v7145_v52, 0.0  ;;  %v7400_v7 = vmul.f32 0.20019531, %v7144_v35  ;;  %v7401_v39 = vmul.f32 0.20019531, %v7145_v52 }
 0x680   : > { %v6455_v14 = vpop.f32.mrf.mxu2  ;;  %vm7561_vm7 = vmpackc.low %vm7273_vm5, %vm7272_vm4  ;;  %v6816_v44 = vunpack.c.l.bf16 %v6557_v29  ;;  %v6817_v24 = vunpack.c.h.bf16 %v6557_v29 }
 0x681   : > { %v7497_v8 = vpack.c.bf16 %v7401_v39, %v7400_v7 }
 0x682   : > { %v6504_v54 = vpop.f32.mrf.mxu3  ;;  %v6960_v31 = vadd.f32 %v17301_v62, %v6816_v44  ;;  %v6961_v0 = vadd.f32 %v17301_v62, %v6817_v24 }
 0x683   : > { %v6360_v12 = vpop.f32.mrf.mxu0  ;;  %v6409_v63 = vpop.f32.mrf.mxu1  ;;  %v7625_v48 = vsel %vm7561_vm7, %v7049_v4, %v7497_v8  ;;  %v6505_v34 = vadd.f32 %v6504_v54, %v6455_v14 }
 0x684   : > { %v7816_v17 = vunpack.c.l.b16 %v7625_v48  ;;  %v7817_v26 = vunpack.c.h.b16 %v7625_v48  ;;  %v6410_v15 = vadd.f32 %v6409_v63, %v6360_v12  ;;  %v8285_v39 = vpop.permute.xlu0 %8284  ;;  %v15050_v62 = vpack.c.bf16 %v6961_v0, %v6960_v31 }
 0x685   : > { %8139 = vmatmul.bf16.gmra.mxu0 %v14854_v45  ;;  %v8303_v61 = vpop.permute.xlu1 %8302  ;;  %v6561_v37 = vpack.c.bf16 %v6505_v34, %v6407_v28 }
 0x686   : > { %8168 = vmatmul.bf16.gmra.mxu1 %v14854_v45  ;;  %v15036_v59 = vpack.c.b16 %v7816_v17, %v7808_v58  ;;  %v15038_v43 = vpack.c.b16 %v7817_v26, %v7809_v6  ;;  %v15059_v6 = vpop.permute.xlu2 %8320 }
 0x687   : > { %v6824_v63 = vunpack.c.l.bf16 %v6561_v37  ;;  %v6825_v55 = vunpack.c.h.bf16 %v6561_v37 }
 0x688   : > { %v6458_v11 = vpop.f32.mrf.mxu2 }
 0x68a   : > { %v6507_v3 = vpop.f32.mrf.mxu3 }
 0x68b   : > { %v6362_v23 = vpop.f32.mrf.mxu0  ;;  %v6411_v1 = vpop.f32.mrf.mxu1  ;;  %v6508_v33 = vadd.f32 %v6507_v3, %v6458_v11 }
 0x68c   : > { %v6412_v54 = vadd.f32 %v6411_v1, %v6362_v23 }
 0x68d   : > { %v6565_v14 = vpack.c.bf16 %v6508_v33, %v6410_v15  ;;  %v8294_v58 = vpop.permute.xlu1 %8293 }
 0x690   : > { %v6460_v30 = vpop.f32.mrf.mxu2 }
 0x692   : > { %v6509_v46 = vpop.f32.mrf.mxu3 }
 0x693   : > { %v6365_v10 = vpop.f32.mrf.mxu0  ;;  %v6414_v53 = vpop.f32.mrf.mxu1  ;;  %v6510_v49 = vadd.f32 %v6509_v46, %v6460_v30  ;;  %v6833_v46 = vunpack.c.h.bf16 %v6565_v14 }
 0x694   : > { %v6415_v13 = vadd.f32 %v6414_v53, %v6365_v10  ;;  %v7152_v53 = vunpack.c.l.bf16 %v15050_v62 }
 0x695   : > { %8144 = vmatmul.bf16.gmra.mxu0 %v14923_v19  ;;  %v6569_v26 = vpack.c.bf16 %v6510_v49, %v6412_v54 }
 0x696   : > { %8173 = vmatmul.bf16.gmra.mxu1 %v14923_v19  ;;  %v17364_v19 = vld [vmem:[#allocation20_spill] sm:$0xff]  ;;  %v7408_v37 = vmul.f32 0.20019531, %v7152_v53  ;;  %vm15089_vm8 = vcmp.gt.f32.partialorder %v7152_v53, 0.0 }
 0x697   : > { %v8344_v51 = vperm.slane %v8339_v5, %v17364_v19  ;;  %v8353_v52 = vperm.slane %v8348_v41, %v17364_v19  ;;  %v8308_v29 = vperm.slane %v8303_v61, %v17364_v19  ;;  %v8290_v23 = vperm.slane %v8285_v39, %v17364_v19 }
 0x698   : > { %v6463_v45 = vpop.f32.mrf.mxu2  ;;  %v6832_v5 = vunpack.c.l.bf16 %v6565_v14  ;;  %v7153_v41 = vunpack.c.h.bf16 %v15050_v62  ;;  %v6840_v24 = vunpack.c.l.bf16 %v6569_v26  ;;  %v6841_v34 = vunpack.c.h.bf16 %v6569_v26  ;;  %v17365_v14 = vld [vmem:[#allocation14_spill] sm:$0xff] }
 0x699   : > { %v15053_v12 = vunpack.c.l.bf16 %v8344_v51  ;;  %v15055_v48 = vunpack.c.l.bf16 %v8353_v52  ;;  %v15061_v3 = vunpack.c.l.bf16 %v8308_v29  ;;  %v15069_v31 = vunpack.c.l.bf16 %v8290_v23 }
 0x69a   : > { %v6512_v18 = vpop.f32.mrf.mxu3  ;;  %v6977_v51 = vadd.f32 %v17310_v22, %v6833_v46  ;;  %v6985_v29 = vadd.f32 %v17309_v38, %v6841_v34  ;;  %vm15093_vm9 = vcmp.gt.f32.partialorder %v7153_v41, 0.0 }
 0x69b   : > { %v6367_v16 = vpop.f32.mrf.mxu0  ;;  %v6416_v32 = vpop.f32.mrf.mxu1  ;;  %v6513_v56 = vadd.f32 %v6512_v18, %v6463_v45  ;;  %v8299_v45 = vperm.slane %v8294_v58, %v17364_v19  ;;  %v6968_v18 = vadd.f32 %v17304_v20, %v6824_v63  ;;  %vm7565_vm10 = vmpackc.low %vm15093_vm9, %vm15089_vm8 }
 0x69c   : > { %v6417_v8 = vadd.f32 %v6416_v32, %v6367_v16  ;;  %v6969_v16 = vadd.f32 %v17304_v20, %v6825_v55  ;;  %v15085_v55 = vpop.permute.xlu2 %8311 }
 0x69d   : > { %v6573_v1 = vpack.c.bf16 %v6513_v56, %v6415_v13 }
 0x69e   : > { %v15075_v20 = vpack.c.bf16 %v6969_v16, %v6968_v18 }
 0x69f   : > { %v6848_v0 = vunpack.c.l.bf16 %v6573_v1  ;;  %v6849_v15 = vunpack.c.h.bf16 %v6573_v1 }
 0x6a0   : > { %v6465_v21 = vpop.f32.mrf.mxu2 }
 0x6a1   : > { %v6992_v39 = vadd.f32 %v17312_v9, %v6848_v0 }
 0x6a2   : > { %v6514_v4 = vpop.f32.mrf.mxu3 }
 0x6a3   : > { %v6370_v25 = vpop.f32.mrf.mxu0  ;;  %v6419_v35 = vpop.f32.mrf.mxu1  ;;  %v6515_v7 = vadd.f32 %v6514_v4, %v6465_v21  ;;  %v6976_v4 = vadd.f32 %v17310_v22, %v6832_v5  ;;  %v6993_v22 = vadd.f32 %v17312_v9, %v6849_v15  ;;  %v7160_v5 = vunpack.c.l.bf16 %v15075_v20 }
 0x6a5   : > { %8149 = vmatmul.bf16.gmra.mxu0 %v14977_v2  ;;  %v6577_v11 = vpack.c.bf16 %v6515_v7, %v6417_v8  ;;  %v6984_v7 = vadd.f32 %v17309_v38, %v6840_v24  ;;  %v15087_v58 = vpack.c.bf16 %v6977_v51, %v6976_v4  ;;  %v15111_v16 = vpack.c.bf16 %v6993_v22, %v6992_v39 }
 0x6a6   : > { %8178 = vmatmul.bf16.gmra.mxu1 %v14977_v2  ;;  %v6420_v2 = vadd.f32 %v6419_v35, %v6370_v25  ;;  %v7409_v25 = vmul.f32 0.20019531, %v7153_v41  ;;  %v15073_v35 = vunpack.c.l.bf16 %v8299_v45  ;;  %v7161_v41 = vunpack.c.h.bf16 %v15075_v20 }
 0x6a7   : > { %v6856_v28 = vunpack.c.l.bf16 %v6577_v11  ;;  %v6857_v21 = vunpack.c.h.bf16 %v6577_v11  ;;  %v15100_v46 = vpack.c.bf16 %v6985_v29, %v6984_v7  ;;  %v7168_v24 = vunpack.c.l.bf16 %v15087_v58 }
 0x6a8   : > { %v6468_v30 = vpop.f32.mrf.mxu2  ;;  %v7501_v11 = vpack.c.bf16 %v7409_v25, %v7408_v37  ;;  %v7169_v0 = vunpack.c.h.bf16 %v15087_v58  ;;  %v15124_v15 = vmul.f32 0.20019531, %v7160_v5  ;;  %v15131_v37 = vmul.f32 0.20019531, %v7161_v41  ;;  %v17370_v25 = vld [vmem:[#allocation16_spill] sm:$0xff] }
 0x6a9   : > { %v7000_v13 = vadd.f32 %v17311_v47, %v6856_v28  ;;  %v7001_v56 = vadd.f32 %v17311_v47, %v6857_v21  ;;  %v7176_v51 = vunpack.c.l.bf16 %v15100_v46  ;;  %v7184_v7 = vunpack.c.l.bf16 %v15111_v16 }
 0x6aa   : > { %v6517_v10 = vpop.f32.mrf.mxu3  ;;  %v15121_v34 = vsel %vm7565_vm10, %v15050_v62, %v7501_v11  ;;  %v7177_v29 = vunpack.c.h.bf16 %v15100_v46  ;;  %v7185_v22 = vunpack.c.h.bf16 %v15111_v16  ;;  %vm15138_vm11 = vcmp.gt.f32.partialorder %v7168_v24, 0.0 }
 0x6ab   : > { %v6518_v32 = vadd.f32 %v6517_v10, %v6468_v30  ;;  %v6372_v61 = vpop.f32.mrf.mxu0  ;;  %v6421_v44 = vpop.f32.mrf.mxu1  ;;  %v15102_v10 = vpack.c.bf16 %v7001_v56, %v7000_v13  ;;  %vm15144_vm12 = vcmp.gt.f32.partialorder %v7169_v0, 0.0  ;;  %v7424_v47 = vmul.f32 0.20019531, %v7168_v24 }
 0x6ac   : > { %v6422_v23 = vadd.f32 %v6421_v44, %v6372_v61  ;;  %vm15164_vm1 = vcmp.gt.f32.partialorder %v7160_v5, 0.0  ;;  %vm15180_vm5 = vcmp.gt.f32.partialorder %v7184_v7, 0.0  ;;  %vm15184_vm6 = vcmp.gt.f32.partialorder %v7185_v22, 0.0 }
 0x6ad   : > { %v6581_v33 = vpack.c.bf16 %v6518_v32, %v6420_v2  ;;  %v7193_v4 = vunpack.c.h.bf16 %v15102_v10  ;;  %vm15199_vm9 = vcmp.gt.f32.partialorder %v7176_v51, 0.0  ;;  %vm15203_vm10 = vcmp.gt.f32.partialorder %v7177_v29, 0.0 }
 0x6af   : > { %v6864_v52 = vunpack.c.l.bf16 %v6581_v33  ;;  %v6865_v49 = vunpack.c.h.bf16 %v6581_v33  ;;  %v7192_v33 = vunpack.c.l.bf16 %v15102_v10  ;;  %vm15160_vm15 = vcmp.gt.f32.partialorder %v7193_v4, 0.0 }
 0x6b0   : > { %v6470_v63 = vpop.f32.mrf.mxu2 }
 0x6b1   : > { %v7008_v54 = vadd.f32 %v17365_v14, %v6864_v52  ;;  %v7009_v8 = vadd.f32 %v17365_v14, %v6865_v49  ;;  %v7448_v11 = vmul.f32 0.20019531, %v7192_v33  ;;  %vm15156_vm14 = vcmp.gt.f32.partialorder %v7192_v33, 0.0 }
 0x6b2   : > { %v6519_v26 = vpop.f32.mrf.mxu3  ;;  %vm7585_vm8 = vmpackc.low %vm15160_vm15, %vm15156_vm14  ;;  %vm15218_vm14 = vcmp.gt.f32.partialorder %v7161_v41, 0.0 }
 0x6b3   : > { %v15097_v9 = vpack.c.bf16 %v7009_v8, %v7008_v54  ;;  %v6520_v1 = vadd.f32 %v6519_v26, %v6470_v63  ;;  %v8019_v2 = vpop.f32.mrf.mxu0  ;;  %v8048_v30 = vpop.f32.mrf.mxu1 }
 0x6b4   : > { %v15104_v53 = vpack.c.bf16 %v8048_v30, %v8019_v2  ;;  %v7432_v2 = vmul.f32 0.20019531, %v7176_v51 }
 0x6b5   : > { %v6585_v32 = vpack.c.bf16 %v6520_v1, %v6422_v23  ;;  %v7200_v61 = vunpack.c.l.bf16 %v15097_v9  ;;  %v7201_v44 = vunpack.c.h.bf16 %v15097_v9  ;;  %v7449_v23 = vmul.f32 0.20019531, %v7193_v4 }
 0x6b6   : > { %v7425_v1 = vmul.f32 0.20019531, %v7169_v0 }
 0x6b7   : > { %v6872_v28 = vunpack.c.l.bf16 %v6585_v32  ;;  %v6873_v21 = vunpack.c.h.bf16 %v6585_v32  ;;  %v7456_v13 = vmul.f32 0.20019531, %v7200_v61  ;;  %v7457_v56 = vmul.f32 0.20019531, %v7201_v44 }
 0x6b8   : > { %v8077_v49 = vpop.f32.mrf.mxu2  ;;  %vm15148_vm13 = vcmp.gt.f32.partialorder %v7200_v61, 0.0  ;;  %vm15152_vm0 = vcmp.gt.f32.partialorder %v7201_v44, 0.0  ;;  %v7521_v33 = vpack.c.bf16 %v7449_v23, %v7448_v11  ;;  %v8355_v11 = vunpack.c.h.bf16 %v15104_v53 }
 0x6b9   : > { %v7016_v52 = vadd.f32 %v17370_v25, %v6872_v28  ;;  %v7017_v62 = vadd.f32 %v17370_v25, %v6873_v21  ;;  %v7440_v28 = vmul.f32 0.20019531, %v7184_v7  ;;  %v7433_v21 = vmul.f32 0.20019531, %v7177_v29  ;;  %vm7589_vm4 = vmpackc.low %vm15152_vm0, %vm15148_vm13 }
 0x6ba   : > { %v8106_v39 = vpop.f32.mrf.mxu3  ;;  %vm7573_vm13 = vmpackc.low %vm15144_vm12, %vm15138_vm11  ;;  %v8427_v14 = vadd.f32 %v15069_v31, %v8355_v11 }
 0x6bb   : > { %v7081_v54 = vpack.c.bf16 %v7017_v62, %v7016_v52  ;;  %v15142_v8 = vpack.c.bf16 %v8106_v39, %v8077_v49  ;;  %v8021_v63 = vpop.f32.mrf.mxu0  ;;  %v8050_v26 = vpop.f32.mrf.mxu1  ;;  %v7525_v62 = vpack.c.bf16 %v7457_v56, %v7456_v13  ;;  %v7441_v49 = vmul.f32 0.20019531, %v7185_v22  ;;  %vm7581_vm0 = vmpackc.low %vm15184_vm6, %vm15180_vm5 }
 0x6bc   : > { %v8246_v44 = vpack.c.bf16 %v8050_v26, %v8021_v63  ;;  %v7509_v63 = vpack.c.bf16 %v7425_v1, %v7424_v47  ;;  %v8354_v26 = vunpack.c.l.bf16 %v15104_v53  ;;  %v7513_v53 = vpack.c.bf16 %v7433_v21, %v7432_v2  ;;  %vm7577_vm11 = vmpackc.low %vm15203_vm10, %vm15199_vm9 }
 0x6bd   : > { %v7208_v30 = vunpack.c.l.bf16 %v7081_v54  ;;  %v7209_v32 = vunpack.c.h.bf16 %v7081_v54  ;;  %v7653_v7 = vsel %vm7589_vm4, %v15097_v9, %v7525_v62  ;;  %v7649_v52 = vsel %vm7585_vm8, %v15102_v10, %v7521_v33  ;;  %vm7569_vm12 = vmpackc.low %vm15218_vm14, %vm15164_vm1 }
 0x6be   : > { %v8362_v1 = vunpack.c.l.bf16 %v8246_v44  ;;  %v8363_v9 = vunpack.c.h.bf16 %v8246_v44  ;;  %v7505_v10 = vpack.c.bf16 %v15131_v37, %v15124_v15  ;;  %v8426_v29 = vadd.f32 %v15069_v31, %v8354_v26 }
 0x6bf   : > { %v7464_v39 = vmul.f32 0.20019531, %v7208_v30  ;;  %v7465_v24 = vmul.f32 0.20019531, %v7209_v32  ;;  %vm15168_vm2 = vcmp.gt.f32.partialorder %v7208_v30, 0.0  ;;  %vm15172_vm3 = vcmp.gt.f32.partialorder %v7209_v32, 0.0 }
 0x6c0   : > { %v8079_v56 = vpop.f32.mrf.mxu2  ;;  %vm7593_vm7 = vmpackc.low %vm15172_vm3, %vm15168_vm2  ;;  %v7517_v30 = vpack.c.bf16 %v7441_v49, %v7440_v28  ;;  %v7637_v38 = vsel %vm7573_vm13, %v15087_v58, %v7509_v63  ;;  %v7873_v21 = vunpack.c.h.b16 %v7653_v7  ;;  %v7864_v49 = vunpack.c.l.b16 %v7649_v52 }
 0x6c1   : > { %v7529_v18 = vpack.c.bf16 %v7465_v24, %v7464_v39  ;;  %v8434_v41 = vadd.f32 %v15073_v35, %v8362_v1  ;;  %v8435_v15 = vadd.f32 %v15073_v35, %v8363_v9  ;;  %v7865_v37 = vunpack.c.h.b16 %v7649_v52 }
 0x6c2   : > { %v8108_v23 = vpop.f32.mrf.mxu3  ;;  %v7641_v39 = vsel %vm7577_vm11, %v15100_v46, %v7513_v53  ;;  %v17399_v13 = vperm.slane %v15085_v55, %v17364_v19  ;;  %v15240_v5 = vpack.c.bf16 %v8427_v14, %v8426_v29  ;;  %v7824_v46 = vunpack.c.l.b16 %v15121_v34 }
 0x6c3   : > { %v8024_v32 = vpop.f32.mrf.mxu0  ;;  %v8053_v25 = vpop.f32.mrf.mxu1  ;;  %v7657_v22 = vsel %vm7593_vm7, %v7081_v54, %v7529_v18  ;;  %v7872_v18 = vunpack.c.l.b16 %v7653_v7  ;;  %v7645_v54 = vsel %vm7581_vm0, %v15111_v16, %v7517_v30  ;;  %v8247_v26 = vpack.c.bf16 %v8108_v23, %v8079_v56 }
 0x6c4   : > { %v7880_v28 = vunpack.c.l.b16 %v7657_v22  ;;  %v8250_v45 = vpack.c.bf16 %v8053_v25, %v8024_v32  ;;  %v7881_v62 = vunpack.c.h.b16 %v7657_v22  ;;  %v7856_v44 = vunpack.c.l.b16 %v7645_v54 }
 0x6c5   : > { %v15238_v33 = vunpack.c.l.bf16 %v17399_v13  ;;  %v7857_v63 = vunpack.c.h.b16 %v7645_v54  ;;  %v7848_v32 = vunpack.c.l.b16 %v7641_v39  ;;  %v7633_v55 = vsel %vm7569_vm12, %v15075_v20, %v7505_v10 }
 0x6c6   : > { %v7944_v2 = vpack.c.b16 %v7880_v28, %v7872_v18  ;;  %v8370_v24 = vunpack.c.l.bf16 %v8250_v45  ;;  %v8371_v16 = vunpack.c.h.bf16 %v8250_v45  ;;  %v7945_v58 = vpack.c.b16 %v7881_v62, %v7873_v21 }
 0x6c7   : > { %v7936_v30 = vpack.c.b16 %v7864_v49, %v7856_v44  ;;  %v15248_v25 = vpack.c.bf16 %v8435_v15, %v8434_v41  ;;  %v7937_v22 = vpack.c.b16 %v7865_v37, %v7857_v63  ;;  %v7840_v47 = vunpack.c.l.b16 %v7637_v38 }
 0x6c8   : > { %8184 = vmatpush.bf16.msrb.mxu2 %v7944_v2  ;;  %v8082_v0 = vpop.f32.mrf.mxu2  ;;  %8213 = vmatpush.bf16.msrb.mxu3 %v7945_v58  ;;  %v7849_v17 = vunpack.c.h.b16 %v7641_v39  ;;  %v8356_v61 = vunpack.c.l.bf16 %v15142_v8  ;;  %v8357_v53 = vunpack.c.h.bf16 %v15142_v8  ;;  %v8442_v1 = vadd.f32 %v15061_v3, %v8370_v24 }
 0x6c9   : > { %v8443_v56 = vadd.f32 %v15061_v3, %v8371_v16  ;;  %v8522_v23 = vunpack.c.l.bf16 %v15240_v5  ;;  %v8523_v9 = vunpack.c.h.bf16 %v15240_v5  ;;  %v7841_v28 = vunpack.c.h.b16 %v7637_v38 }
 0x6ca   : > { %v8111_v4 = vpop.f32.mrf.mxu3  ;;  %v7832_v20 = vunpack.c.l.b16 %v7633_v55  ;;  %v8364_v52 = vunpack.c.l.bf16 %v8247_v26  ;;  %v8365_v45 = vunpack.c.h.bf16 %v8247_v26  ;;  %v7928_v51 = vpack.c.b16 %v7848_v32, %v7840_v47 }
 0x6cb   : > { %v8026_v11 = vpop.f32.mrf.mxu0  ;;  %v8055_v7 = vpop.f32.mrf.mxu1  ;;  %v8530_v10 = vunpack.c.l.bf16 %v15248_v25  ;;  %v8531_v8 = vunpack.c.h.bf16 %v15248_v25  ;;  %v7825_v29 = vunpack.c.h.b16 %v15121_v34  ;;  %v7833_v14 = vunpack.c.h.b16 %v7633_v55 }
 0x6cc   : > { %8185 = vmatpush.bf16.msrb.mxu2 %v7936_v30  ;;  %v8254_v18 = vpack.c.bf16 %v8055_v7, %v8026_v11  ;;  %8214 = vmatpush.bf16.msrb.mxu3 %v7937_v22  ;;  %v8428_v54 = vadd.f32 %v15069_v31, %v8356_v61  ;;  %v8429_v2 = vadd.f32 %v15069_v31, %v8357_v53  ;;  %v8650_v49 = vmul.f32 0.20019531, %v8522_v23 }
 0x6cd   : > { %v15261_v21 = vpack.c.bf16 %v8443_v56, %v8442_v1  ;;  %v7929_v38 = vpack.c.b16 %v7849_v17, %v7841_v28  ;;  %v8651_v41 = vmul.f32 0.20019531, %v8523_v9  ;;  %v8251_v15 = vpack.c.bf16 %v8111_v4, %v8082_v0 }
 0x6ce   : > { %v7920_v39 = vpack.c.b16 %v7832_v20, %v7824_v46  ;;  %v8436_v24 = vadd.f32 %v15073_v35, %v8364_v52  ;;  %v8437_v16 = vadd.f32 %v15073_v35, %v8365_v45  ;;  %v8378_v34 = vunpack.c.l.bf16 %v8254_v18 }
 0x6cf   : > { %v8379_v58 = vunpack.c.h.bf16 %v8254_v18  ;;  %v8658_v63 = vmul.f32 0.20019531, %v8530_v10  ;;  %v8659_v26 = vmul.f32 0.20019531, %v8531_v8  ;;  %v7921_v7 = vpack.c.b16 %v7833_v14, %v7825_v29 }
 0x6d0   : > { %8186 = vmatpush.bf16.msrb.mxu2 %v7928_v51  ;;  %v8084_v62 = vpop.f32.mrf.mxu2  ;;  %8215 = vmatpush.bf16.msrb.mxu3 %v7929_v38  ;;  %v15265_v30 = vpack.c.bf16 %v8429_v2, %v8428_v54  ;;  %v8538_v32 = vunpack.c.l.bf16 %v15261_v21  ;;  %v8539_v0 = vunpack.c.h.bf16 %v15261_v21  ;;  %vm15269_vm15 = vcmp.gt.f32.partialorder %v8522_v23, 0.0 }
 0x6d1   : > { %v8372_v46 = vunpack.c.l.bf16 %v8251_v15  ;;  %v8373_v55 = vunpack.c.h.bf16 %v8251_v15  ;;  %vm15273_vm1 = vcmp.gt.f32.partialorder %v8523_v9, 0.0  ;;  %v8714_v47 = vpack.c.bf16 %v8651_v41, %v8650_v49 }
 0x6d2   : > { %v8113_v37 = vpop.f32.mrf.mxu3  ;;  %v15277_v17 = vpack.c.bf16 %v8437_v16, %v8436_v24  ;;  %v8450_v61 = vadd.f32 %v15238_v33, %v8378_v34  ;;  %v8451_v53 = vadd.f32 %v15238_v33, %v8379_v58  ;;  %vm15281_vm2 = vcmp.gt.f32.partialorder %v8530_v10, 0.0  ;;  %vm8746_vm4 = vmpackc.low %vm15273_vm1, %vm15269_vm15 }
 0x6d3   : > { %v8029_v44 = vpop.f32.mrf.mxu0  ;;  %v8058_v13 = vpop.f32.mrf.mxu1  ;;  %vm15285_vm3 = vcmp.gt.f32.partialorder %v8531_v8, 0.0  ;;  %v8718_v9 = vpack.c.bf16 %v8659_v26, %v8658_v63  ;;  %v17408_v20 = vperm.slane %v15042_v36, %v17364_v19  ;;  %v17409_v45 = vperm.slane %v15059_v6, %v17364_v19 }
 0x6d4   : > { %v8258_v11 = vpack.c.bf16 %v8058_v13, %v8029_v44  ;;  %8187 = vmatpush.bf16.msrb.mxu2 %v7920_v39  ;;  %8216 = vmatpush.bf16.msrb.mxu3 %v7921_v7  ;;  %v8666_v51 = vmul.f32 0.20019531, %v8538_v32  ;;  %v8667_v10 = vmul.f32 0.20019531, %v8539_v0  ;;  %v16303_v8 = vunpack.c.l.bf16 %v15265_v30  ;;  %vm8750_vm5 = vmpackc.low %vm15285_vm3, %vm15281_vm2 }
 0x6d5   : > { %v15292_v52 = vunpack.c.l.bf16 %v17408_v20  ;;  %v15297_v18 = vunpack.c.l.bf16 %v17409_v45  ;;  %v16302_v14 = vunpack.c.h.bf16 %v15265_v30  ;;  %v8444_v54 = vadd.f32 %v15061_v3, %v8372_v46 }
 0x6d6   : > { %v8386_v56 = vunpack.c.l.bf16 %v8258_v11  ;;  %v8387_v23 = vunpack.c.h.bf16 %v8258_v11  ;;  %v8445_v36 = vadd.f32 %v15061_v3, %v8373_v55  ;;  %v16305_v19 = vunpack.c.l.bf16 %v15277_v17 }
 0x6d7   : > { %v15309_v6 = vpack.c.bf16 %v8451_v53, %v8450_v61  ;;  %v15317_v41 = vsel %vm8746_vm4, %v15240_v5, %v8714_v47  ;;  %v16304_v15 = vunpack.c.h.bf16 %v15277_v17  ;;  %vm15326_vm6 = vcmp.gt.f32.partialorder %v8538_v32, 0.0 }
 0x6d8   : > { %8188 = vmatpush.bf16.msrb.mxu2 %v15036_v59  ;;  %v8087_v29 = vpop.f32.mrf.mxu2  ;;  %v8255_v59 = vpack.c.bf16 %v8113_v37, %v8084_v62  ;;  %8217 = vmatpush.bf16.msrb.mxu3 %v15038_v43  ;;  %v8458_v39 = vadd.f32 %v15297_v18, %v8386_v56  ;;  %v8459_v24 = vadd.f32 %v15297_v18, %v8387_v23  ;;  %vm15330_vm7 = vcmp.gt.f32.partialorder %v8539_v0, 0.0 }
 0x6d9   : > { %v15323_v62 = vsel %vm8750_vm5, %v15248_v25, %v8718_v9  ;;  %v8722_v5 = vpack.c.bf16 %v8667_v10, %v8666_v51  ;;  %v15336_v34 = vmul.f32 0.20019531, %v16303_v8  ;;  %v15340_v25 = vmul.f32 0.20019531, %v16302_v14  ;;  %vm8754_vm8 = vmpackc.low %vm15330_vm7, %vm15326_vm6 }
 0x6da   : > { %v8116_v2 = vpop.f32.mrf.mxu3  ;;  %v15342_v58 = vpack.c.bf16 %v8445_v36, %v8444_v54  ;;  %v8546_v44 = vunpack.c.l.bf16 %v15309_v6  ;;  %v8547_v13 = vunpack.c.h.bf16 %v15309_v6  ;;  %v8380_v63 = vunpack.c.l.bf16 %v8255_v59 }
 0x6db   : > { %v8031_v38 = vpop.f32.mrf.mxu0  ;;  %v8060_v49 = vpop.f32.mrf.mxu1  ;;  %v8381_v26 = vunpack.c.h.bf16 %v8255_v59  ;;  %v15350_v11 = vmul.f32 0.20019531, %v16305_v19  ;;  %v15352_v7 = vpack.c.bf16 %v8459_v24, %v8458_v39  ;;  %v15362_v4 = vmul.f32 0.20019531, %v16304_v15 }
 0x6dc   : > { %v8262_v43 = vpack.c.bf16 %v8060_v49, %v8031_v38  ;;  %8189 = vmatpush.bf16.msrb.mxu2 %v15028_v42  ;;  %8218 = vmatpush.bf16.msrb.mxu3 %v15030_v27  ;;  %v8259_v27 = vpack.c.bf16 %v8116_v2, %v8087_v29  ;;  %v15366_v22 = vsel %vm8754_vm8, %v15261_v21, %v8722_v5  ;;  %v16307_v47 = vunpack.c.l.bf16 %v15342_v58 }
 0x6dd   : > { %v16306_v61 = vunpack.c.h.bf16 %v15342_v58  ;;  %v8674_v23 = vmul.f32 0.20019531, %v8546_v44  ;;  %v8675_v28 = vmul.f32 0.20019531, %v8547_v13  ;;  %v8452_v9 = vadd.f32 %v15238_v33, %v8380_v63 }
 0x6de   : > { %v8394_v46 = vunpack.c.l.bf16 %v8262_v43  ;;  %v8395_v53 = vunpack.c.h.bf16 %v8262_v43  ;;  %v8453_v20 = vadd.f32 %v15238_v33, %v8381_v26  ;;  %v8554_v21 = vunpack.c.l.bf16 %v15352_v7 }
 0x6df   : > { %v8555_v51 = vunpack.c.h.bf16 %v15352_v7  ;;  %v8388_v54 = vunpack.c.l.bf16 %v8259_v27  ;;  %v8389_v36 = vunpack.c.h.bf16 %v8259_v27  ;;  %vm15384_vm9 = vcmp.gt.f32.partialorder %v8546_v44, 0.0  ;;  %v10151_v27 = vld [vmem:[%s16042_s5] sm:$0xff] }
 0x6e0   : > { %8190 = vmatpush.bf16.msrb.mxu2 %v14994_v60  ;;  %v8089_v55 = vpop.f32.mrf.mxu2  ;;  %8219 = vmatpush.bf16.msrb.mxu3 %v14996_v57  ;;  %v8466_v2 = vadd.f32 %v15292_v52, %v8394_v46  ;;  %v8467_v38 = vadd.f32 %v15292_v52, %v8395_v53  ;;  %v15381_v24 = vpack.c.bf16 %v8453_v20, %v8452_v9  ;;  %vm15388_vm10 = vcmp.gt.f32.partialorder %v8547_v13, 0.0 }
 0x6e1   : > { %v8682_v16 = vmul.f32 0.20019531, %v8554_v21  ;;  %v8683_v5 = vmul.f32 0.20019531, %v8555_v51  ;;  %v15403_v44 = vmul.f32 0.20019531, %v16306_v61  ;;  %v8460_v13 = vadd.f32 %v15297_v18, %v8388_v54  ;;  %vm8758_vm13 = vmpackc.low %vm15388_vm10, %vm15384_vm9 }
 0x6e2   : > { %v8118_v1 = vpop.f32.mrf.mxu3  ;;  %v8461_v46 = vadd.f32 %v15297_v18, %v8389_v36  ;;  %v15407_v53 = vpack.c.bf16 %v8467_v38, %v8466_v2  ;;  %v8548_v20 = vunpack.c.l.bf16 %v15381_v24  ;;  %vm15416_vm0 = vcmp.gt.f32.partialorder %v8554_v21, 0.0 }
 0x6e3   : > { %v8034_v60 = vpop.f32.mrf.mxu0  ;;  %v8063_v45 = vpop.f32.mrf.mxu1  ;;  %v8263_v57 = vpack.c.bf16 %v8118_v1, %v8089_v55  ;;  %vm15424_vm14 = vcmp.gt.f32.partialorder %v8555_v51, 0.0 }
 0x6e4   : > { %v8266_v10 = vpack.c.bf16 %v8063_v45, %v8034_v60  ;;  %8191 = vmatpush.bf16.msrb.mxu2 %v14946_v40  ;;  %8220 = vmatpush.bf16.msrb.mxu3 %v14948_v50  ;;  %v8726_v40 = vpack.c.bf16 %v8675_v28, %v8674_v23  ;;  %v15399_v50 = vmul.f32 0.20019531, %v16307_v47  ;;  %vm8762_vm11 = vmpackc.low %vm15424_vm14, %vm15416_vm0 }
 0x6e5   : > { %v8396_v1 = vunpack.c.l.bf16 %v8263_v57  ;;  %v8397_v23 = vunpack.c.h.bf16 %v8263_v57 }
 0x6e6   : > { %v8402_v49 = vunpack.c.l.bf16 %v8266_v10  ;;  %v8403_v39 = vunpack.c.h.bf16 %v8266_v10  ;;  %v15421_v36 = vsel %vm8758_vm13, %v15309_v6, %v8726_v40 }
 0x6e7   : > { %8192 = vmatmul.bf16.vlgmr.msrb.gmra.mxu2 %v10151_v27  ;;  %8221 = vmatmul.bf16.vlgmr.msrb.gmra.mxu3 %v10151_v27  ;;  %v8468_v6 = vadd.f32 %v15292_v52, %v8396_v1  ;;  %v8469_v40 = vadd.f32 %v15292_v52, %v8397_v23 }
 0x6e8   : > { %v8474_v63 = vadd.f32 %v15053_v12, %v8402_v49  ;;  %v8475_v26 = vadd.f32 %v15053_v12, %v8403_v39  ;;  %v8092_v55 = vpop.f32.mrf.mxu2  ;;  %v8730_v49 = vpack.c.bf16 %v8683_v5, %v8682_v16  ;;  %v15428_v39 = vpack.c.bf16 %v8461_v46, %v8460_v13 }
 0x6e9   : > { %v16308_v5 = vunpack.c.h.bf16 %v15381_v24 }
 0x6ea   : > { %v15409_v28 = vpack.c.bf16 %v8475_v26, %v8474_v63  ;;  %v8121_v9 = vpop.f32.mrf.mxu3  ;;  %v8562_v63 = vunpack.c.l.bf16 %v15407_v53  ;;  %v8563_v26 = vunpack.c.h.bf16 %v15407_v53  ;;  %v8557_v57 = vunpack.c.h.bf16 %v15428_v39 }
 0x6eb   : > { %v8267_v60 = vpack.c.bf16 %v8121_v9, %v8092_v55  ;;  %v8036_v45 = vpop.f32.mrf.mxu0  ;;  %v8065_v10 = vpop.f32.mrf.mxu1 }
 0x6ec   : > { %v8570_v2 = vunpack.c.l.bf16 %v15409_v28  ;;  %v8270_v38 = vpack.c.bf16 %v8065_v10, %v8036_v45  ;;  %v8571_v43 = vunpack.c.h.bf16 %v15409_v28  ;;  %vm15465_vm15 = vcmp.gt.f32.partialorder %v8562_v63, 0.0 }
 0x6ed   : > { %v8404_v37 = vunpack.c.l.bf16 %v8267_v60  ;;  %v8405_v21 = vunpack.c.h.bf16 %v8267_v60  ;;  %vm15477_vm2 = vcmp.gt.f32.partialorder %v8563_v26, 0.0 }
 0x6ee   : > { %v8410_v55 = vunpack.c.l.bf16 %v8270_v38  ;;  %v8411_v16 = vunpack.c.h.bf16 %v8270_v38  ;;  %v8698_v13 = vmul.f32 0.20019531, %v8570_v2  ;;  %v8699_v60 = vmul.f32 0.20019531, %v8571_v43  ;;  %vm8766_vm6 = vmpackc.low %vm15477_vm2, %vm15465_vm15 }
 0x6ef   : > { %v8476_v51 = vadd.f32 %v15053_v12, %v8404_v37  ;;  %v8477_v27 = vadd.f32 %v15053_v12, %v8405_v21  ;;  %v15450_v38 = vmul.f32 0.20019531, %v8548_v20  ;;  %v8556_v37 = vunpack.c.l.bf16 %v15428_v39 }
 0x6f0   : > { %v8482_v1 = vadd.f32 %v15055_v48, %v8410_v55  ;;  %v8483_v23 = vadd.f32 %v15055_v48, %v8411_v16  ;;  %v8094_v10 = vpop.f32.mrf.mxu2  ;;  %v8690_v21 = vmul.f32 0.20019531, %v8562_v63  ;;  %v15456_v55 = vpack.c.bf16 %v8469_v40, %v8468_v6 }
 0x6f1   : > { %v15440_v45 = vpack.c.bf16 %v8477_v27, %v8476_v51  ;;  %v15454_v51 = vsel %vm8762_vm11, %v15352_v7, %v8730_v49  ;;  %v8691_v27 = vmul.f32 0.20019531, %v8563_v26  ;;  %vm15459_vm12 = vcmp.gt.f32.partialorder %v8570_v2, 0.0 }
 0x6f2   : > { %v8123_v56 = vpop.f32.mrf.mxu3  ;;  %v8518_v16 = vpack.c.bf16 %v8483_v23, %v8482_v1  ;;  %vm15469_vm1 = vcmp.gt.f32.partialorder %v8571_v43, 0.0  ;;  %v8738_v6 = vpack.c.bf16 %v8699_v60, %v8698_v13  ;;  %v8565_v63 = vunpack.c.h.bf16 %v15456_v55 }
 0x6f3   : > { %v8271_v0 = vpack.c.bf16 %v8123_v56, %v8094_v10  ;;  %v8135_v54 = vpop.f32.mrf.mxu0  ;;  %v8164_v32 = vpop.f32.mrf.mxu1  ;;  %v8572_v56 = vunpack.c.l.bf16 %v15440_v45  ;;  %v8573_v49 = vunpack.c.h.bf16 %v15440_v45  ;;  %v8734_v43 = vpack.c.bf16 %v8691_v27, %v8690_v21  ;;  %vm8770_vm5 = vmpackc.low %vm15469_vm1, %vm15459_vm12 }
 0x6f4   : > { %v15463_v14 = vpack.c.bf16 %v8164_v32, %v8135_v54  ;;  %v8578_v40 = vunpack.c.l.bf16 %v8518_v16  ;;  %v8579_v2 = vunpack.c.h.bf16 %v8518_v16  ;;  %v8564_v32 = vunpack.c.l.bf16 %v15456_v55 }
 0x6f5   : > { %v8412_v1 = vunpack.c.l.bf16 %v8271_v0  ;;  %v8413_v23 = vunpack.c.h.bf16 %v8271_v0  ;;  %v10152_v0 = vld [vmem:[%s16042_s5 + $0x8] sm:$0xff]  ;;  %v15498_v26 = vmul.f32 0.20019531, %v16308_v5  ;;  %v8701_v59 = vmul.f32 0.20019531, %v8573_v49 }
 0x6f6   : > { %vm15481_vm3 = vcmp.gt.f32.partialorder %v8578_v40, 0.0  ;;  %vm15485_vm4 = vcmp.gt.f32.partialorder %v8579_v2, 0.0  ;;  %v8706_v13 = vmul.f32 0.20019531, %v8578_v40  ;;  %v8707_v60 = vmul.f32 0.20019531, %v8579_v2 }
 0x6f7   : > { %8197 = vmatmul.bf16.gmra.mxu2 %v10152_v0  ;;  %v8484_v21 = vadd.f32 %v15055_v48, %v8412_v1  ;;  %v8485_v27 = vadd.f32 %v15055_v48, %v8413_v23  ;;  %v8802_v40 = vsel %vm8770_vm5, %v15409_v28, %v8738_v6  ;;  %v8700_v2 = vmul.f32 0.20019531, %v8572_v56  ;;  %8226 = vmatmul.bf16.gmra.mxu3 %v10152_v0  ;;  %vm8774_vm7 = vmpackc.low %vm15485_vm4, %vm15481_vm3 }
 0x6f8   : > { %v8742_v46 = vpack.c.bf16 %v8707_v60, %v8706_v13  ;;  %v8881_v42 = vunpack.c.l.b16 %v15454_v51  ;;  %v8684_v7 = vmul.f32 0.20019531, %v8556_v37  ;;  %v8685_v1 = vmul.f32 0.20019531, %v8557_v57 }
 0x6f9   : > { %v8519_v23 = vpack.c.bf16 %v8485_v27, %v8484_v21  ;;  %v8798_v8 = vsel %vm8766_vm6, %v15407_v53, %v8734_v43  ;;  %v8692_v6 = vmul.f32 0.20019531, %v8564_v32  ;;  %v8693_v10 = vmul.f32 0.20019531, %v8565_v63  ;;  %v10153_v53 = vld [vmem:[%s16042_s5 + $0x10] sm:$0xff] }
 0x6fa   : > { %v8806_v13 = vsel %vm8774_vm7, %v8518_v16, %v8742_v46  ;;  %v8897_v60 = vunpack.c.l.b16 %v8802_v40  ;;  %vm15521_vm8 = vcmp.gt.f32.partialorder %v8572_v56, 0.0  ;;  %v8898_v15 = vunpack.c.h.b16 %v8802_v40 }
 0x6fb   : > { %v15512_v29 = vpop.f32.mrf.mxu0  ;;  %v15514_v28 = vpop.f32.mrf.mxu1  ;;  %v8580_v21 = vunpack.c.l.bf16 %v8519_v23  ;;  %v8581_v27 = vunpack.c.h.bf16 %v8519_v23  ;;  %vm15525_vm9 = vcmp.gt.f32.partialorder %v8573_v49, 0.0  ;;  %v8905_v54 = vunpack.c.l.b16 %v8806_v13 }
 0x6fc   : > { %v8906_v9 = vunpack.c.h.b16 %v8806_v13  ;;  %v8739_v61 = vpack.c.bf16 %v8701_v59, %v8700_v2  ;;  %v8889_v43 = vunpack.c.l.b16 %v8798_v8  ;;  %vm15537_vm0 = vcmp.gt.f32.partialorder %v8564_v32, 0.0  ;;  %vm8771_vm11 = vmpackc.low %vm15525_vm9, %vm15521_vm8 }
 0x6fd   : > { %vm15529_vm10 = vcmp.gt.f32.partialorder %v8580_v21, 0.0  ;;  %vm15533_vm13 = vcmp.gt.f32.partialorder %v8581_v27, 0.0  ;;  %v8708_v16 = vmul.f32 0.20019531, %v8580_v21  ;;  %v8709_v56 = vmul.f32 0.20019531, %v8581_v27 }
 0x6fe   : > { %vm15541_vm14 = vcmp.gt.f32.partialorder %v8565_v63, 0.0  ;;  %v8735_v59 = vpack.c.bf16 %v8693_v10, %v8692_v6  ;;  %v8937_v2 = vpack.c.b16 %v8905_v54, %v8897_v60  ;;  %v8938_v13 = vpack.c.b16 %v8906_v9, %v8898_v15  ;;  %vm8775_vm12 = vmpackc.low %vm15533_vm13, %vm15529_vm10 }
 0x6ff   : > { %v8890_v47 = vunpack.c.h.b16 %v8798_v8  ;;  %v8743_v5 = vpack.c.bf16 %v8709_v56, %v8708_v16  ;;  %v8803_v32 = vsel %vm8771_vm11, %v15440_v45, %v8739_v61  ;;  %vm15556_vm15 = vcmp.gt.f32.partialorder %v8556_v37, 0.0  ;;  %vm8767_vm2 = vmpackc.low %vm15541_vm14, %vm15537_vm0 }
 0x700   : > { %vm15562_vm1 = vcmp.gt.f32.partialorder %v8557_v57, 0.0  ;;  %v8731_v19 = vpack.c.bf16 %v8685_v1, %v8684_v7  ;;  %8985 = vmatpush.bf16.msra.mxu0 %v8937_v2  ;;  %8999 = vmatpush.bf16.msra.mxu1 %v8938_v13  ;;  %v8882_v61 = vunpack.c.h.b16 %v15454_v51  ;;  %vm15577_vm3 = vcmp.gt.f32.partialorder %v8548_v20, 0.0 }
 0x701   : > { %v8807_v45 = vsel %vm8775_vm12, %v8519_v23, %v8743_v5  ;;  %v17452_v57 = vunpack.c.h.bf16 %v15381_v24  ;;  %v8929_v1 = vpack.c.b16 %v8889_v43, %v8881_v42  ;;  %v8799_v5 = vsel %vm8767_vm2, %v15456_v55, %v8735_v59  ;;  %vm8763_vm5 = vmpackc.low %vm15562_vm1, %vm15556_vm15 }
 0x702   : > { %v8907_v51 = vunpack.c.l.b16 %v8807_v45  ;;  %v8727_v23 = vpack.c.bf16 %v15498_v26, %v15450_v38  ;;  %v8930_v10 = vpack.c.b16 %v8890_v47, %v8882_v61  ;;  %v8899_v60 = vunpack.c.l.b16 %v8803_v32 }
 0x703   : > { %v15566_v8 = vpop.f32.mrf.mxu0  ;;  %v15568_v6 = vpop.f32.mrf.mxu1  ;;  %vm15583_vm4 = vcmp.gt.f32.partialorder %v17452_v57, 0.0  ;;  %v8900_v0 = vunpack.c.h.b16 %v8803_v32  ;;  %v8908_v20 = vunpack.c.h.b16 %v8807_v45  ;;  %v8795_v21 = vsel %vm8763_vm5, %v15428_v39, %v8731_v19 }
 0x704   : > { %v17455_v27 = vunpack.c.l.bf16 %v15342_v58  ;;  %v17458_v55 = vunpack.c.h.bf16 %v15342_v58  ;;  %v8723_v38 = vpack.c.bf16 %v15403_v44, %v15399_v50  ;;  %8986 = vmatpush.bf16.msra.mxu0 %v8929_v1  ;;  %9000 = vmatpush.bf16.msra.mxu1 %v8930_v10  ;;  %v8939_v26 = vpack.c.b16 %v8907_v51, %v8899_v60  ;;  %vm8759_vm8 = vmpackc.low %vm15583_vm4, %vm15577_vm3 }
 0x705   : > { %v8940_v54 = vpack.c.b16 %v8908_v20, %v8900_v0  ;;  %v8891_v39 = vunpack.c.l.b16 %v8799_v5  ;;  %v8892_v9 = vunpack.c.h.b16 %v8799_v5  ;;  %v8791_v46 = vsel %vm8759_vm8, %v15381_v24, %v8727_v23 }
 0x706   : > { %vm15597_vm6 = vcmp.gt.f32.partialorder %v17455_v27, 0.0  ;;  %vm15603_vm7 = vcmp.gt.f32.partialorder %v17458_v55, 0.0  ;;  %v17461_v50 = vunpack.c.l.bf16 %v15277_v17  ;;  %v17464_v16 = vunpack.c.h.bf16 %v15277_v17  ;;  %9013 = vmatpush.bf16.msra.mxu2 %v8939_v26 }
 0x707   : > { %8202 = vmatmul.bf16.gmra.mxu2 %v10153_v53  ;;  %v8719_v43 = vpack.c.bf16 %v15362_v4, %v15350_v11  ;;  %9027 = vmatpush.bf16.msra.mxu3 %v8940_v54  ;;  %v17467_v40 = vunpack.c.l.b16 %v15366_v22  ;;  %v17468_v24 = vunpack.c.l.b16 %v15421_v36  ;;  %v17469_v59 = vunpack.c.h.b16 %v15366_v22  ;;  %vm8755_vm13 = vmpackc.low %vm15603_vm7, %vm15597_vm6 }
 0x708   : > { %vm15619_vm9 = vcmp.gt.f32.partialorder %v17461_v50, 0.0  ;;  %vm15625_vm10 = vcmp.gt.f32.partialorder %v17464_v16, 0.0  ;;  %v17470_v2 = vunpack.c.h.b16 %v15421_v36  ;;  %v8883_v32 = vunpack.c.l.b16 %v8795_v21  ;;  %8231 = vmatmul.bf16.gmra.mxu3 %v10153_v53 }
 0x709   : > { %v8921_v49 = vpack.c.b16 %v17468_v24, %v17467_v40  ;;  %v8884_v63 = vunpack.c.h.b16 %v8795_v21  ;;  %v8787_v11 = vsel %vm8755_vm13, %v15342_v58, %v8723_v38  ;;  %v17471_v4 = vunpack.c.l.bf16 %v15265_v30  ;;  %vm8751_vm11 = vmpackc.low %vm15625_vm10, %vm15619_vm9 }
 0x70a   : > { %v8922_v13 = vpack.c.b16 %v17470_v2, %v17469_v59  ;;  %v17474_v22 = vunpack.c.h.bf16 %v15265_v30  ;;  %v8715_v19 = vpack.c.bf16 %v15340_v25, %v15336_v34  ;;  %v8931_v61 = vpack.c.b16 %v8891_v39, %v8883_v32 }
 0x70b   : > { %vm15646_vm0 = vcmp.gt.f32.partialorder %v17471_v4, 0.0  ;;  %8987 = vmatpush.bf16.msra.mxu0 %v8921_v49  ;;  %v8932_v45 = vpack.c.b16 %v8892_v9, %v8884_v63  ;;  %v8142_v58 = vpop.f32.mrf.mxu0  ;;  %v8171_v37 = vpop.f32.mrf.mxu1  ;;  %v8875_v57 = vunpack.c.l.b16 %v8791_v46  ;;  %v8876_v7 = vunpack.c.h.b16 %v8791_v46 }
 0x70c   : > { %vm15652_vm14 = vcmp.gt.f32.partialorder %v17474_v22, 0.0  ;;  %9001 = vmatpush.bf16.msra.mxu1 %v8922_v13  ;;  %v8783_v1 = vsel %vm8751_vm11, %v15277_v17, %v8719_v43  ;;  %9014 = vmatpush.bf16.msra.mxu2 %v8931_v61  ;;  %v17477_v51 = vunpack.c.l.b16 %v15317_v41  ;;  %v17478_v34 = vunpack.c.l.b16 %v15323_v62 }
 0x70d   : > { %9028 = vmatpush.bf16.msra.mxu3 %v8932_v45  ;;  %v17479_v5 = vunpack.c.h.b16 %v15317_v41  ;;  %v17480_v23 = vunpack.c.h.b16 %v15323_v62  ;;  %v8867_v60 = vunpack.c.l.b16 %v8787_v11  ;;  %v8868_v0 = vunpack.c.h.b16 %v8787_v11  ;;  %vm8747_vm12 = vmpackc.low %vm15652_vm14, %vm15646_vm0 }
 0x70e   : > { %v8913_v25 = vpack.c.b16 %v17478_v34, %v17477_v51  ;;  %v8779_v17 = vsel %vm8747_vm12, %v15265_v30, %v8715_v19  ;;  %v8859_v27 = vunpack.c.l.b16 %v8783_v1  ;;  %v8860_v42 = vunpack.c.h.b16 %v8783_v1  ;;  %v10154_v30 = vld [vmem:[%s16042_s5 + $0x18] sm:$0xff] }
 0x70f   : > { %v8914_v10 = vpack.c.b16 %v17480_v23, %v17479_v5  ;;  %v8923_v20 = vpack.c.b16 %v8875_v57, %v8867_v60  ;;  %v8924_v21 = vpack.c.b16 %v8876_v7, %v8868_v0  ;;  %v8851_v41 = vunpack.c.l.b16 %v8779_v17 }
 0x710   : > { %8988 = vmatpush.bf16.msra.mxu0 %v8913_v25  ;;  %v8852_v62 = vunpack.c.h.b16 %v8779_v17  ;;  %v8256_v53 = vpack.c.bf16 %v8171_v37, %v8142_v58  ;;  %v8358_v50 = vunpack.c.l.bf16 %v15463_v14  ;;  %v8359_v44 = vunpack.c.h.bf16 %v15463_v14 }
 0x711   : > { %9002 = vmatpush.bf16.msra.mxu1 %v8914_v10  ;;  %9015 = vmatpush.bf16.msra.mxu2 %v8923_v20  ;;  %v8915_v55 = vpack.c.b16 %v8859_v27, %v8851_v41  ;;  %v8248_v16 = vpack.c.bf16 %v15514_v28, %v15512_v29  ;;  %v8252_v40 = vpack.c.bf16 %v15568_v6, %v15566_v8 }
 0x712   : > { %9029 = vmatpush.bf16.msra.mxu3 %v8924_v21  ;;  %v8916_v47 = vpack.c.b16 %v8860_v42, %v8852_v62  ;;  %v8382_v24 = vunpack.c.l.bf16 %v8256_v53  ;;  %v8383_v49 = vunpack.c.h.bf16 %v8256_v53  ;;  %v8430_v11 = vadd.f32 %v15069_v31, %v8358_v50 }
 0x713   : > { %v8145_v38 = vpop.f32.mrf.mxu0  ;;  %v8174_v26 = vpop.f32.mrf.mxu1  ;;  %v8431_v4 = vadd.f32 %v15069_v31, %v8359_v44  ;;  %v8366_v14 = vunpack.c.l.bf16 %v8248_v16  ;;  %v8367_v15 = vunpack.c.h.bf16 %v8248_v16  ;;  %v8374_v8 = vunpack.c.l.bf16 %v8252_v40 }
 0x714   : > { %v8260_v46 = vpack.c.bf16 %v8174_v26, %v8145_v38  ;;  %v8375_v6 = vunpack.c.h.bf16 %v8252_v40  ;;  %v8454_v19 = vadd.f32 %v15238_v33, %v8382_v24  ;;  %v8455_v61 = vadd.f32 %v15238_v33, %v8383_v49 }
 0x715   : > { %9016 = vmatpush.bf16.msra.mxu2 %v8915_v55  ;;  %v8438_v7 = vadd.f32 %v15073_v35, %v8366_v14  ;;  %v8439_v1 = vadd.f32 %v15073_v35, %v8367_v15  ;;  %v15699_v25 = vpack.c.bf16 %v8431_v4, %v8430_v11  ;;  %v8446_v5 = vadd.f32 %v15061_v3, %v8374_v8 }
 0x716   : > { %9030 = vmatpush.bf16.msra.mxu3 %v8916_v47  ;;  %v8390_v13 = vunpack.c.l.bf16 %v8260_v46  ;;  %v8391_v32 = vunpack.c.h.bf16 %v8260_v46  ;;  %v8447_v23 = vadd.f32 %v15061_v3, %v8375_v6  ;;  %v15703_v0 = vpack.c.bf16 %v8455_v61, %v8454_v19 }
 0x717   : > { %8207 = vmatmul.bf16.gmra.mxu2 %v10154_v30  ;;  %v15707_v42 = vpack.c.bf16 %v8439_v1, %v8438_v7  ;;  %v8526_v55 = vunpack.c.l.bf16 %v15699_v25 }
 0x718   : > { %8236 = vmatmul.bf16.gmra.mxu3 %v10154_v30  ;;  %v8462_v45 = vadd.f32 %v15297_v18, %v8390_v13  ;;  %v8463_v58 = vadd.f32 %v15297_v18, %v8391_v32  ;;  %v15712_v47 = vpack.c.bf16 %v8447_v23, %v8446_v5  ;;  %v8527_v30 = vunpack.c.h.bf16 %v15699_v25 }
 0x719   : > { %v8534_v16 = vunpack.c.l.bf16 %v15707_v42  ;;  %v8535_v24 = vunpack.c.h.bf16 %v15707_v42 }
 0x71a   : > { %v15705_v17 = vpack.c.bf16 %v8463_v58, %v8462_v45  ;;  %v8542_v49 = vunpack.c.l.bf16 %v15712_v47  ;;  %v8654_v58 = vmul.f32 0.20019531, %v8526_v55 }
 0x71b   : > { %v8147_v54 = vpop.f32.mrf.mxu0  ;;  %v8176_v39 = vpop.f32.mrf.mxu1 }
 0x71c   : > { %v8264_v9 = vpack.c.bf16 %v8176_v39, %v8147_v54  ;;  %v8550_v54 = vunpack.c.l.bf16 %v15703_v0  ;;  %v8558_v39 = vunpack.c.l.bf16 %v15705_v17  ;;  %vm15787_vm11 = vcmp.gt.f32.partialorder %v8542_v49, 0.0 }
 0x71e   : > { %v8398_v56 = vunpack.c.l.bf16 %v8264_v9  ;;  %v8399_v43 = vunpack.c.h.bf16 %v8264_v9  ;;  %v8559_v9 = vunpack.c.h.bf16 %v15705_v17  ;;  %v8678_v13 = vmul.f32 0.20019531, %v8550_v54 }
 0x71f   : > { %v8686_v32 = vmul.f32 0.20019531, %v8558_v39  ;;  %vm15755_vm7 = vcmp.gt.f32.partialorder %v8558_v39, 0.0  ;;  %vm15773_vm13 = vcmp.gt.f32.partialorder %v8550_v54, 0.0 }
 0x720   : > { %v8470_v29 = vadd.f32 %v15292_v52, %v8398_v56  ;;  %v8471_v28 = vadd.f32 %v15292_v52, %v8399_v43  ;;  %v8551_v56 = vunpack.c.h.bf16 %v15703_v0  ;;  %vm15759_vm8 = vcmp.gt.f32.partialorder %v8559_v9, 0.0 }
 0x721   : > { %vm8764_vm14 = vmpackc.low %vm15759_vm8, %vm15755_vm7  ;;  %vm8977_vm8 = vcmask 523264  }
 0x722   : > { %v15697_v51 = vpack.c.bf16 %v8471_v28, %v8470_v29  ;;  %v8679_v28 = vmul.f32 0.20019531, %v8551_v56  ;;  %vm15778_vm0 = vcmp.gt.f32.partialorder %v8551_v56, 0.0 }
 0x723   : > { %v8150_v59 = vpop.f32.mrf.mxu0  ;;  %v8179_v2 = vpop.f32.mrf.mxu1 }
 0x724   : > { %v8268_v63 = vpack.c.bf16 %v8179_v2, %v8150_v59  ;;  %v8566_v41 = vunpack.c.l.bf16 %v15697_v51  ;;  %v8567_v62 = vunpack.c.h.bf16 %v15697_v51  ;;  %v8543_v59 = vunpack.c.h.bf16 %v15712_v47 }
 0x726   : > { %v8406_v22 = vunpack.c.l.bf16 %v8268_v63  ;;  %v8407_v36 = vunpack.c.h.bf16 %v8268_v63  ;;  %v8694_v43 = vmul.f32 0.20019531, %v8566_v41  ;;  %v8695_v40 = vmul.f32 0.20019531, %v8567_v62 }
 0x727   : > { %v8687_v63 = vmul.f32 0.20019531, %v8559_v9  ;;  %vm15733_vm2 = vcmp.gt.f32.partialorder %v8566_v41, 0.0  ;;  %vm15737_vm3 = vcmp.gt.f32.partialorder %v8567_v62, 0.0  ;;  %vm15791_vm12 = vcmp.gt.f32.partialorder %v8543_v59, 0.0 }
 0x728   : > { %v8478_v37 = vadd.f32 %v15053_v12, %v8406_v22  ;;  %v8479_v57 = vadd.f32 %v15053_v12, %v8407_v36  ;;  %v8736_v8 = vpack.c.bf16 %v8695_v40, %v8694_v43  ;;  %vm8768_vm9 = vmpackc.low %vm15737_vm3, %vm15733_vm2  ;;  %vm15804_vm2 = vcmp.gt.f32.partialorder %v8535_v24, 0.0 }
 0x729   : > { %vm8756_vm3 = vmpackc.low %vm15791_vm12, %vm15787_vm11 }
 0x72a   : > { %v8516_v34 = vpack.c.bf16 %v8479_v57, %v8478_v37  ;;  %v8670_v37 = vmul.f32 0.20019531, %v8542_v49  ;;  %v8671_v57 = vmul.f32 0.20019531, %v8543_v59  ;;  %v8800_v41 = vsel %vm8768_vm9, %v15697_v51, %v8736_v8 }
 0x72b   : > { %v8152_v10 = vpop.f32.mrf.mxu0  ;;  %v8181_v60 = vpop.f32.mrf.mxu1  ;;  %v8893_v43 = vunpack.c.l.b16 %v8800_v41  ;;  %v8894_v40 = vunpack.c.h.b16 %v8800_v41 }
 0x72c   : > { %v8272_v20 = vpack.c.bf16 %v8181_v60, %v8152_v10  ;;  %v8574_v21 = vunpack.c.l.bf16 %v8516_v34  ;;  %v8575_v27 = vunpack.c.h.bf16 %v8516_v34  ;;  %v8732_v10 = vpack.c.bf16 %v8687_v63, %v8686_v32 }
 0x72d   : > { %v8655_v60 = vmul.f32 0.20019531, %v8527_v30 }
 0x72e   : > { %v8414_v38 = vunpack.c.l.bf16 %v8272_v20  ;;  %v8415_v26 = vunpack.c.h.bf16 %v8272_v20  ;;  %v8702_v53 = vmul.f32 0.20019531, %v8574_v21  ;;  %v8703_v46 = vmul.f32 0.20019531, %v8575_v27 }
 0x72f   : > { %vm15725_vm15 = vcmp.gt.f32.partialorder %v8574_v21, 0.0  ;;  %vm15729_vm1 = vcmp.gt.f32.partialorder %v8575_v27, 0.0  ;;  %v8662_v20 = vmul.f32 0.20019531, %v8534_v16  ;;  %v8663_v21 = vmul.f32 0.20019531, %v8535_v24 }
 0x730   : > { %v8486_v50 = vadd.f32 %v15055_v48, %v8414_v38  ;;  %v8487_v44 = vadd.f32 %v15055_v48, %v8415_v26  ;;  %v8740_v29 = vpack.c.bf16 %v8703_v46, %v8702_v53  ;;  %vm8772_vm6 = vmpackc.low %vm15729_vm1, %vm15725_vm15  ;;  %v8728_v38 = vpack.c.bf16 %v8679_v28, %v8678_v13 }
 0x731   : > { %v8796_v54 = vsel %vm8764_vm14, %v15705_v17, %v8732_v10  ;;  %vm8760_vm15 = vmpackc.low %vm15778_vm0, %vm15773_vm13  ;;  %vm15800_vm1 = vcmp.gt.f32.partialorder %v8534_v16, 0.0  ;;  %v8716_v16 = vpack.c.bf16 %v8655_v60, %v8654_v58 }
 0x732   : > { %v8520_v2 = vpack.c.bf16 %v8487_v44, %v8486_v50  ;;  %v8804_v5 = vsel %vm8772_vm6, %v8516_v34, %v8740_v29  ;;  %v8724_v50 = vpack.c.bf16 %v8671_v57, %v8670_v37  ;;  %v8792_v17 = vsel %vm8760_vm15, %v15703_v0, %v8728_v38  ;;  %vm8752_vm6 = vmpackc.low %vm15804_vm2, %vm15800_vm1 }
 0x733   : > { %v8901_v26 = vunpack.c.l.b16 %v8804_v5  ;;  %v8902_v9 = vunpack.c.h.b16 %v8804_v5  ;;  %v8885_v13 = vunpack.c.l.b16 %v8796_v54  ;;  %v8886_v32 = vunpack.c.h.b16 %v8796_v54 }
 0x734   : > { %v8582_v14 = vunpack.c.l.bf16 %v8520_v2  ;;  %v8583_v15 = vunpack.c.h.bf16 %v8520_v2  ;;  %v8788_v0 = vsel %vm8756_vm3, %v15712_v47, %v8724_v50  ;;  %v8877_v11 = vunpack.c.l.b16 %v8792_v17 }
 0x735   : > { %v8933_v24 = vpack.c.b16 %v8893_v43, %v8885_v13  ;;  %v8934_v63 = vpack.c.b16 %v8894_v40, %v8886_v32  ;;  %v8878_v4 = vunpack.c.h.b16 %v8792_v17  ;;  %v8869_v47 = vunpack.c.l.b16 %v8788_v0 }
 0x736   : > { %vm15741_vm4 = vcmp.gt.f32.partialorder %v8582_v14, 0.0  ;;  %vm15745_vm5 = vcmp.gt.f32.partialorder %v8583_v15, 0.0  ;;  %v8710_v61 = vmul.f32 0.20019531, %v8582_v14  ;;  %v8711_v45 = vmul.f32 0.20019531, %v8583_v15 }
 0x737   : > { %vm8776_vm10 = vmpackc.low %vm15745_vm5, %vm15741_vm4  ;;  %vm8590_vm4 = vcmp.gt.f32.partialorder %v8526_v55, 0.0  ;;  %vm8591_vm5 = vcmp.gt.f32.partialorder %v8527_v30, 0.0  ;;  %v8870_v15 = vunpack.c.h.b16 %v8788_v0  ;;  %v8925_v30 = vpack.c.b16 %v8877_v11, %v8869_v47 }
 0x738   : > { %v8744_v1 = vpack.c.bf16 %v8711_v45, %v8710_v61  ;;  %vm8748_vm7 = vmpackc.low %vm8591_vm5, %vm8590_vm4 }
 0x739   : > { %v8780_v55 = vsel %vm8748_vm7, %v15699_v25, %v8716_v16  ;;  %v8926_v29 = vpack.c.b16 %v8878_v4, %v8870_v15 }
 0x73a   : > { %v8808_v27 = vsel %vm8776_vm10, %v8520_v2, %v8744_v1  ;;  %v8720_v2 = vpack.c.bf16 %v8663_v21, %v8662_v20  ;;  %v8853_v36 = vunpack.c.l.b16 %v8780_v55  ;;  %v8854_v8 = vunpack.c.h.b16 %v8780_v55 }
 0x73b   : > { %v8909_v39 = vunpack.c.l.b16 %v8808_v27  ;;  %v8910_v53 = vunpack.c.h.b16 %v8808_v27 }
 0x73c   : > { %v8784_v14 = vsel %vm8752_vm6, %v15707_v42, %v8720_v2 }
 0x73d   : > { %v8941_v44 = vpack.c.b16 %v8909_v39, %v8901_v26  ;;  %v8942_v56 = vpack.c.b16 %v8910_v53, %v8902_v9  ;;  %v8861_v28 = vunpack.c.l.b16 %v8784_v14  ;;  %v8862_v22 = vunpack.c.h.b16 %v8784_v14 }
 0x73f   : > { %9041 = vmatpush.bf16.msrb.mxu0 %v8941_v44  ;;  %9055 = vmatpush.bf16.msrb.mxu1 %v8942_v56  ;;  %v8917_v6 = vpack.c.b16 %v8861_v28, %v8853_v36  ;;  %v8918_v19 = vpack.c.b16 %v8862_v22, %v8854_v8 }
 0x743   : > { %9042 = vmatpush.bf16.msrb.mxu0 %v8933_v24  ;;  %9056 = vmatpush.bf16.msrb.mxu1 %v8934_v63 }
 0x747   : > { %9043 = vmatpush.bf16.msrb.mxu0 %v8925_v30  ;;  %9057 = vmatpush.bf16.msrb.mxu1 %v8926_v29 }
 0x74b   : > { %9044 = vmatpush.bf16.msrb.mxu0 %v8917_v6  ;;  %9058 = vmatpush.bf16.msrb.mxu1 %v8918_v19  ;;  %v9927_v6 = vld [vmem:[%s16044_s7] sm:$0xf] }
 0x76a   : > { %v8193_v42 = vpop.f32.mrf.mxu2  ;;  %v8222_v61 = vpop.f32.mrf.mxu3 }
 0x76b   : > { %v8245_v45 = vpack.c.bf16 %v8222_v61, %v8193_v42 }
 0x76d   : > { %v8360_v27 = vunpack.c.l.bf16 %v8245_v45  ;;  %v8361_v41 = vunpack.c.h.bf16 %v8245_v45 }
 0x76f   : > { %v8432_v56 = vadd.f32 %v15069_v31, %v8360_v27  ;;  %v8433_v43 = vadd.f32 %v15069_v31, %v8361_v41 }
 0x771   : > { %v15833_v14 = vpack.c.bf16 %v8433_v43, %v8432_v56 }
 0x772   : > { %v8195_v58 = vpop.f32.mrf.mxu2  ;;  %v8224_v37 = vpop.f32.mrf.mxu3 }
 0x773   : > { %v8249_v62 = vpack.c.bf16 %v8224_v37, %v8195_v58  ;;  %v8528_v36 = vunpack.c.l.bf16 %v15833_v14  ;;  %v8529_v19 = vunpack.c.h.bf16 %v15833_v14 }
 0x775   : > { %v8368_v40 = vunpack.c.l.bf16 %v8249_v62  ;;  %v8369_v17 = vunpack.c.h.bf16 %v8249_v62 }
 0x777   : > { %v8441_v15 = vadd.f32 %v15073_v35, %v8369_v17 }
 0x77a   : > { %v8198_v57 = vpop.f32.mrf.mxu2  ;;  %v8227_v7 = vpop.f32.mrf.mxu3 }
 0x77b   : > { %v8253_v9 = vpack.c.bf16 %v8227_v7, %v8198_v57 }
 0x77d   : > { %v8376_v32 = vunpack.c.l.bf16 %v8253_v9  ;;  %v8377_v0 = vunpack.c.h.bf16 %v8253_v9 }
 0x77f   : > { %v8449_v29 = vadd.f32 %v15061_v3, %v8377_v0 }
 0x782   : > { %v8200_v25 = vpop.f32.mrf.mxu2  ;;  %v8229_v1 = vpop.f32.mrf.mxu3 }
 0x783   : > { %v8257_v21 = vpack.c.bf16 %v8229_v1, %v8200_v25 }
 0x785   : > { %v8384_v53 = vunpack.c.l.bf16 %v8257_v21  ;;  %v8385_v54 = vunpack.c.h.bf16 %v8257_v21 }
 0x787   : > { %v8456_v16 = vadd.f32 %v15238_v33, %v8384_v53  ;;  %v8457_v24 = vadd.f32 %v15238_v33, %v8385_v54  ;;  %v8448_v33 = vadd.f32 %v15061_v3, %v8376_v32  ;;  %v10121_v3 = vld [vmem:[%s16044_s7] sm:$0x70]  ;;  %v8656_v32 = vmul.f32 0.20019531, %v8528_v36 }
 0x789   : > { %v15861_v58 = vpack.c.bf16 %v8449_v29, %v8448_v33 }
 0x78a   : > { %v8203_v5 = vpop.f32.mrf.mxu2 }
 0x78b   : > { %v8232_v23 = vpop.f32.mrf.mxu3 }
 0x78c   : > { %v8261_v34 = vpack.c.bf16 %v8232_v23, %v8203_v5  ;;  %v15866_v5 = vor.u32 %v10121_v3, %v9927_v6 }
 0x78e   : > { %v8392_v51 = vunpack.c.l.bf16 %v8261_v34  ;;  %v8393_v50 = vunpack.c.h.bf16 %v8261_v34  ;;  %9931 = vmatmul.msk.bf16.vlgmr.msra.gmra.mxu2 %vm8977_vm8, %v15866_v5  ;;  %9932 = vmatmul.msk.bf16.vlgmr.msra.gmra.mxu3 %vm8977_vm8, %v15866_v5 }
 0x78f   : > { %9929 = vmatmul.msk.bf16.vlgmr.msra.gmra.mxu0 %vm8977_vm8, %v15866_v5  ;;  %9930 = vmatmul.msk.bf16.vlgmr.msra.gmra.mxu1 %vm8977_vm8, %v15866_v5 }
 0x790   : > { %v8464_v63 = vadd.f32 %v15297_v18, %v8392_v51  ;;  %v8465_v11 = vadd.f32 %v15297_v18, %v8393_v50  ;;  %v15843_v18 = vpack.c.bf16 %v8457_v24, %v8456_v16 }
 0x792   : > { %v8205_v10 = vpop.f32.mrf.mxu2  ;;  %v15845_v22 = vpack.c.bf16 %v8465_v11, %v8464_v63  ;;  %v8552_v37 = vunpack.c.l.bf16 %v15843_v18  ;;  %v8553_v34 = vunpack.c.h.bf16 %v15843_v18 }
 0x793   : > { %v8234_v60 = vpop.f32.mrf.mxu3 }
 0x794   : > { %v8265_v20 = vpack.c.bf16 %v8234_v60, %v8205_v10  ;;  %v8560_v25 = vunpack.c.l.bf16 %v15845_v22  ;;  %v8561_v1 = vunpack.c.h.bf16 %v15845_v22  ;;  %v8681_v56 = vmul.f32 0.20019531, %v8553_v34 }
 0x795   : > { %vm15934_vm4 = vcmp.gt.f32.partialorder %v8552_v37, 0.0  ;;  %vm15939_vm5 = vcmp.gt.f32.partialorder %v8553_v34, 0.0 }
 0x796   : > { %v8400_v26 = vunpack.c.l.bf16 %v8265_v20  ;;  %v8401_v39 = vunpack.c.h.bf16 %v8265_v20  ;;  %v8688_v9 = vmul.f32 0.20019531, %v8560_v25  ;;  %v8689_v53 = vmul.f32 0.20019531, %v8561_v1 }
 0x797   : > { %vm15913_vm15 = vcmp.gt.f32.partialorder %v8560_v25, 0.0  ;;  %vm15918_vm1 = vcmp.gt.f32.partialorder %v8561_v1, 0.0 }
 0x798   : > { %v8472_v49 = vadd.f32 %v15292_v52, %v8400_v26  ;;  %v8473_v59 = vadd.f32 %v15292_v52, %v8401_v39  ;;  %v8440_v52 = vadd.f32 %v15073_v35, %v8368_v40  ;;  %v8545_v26 = vunpack.c.h.bf16 %v15861_v58  ;;  %vm8765_vm6 = vmpackc.low %vm15918_vm1, %vm15913_vm15 }
 0x79a   : > { %v8208_v38 = vpop.f32.mrf.mxu2  ;;  %v15837_v55 = vpack.c.bf16 %v8473_v59, %v8472_v49  ;;  %v15857_v42 = vpack.c.bf16 %v8441_v15, %v8440_v52  ;;  %v8673_v16 = vmul.f32 0.20019531, %v8545_v26 }
 0x79b   : > { %v8237_v46 = vpop.f32.mrf.mxu3 }
 0x79c   : > { %v8269_v44 = vpack.c.bf16 %v8237_v46, %v8208_v38  ;;  %v8568_v61 = vunpack.c.l.bf16 %v15837_v55  ;;  %v8569_v45 = vunpack.c.h.bf16 %v15837_v55  ;;  %v8536_v21 = vunpack.c.l.bf16 %v15857_v42 }
 0x79d   : > { %v8537_v62 = vunpack.c.h.bf16 %v15857_v42  ;;  %v8544_v38 = vunpack.c.l.bf16 %v15861_v58 }
 0x79e   : > { %v8408_v2 = vunpack.c.l.bf16 %v8269_v44  ;;  %v8409_v13 = vunpack.c.h.bf16 %v8269_v44  ;;  %v8696_v27 = vmul.f32 0.20019531, %v8568_v61  ;;  %v8697_v41 = vmul.f32 0.20019531, %v8569_v45 }
 0x79f   : > { %vm15891_vm13 = vcmp.gt.f32.partialorder %v8568_v61, 0.0  ;;  %vm15895_vm0 = vcmp.gt.f32.partialorder %v8569_v45, 0.0  ;;  %v8672_v0 = vmul.f32 0.20019531, %v8544_v38  ;;  %v8664_v52 = vmul.f32 0.20019531, %v8536_v21  ;;  %9933 = vmatmul.msk.bf16.vlgmr.msrb.gmra.mxu0 %vm8977_vm8, %v15866_v5  ;;  %9934 = vmatmul.msk.bf16.vlgmr.msrb.gmra.mxu1 %vm8977_vm8, %v15866_v5 }
 0x7a0   : > { %v8480_v31 = vadd.f32 %v15053_v12, %v8408_v2  ;;  %v8481_v4 = vadd.f32 %v15053_v12, %v8409_v13  ;;  %v8737_v17 = vpack.c.bf16 %v8697_v41, %v8696_v27  ;;  %vm8769_vm2 = vmpackc.low %vm15895_vm0, %vm15891_vm13  ;;  %v8665_v15 = vmul.f32 0.20019531, %v8537_v62 }
 0x7a1   : > { %vm15948_vm7 = vcmp.gt.f32.partialorder %v8544_v38, 0.0  ;;  %vm15963_vm13 = vcmp.gt.f32.partialorder %v8536_v21, 0.0  ;;  %vm15967_vm0 = vcmp.gt.f32.partialorder %v8537_v62, 0.0 }
 0x7a2   : > { %v8210_v47 = vpop.f32.mrf.mxu2  ;;  %v15839_v30 = vpack.c.bf16 %v8481_v4, %v8480_v31  ;;  %v8733_v4 = vpack.c.bf16 %v8689_v53, %v8688_v9  ;;  %v8801_v29 = vsel %vm8769_vm2, %v15837_v55, %v8737_v17  ;;  %vm8753_vm15 = vmpackc.low %vm15967_vm0, %vm15963_vm13 }
 0x7a3   : > { %v8239_v28 = vpop.f32.mrf.mxu3  ;;  %v8895_v25 = vunpack.c.l.b16 %v8801_v29  ;;  %v8896_v1 = vunpack.c.h.b16 %v8801_v29 }
 0x7a4   : > { %v8273_v12 = vpack.c.bf16 %v8239_v28, %v8210_v47  ;;  %v8576_v8 = vunpack.c.l.bf16 %v15839_v30  ;;  %v8577_v35 = vunpack.c.h.bf16 %v15839_v30  ;;  %v8657_v47 = vmul.f32 0.20019531, %v8529_v19 }
 0x7a5   : > { %v8797_v61 = vsel %vm8765_vm6, %v15845_v22, %v8733_v4 }
 0x7a6   : > { %v8416_v57 = vunpack.c.l.bf16 %v8273_v12  ;;  %v8417_v7 = vunpack.c.h.bf16 %v8273_v12  ;;  %v8704_v23 = vmul.f32 0.20019531, %v8576_v8  ;;  %v8705_v10 = vmul.f32 0.20019531, %v8577_v35 }
 0x7a7   : > { %vm15883_vm9 = vcmp.gt.f32.partialorder %v8576_v8, 0.0  ;;  %vm15887_vm10 = vcmp.gt.f32.partialorder %v8577_v35, 0.0  ;;  %v8888_v34 = vunpack.c.h.b16 %v8797_v61  ;;  %v8717_v41 = vpack.c.bf16 %v8657_v47, %v8656_v32 }
 0x7a8   : > { %v8488_v60 = vadd.f32 %v15055_v48, %v8416_v57  ;;  %v8489_v20 = vadd.f32 %v15055_v48, %v8417_v7  ;;  %v8680_v48 = vmul.f32 0.20019531, %v8552_v37  ;;  %v8741_v44 = vpack.c.bf16 %v8705_v10, %v8704_v23  ;;  %vm8773_vm12 = vmpackc.low %vm15887_vm10, %vm15883_vm9 }
 0x7a9   : > { %vm15952_vm9 = vcmp.gt.f32.partialorder %v8545_v26, 0.0  ;;  %v8725_v37 = vpack.c.bf16 %v8673_v16, %v8672_v0  ;;  %vm8761_vm10 = vmpackc.low %vm15939_vm5, %vm15934_vm4  ;;  %v8936_v38 = vpack.c.b16 %v8896_v1, %v8888_v34 }
 0x7aa   : > { %v8521_v39 = vpack.c.bf16 %v8489_v20, %v8488_v60  ;;  %v8805_v11 = vsel %vm8773_vm12, %v15839_v30, %v8741_v44  ;;  %v8729_v12 = vpack.c.bf16 %v8681_v56, %v8680_v48  ;;  %v8721_v60 = vpack.c.bf16 %v8665_v15, %v8664_v52 }
 0x7ab   : > { %v8903_v8 = vunpack.c.l.b16 %v8805_v11  ;;  %v8904_v6 = vunpack.c.h.b16 %v8805_v11  ;;  %v8887_v20 = vunpack.c.l.b16 %v8797_v61  ;;  %vm15984_vm12 = vcmp.gt.f32.partialorder %v8529_v19, 0.0 }
 0x7ac   : > { %v8584_v51 = vunpack.c.l.bf16 %v8521_v39  ;;  %v8585_v50 = vunpack.c.h.bf16 %v8521_v39  ;;  %v8793_v22 = vsel %vm8761_vm10, %v15843_v18, %v8729_v12 }
 0x7ad   : > { %v8935_v62 = vpack.c.b16 %v8895_v25, %v8887_v20  ;;  %v8879_v26 = vunpack.c.l.b16 %v8793_v22 }
 0x7ae   : > { %vm15899_vm14 = vcmp.gt.f32.partialorder %v8584_v51, 0.0  ;;  %vm15903_vm11 = vcmp.gt.f32.partialorder %v8585_v50, 0.0  ;;  %v8712_v2 = vmul.f32 0.20019531, %v8584_v51  ;;  %v8713_v13 = vmul.f32 0.20019531, %v8585_v50 }
 0x7af   : > { %vm8777_vm3 = vmpackc.low %vm15903_vm11, %vm15899_vm14  ;;  %vm15978_vm11 = vcmp.gt.f32.partialorder %v8528_v36, 0.0  ;;  %v8785_v36 = vsel %vm8753_vm15, %v15857_v42, %v8721_v60 }
 0x7b0   : > { %v8745_v63 = vpack.c.bf16 %v8713_v13, %v8712_v2  ;;  %vm8757_vm14 = vmpackc.low %vm15952_vm9, %vm15948_vm7  ;;  %v8863_v53 = vunpack.c.l.b16 %v8785_v36  ;;  %v8864_v54 = vunpack.c.h.b16 %v8785_v36 }
 0x7b1   : > { %v8789_v18 = vsel %vm8757_vm14, %v15861_v58, %v8725_v37  ;;  %vm8749_vm1 = vmpackc.low %vm15984_vm12, %vm15978_vm11 }
 0x7b2   : > { %v8809_v33 = vsel %vm8777_vm3, %v8521_v39, %v8745_v63  ;;  %v8880_v39 = vunpack.c.h.b16 %v8793_v22  ;;  %v8871_v19 = vunpack.c.l.b16 %v8789_v18  ;;  %v8872_v58 = vunpack.c.h.b16 %v8789_v18 }
 0x7b3   : > { %v8911_v35 = vunpack.c.l.b16 %v8809_v33  ;;  %v8912_v3 = vunpack.c.h.b16 %v8809_v33  ;;  %v8781_v48 = vsel %vm8749_vm1, %v15833_v14, %v8717_v41 }
 0x7b4   : > { %v8927_v9 = vpack.c.b16 %v8879_v26, %v8871_v19  ;;  %v8928_v42 = vpack.c.b16 %v8880_v39, %v8872_v58  ;;  %v8855_v46 = vunpack.c.l.b16 %v8781_v48  ;;  %v8856_v51 = vunpack.c.h.b16 %v8781_v48 }
 0x7b5   : > { %v8943_v57 = vpack.c.b16 %v8911_v35, %v8903_v8  ;;  %v8944_v7 = vpack.c.b16 %v8912_v3, %v8904_v6 }
 0x7b6   : > { %v8919_v50 = vpack.c.b16 %v8863_v53, %v8855_v46  ;;  %v8920_v44 = vpack.c.b16 %v8864_v54, %v8856_v51 }
 0x7b7   : > { %9069 = vmatpush.bf16.msrb.mxu2 %v8943_v57  ;;  %9083 = vmatpush.bf16.msrb.mxu3 %v8944_v7 }
 0x7bb   : > { %9070 = vmatpush.bf16.msrb.mxu2 %v8935_v62  ;;  %9084 = vmatpush.bf16.msrb.mxu3 %v8936_v38 }
 0x7bf   : > { %9071 = vmatpush.bf16.msrb.mxu2 %v8927_v9  ;;  %9085 = vmatpush.bf16.msrb.mxu3 %v8928_v42 }
 0x7c3   : > { %9072 = vmatpush.bf16.msrb.mxu2 %v8919_v50  ;;  %9086 = vmatpush.bf16.msrb.mxu3 %v8920_v44 }
 0x7c6   : > { %9935 = vmatmul.msk.bf16.vlgmr.msrb.gmra.mxu2 %vm8977_vm8, %v15866_v5  ;;  %9936 = vmatmul.msk.bf16.vlgmr.msrb.gmra.mxu3 %vm8977_vm8, %v15866_v5 }
 0x80c   : > { %v8990_v14 = vpop.f32.mrf.mxu0  ;;  %v9004_v56 = vpop.f32.mrf.mxu1 }
 0x80d   : > { %9093 = vst [vmem:[%s16010_s26] sm:$0xff] %v8990_v14 }
 0x80e   : > { %9094 = vst [vmem:[%s16010_s26 + $0x8] sm:$0xff] %v9004_v56 }
 0x811   : > { %v9018_v5 = vpop.f32.mrf.mxu2  ;;  %v9032_v43 = vpop.f32.mrf.mxu3 }
 0x812   : > { %9095 = vst [vmem:[%s16010_s26 + $0x10] sm:$0xff] %v9018_v5 }
 0x813   : > { %9096 = vst [vmem:[%s16010_s26 + $0x18] sm:$0xff] %v9032_v43 }
 0x814   : > { %v8992_v40 = vpop.f32.mrf.mxu0  ;;  %v9006_v17 = vpop.f32.mrf.mxu1 }
 0x815   : > { %9101 = vst [vmem:[%s16010_s26 + $0x40] sm:$0x1f] %v8992_v40 }
 0x816   : > { %9102 = vst [vmem:[%s16010_s26 + $0x48] sm:$0x1f] %v9006_v17 }
 0x819   : > { %v9020_v49 = vpop.f32.mrf.mxu2  ;;  %v9034_v59 = vpop.f32.mrf.mxu3 }
 0x81a   : > { %9103 = vst [vmem:[%s16010_s26 + $0x50] sm:$0x1f] %v9020_v49 }
 0x81b   : > { %9104 = vst [vmem:[%s16010_s26 + $0x58] sm:$0x1f] %v9034_v59 }
 0x81c   : > { %v9046_v2 = vpop.f32.mrf.mxu0  ;;  %v9060_v13 = vpop.f32.mrf.mxu1 }
 0x81d   : > { %9097 = vst [vmem:[%s16010_s26 + $0x20] sm:$0xff] %v9046_v2 }
 0x81e   : > { %9098 = vst [vmem:[%s16010_s26 + $0x28] sm:$0xff] %v9060_v13 }
 0x824   : > { %v9048_v32 = vpop.f32.mrf.mxu0  ;;  %v9062_v0 = vpop.f32.mrf.mxu1 }
 0x825   : > { %9105 = vst [vmem:[%s16010_s26 + $0x60] sm:$0x1f] %v9048_v32 }
 0x826   : > { %9106 = vst [vmem:[%s16010_s26 + $0x68] sm:$0x1f] %v9062_v0 }
 0x849   : > { %v9074_v16 = vpop.f32.mrf.mxu2  ;;  %v9088_v24 = vpop.f32.mrf.mxu3 }
 0x84a   : > { %9099 = vst [vmem:[%s16010_s26 + $0x30] sm:$0xff] %v9074_v16 }
 0x84b   : > { %9100 = vst [vmem:[%s16010_s26 + $0x38] sm:$0xff] %v9088_v24 }
 0x851   : > { %v9076_v63 = vpop.f32.mrf.mxu2  ;;  %v9090_v11 = vpop.f32.mrf.mxu3 }
 0x852   : > { %9107 = vst [vmem:[%s16010_s26 + $0x70] sm:$0x1f] %v9076_v63 }
 0x853   : > { %9108 = vst [vmem:[%s16010_s26 + $0x78] sm:$0x1f] %v9090_v11 }
 0x854 PF: > { %s18_s29 = sadd.s32 1, %s10177_s29   ;;  %s17541_s27 = smov %s10173_s28 }
 0x855   : > { %p15_p5 = scmp.ge.s32.totalorder %s18_s29, 4   ;;  %s17542_s28 = smov %s17544_s30 }
 0x857   :  { %17 = sbr.rel (!%p15_p5) target bundleno = 2 (0x2), region = 82 }

</bundles_post_ra>
